<compile_context>
chip_gen: v7x
topology: tpu7x:2x2x1
jax: 0.10.0
libtpu: 0.0.40
codegen_flags: <defaults>
</compile_context>

<pallas_src>
import functools

import jax
import jax.numpy as jnp
from jax import lax
from jax.experimental import pallas as pl
from jax.experimental.pallas import tpu as pltpu

LANE = 128
NEG_BIG = -1e30  # bias for padded (non-existent) classes; keep in f32


def csa_fused_kernel(xp_ref, w1_ref, b1_ref, w2_ref, b2_ref, bankp_ref,
                     out_ref, *, mask_alpha, num_classes, batch, seq,
                     apply_csa):
    """Fused CSA forward for the whole batch (single program, all VMEM).

    xp_ref:    [B*S, CP]   zero-padded channels (CP=128)
    w1_ref:    [CP, HP]    b1_ref: [1, HP]
    w2_ref:    [HP, NCP]   b2_ref: [1, NCP]  (padded classes biased to -1e30)
    bankp_ref: [NC, S, HP] per-class mean confidence set projected through W1
    out_ref:   [B, NCP]
    """
    # ---- backbone pass 1 (batched, lane-dense) ------------------------------
    xw1 = jnp.dot(xp_ref[...], w1_ref[...],
                  preferred_element_type=jnp.float32)            # [B*S, HP]
    hp = xw1.shape[-1]
    b1 = b1_ref[...]
    h1 = jnp.maximum(xw1 + b1, 0.0)
    pooled1 = jnp.mean(h1.reshape(batch, seq, hp), axis=1)       # [B, HP]
    logits1 = (jnp.dot(pooled1, w2_ref[...],
                       preferred_element_type=jnp.float32)
               + b2_ref[...])                                    # [B, NCP]

    if not apply_csa:
        out_ref[...] = logits1
        return

    # ---- argmax over classes (first max, NaN-safe clamp) --------------------
    ncp = logits1.shape[-1]
    ids = lax.broadcasted_iota(jnp.int32, logits1.shape, 1)
    maxv = jnp.max(logits1, axis=1, keepdims=True)
    idx = jnp.min(jnp.where(logits1 == maxv, ids, ncp), axis=1, keepdims=True)
    idx = jnp.clip(idx, 0, num_classes - 1)                      # [B, 1] int32

    # ---- CSA pass: x@W1 + alpha * (x_att@W1)[y] via one-hot weighted sum ----
    x2 = xw1.reshape(batch, seq, hp)                             # pre-ReLU proj
    for c in range(num_classes):                                 # NC=10, static
        w_c = (idx == c).astype(jnp.float32)[:, :, None] * mask_alpha  # [B,1,1]
        x2 = x2 + w_c * bankp_ref[c]                             # bcast [S,HP]
    h2 = jnp.maximum(x2 + b1, 0.0)                               # [B, S, HP]
    pooled2 = jnp.mean(h2, axis=1)                               # [B, HP]
    out_ref[...] = (jnp.dot(pooled2, w2_ref[...],
                            preferred_element_type=jnp.float32)
                    + b2_ref[...])                               # [B, NCP]


class CSANetworkPallas:
    """JAX/Pallas re-implementation of CSANetwork's forward pass."""

    def __init__(self, num_classes=10, conf_per_class=4, use_conf=True,
                 mask_alpha=0.3, in_channels=4, hidden=32, spatial=16,
                 key=jax.random.PRNGKey(0)):
        self.num_classes = num_classes
        self.conf_per_class = conf_per_class
        self.test_CSA = use_conf
        self.mask_alpha = float(mask_alpha)
        self.in_channels = in_channels
        self.spatial = spatial
        s = spatial * spatial
        self.seq = s

        k1, k2, k3 = jax.random.split(key, 3)
        # Synthetic backbone parameters (deterministic init).
        # TODO(synk): the PyTorch module takes backbone=None; a 1x1-conv ->
        # ReLU -> global-avg-pool -> linear head stands in for it.
        self.w1 = (jax.random.normal(k1, (in_channels, hidden), jnp.float32)
                   * (1.0 / jnp.sqrt(in_channels)))
        self.b1 = jnp.zeros((1, hidden), jnp.float32)
        self.w2 = (jax.random.normal(k2, (hidden, num_classes), jnp.float32)
                   * (1.0 / jnp.sqrt(hidden)))
        self.b2 = jnp.zeros((1, num_classes), jnp.float32)
        # NFCBank-style confidence bank: per-class stored inputs [NC, K, S, C].
        self.bank = jax.random.normal(
            k3, (num_classes, conf_per_class, s, in_channels), jnp.float32)

        # Lane-dense padded parameters (channels 4->128, hidden 32->128,
        # classes 10->128).  Zero padding keeps real lanes exact; padded class
        # logits are biased to -1e30 so they never win the argmax (f32 only).
        self.cp = max(LANE, in_channels)
        self.hp = max(LANE, hidden)
        self.ncp = max(LANE, num_classes)
        self.w1_p = (jnp.zeros((self.cp, self.hp), jnp.float32)
                     .at[:in_channels, :hidden].set(self.w1))
        self.b1_p = (jnp.zeros((1, self.hp), jnp.float32)
                     .at[:, :hidden].set(self.b1))
        self.w2_p = (jnp.zeros((self.hp, self.ncp), jnp.float32)
                     .at[:hidden, :num_classes].set(self.w2))
        self.b2_p = (jnp.full((1, self.ncp), NEG_BIG, jnp.float32)
                     .at[:, :num_classes].set(self.b2))
        # Linearity rewrite: per-class K-mean of the bank projected through W1.
        # TODO(synk): NFCBank.batch_sample_set's (random) sampling policy is
        # unspecified; deterministically use the whole per-class set.
        x_att = jnp.mean(self.bank, axis=1)                      # [NC, S, C]
        self.bank_proj = (jnp.zeros((num_classes, s, self.hp), jnp.float32)
                          .at[:, :, :hidden]
                          .set(jnp.einsum("nsc,ch->nsh", x_att, self.w1)))

    # ---- pallas_call wrapper ------------------------------------------------
    def _fused_call(self, xp, apply_csa):
        b = xp.shape[0] // self.seq
        kern = functools.partial(
            csa_fused_kernel, mask_alpha=self.mask_alpha,
            num_classes=self.num_classes, batch=b, seq=self.seq,
            apply_csa=apply_csa)
        vmem = pl.BlockSpec(memory_space=pltpu.MemorySpace.VMEM)
        return pl.pallas_call(
            kern,
            out_shape=jax.ShapeDtypeStruct((b, self.ncp), jnp.float32),
            in_specs=[vmem] * 6,
            out_specs=vmem,
        )(xp, self.w1_p, self.b1_p, self.w2_p, self.b2_p, self.bank_proj)

    # ---- forward --------------------------------------------------------
    def __call__(self, x_nchw, training=False):
        bsz, c, h, w = x_nchw.shape
        s = h * w
        # NCHW -> [B*S, C] -> zero-pad channels to 128 (one cheap XLA copy so
        # the kernel only ever touches lane-dense rows).
        # TODO(synk): could be folded into the producer's layout to also save
        # this one HBM pass over x at launch-overhead-bound sizes.
        x_flat = jnp.transpose(x_nchw, (0, 2, 3, 1)).reshape(bsz * s, c)
        xp = jnp.pad(x_flat, ((0, 0), (0, self.cp - c)))
        apply_csa = bool(self.test_CSA and (not training))
        out = self._fused_call(xp, apply_csa)
        return out[:, :self.num_classes]


# ---- pure-JAX reference (numerics check) ----------------------------------
def _reference_forward(model, x_nchw, training=False):
    b, c, h, w = x_nchw.shape
    x = jnp.transpose(x_nchw, (0, 2, 3, 1)).reshape(b, h * w, c)

    def backbone(xb):
        hid = jax.nn.relu(jnp.einsum("bsc,ch->bsh", xb, model.w1)
                          + model.b1[0])
        pooled = jnp.mean(hid, axis=1)
        return pooled @ model.w2 + model.b2[0]

    logits = backbone(x)
    if model.test_CSA and (not training):
        y = jnp.argmax(logits, axis=1)
        x_att = jnp.mean(model.bank[y], axis=1)
        return backbone(x + model.mask_alpha * x_att)
    return logits


if __name__ == "__main__":
    key = jax.random.PRNGKey(0)
    k_x, k_params = jax.random.split(key)

    B, C, H, W = 2, 4, 16, 16
    x = jax.random.normal(k_x, (B, C, H, W), jnp.float32)   # PyTorch-style NCHW

    model = CSANetworkPallas(num_classes=10, conf_per_class=4, use_conf=True,
                             mask_alpha=0.3, in_channels=C, hidden=32,
                             spatial=H, key=k_params)

    preds = jax.block_until_ready(model(x, training=False))       # CSA path
    assert preds.shape == (B, 10) and preds.dtype == jnp.float32

    preds_plain = jax.block_until_ready(model(x, training=True))  # plain path
    assert preds_plain.shape == (B, 10)

    ref_csa = _reference_forward(model, x, training=False)
    ref_plain = _reference_forward(model, x, training=True)
    assert jnp.allclose(preds, ref_csa, atol=2e-3, rtol=2e-3)
    assert jnp.allclose(preds_plain, ref_plain, atol=2e-3, rtol=2e-3)

    print("KERNEL_OK")
</pallas_src>

<mosaic_0001>
module attributes {stable_mosaic.version = 11 : i64} {
  func.func @csa_fused_kernel(%arg0: memref<512x128xf32, #tpu.memory_space<vmem>>, %arg1: memref<128x128xf32, #tpu.memory_space<vmem>>, %arg2: memref<1x128xf32, #tpu.memory_space<vmem>>, %arg3: memref<128x128xf32, #tpu.memory_space<vmem>>, %arg4: memref<1x128xf32, #tpu.memory_space<vmem>>, %arg5: memref<10x256x128xf32, #tpu.memory_space<vmem>>, %arg6: memref<2x128xf32, #tpu.memory_space<vmem>>) attributes {dimension_semantics = [], scalar_prefetch = 0 : i64, scratch_operands = 0 : i64, tpu.core_type = #tpu.core_type<tc>} {
    %c0 = arith.constant 0 : index
    %c0_0 = arith.constant 0 : index
    %0 = vector.load %arg0[%c0, %c0_0] : memref<512x128xf32, #tpu.memory_space<vmem>>, vector<512x128xf32>
    %c0_1 = arith.constant 0 : index
    %c0_2 = arith.constant 0 : index
    %1 = vector.load %arg1[%c0_1, %c0_2] : memref<128x128xf32, #tpu.memory_space<vmem>>, vector<128x128xf32>
    %cst = arith.constant dense<0.000000e+00> : vector<512x128xf32>
    %2 = tpu.matmul %0, %1, %cst {dimension_numbers = #tpu.dot_dimension_numbers<[1], [0], [0], [1], [0, 0, 1, 1], [], []>} : vector<512x128xf32>, vector<128x128xf32>, vector<512x128xf32> -> vector<512x128xf32>
    %c0_3 = arith.constant 0 : index
    %c0_4 = arith.constant 0 : index
    %3 = vector.load %arg2[%c0_3, %c0_4] : memref<1x128xf32, #tpu.memory_space<vmem>>, vector<1x128xf32>
    %4 = vector.broadcast %3 : vector<1x128xf32> to vector<512x128xf32>
    %5 = arith.addf %2, %4 : vector<512x128xf32>
    %cst_5 = arith.constant 0.000000e+00 : f32
    %6 = vector.broadcast %cst_5 : f32 to vector<512x128xf32>
    %7 = arith.maximumf %5, %6 : vector<512x128xf32>
    %8 = vector.shape_cast %7 : vector<512x128xf32> to vector<2x256x128xf32>
    %cst_6 = arith.constant dense<0.000000e+00> : vector<2x128xf32>
    %9 = vector.multi_reduction <add>, %8, %cst_6 [1] : vector<2x256x128xf32> to vector<2x128xf32>
    %cst_7 = arith.constant 2.560000e+02 : f32
    %10 = vector.broadcast %cst_7 : f32 to vector<2x128xf32>
    %11 = arith.divf %9, %10 : vector<2x128xf32>
    %c0_8 = arith.constant 0 : index
    %c0_9 = arith.constant 0 : index
    %12 = vector.load %arg3[%c0_8, %c0_9] : memref<128x128xf32, #tpu.memory_space<vmem>>, vector<128x128xf32>
    %cst_10 = arith.constant dense<0.000000e+00> : vector<2x128xf32>
    %13 = tpu.matmul %11, %12, %cst_10 {dimension_numbers = #tpu.dot_dimension_numbers<[1], [0], [0], [1], [0, 0, 1, 1], [], []>} : vector<2x128xf32>, vector<128x128xf32>, vector<2x128xf32> -> vector<2x128xf32>
    %c0_11 = arith.constant 0 : index
    %c0_12 = arith.constant 0 : index
    %14 = vector.load %arg4[%c0_11, %c0_12] : memref<1x128xf32, #tpu.memory_space<vmem>>, vector<1x128xf32>
    %15 = vector.broadcast %14 : vector<1x128xf32> to vector<2x128xf32>
    %16 = arith.addf %13, %15 : vector<2x128xf32>
    %17 = tpu.iota {dimensions = array<i32: 1>} : vector<2x128xi32>
    %cst_13 = arith.constant dense<0xFF800000> : vector<2xf32>
    %18 = vector.multi_reduction <maximumf>, %16, %cst_13 [1] : vector<2x128xf32> to vector<2xf32>
    %19 = vector.shape_cast %18 : vector<2xf32> to vector<2x1xf32>
    %20 = vector.broadcast %19 : vector<2x1xf32> to vector<2x128xf32>
    %21 = arith.cmpf oeq, %16, %20 : vector<2x128xf32>
    %c128_i32 = arith.constant 128 : i32
    %22 = vector.broadcast %c128_i32 : i32 to vector<2x128xi32>
    %23 = arith.select %21, %17, %22 : vector<2x128xi1>, vector<2x128xi32>
    %cst_14 = arith.constant dense<2147483647> : vector<2xi32>
    %24 = vector.multi_reduction <minsi>, %23, %cst_14 [1] : vector<2x128xi32> to vector<2xi32>
    %25 = vector.shape_cast %24 : vector<2xi32> to vector<2x1xi32>
    %c0_i32 = arith.constant 0 : i32
    %c9_i32 = arith.constant 9 : i32
    %26 = vector.broadcast %c0_i32 : i32 to vector<2x1xi32>
    %27 = arith.maxsi %26, %25 : vector<2x1xi32>
    %28 = vector.broadcast %c9_i32 : i32 to vector<2x1xi32>
    %29 = arith.minsi %28, %27 : vector<2x1xi32>
    %30 = vector.shape_cast %2 : vector<512x128xf32> to vector<2x256x128xf32>
    %c0_i32_15 = arith.constant 0 : i32
    %31 = vector.broadcast %c0_i32_15 : i32 to vector<2x1xi32>
    %32 = arith.cmpi eq, %29, %31 : vector<2x1xi32>
    %33 = arith.extui %32 : vector<2x1xi1> to vector<2x1xi32>
    %34 = arith.sitofp %33 : vector<2x1xi32> to vector<2x1xf32>
    %35 = vector.shape_cast %34 : vector<2x1xf32> to vector<2x1x1xf32>
    %cst_16 = arith.constant 3.000000e-01 : f32
    %36 = vector.broadcast %cst_16 : f32 to vector<2x1x1xf32>
    %37 = arith.mulf %35, %36 : vector<2x1x1xf32>
    %c0_17 = arith.constant 0 : index
    %c0_18 = arith.constant 0 : index
    %c0_19 = arith.constant 0 : index
    %38 = vector.load %arg5[%c0_17, %c0_18, %c0_19] : memref<10x256x128xf32, #tpu.memory_space<vmem>>, vector<1x256x128xf32>
    %39 = vector.shape_cast %38 : vector<1x256x128xf32> to vector<256x128xf32>
    %40 = vector.shape_cast %39 : vector<256x128xf32> to vector<1x256x128xf32>
    %41 = vector.broadcast %37 : vector<2x1x1xf32> to vector<2x256x128xf32>
    %42 = vector.broadcast %40 : vector<1x256x128xf32> to vector<2x256x128xf32>
    %43 = arith.mulf %41, %42 : vector<2x256x128xf32>
    %44 = arith.addf %30, %43 : vector<2x256x128xf32>
    %c1_i32 = arith.constant 1 : i32
    %45 = vector.broadcast %c1_i32 : i32 to vector<2x1xi32>
    %46 = arith.cmpi eq, %29, %45 : vector<2x1xi32>
    %47 = arith.extui %46 : vector<2x1xi1> to vector<2x1xi32>
    %48 = arith.sitofp %47 : vector<2x1xi32> to vector<2x1xf32>
    %49 = vector.shape_cast %48 : vector<2x1xf32> to vector<2x1x1xf32>
    %cst_20 = arith.constant 3.000000e-01 : f32
    %50 = vector.broadcast %cst_20 : f32 to vector<2x1x1xf32>
    %51 = arith.mulf %49, %50 : vector<2x1x1xf32>
    %c1 = arith.constant 1 : index
    %c0_21 = arith.constant 0 : index
    %c0_22 = arith.constant 0 : index
    %52 = vector.load %arg5[%c1, %c0_21, %c0_22] : memref<10x256x128xf32, #tpu.memory_space<vmem>>, vector<1x256x128xf32>
    %53 = vector.shape_cast %52 : vector<1x256x128xf32> to vector<256x128xf32>
    %54 = vector.shape_cast %53 : vector<256x128xf32> to vector<1x256x128xf32>
    %55 = vector.broadcast %51 : vector<2x1x1xf32> to vector<2x256x128xf32>
    %56 = vector.broadcast %54 : vector<1x256x128xf32> to vector<2x256x128xf32>
    %57 = arith.mulf %55, %56 : vector<2x256x128xf32>
    %58 = arith.addf %44, %57 : vector<2x256x128xf32>
    %c2_i32 = arith.constant 2 : i32
    %59 = vector.broadcast %c2_i32 : i32 to vector<2x1xi32>
    %60 = arith.cmpi eq, %29, %59 : vector<2x1xi32>
    %61 = arith.extui %60 : vector<2x1xi1> to vector<2x1xi32>
    %62 = arith.sitofp %61 : vector<2x1xi32> to vector<2x1xf32>
    %63 = vector.shape_cast %62 : vector<2x1xf32> to vector<2x1x1xf32>
    %cst_23 = arith.constant 3.000000e-01 : f32
    %64 = vector.broadcast %cst_23 : f32 to vector<2x1x1xf32>
    %65 = arith.mulf %63, %64 : vector<2x1x1xf32>
    %c2 = arith.constant 2 : index
    %c0_24 = arith.constant 0 : index
    %c0_25 = arith.constant 0 : index
    %66 = vector.load %arg5[%c2, %c0_24, %c0_25] : memref<10x256x128xf32, #tpu.memory_space<vmem>>, vector<1x256x128xf32>
    %67 = vector.shape_cast %66 : vector<1x256x128xf32> to vector<256x128xf32>
    %68 = vector.shape_cast %67 : vector<256x128xf32> to vector<1x256x128xf32>
    %69 = vector.broadcast %65 : vector<2x1x1xf32> to vector<2x256x128xf32>
    %70 = vector.broadcast %68 : vector<1x256x128xf32> to vector<2x256x128xf32>
    %71 = arith.mulf %69, %70 : vector<2x256x128xf32>
    %72 = arith.addf %58, %71 : vector<2x256x128xf32>
    %c3_i32 = arith.constant 3 : i32
    %73 = vector.broadcast %c3_i32 : i32 to vector<2x1xi32>
    %74 = arith.cmpi eq, %29, %73 : vector<2x1xi32>
    %75 = arith.extui %74 : vector<2x1xi1> to vector<2x1xi32>
    %76 = arith.sitofp %75 : vector<2x1xi32> to vector<2x1xf32>
    %77 = vector.shape_cast %76 : vector<2x1xf32> to vector<2x1x1xf32>
    %cst_26 = arith.constant 3.000000e-01 : f32
    %78 = vector.broadcast %cst_26 : f32 to vector<2x1x1xf32>
    %79 = arith.mulf %77, %78 : vector<2x1x1xf32>
    %c3 = arith.constant 3 : index
    %c0_27 = arith.constant 0 : index
    %c0_28 = arith.constant 0 : index
    %80 = vector.load %arg5[%c3, %c0_27, %c0_28] : memref<10x256x128xf32, #tpu.memory_space<vmem>>, vector<1x256x128xf32>
    %81 = vector.shape_cast %80 : vector<1x256x128xf32> to vector<256x128xf32>
    %82 = vector.shape_cast %81 : vector<256x128xf32> to vector<1x256x128xf32>
    %83 = vector.broadcast %79 : vector<2x1x1xf32> to vector<2x256x128xf32>
    %84 = vector.broadcast %82 : vector<1x256x128xf32> to vector<2x256x128xf32>
    %85 = arith.mulf %83, %84 : vector<2x256x128xf32>
    %86 = arith.addf %72, %85 : vector<2x256x128xf32>
    %c4_i32 = arith.constant 4 : i32
    %87 = vector.broadcast %c4_i32 : i32 to vector<2x1xi32>
    %88 = arith.cmpi eq, %29, %87 : vector<2x1xi32>
    %89 = arith.extui %88 : vector<2x1xi1> to vector<2x1xi32>
    %90 = arith.sitofp %89 : vector<2x1xi32> to vector<2x1xf32>
    %91 = vector.shape_cast %90 : vector<2x1xf32> to vector<2x1x1xf32>
    %cst_29 = arith.constant 3.000000e-01 : f32
    %92 = vector.broadcast %cst_29 : f32 to vector<2x1x1xf32>
    %93 = arith.mulf %91, %92 : vector<2x1x1xf32>
    %c4 = arith.constant 4 : index
    %c0_30 = arith.constant 0 : index
    %c0_31 = arith.constant 0 : index
    %94 = vector.load %arg5[%c4, %c0_30, %c0_31] : memref<10x256x128xf32, #tpu.memory_space<vmem>>, vector<1x256x128xf32>
    %95 = vector.shape_cast %94 : vector<1x256x128xf32> to vector<256x128xf32>
    %96 = vector.shape_cast %95 : vector<256x128xf32> to vector<1x256x128xf32>
    %97 = vector.broadcast %93 : vector<2x1x1xf32> to vector<2x256x128xf32>
    %98 = vector.broadcast %96 : vector<1x256x128xf32> to vector<2x256x128xf32>
    %99 = arith.mulf %97, %98 : vector<2x256x128xf32>
    %100 = arith.addf %86, %99 : vector<2x256x128xf32>
    %c5_i32 = arith.constant 5 : i32
    %101 = vector.broadcast %c5_i32 : i32 to vector<2x1xi32>
    %102 = arith.cmpi eq, %29, %101 : vector<2x1xi32>
    %103 = arith.extui %102 : vector<2x1xi1> to vector<2x1xi32>
    %104 = arith.sitofp %103 : vector<2x1xi32> to vector<2x1xf32>
    %105 = vector.shape_cast %104 : vector<2x1xf32> to vector<2x1x1xf32>
    %cst_32 = arith.constant 3.000000e-01 : f32
    %106 = vector.broadcast %cst_32 : f32 to vector<2x1x1xf32>
    %107 = arith.mulf %105, %106 : vector<2x1x1xf32>
    %c5 = arith.constant 5 : index
    %c0_33 = arith.constant 0 : index
    %c0_34 = arith.constant 0 : index
    %108 = vector.load %arg5[%c5, %c0_33, %c0_34] : memref<10x256x128xf32, #tpu.memory_space<vmem>>, vector<1x256x128xf32>
    %109 = vector.shape_cast %108 : vector<1x256x128xf32> to vector<256x128xf32>
    %110 = vector.shape_cast %109 : vector<256x128xf32> to vector<1x256x128xf32>
    %111 = vector.broadcast %107 : vector<2x1x1xf32> to vector<2x256x128xf32>
    %112 = vector.broadcast %110 : vector<1x256x128xf32> to vector<2x256x128xf32>
    %113 = arith.mulf %111, %112 : vector<2x256x128xf32>
    %114 = arith.addf %100, %113 : vector<2x256x128xf32>
    %c6_i32 = arith.constant 6 : i32
    %115 = vector.broadcast %c6_i32 : i32 to vector<2x1xi32>
    %116 = arith.cmpi eq, %29, %115 : vector<2x1xi32>
    %117 = arith.extui %116 : vector<2x1xi1> to vector<2x1xi32>
    %118 = arith.sitofp %117 : vector<2x1xi32> to vector<2x1xf32>
    %119 = vector.shape_cast %118 : vector<2x1xf32> to vector<2x1x1xf32>
    %cst_35 = arith.constant 3.000000e-01 : f32
    %120 = vector.broadcast %cst_35 : f32 to vector<2x1x1xf32>
    %121 = arith.mulf %119, %120 : vector<2x1x1xf32>
    %c6 = arith.constant 6 : index
    %c0_36 = arith.constant 0 : index
    %c0_37 = arith.constant 0 : index
    %122 = vector.load %arg5[%c6, %c0_36, %c0_37] : memref<10x256x128xf32, #tpu.memory_space<vmem>>, vector<1x256x128xf32>
    %123 = vector.shape_cast %122 : vector<1x256x128xf32> to vector<256x128xf32>
    %124 = vector.shape_cast %123 : vector<256x128xf32> to vector<1x256x128xf32>
    %125 = vector.broadcast %121 : vector<2x1x1xf32> to vector<2x256x128xf32>
    %126 = vector.broadcast %124 : vector<1x256x128xf32> to vector<2x256x128xf32>
    %127 = arith.mulf %125, %126 : vector<2x256x128xf32>
    %128 = arith.addf %114, %127 : vector<2x256x128xf32>
    %c7_i32 = arith.constant 7 : i32
    %129 = vector.broadcast %c7_i32 : i32 to vector<2x1xi32>
    %130 = arith.cmpi eq, %29, %129 : vector<2x1xi32>
    %131 = arith.extui %130 : vector<2x1xi1> to vector<2x1xi32>
    %132 = arith.sitofp %131 : vector<2x1xi32> to vector<2x1xf32>
    %133 = vector.shape_cast %132 : vector<2x1xf32> to vector<2x1x1xf32>
    %cst_38 = arith.constant 3.000000e-01 : f32
    %134 = vector.broadcast %cst_38 : f32 to vector<2x1x1xf32>
    %135 = arith.mulf %133, %134 : vector<2x1x1xf32>
    %c7 = arith.constant 7 : index
    %c0_39 = arith.constant 0 : index
    %c0_40 = arith.constant 0 : index
    %136 = vector.load %arg5[%c7, %c0_39, %c0_40] : memref<10x256x128xf32, #tpu.memory_space<vmem>>, vector<1x256x128xf32>
    %137 = vector.shape_cast %136 : vector<1x256x128xf32> to vector<256x128xf32>
    %138 = vector.shape_cast %137 : vector<256x128xf32> to vector<1x256x128xf32>
    %139 = vector.broadcast %135 : vector<2x1x1xf32> to vector<2x256x128xf32>
    %140 = vector.broadcast %138 : vector<1x256x128xf32> to vector<2x256x128xf32>
    %141 = arith.mulf %139, %140 : vector<2x256x128xf32>
    %142 = arith.addf %128, %141 : vector<2x256x128xf32>
    %c8_i32 = arith.constant 8 : i32
    %143 = vector.broadcast %c8_i32 : i32 to vector<2x1xi32>
    %144 = arith.cmpi eq, %29, %143 : vector<2x1xi32>
    %145 = arith.extui %144 : vector<2x1xi1> to vector<2x1xi32>
    %146 = arith.sitofp %145 : vector<2x1xi32> to vector<2x1xf32>
    %147 = vector.shape_cast %146 : vector<2x1xf32> to vector<2x1x1xf32>
    %cst_41 = arith.constant 3.000000e-01 : f32
    %148 = vector.broadcast %cst_41 : f32 to vector<2x1x1xf32>
    %149 = arith.mulf %147, %148 : vector<2x1x1xf32>
    %c8 = arith.constant 8 : index
    %c0_42 = arith.constant 0 : index
    %c0_43 = arith.constant 0 : index
    %150 = vector.load %arg5[%c8, %c0_42, %c0_43] : memref<10x256x128xf32, #tpu.memory_space<vmem>>, vector<1x256x128xf32>
    %151 = vector.shape_cast %150 : vector<1x256x128xf32> to vector<256x128xf32>
    %152 = vector.shape_cast %151 : vector<256x128xf32> to vector<1x256x128xf32>
    %153 = vector.broadcast %149 : vector<2x1x1xf32> to vector<2x256x128xf32>
    %154 = vector.broadcast %152 : vector<1x256x128xf32> to vector<2x256x128xf32>
    %155 = arith.mulf %153, %154 : vector<2x256x128xf32>
    %156 = arith.addf %142, %155 : vector<2x256x128xf32>
    %c9_i32_44 = arith.constant 9 : i32
    %157 = vector.broadcast %c9_i32_44 : i32 to vector<2x1xi32>
    %158 = arith.cmpi eq, %29, %157 : vector<2x1xi32>
    %159 = arith.extui %158 : vector<2x1xi1> to vector<2x1xi32>
    %160 = arith.sitofp %159 : vector<2x1xi32> to vector<2x1xf32>
    %161 = vector.shape_cast %160 : vector<2x1xf32> to vector<2x1x1xf32>
    %cst_45 = arith.constant 3.000000e-01 : f32
    %162 = vector.broadcast %cst_45 : f32 to vector<2x1x1xf32>
    %163 = arith.mulf %161, %162 : vector<2x1x1xf32>
    %c9 = arith.constant 9 : index
    %c0_46 = arith.constant 0 : index
    %c0_47 = arith.constant 0 : index
    %164 = vector.load %arg5[%c9, %c0_46, %c0_47] : memref<10x256x128xf32, #tpu.memory_space<vmem>>, vector<1x256x128xf32>
    %165 = vector.shape_cast %164 : vector<1x256x128xf32> to vector<256x128xf32>
    %166 = vector.shape_cast %165 : vector<256x128xf32> to vector<1x256x128xf32>
    %167 = vector.broadcast %163 : vector<2x1x1xf32> to vector<2x256x128xf32>
    %168 = vector.broadcast %166 : vector<1x256x128xf32> to vector<2x256x128xf32>
    %169 = arith.mulf %167, %168 : vector<2x256x128xf32>
    %170 = arith.addf %156, %169 : vector<2x256x128xf32>
    %171 = vector.shape_cast %3 : vector<1x128xf32> to vector<1x1x128xf32>
    %172 = vector.broadcast %171 : vector<1x1x128xf32> to vector<2x256x128xf32>
    %173 = arith.addf %170, %172 : vector<2x256x128xf32>
    %cst_48 = arith.constant 0.000000e+00 : f32
    %174 = vector.broadcast %cst_48 : f32 to vector<2x256x128xf32>
    %175 = arith.maximumf %173, %174 : vector<2x256x128xf32>
    %cst_49 = arith.constant dense<0.000000e+00> : vector<2x128xf32>
    %176 = vector.multi_reduction <add>, %175, %cst_49 [1] : vector<2x256x128xf32> to vector<2x128xf32>
    %cst_50 = arith.constant 2.560000e+02 : f32
    %177 = vector.broadcast %cst_50 : f32 to vector<2x128xf32>
    %178 = arith.divf %176, %177 : vector<2x128xf32>
    %c0_51 = arith.constant 0 : index
    %c0_52 = arith.constant 0 : index
    %179 = vector.load %arg3[%c0_51, %c0_52] : memref<128x128xf32, #tpu.memory_space<vmem>>, vector<128x128xf32>
    %cst_53 = arith.constant dense<0.000000e+00> : vector<2x128xf32>
    %180 = tpu.matmul %178, %179, %cst_53 {dimension_numbers = #tpu.dot_dimension_numbers<[1], [0], [0], [1], [0, 0, 1, 1], [], []>} : vector<2x128xf32>, vector<128x128xf32>, vector<2x128xf32> -> vector<2x128xf32>
    %c0_54 = arith.constant 0 : index
    %c0_55 = arith.constant 0 : index
    %181 = vector.load %arg4[%c0_54, %c0_55] : memref<1x128xf32, #tpu.memory_space<vmem>>, vector<1x128xf32>
    %182 = vector.broadcast %181 : vector<1x128xf32> to vector<2x128xf32>
    %183 = arith.addf %180, %182 : vector<2x128xf32>
    %c0_56 = arith.constant 0 : index
    %c0_57 = arith.constant 0 : index
    %184 = vector.load %arg6[%c0_56, %c0_57] : memref<2x128xf32, #tpu.memory_space<vmem>>, vector<2x128xf32>
    tpu.vector_store %arg6[%c0_56, %c0_57], %183 {strides = array<i32>} : memref<2x128xf32, #tpu.memory_space<vmem>>, vector<2x128xf32>,
    return
  }
}

</mosaic_0001>

<bundles_post_ra>
// kernel: tpu_custom_call.1
= control target key start
LH: loop header
LB: loop body
LE: loop exit
PB: predicated region body
PF: predicated region fallthrough
CT: control target
= control target key end

     0   :  { %11 = vsyncpa [#allocation3], 0  ;;  %s9921_s0 = inlined_call_operand.hbm [shape: f32[512,128], index: 0, kind: input, shape index: {}]   ;;  %s9922_s1 = inlined_call_operand.hbm [shape: f32[128,128], index: 1, kind: input, shape index: {}]   ;;  %s9923_s2 = inlined_call_operand.hbm [shape: f32[1,128], index: 2, kind: input, shape index: {}]   ;;  %s9924_s3 = inlined_call_operand.hbm [shape: f32[128,128], index: 3, kind: input, shape index: {}]   ;;  %s9925_s4 = inlined_call_operand.hbm [shape: f32[1,128], index: 4, kind: input, shape index: {}]   ;;  %s9926_s5 = inlined_call_operand.hbm [shape: f32[10,256,128], index: 5, kind: input, shape index: {}]   ;;  %s9927_s6 = inlined_call_operand.hbm [shape: f32[2,128], index: 6, kind: output, shape index: {}]  }
   0x1   :  { %12 = vsyncpa [#allocation6], 0 }
   0x2   :  { %13 = vsyncpa [#allocation9], 0 }
   0x3   :  { %14 = vsyncpa [#allocation12], 0 }
   0x4   :  { %15 = vsyncpa [#allocation4], 0  ;;  %s3568_s21 = smov [#allocation5]   ;;  %s3569_s23 = smov [#allocation8]  }
   0x5   :  { %s33_s22 = sshll.u32 %s3568_s21, 4  ;;  %s55_s24 = sshll.u32 %s3569_s23, 4  ;;  %s34_s22 = int_to_ptr.vmem [resolvable:$true] %s33_s22  ;;  %s3615_s24 = int_to_ptr.vmem [resolvable:$true] %s55_s24 }
   0x6   :  { %s3404_s27 = scalar_lea.hbm %s9922_s1, 2048 }
   0x7   :  { %p3405_p0 = scmp.ne.s32.totalorder %s9922_s1, %s3404_s27  ;;  %p3408_p1 = scmp.lt.u32.totalorder %s3404_s27, %s9922_s1 }
   0x9   :  { %p3410_p2 = pnand %p3408_p1, %p3405_p0 }
   0xb   :  { %3413 = shalt.err (!%p3410_p2)
}
   0xc   :  { %s3414_s8 = scalar_lea.vmem %s34_s22, 2048  ;;  %p3419_p4 = scmp.lt.s32.totalorder %s34_s22, %s34_s22 }
   0xd   :  { %p3415_p3 = scmp.ne.s32.totalorder %s34_s22, %s3414_s8  ;;  %p3420_p5 = scmp.lt.s32.totalorder %s3414_s8, %s3414_s8 }
   0xf   :  { %p3421_p6 = por %p3420_p5, %p3419_p4 }
  0x11   :  { %p3422_p7 = pnand %p3421_p6, %p3415_p3 }
  0x13   :  { %3425 = shalt.err (!%p3422_p7)
}
  0x14   :  { %s3570_s9 = smov 128   ;;  %s3571_s10 = smov 8  }
  0x15   :  { %39 = dma.hbm_to_vmem [thread:$0]  %s9922_s1, 2048, %s34_s22, [#allocation6], %s3570_s9, %s3570_s9, %s3571_s10  }
  0x16   :  { %s3426_s15 = scalar_lea.hbm %s9924_s3, 2048 }
  0x17   :  { %p3427_p8 = scmp.ne.s32.totalorder %s9924_s3, %s3426_s15  ;;  %p3430_p9 = scmp.lt.u32.totalorder %s3426_s15, %s9924_s3 }
  0x19   :  { %p3432_p10 = pnand %p3430_p9, %p3427_p8 }
  0x1b   :  { %3435 = shalt.err (!%p3432_p10)
}
  0x1c   :  { %s3436_s20 = scalar_lea.vmem %s3615_s24, 2048  ;;  %p3441_p12 = scmp.lt.s32.totalorder %s3615_s24, %s3615_s24 }
  0x1d   :  { %p3437_p11 = scmp.ne.s32.totalorder %s3615_s24, %s3436_s20  ;;  %p3442_p13 = scmp.lt.s32.totalorder %s3436_s20, %s3436_s20 }
  0x1f   :  { %p3443_p0 = por %p3442_p13, %p3441_p12 }
  0x21   :  { %p3444_p1 = pnand %p3443_p0, %p3437_p11 }
  0x23   :  { %3447 = shalt.err (!%p3444_p1)
}
  0x24   :  { %61 = dma.hbm_to_vmem [thread:$0]  %s9924_s3, 2048, %s3615_s24, [#allocation9], %s3570_s9, %s3570_s9, %s3571_s10  }
  0x25   :  { %s3572_s22 = smov [#allocation2]   ;;  %s3573_s25 = smov [#allocation7]  }
  0x26   :  { %s21_s23 = sshll.u32 %s3572_s22, 4  ;;  %s46_s26 = sshll.u32 %s3573_s25, 4  ;;  %s22_s23 = int_to_ptr.vmem [resolvable:$true] %s21_s23  ;;  %s47_s26 = int_to_ptr.vmem [resolvable:$true] %s46_s26 }
  0x27   :  { %s3448_s29 = scalar_lea.hbm %s9921_s0, 8192 }
  0x28   :  { %p3449_p2 = scmp.ne.s32.totalorder %s9921_s0, %s3448_s29  ;;  %p3452_p3 = scmp.lt.u32.totalorder %s3448_s29, %s9921_s0 }
  0x2a   :  { %p3454_p4 = pnand %p3452_p3, %p3449_p2 }
  0x2c   :  { %3457 = shalt.err (!%p3454_p4)
}
  0x2d   :  { %s3458_s3 = scalar_lea.vmem %s22_s23, 8192  ;;  %p3463_p6 = scmp.lt.s32.totalorder %s22_s23, %s22_s23 }
  0x2e   :  { %p3459_p5 = scmp.ne.s32.totalorder %s22_s23, %s3458_s3  ;;  %p3464_p7 = scmp.lt.s32.totalorder %s3458_s3, %s3458_s3 }
  0x30   :  { %p3465_p8 = por %p3464_p7, %p3463_p6 }
  0x32   :  { %p3466_p9 = pnand %p3465_p8, %p3459_p5 }
  0x34   :  { %3469 = shalt.err (!%p3466_p9)
}
  0x35   :  { %27 = dma.hbm_to_vmem [thread:$0]  %s9921_s0, 8192, %s22_s23, [#allocation3], %s3570_s9, %s3570_s9, %s3571_s10  }
  0x36   :  { %s3470_s15 = scalar_lea.hbm %s9923_s2, 16 }
  0x37   :  { %p3471_p10 = scmp.ne.s32.totalorder %s9923_s2, %s3470_s15  ;;  %p3474_p11 = scmp.lt.u32.totalorder %s3470_s15, %s9923_s2 }
  0x39   :  { %p3476_p12 = pnand %p3474_p11, %p3471_p10 }
  0x3b   :  { %3479 = shalt.err (!%p3476_p12)
}
  0x3c   :  { %s3480_s20 = scalar_lea.vmem %s47_s26, 16  ;;  %s3484_s1 = scalar_lea.vmem %s47_s26, 32 }
  0x3d   :  { %p3481_p13 = scmp.ne.s32.totalorder %s47_s26, %s3480_s20  ;;  %p3485_p0 = scmp.lt.s32.totalorder %s47_s26, %s47_s26 }
  0x3e   :  { %p3486_p1 = scmp.lt.s32.totalorder %s3484_s1, %s3480_s20 }
  0x40   :  { %p3487_p2 = por %p3486_p1, %p3485_p0 }
  0x42   :  { %p3488_p3 = pnand %p3487_p2, %p3481_p13 }
  0x44   :  { %3491 = shalt.err (!%p3488_p3)
}
  0x45   :  { %49 = dma.hbm_to_vmem [thread:$0]  %s9923_s2, 16, %s47_s26, [#allocation6]  }
  0x46   :  { %s3574_s22 = smov [#allocation10]   ;;  %s3575_s25 = smov [#allocation11]  }
  0x47   :  { %s68_s23 = sshll.u32 %s3574_s22, 4  ;;  %s77_s27 = sshll.u32 %s3575_s25, 4  ;;  %s69_s23 = int_to_ptr.vmem [resolvable:$true] %s68_s23  ;;  %s3679_s27 = int_to_ptr.vmem [resolvable:$true] %s77_s27 }
  0x48   :  { %s3492_s30 = scalar_lea.hbm %s9925_s4, 16 }
  0x49   :  { %p3493_p4 = scmp.ne.s32.totalorder %s9925_s4, %s3492_s30  ;;  %p3496_p5 = scmp.lt.u32.totalorder %s3492_s30, %s9925_s4 }
  0x4b   :  { %p3498_p6 = pnand %p3496_p5, %p3493_p4 }
  0x4d   :  { %3501 = shalt.err (!%p3498_p6)
}
  0x4e   :  { %s3502_s2 = scalar_lea.vmem %s69_s23, 16  ;;  %s3506_s26 = scalar_lea.vmem %s69_s23, 32 }
  0x4f   :  { %p3503_p7 = scmp.ne.s32.totalorder %s69_s23, %s3502_s2  ;;  %p3507_p8 = scmp.lt.s32.totalorder %s69_s23, %s69_s23 }
  0x50   :  { %p3508_p9 = scmp.lt.s32.totalorder %s3506_s26, %s3502_s2 }
  0x52   :  { %p3509_p10 = por %p3508_p9, %p3507_p8 }
  0x54   :  { %p3510_p11 = pnand %p3509_p10, %p3503_p7 }
  0x56   :  { %3513 = shalt.err (!%p3510_p11)
}
  0x57   :  { %71 = dma.hbm_to_vmem [thread:$0]  %s9925_s4, 16, %s69_s23, [#allocation9]  }
  0x58   :  { %s3514_s15 = scalar_lea.hbm %s9926_s5, 40960 }
  0x59   :  { %p3515_p12 = scmp.ne.s32.totalorder %s9926_s5, %s3514_s15  ;;  %p3518_p13 = scmp.lt.u32.totalorder %s3514_s15, %s9926_s5 }
  0x5b   :  { %p3520_p0 = pnand %p3518_p13, %p3515_p12 }
  0x5d   :  { %3523 = shalt.err (!%p3520_p0)
}
  0x5e   :  { %s3524_s20 = scalar_lea.vmem %s3679_s27, 40960  ;;  %p3529_p2 = scmp.lt.s32.totalorder %s3679_s27, %s3679_s27 }
  0x5f   :  { %p3525_p1 = scmp.ne.s32.totalorder %s3679_s27, %s3524_s20  ;;  %p3530_p3 = scmp.lt.s32.totalorder %s3524_s20, %s3524_s20 }
  0x61   :  { %p3531_p4 = por %p3530_p3, %p3529_p2 }
  0x63   :  { %p3532_p5 = pnand %p3531_p4, %p3525_p1 }
  0x65   :  { %3535 = shalt.err (!%p3532_p5)
}
  0x66   :  { %83 = dma.hbm_to_vmem [thread:$0]  %s9926_s5, 40960, %s3679_s27, [#allocation12], %s3570_s9, %s3570_s9, %s3571_s10  }
  0x67   :  { %3558 = dma.done.wait [#allocation3], 8192  }
  0x68   :  { %3559 = vsyncadd [#allocation3], 4294959104 }
  0x69   :  { %3560 = dma.done.wait [#allocation6], 2064  }
  0x6a   :  { %3561 = vsyncadd [#allocation6], 4294965232 }
  0x6b   :  { %3562 = dma.done.wait [#allocation9], 2064  }
  0x6c   :  { %3563 = vsyncadd [#allocation9], 4294965232 }
  0x6d   :  { %3564 = dma.done.wait [#allocation12], 40960  }
  0x6e   :  { %3565 = vsyncadd [#allocation12], 4294926336  ;;  %v166_v0 = vld [vmem:[#allocation5] sm:$0xff]  ;;  %v167_v1 = vld [vmem:[#allocation5 + $0x8] sm:$0xff]  ;;  %vm3577_vm0 = vmmov 0   ;;  %vm804_vm1 = vcmask 1041409  }
  0x6f   :  { %v168_v2 = vld [vmem:[#allocation5 + $0x10] sm:$0xff]  ;;  %v3294_v3 = vpack.c.bf16 %v167_v1, %v166_v0  ;;  %v169_v4 = vld [vmem:[#allocation5 + $0x18] sm:$0xff]  ;;  %v170_v6 = vld [vmem:[#allocation5 + $0x20] sm:$0xff]  ;;  %vm879_vm2 = vcmask 1041408   ;;  %s3579_s5 = smov [#allocation13]  }
  0x70   :  { %v3298_v5 = vpack.c.bf16 %v169_v4, %v168_v2  ;;  %v171_v7 = vld [vmem:[#allocation5 + $0x28] sm:$0xff]  ;;  %v102_v9 = vld [vmem:[#allocation2] sm:$0xff]  ;;  %v172_v10 = vld [vmem:[#allocation5 + $0x30] sm:$0xff]  ;;  %s2958_s9 = sshll.u32 %s3579_s5, 4  ;;  %s2959_s9 = int_to_ptr.vmem [resolvable:$true] %s2958_s9 }
  0x71   :  { %3295 = vmatprep.subr.bf16.mxu0 %v3294_v3  ;;  %3374 = vmatprep.subr.bf16.mxu1 %v3294_v3  ;;  %v3302_v8 = vpack.c.bf16 %v171_v7, %v170_v6  ;;  %v173_v11 = vld [vmem:[#allocation5 + $0x38] sm:$0xff]  ;;  %v174_v13 = vld [vmem:[#allocation5 + $0x40] sm:$0xff]  ;;  %v175_v14 = vld [vmem:[#allocation5 + $0x48] sm:$0xff]  ;;  %s3536_s10 = scalar_lea.vmem %s2959_s9, 32  ;;  %p3541_p7 = scmp.lt.s32.totalorder %s2959_s9, %s2959_s9 }
  0x72   :  { %3297 = vmatpush3.bf16.msra.mxu0 %v3294_v3  ;;  %3382 = vmatpush3.bf16.msra.mxu1 %v3294_v3  ;;  %v3306_v12 = vpack.c.bf16 %v173_v11, %v172_v10  ;;  %v3310_v15 = vpack.c.bf16 %v175_v14, %v174_v13  ;;  %v176_v16 = vld [vmem:[#allocation5 + $0x50] sm:$0xff]  ;;  %v177_v17 = vld [vmem:[#allocation5 + $0x58] sm:$0xff]  ;;  %v178_v19 = vld [vmem:[#allocation5 + $0x60] sm:$0xff]  ;;  %p3537_p6 = scmp.ne.s32.totalorder %s2959_s9, %s3536_s10  ;;  %p3542_p8 = scmp.lt.s32.totalorder %s3536_s10, %s3536_s10 }
  0x73   :  { %3299 = vmatprep.subr.bf16.mxu0 %v3298_v5  ;;  %3375 = vmatprep.subr.bf16.mxu1 %v3298_v5  ;;  %v3314_v18 = vpack.c.bf16 %v177_v17, %v176_v16  ;;  %v179_v20 = vld [vmem:[#allocation5 + $0x68] sm:$0xff]  ;;  %v144_v21 = vld [vmem:[#allocation2 + $0x150] sm:$0xff]  ;;  %v181_v24 = vld [vmem:[#allocation5 + $0x78] sm:$0xff] }
  0x74   :  { %3128 = vmatprep.mubr.f32.mxu0 %v102_v9  ;;  %v3318_v22 = vpack.c.bf16 %v179_v20, %v178_v19  ;;  %v180_v23 = vld [vmem:[#allocation5 + $0x70] sm:$0xff]  ;;  %3191 = vmatprep.mubr.f32.mxu1 %v144_v21  ;;  %v103_v26 = vld [vmem:[#allocation2 + $0x8] sm:$0xff]  ;;  %v145_v27 = vld [vmem:[#allocation2 + $0x158] sm:$0xff]  ;;  %p3543_p9 = por %p3542_p8, %p3541_p7 }
  0x75   :  { %v3322_v25 = vpack.c.bf16 %v181_v24, %v180_v23  ;;  %v104_v28 = vld [vmem:[#allocation2 + $0x10] sm:$0xff]  ;;  %v146_v29 = vld [vmem:[#allocation2 + $0x160] sm:$0xff]  ;;  %v105_v30 = vld [vmem:[#allocation2 + $0x18] sm:$0xff] }
  0x76   :  { %3301 = vmatpush3.bf16.msra.mxu0 %v3298_v5  ;;  %3383 = vmatpush3.bf16.msra.mxu1 %v3298_v5  ;;  %v147_v31 = vld [vmem:[#allocation2 + $0x168] sm:$0xff]  ;;  %v106_v32 = vld [vmem:[#allocation2 + $0x20] sm:$0xff]  ;;  %v148_v33 = vld [vmem:[#allocation2 + $0x170] sm:$0xff]  ;;  %p3544_p10 = pnand %p3543_p9, %p3537_p6 }
  0x77   :  { %3303 = vmatprep.subr.bf16.mxu0 %v3302_v8  ;;  %3376 = vmatprep.subr.bf16.mxu1 %v3302_v8  ;;  %v107_v34 = vld [vmem:[#allocation2 + $0x28] sm:$0xff]  ;;  %v149_v35 = vld [vmem:[#allocation2 + $0x178] sm:$0xff]  ;;  %v108_v36 = vld [vmem:[#allocation2 + $0x30] sm:$0xff] }
  0x78   :  { %v150_v37 = vld [vmem:[#allocation2 + $0x180] sm:$0xff]  ;;  %v109_v38 = vld [vmem:[#allocation2 + $0x38] sm:$0xff]  ;;  %v151_v39 = vld [vmem:[#allocation2 + $0x188] sm:$0xff] }
  0x79   :  { %v110_v40 = vld [vmem:[#allocation2 + $0x40] sm:$0xff]  ;;  %v152_v41 = vld [vmem:[#allocation2 + $0x190] sm:$0xff]  ;;  %v111_v42 = vld [vmem:[#allocation2 + $0x48] sm:$0xff] }
  0x7a   :  { %3305 = vmatpush3.bf16.msra.mxu0 %v3302_v8  ;;  %3384 = vmatpush3.bf16.msra.mxu1 %v3302_v8  ;;  %v153_v43 = vld [vmem:[#allocation2 + $0x198] sm:$0xff]  ;;  %v112_v44 = vld [vmem:[#allocation2 + $0x50] sm:$0xff]  ;;  %v154_v45 = vld [vmem:[#allocation2 + $0x1a0] sm:$0xff] }
  0x7b   :  { %3307 = vmatprep.subr.bf16.mxu0 %v3306_v12  ;;  %3377 = vmatprep.subr.bf16.mxu1 %v3306_v12  ;;  %v113_v46 = vld [vmem:[#allocation2 + $0x58] sm:$0xff]  ;;  %v155_v47 = vld [vmem:[#allocation2 + $0x1a8] sm:$0xff]  ;;  %v114_v48 = vld [vmem:[#allocation2 + $0x60] sm:$0xff] }
  0x7c   :  { %v156_v49 = vld [vmem:[#allocation2 + $0x1b0] sm:$0xff]  ;;  %v115_v50 = vld [vmem:[#allocation2 + $0x68] sm:$0xff]  ;;  %v157_v51 = vld [vmem:[#allocation2 + $0x1b8] sm:$0xff] }
  0x7d   :  { %v116_v52 = vld [vmem:[#allocation2 + $0x70] sm:$0xff]  ;;  %v158_v53 = vld [vmem:[#allocation2 + $0x1c0] sm:$0xff]  ;;  %v117_v54 = vld [vmem:[#allocation2 + $0x78] sm:$0xff] }
  0x7e   :  { %3309 = vmatpush3.bf16.msra.mxu0 %v3306_v12  ;;  %3385 = vmatpush3.bf16.msra.mxu1 %v3306_v12  ;;  %v159_v55 = vld [vmem:[#allocation2 + $0x1c8] sm:$0xff]  ;;  %v118_v56 = vld [vmem:[#allocation2 + $0x80] sm:$0xff]  ;;  %v160_v57 = vld [vmem:[#allocation2 + $0x1d0] sm:$0xff] }
  0x7f   :  { %3311 = vmatprep.subr.bf16.mxu0 %v3310_v15  ;;  %3378 = vmatprep.subr.bf16.mxu1 %v3310_v15  ;;  %v119_v58 = vld [vmem:[#allocation2 + $0x88] sm:$0xff]  ;;  %v161_v59 = vld [vmem:[#allocation2 + $0x1d8] sm:$0xff]  ;;  %v120_v60 = vld [vmem:[#allocation2 + $0x90] sm:$0xff] }
  0x80   :  { %v162_v61 = vld [vmem:[#allocation2 + $0x1e0] sm:$0xff]  ;;  %v121_v62 = vld [vmem:[#allocation2 + $0x98] sm:$0xff]  ;;  %v163_v63 = vld [vmem:[#allocation2 + $0x1e8] sm:$0xff] }
  0x81   :  { %v122_v0 = vld [vmem:[#allocation2 + $0xa0] sm:$0xff]  ;;  %v164_v1 = vld [vmem:[#allocation2 + $0x1f0] sm:$0xff]  ;;  %v123_v2 = vld [vmem:[#allocation2 + $0xa8] sm:$0xff] }
  0x82   :  { %3313 = vmatpush3.bf16.msra.mxu0 %v3310_v15  ;;  %3386 = vmatpush3.bf16.msra.mxu1 %v3310_v15  ;;  %v165_v3 = vld [vmem:[#allocation2 + $0x1f8] sm:$0xff]  ;;  %v124_v4 = vld [vmem:[#allocation2 + $0xb0] sm:$0xff]  ;;  %v126_v6 = vld [vmem:[#allocation2 + $0xc0] sm:$0xff] }
  0x83   :  { %3315 = vmatprep.subr.bf16.mxu0 %v3314_v18  ;;  %3379 = vmatprep.subr.bf16.mxu1 %v3314_v18  ;;  %v125_v5 = vld [vmem:[#allocation2 + $0xb8] sm:$0xff]  ;;  %v127_v7 = vld [vmem:[#allocation2 + $0xc8] sm:$0xff]  ;;  %v128_v8 = vld [vmem:[#allocation2 + $0xd0] sm:$0xff] }
  0x84   :  { %v129_v9 = vld [vmem:[#allocation2 + $0xd8] sm:$0xff]  ;;  %v130_v10 = vld [vmem:[#allocation2 + $0xe0] sm:$0xff]  ;;  %v131_v11 = vld [vmem:[#allocation2 + $0xe8] sm:$0xff] }
  0x85   :  { %v132_v12 = vld [vmem:[#allocation2 + $0xf0] sm:$0xff]  ;;  %v133_v13 = vld [vmem:[#allocation2 + $0xf8] sm:$0xff]  ;;  %v134_v14 = vld [vmem:[#allocation2 + $0x100] sm:$0xff] }
  0x86   :  { %3317 = vmatpush3.bf16.msra.mxu0 %v3314_v18  ;;  %3387 = vmatpush3.bf16.msra.mxu1 %v3314_v18  ;;  %v135_v15 = vld [vmem:[#allocation2 + $0x108] sm:$0xff]  ;;  %v136_v16 = vld [vmem:[#allocation2 + $0x110] sm:$0xff]  ;;  %v137_v17 = vld [vmem:[#allocation2 + $0x118] sm:$0xff] }
  0x87   :  { %3319 = vmatprep.subr.bf16.mxu0 %v3318_v22  ;;  %3380 = vmatprep.subr.bf16.mxu1 %v3318_v22  ;;  %v138_v18 = vld [vmem:[#allocation2 + $0x120] sm:$0xff]  ;;  %v139_v19 = vld [vmem:[#allocation2 + $0x128] sm:$0xff]  ;;  %v140_v20 = vld [vmem:[#allocation2 + $0x130] sm:$0xff] }
  0x88   :  { %v141_v21 = vld [vmem:[#allocation2 + $0x138] sm:$0xff]  ;;  %v143_v23 = vld [vmem:[#allocation2 + $0x148] sm:$0xff] }
  0x89   :  { %v779_v24 = vld [vmem:[#allocation8] sm:$0xff] }
  0x8a   :  { %3321 = vmatpush3.bf16.msra.mxu0 %v3318_v22  ;;  %3388 = vmatpush3.bf16.msra.mxu1 %v3318_v22  ;;  %v142_v22 = vld [vmem:[#allocation2 + $0x140] sm:$0xff] }
  0x8b   :  { %3323 = vmatprep.subr.bf16.mxu0 %v3322_v25  ;;  %3381 = vmatprep.subr.bf16.mxu1 %v3322_v25 }
  0x8e   :  { %3325 = vmatpush3.bf16.msra.mxu0 %v3322_v25  ;;  %3389 = vmatpush3.bf16.msra.mxu1 %v3322_v25  ;;  %v780_v25 = vld [vmem:[#allocation8 + $0x8] sm:$0xff] }
  0x91   :  { %3129 = vmatmul.mubr.f32.vlgmr.msra.gmra.mrb[0].mxu0 %v103_v26  ;;  %3192 = vmatmul.mubr.f32.vlgmr.msra.gmra.mrb[0].mxu1 %v145_v27  ;;  %v9928_v26 = vmov 0.0|0.0   ;;  %v3714_v27 = vpack.c.bf16 %v780_v25, %v779_v24  ;;  %v9930_v24 = vmov 0.0  }
  0x92   :  { %3131 = vmatprep.mubr.f32.mxu0 %v104_v28  ;;  %3194 = vmatprep.mubr.f32.mxu1 %v146_v29  ;;  %v781_v28 = vld [vmem:[#allocation8 + $0x10] sm:$0xff]  ;;  %v782_v29 = vld [vmem:[#allocation8 + $0x18] sm:$0xff] }
  0x93   :  { %3326 = vmatprep.subr.bf16.mxu1 %v9928_v26 }
  0x94   :  { %3328 = vmatpush3.bf16.msra.mxu1 %v3714_v27 }
  0x95   :  { %3132 = vmatmul.mubr.f32.gmra.mrb[2].mxu0 %v105_v30  ;;  %3195 = vmatmul.mubr.f32.gmra.mrb[2].mxu1 %v147_v31  ;;  %v3718_v30 = vpack.c.bf16 %v782_v29, %v781_v28  ;;  %v783_v31 = vld [vmem:[#allocation8 + $0x20] sm:$0xff] }
  0x96   :  { %3134 = vmatprep.mubr.f32.mxu0 %v106_v32  ;;  %3197 = vmatprep.mubr.f32.mxu1 %v148_v33  ;;  %v784_v32 = vld [vmem:[#allocation8 + $0x28] sm:$0xff] }
  0x97   :  { %3329 = vmatprep.subr.bf16.mxu1 %v9928_v26  ;;  %v3722_v33 = vpack.c.bf16 %v784_v32, %v783_v31 }
  0x98   :  { %3331 = vmatpush3.bf16.msra.mxu1 %v3718_v30 }
  0x99   :  { %3135 = vmatmul.mubr.f32.gmra.mrb[4].mxu0 %v107_v34  ;;  %3198 = vmatmul.mubr.f32.gmra.mrb[4].mxu1 %v149_v35  ;;  %v3725_v34 = vld [vmem:[#allocation7] ss:$0 sm:$0xff]  ;;  %v785_v35 = vld [vmem:[#allocation8 + $0x30] sm:$0xff] }
  0x9a   :  { %3137 = vmatprep.mubr.f32.mxu0 %v108_v36  ;;  %3200 = vmatprep.mubr.f32.mxu1 %v150_v37  ;;  %v786_v36 = vld [vmem:[#allocation8 + $0x38] sm:$0xff] }
  0x9b   :  { %3332 = vmatprep.subr.bf16.mxu1 %v9928_v26  ;;  %v3728_v37 = vpack.c.bf16 %v786_v36, %v785_v35 }
  0x9c   :  { %3334 = vmatpush3.bf16.msra.mxu1 %v3722_v33 }
  0x9d   :  { %3138 = vmatmul.mubr.f32.gmra.mrb[6].mxu0 %v109_v38  ;;  %3201 = vmatmul.mubr.f32.gmra.mrb[6].mxu1 %v151_v39 }
  0x9e   :  { %3140 = vmatprep.mubr.f32.mxu0 %v110_v40  ;;  %3203 = vmatprep.mubr.f32.mxu1 %v152_v41 }
  0x9f   :  { %3335 = vmatprep.subr.bf16.mxu1 %v9928_v26 }
  0xa0   :  { %3337 = vmatpush3.bf16.msra.mxu1 %v3728_v37 }
  0xa1   :  { %3141 = vmatmul.mubr.f32.gmra.mrb[8].mxu0 %v111_v42  ;;  %3204 = vmatmul.mubr.f32.gmra.mrb[8].mxu1 %v153_v43 }
  0xa2   :  { %3143 = vmatprep.mubr.f32.mxu0 %v112_v44  ;;  %3206 = vmatprep.mubr.f32.mxu1 %v154_v45  ;;  %v787_v45 = vld [vmem:[#allocation8 + $0x40] sm:$0xff] }
  0xa3   :  { %3338 = vmatprep.subr.bf16.mxu1 %v9928_v26 }
  0xa5   :  { %3144 = vmatmul.mubr.f32.gmra.mrb[10].mxu0 %v113_v46  ;;  %3207 = vmatmul.mubr.f32.gmra.mrb[10].mxu1 %v155_v47  ;;  %v788_v46 = vld [vmem:[#allocation8 + $0x48] sm:$0xff] }
  0xa6   :  { %3146 = vmatprep.mubr.f32.mxu0 %v114_v48  ;;  %3209 = vmatprep.mubr.f32.mxu1 %v156_v49 }
  0xa9   :  { %3147 = vmatmul.mubr.f32.gmra.mrb[12].mxu0 %v115_v50  ;;  %3210 = vmatmul.mubr.f32.gmra.mrb[12].mxu1 %v157_v51  ;;  %v3748_v50 = vpack.c.bf16 %v788_v46, %v787_v45 }
  0xaa   :  { %3149 = vmatprep.mubr.f32.mxu0 %v116_v52  ;;  %3212 = vmatprep.mubr.f32.mxu1 %v158_v53 }
  0xab   :  { %3340 = vmatpush3.bf16.msra.mxu1 %v3748_v50 }
  0xac   :  { %3341 = vmatprep.subr.bf16.mxu1 %v9928_v26 }
  0xad   :  { %3150 = vmatmul.mubr.f32.gmra.mrb[14].mxu0 %v117_v54  ;;  %3213 = vmatmul.mubr.f32.gmra.mrb[14].mxu1 %v159_v55 }
  0xae   :  { %3152 = vmatprep.mubr.f32.mxu0 %v118_v56  ;;  %3215 = vmatprep.mubr.f32.mxu1 %v160_v57  ;;  %v789_v56 = vld [vmem:[#allocation8 + $0x50] sm:$0xff]  ;;  %v790_v57 = vld [vmem:[#allocation8 + $0x58] sm:$0xff] }
  0xb1   :  { %3153 = vmatmul.mubr.f32.gmra.mrb[16].mxu0 %v119_v58  ;;  %3216 = vmatmul.mubr.f32.gmra.mrb[16].mxu1 %v161_v59 }
  0xb2   :  { %3155 = vmatprep.mubr.f32.mxu0 %v120_v60  ;;  %3218 = vmatprep.mubr.f32.mxu1 %v162_v61  ;;  %v3764_v61 = vpack.c.bf16 %v790_v57, %v789_v56 }
  0xb4   :  { %3343 = vmatpush3.bf16.msra.mxu1 %v3764_v61 }
  0xb5   :  { %3156 = vmatmul.mubr.f32.gmra.mrb[18].mxu0 %v121_v62  ;;  %3219 = vmatmul.mubr.f32.gmra.mrb[18].mxu1 %v163_v63 }
  0xb6   :  { %3158 = vmatprep.mubr.f32.mxu0 %v122_v0  ;;  %3221 = vmatprep.mubr.f32.mxu1 %v164_v1 }
  0xb7   :  { %3344 = vmatprep.subr.bf16.mxu1 %v9928_v26 }
  0xb9   :  { %3159 = vmatmul.mubr.f32.gmra.mrb[20].mxu0 %v123_v2  ;;  %3222 = vmatmul.mubr.f32.gmra.mrb[20].mxu1 %v165_v3 }
  0xba   :  { %3161 = vmatprep.mubr.f32.mxu0 %v124_v4  ;;  %v791_v4 = vld [vmem:[#allocation8 + $0x60] sm:$0xff]  ;;  %3256 = vmatprep.mubr.msk.f32.mxu1 %vm3577_vm0, %v9930_v24 }
  0xbd   :  { %3162 = vmatmul.mubr.f32.gmra.mrb[22].mxu0 %v125_v5  ;;  %v792_v5 = vld [vmem:[#allocation8 + $0x68] sm:$0xff] }
  0xbe   :  { %3164 = vmatprep.mubr.f32.mxu0 %v126_v6 }
  0xc1   :  { %3165 = vmatmul.mubr.f32.gmra.mrb[24].mxu0 %v127_v7 }
  0xc2   :  { %3167 = vmatprep.mubr.f32.mxu0 %v128_v8 }
  0xc5   :  { %3168 = vmatmul.mubr.f32.gmra.mrb[26].mxu0 %v129_v9 }
  0xc6   :  { %3170 = vmatprep.mubr.f32.mxu0 %v130_v10  ;;  %v3780_v10 = vpack.c.bf16 %v792_v5, %v791_v4 }
  0xc8   :  { %3346 = vmatpush3.bf16.msra.mxu1 %v3780_v10 }
  0xc9   :  { %3171 = vmatmul.mubr.f32.gmra.mrb[28].mxu0 %v131_v11  ;;  %3347 = vmatprep.subr.bf16.mxu1 %v9928_v26 }
  0xca   :  { %3173 = vmatprep.mubr.f32.mxu0 %v132_v12 }
  0xcd   :  { %3174 = vmatmul.mubr.f32.gmra.mrb[30].mxu0 %v133_v13 }
  0xce   :  { %3176 = vmatprep.mubr.f32.mxu0 %v134_v14 }
  0xd1   :  { %3177 = vmatmul.mubr.f32.gmra.mrb[32].mxu0 %v135_v15 }
  0xd2   :  { %3179 = vmatprep.mubr.f32.mxu0 %v136_v16 }
  0xd5   :  { %3180 = vmatmul.mubr.f32.gmra.mrb[34].mxu0 %v137_v17  ;;  %v793_v17 = vld [vmem:[#allocation8 + $0x70] sm:$0xff] }
  0xd6   :  { %3182 = vmatprep.mubr.f32.mxu0 %v138_v18  ;;  %v794_v18 = vld [vmem:[#allocation8 + $0x78] sm:$0xff] }
  0xd9   :  { %3183 = vmatmul.mubr.f32.gmra.mrb[36].mxu0 %v139_v19  ;;  %v3792_v19 = vpack.c.bf16 %v794_v18, %v793_v17 }
  0xda   :  { %3185 = vmatprep.mubr.f32.mxu0 %v140_v20 }
  0xdb   :  { %3349 = vmatpush3.bf16.msra.mxu1 %v3792_v19 }
  0xdc   :  { %3350 = vmatprep.subr.bf16.mxu1 %v9928_v26 }
  0xdd   :  { %3186 = vmatmul.mubr.f32.gmra.mrb[38].mxu0 %v141_v21 }
  0xde   :  { %3188 = vmatprep.mubr.f32.mxu0 %v142_v22 }
  0xe1   :  { %3189 = vmatmul.mubr.f32.gmra.mrb[40].mxu0 %v143_v23 }
 0x164   :  { %v3730_v38 = vpop.f32.mrb[0].mxu0  ;;  %v3732_v39 = vpop.f32.mrb[0].mxu1 }
 0x165   :  { %9995 = vst [vmem:[#allocation19_spill] sm:$0xff] %v3732_v39  ;;  %v575_v40 = vadd.f32 %v3730_v38, %v3725_v34  ;;  %v3736_v41 = vpop.f32.mrb[1].mxu0  ;;  %v3738_v42 = vpop.f32.mrb[1].mxu1 }
 0x166   :  { %9996 = vst [vmem:[#allocation20_spill] sm:$0xff] %v3738_v42  ;;  %v574_v43 = vadd.f32 %v3725_v34, %v3736_v41 }
 0x167   :  { %v639_v44 = vmax.f32 %v575_v40, 0.0 }
 0x168   :  { %v638_v47 = vmax.f32 %v574_v43, 0.0  ;;  %v3744_v48 = vpop.f32.mrb[2].mxu0  ;;  %v3746_v49 = vpop.f32.mrb[2].mxu1 }
 0x169   :  { %9997 = vst [vmem:[#allocation21_spill] sm:$0xff] %v3744_v48  ;;  %9998 = vst [vmem:[#allocation22_spill] sm:$0xff] %v3746_v49  ;;  %v3750_v51 = vpop.f32.mrb[3].mxu0  ;;  %v3752_v52 = vpop.f32.mrb[3].mxu1  ;;  %v577_v54 = vadd.f32 %v3744_v48, %v3725_v34 }
 0x16a   :  { %9999 = vst [vmem:[#allocation23_spill] sm:$0xff] %v3752_v52  ;;  %v702_v53 = vadd.f32 %v639_v44, %v638_v47  ;;  %v576_v55 = vadd.f32 %v3725_v34, %v3750_v51 }
 0x16b   :  { %v641_v1 = vmax.f32 %v577_v54, 0.0 }
 0x16c   :  { %v640_v58 = vmax.f32 %v576_v55, 0.0  ;;  %v3760_v59 = vpop.f32.mrb[4].mxu0  ;;  %v3762_v60 = vpop.f32.mrb[4].mxu1 }
 0x16d   :  { %10000 = vst [vmem:[#allocation24_spill] sm:$0xff] %v3760_v59  ;;  %10001 = vst [vmem:[#allocation25_spill] sm:$0xff] %v3762_v60  ;;  %v579_v62 = vadd.f32 %v3760_v59, %v3725_v34  ;;  %v3768_v63 = vpop.f32.mrb[5].mxu0  ;;  %v3770_v0 = vpop.f32.mrb[5].mxu1  ;;  %v4216_v59 = vld [vmem:[#allocation11 + $0xe8] sm:$0xff] }
 0x16e   :  { %10002 = vst [vmem:[#allocation26_spill] sm:$0xff] %v3768_v63  ;;  %10003 = vst [vmem:[#allocation27_spill] sm:$0xff] %v3770_v0  ;;  %v703_v2 = vadd.f32 %v702_v53, %v640_v58  ;;  %v578_v3 = vadd.f32 %v3725_v34, %v3768_v63  ;;  %v4238_v63 = vld [vmem:[#allocation11 + $0xf0] sm:$0xff] }
 0x16f   :  { %v643_v11 = vmax.f32 %v579_v62, 0.0 }
 0x170   :  { %v642_v6 = vmax.f32 %v578_v3, 0.0  ;;  %v704_v7 = vadd.f32 %v703_v2, %v641_v1  ;;  %v3776_v8 = vpop.f32.mrb[6].mxu0  ;;  %v3778_v9 = vpop.f32.mrb[6].mxu1 }
 0x171   :  { %10004 = vst [vmem:[#allocation28_spill] sm:$0xff] %v3776_v8  ;;  %10005 = vst [vmem:[#allocation29_spill] sm:$0xff] %v3778_v9  ;;  %v3782_v12 = vpop.f32.mrb[7].mxu0  ;;  %v3784_v13 = vpop.f32.mrb[7].mxu1  ;;  %v581_v15 = vadd.f32 %v3776_v8, %v3725_v34  ;;  %v4196_v8 = vld [vmem:[#allocation11 + $0xd8] sm:$0xff] }
 0x172   :  { %10006 = vst [vmem:[#allocation30_spill] sm:$0xff] %v3782_v12  ;;  %10007 = vst [vmem:[#allocation31_spill] sm:$0xff] %v3784_v13  ;;  %v705_v14 = vadd.f32 %v704_v7, %v642_v6  ;;  %v580_v16 = vadd.f32 %v3725_v34, %v3782_v12  ;;  %v4214_v12 = vld [vmem:[#allocation11 + $0xd0] sm:$0xff] }
 0x173   :  { %v645_v29 = vmax.f32 %v581_v15, 0.0 }
 0x174   :  { %v644_v20 = vmax.f32 %v580_v16, 0.0  ;;  %v706_v21 = vadd.f32 %v705_v14, %v643_v11  ;;  %v3794_v22 = vpop.f32.mrb[8].mxu0  ;;  %v3796_v23 = vpop.f32.mrb[8].mxu1 }
 0x175   :  { %10008 = vst [vmem:[#allocation32_spill] sm:$0xff] %v3794_v22  ;;  %10009 = vst [vmem:[#allocation33_spill] sm:$0xff] %v3796_v23  ;;  %v3800_v25 = vpop.f32.mrb[9].mxu0  ;;  %v3802_v28 = vpop.f32.mrb[9].mxu1  ;;  %v583_v32 = vadd.f32 %v3794_v22, %v3725_v34  ;;  %v4192_v22 = vld [vmem:[#allocation11 + $0xc8] sm:$0xff] }
 0x176   :  { %10010 = vst [vmem:[#allocation34_spill] sm:$0xff] %v3800_v25  ;;  %10011 = vst [vmem:[#allocation35_spill] sm:$0xff] %v3802_v28  ;;  %v707_v31 = vadd.f32 %v706_v21, %v644_v20  ;;  %v582_v35 = vadd.f32 %v3725_v34, %v3800_v25  ;;  %v4194_v25 = vld [vmem:[#allocation11 + $0xc0] sm:$0xff] }
 0x177   :  { %v647_v47 = vmax.f32 %v583_v32, 0.0 }
 0x178   :  { %v646_v36 = vmax.f32 %v582_v35, 0.0  ;;  %v708_v40 = vadd.f32 %v707_v31, %v645_v29  ;;  %v3810_v43 = vpop.f32.mrb[10].mxu0  ;;  %v3812_v44 = vpop.f32.mrb[10].mxu1 }
 0x179   :  { %10012 = vst [vmem:[#allocation36_spill] sm:$0xff] %v3810_v43  ;;  %10013 = vst [vmem:[#allocation37_spill] sm:$0xff] %v3812_v44  ;;  %v3814_v45 = vpop.f32.mrb[11].mxu0  ;;  %v3816_v46 = vpop.f32.mrb[11].mxu1  ;;  %v585_v54 = vadd.f32 %v3810_v43, %v3725_v34  ;;  %v4174_v43 = vld [vmem:[#allocation11 + $0xb0] sm:$0xff] }
 0x17a   :  { %10014 = vst [vmem:[#allocation38_spill] sm:$0xff] %v3814_v45  ;;  %10015 = vst [vmem:[#allocation39_spill] sm:$0xff] %v3816_v46  ;;  %v709_v53 = vadd.f32 %v708_v40, %v646_v36  ;;  %v584_v55 = vadd.f32 %v3725_v34, %v3814_v45 }
 0x17b   :  { %v649_v3 = vmax.f32 %v585_v54, 0.0 }
 0x17c   :  { %v648_v56 = vmax.f32 %v584_v55, 0.0  ;;  %v710_v57 = vadd.f32 %v709_v53, %v647_v47  ;;  %v3822_v58 = vpop.f32.mrb[12].mxu0  ;;  %v3824_v62 = vpop.f32.mrb[12].mxu1 }
 0x17d   :  { %10016 = vst [vmem:[#allocation40_spill] sm:$0xff] %v3822_v58  ;;  %10017 = vst [vmem:[#allocation41_spill] sm:$0xff] %v3824_v62  ;;  %v3826_v1 = vpop.f32.mrb[13].mxu0  ;;  %v3828_v2 = vpop.f32.mrb[13].mxu1  ;;  %v587_v5 = vadd.f32 %v3822_v58, %v3725_v34  ;;  %v4170_v58 = vld [vmem:[#allocation11 + $0xa0] sm:$0xff] }
 0x17e   :  { %10018 = vst [vmem:[#allocation42_spill] sm:$0xff] %v3826_v1  ;;  %10019 = vst [vmem:[#allocation43_spill] sm:$0xff] %v3828_v2  ;;  %v711_v4 = vadd.f32 %v710_v57, %v648_v56  ;;  %v586_v6 = vadd.f32 %v3725_v34, %v3826_v1  ;;  %v4172_v1 = vld [vmem:[#allocation11 + $0xb8] sm:$0xff] }
 0x17f   :  { %v651_v18 = vmax.f32 %v587_v5, 0.0 }
 0x180   :  { %v650_v7 = vmax.f32 %v586_v6, 0.0  ;;  %v712_v11 = vadd.f32 %v711_v4, %v649_v3  ;;  %v3834_v14 = vpop.f32.mrb[14].mxu0  ;;  %v3836_v15 = vpop.f32.mrb[14].mxu1 }
 0x181   :  { %10020 = vst [vmem:[#allocation44_spill] sm:$0xff] %v3834_v14  ;;  %10021 = vst [vmem:[#allocation45_spill] sm:$0xff] %v3836_v15  ;;  %v3838_v16 = vpop.f32.mrb[15].mxu0  ;;  %v3840_v17 = vpop.f32.mrb[15].mxu1  ;;  %v589_v21 = vadd.f32 %v3834_v14, %v3725_v34 }
 0x182   :  { %10022 = vst [vmem:[#allocation46_spill] sm:$0xff] %v3838_v16  ;;  %10023 = vst [vmem:[#allocation47_spill] sm:$0xff] %v3840_v17  ;;  %v713_v20 = vadd.f32 %v712_v11, %v650_v7  ;;  %v588_v29 = vadd.f32 %v3725_v34, %v3838_v16 }
 0x183   :  { %v653_v53 = vmax.f32 %v589_v21, 0.0 }
 0x184   :  { %v652_v31 = vmax.f32 %v588_v29, 0.0  ;;  %v714_v32 = vadd.f32 %v713_v20, %v651_v18  ;;  %v3846_v35 = vpop.f32.mrb[16].mxu0  ;;  %v3848_v36 = vpop.f32.mrb[16].mxu1 }
 0x185   :  { %10024 = vst [vmem:[#allocation48_spill] sm:$0xff] %v3846_v35  ;;  %10025 = vst [vmem:[#allocation49_spill] sm:$0xff] %v3848_v36  ;;  %v3850_v40 = vpop.f32.mrb[17].mxu0  ;;  %v3852_v47 = vpop.f32.mrb[17].mxu1  ;;  %v591_v55 = vadd.f32 %v3846_v35, %v3725_v34 }
 0x186   :  { %10026 = vst [vmem:[#allocation50_spill] sm:$0xff] %v3850_v40  ;;  %10027 = vst [vmem:[#allocation51_spill] sm:$0xff] %v3852_v47  ;;  %v715_v54 = vadd.f32 %v714_v32, %v652_v31  ;;  %v590_v56 = vadd.f32 %v3725_v34, %v3850_v40 }
 0x187   :  { %v655_v11 = vmax.f32 %v591_v55, 0.0 }
 0x188   :  { %v654_v57 = vmax.f32 %v590_v56, 0.0  ;;  %v716_v3 = vadd.f32 %v715_v54, %v653_v53  ;;  %v3858_v4 = vpop.f32.mrb[18].mxu0  ;;  %v3860_v5 = vpop.f32.mrb[18].mxu1 }
 0x189   :  { %10028 = vst [vmem:[#allocation52_spill] sm:$0xff] %v3858_v4  ;;  %10029 = vst [vmem:[#allocation53_spill] sm:$0xff] %v3860_v5  ;;  %v3862_v6 = vpop.f32.mrb[19].mxu0  ;;  %v3864_v7 = vpop.f32.mrb[19].mxu1  ;;  %v593_v20 = vadd.f32 %v3858_v4, %v3725_v34 }
 0x18a   :  { %10030 = vst [vmem:[#allocation54_spill] sm:$0xff] %v3862_v6  ;;  %10031 = vst [vmem:[#allocation55_spill] sm:$0xff] %v3864_v7  ;;  %v717_v18 = vadd.f32 %v716_v3, %v654_v57  ;;  %v592_v21 = vadd.f32 %v3725_v34, %v3862_v6 }
 0x18b   :  { %v657_v26 = vmax.f32 %v593_v20, 0.0 }
 0x18c   :  { %v656_v29 = vmax.f32 %v592_v21, 0.0  ;;  %v718_v31 = vadd.f32 %v717_v18, %v655_v11  ;;  %v3870_v32 = vpop.f32.mrb[20].mxu0  ;;  %v3872_v53 = vpop.f32.mrb[20].mxu1 }
 0x18d   :  { %10032 = vst [vmem:[#allocation56_spill] sm:$0xff] %v3870_v32  ;;  %10033 = vst [vmem:[#allocation57_spill] sm:$0xff] %v3872_v53  ;;  %v3874_v54 = vpop.f32.mrb[21].mxu0  ;;  %v3876_v56 = vpop.f32.mrb[21].mxu1  ;;  %v595_v55 = vadd.f32 %v3870_v32, %v3725_v34 }
 0x18e   :  { %10034 = vst [vmem:[#allocation58_spill] sm:$0xff] %v3874_v54  ;;  %10035 = vst [vmem:[#allocation59_spill] sm:$0xff] %v3876_v56  ;;  %v719_v24 = vadd.f32 %v718_v31, %v656_v29  ;;  %v594_v57 = vadd.f32 %v3725_v34, %v3874_v54 }
 0x18f   :  { %v659_v18 = vmax.f32 %v595_v55, 0.0 }
 0x190   :  { %v658_v3 = vmax.f32 %v594_v57, 0.0  ;;  %v720_v4 = vadd.f32 %v719_v24, %v657_v26  ;;  %v3882_v21 = vpop.f32.mrb[22].mxu0 }
 0x191   :  { %10036 = vst [vmem:[#allocation60_spill] sm:$0xff] %v3882_v21  ;;  %v3884_v11 = vpop.f32.mrb[23].mxu0  ;;  %v597_v35 = vadd.f32 %v3882_v21, %v3725_v34 }
 0x192   :  { %10037 = vst [vmem:[#allocation61_spill] sm:$0xff] %v3884_v11  ;;  %v721_v6 = vadd.f32 %v720_v4, %v658_v3  ;;  %v596_v20 = vadd.f32 %v3725_v34, %v3884_v11 }
 0x193   :  { %v661_v57 = vmax.f32 %v597_v35, 0.0 }
 0x194   :  { %v660_v29 = vmax.f32 %v596_v20, 0.0  ;;  %v722_v31 = vadd.f32 %v721_v6, %v659_v18  ;;  %v3890_v32 = vpop.f32.mrb[24].mxu0 }
 0x195   :  { %10038 = vst [vmem:[#allocation62_spill] sm:$0xff] %v3890_v32  ;;  %v3892_v40 = vpop.f32.mrb[25].mxu0  ;;  %v599_v24 = vadd.f32 %v3890_v32, %v3725_v34 }
 0x196   :  { %10039 = vst [vmem:[#allocation63_spill] sm:$0xff] %v3892_v40  ;;  %v723_v26 = vadd.f32 %v722_v31, %v660_v29  ;;  %v598_v4 = vadd.f32 %v3725_v34, %v3892_v40 }
 0x197   :  { %v663_v20 = vmax.f32 %v599_v24, 0.0 }
 0x198   :  { %v662_v55 = vmax.f32 %v598_v4, 0.0  ;;  %v724_v3 = vadd.f32 %v723_v26, %v661_v57  ;;  %v3898_v21 = vpop.f32.mrb[26].mxu0 }
 0x199   :  { %10040 = vst [vmem:[#allocation64_spill] sm:$0xff] %v3898_v21  ;;  %v3900_v54 = vpop.f32.mrb[27].mxu0  ;;  %v601_v18 = vadd.f32 %v3898_v21, %v3725_v34 }
 0x19a   :  { %10041 = vst [vmem:[#allocation65_spill] sm:$0xff] %v3900_v54  ;;  %v725_v6 = vadd.f32 %v724_v3, %v662_v55  ;;  %v600_v35 = vadd.f32 %v3725_v34, %v3900_v54 }
 0x19b   :  { %v665_v4 = vmax.f32 %v601_v18, 0.0 }
 0x19c   :  { %v664_v29 = vmax.f32 %v600_v35, 0.0  ;;  %v726_v31 = vadd.f32 %v725_v6, %v663_v20  ;;  %v3906_v32 = vpop.f32.mrb[28].mxu0 }
 0x19d   :  { %10042 = vst [vmem:[#allocation66_spill] sm:$0xff] %v3906_v32  ;;  %v3908_v11 = vpop.f32.mrb[29].mxu0  ;;  %v603_v26 = vadd.f32 %v3906_v32, %v3725_v34 }
 0x19e   :  { %10043 = vst [vmem:[#allocation67_spill] sm:$0xff] %v3908_v11  ;;  %v727_v57 = vadd.f32 %v726_v31, %v664_v29  ;;  %v602_v24 = vadd.f32 %v3725_v34, %v3908_v11 }
 0x19f   :  { %v667_v35 = vmax.f32 %v603_v26, 0.0 }
 0x1a0   :  { %v666_v55 = vmax.f32 %v602_v24, 0.0  ;;  %v728_v3 = vadd.f32 %v727_v57, %v665_v4  ;;  %v3914_v21 = vpop.f32.mrb[30].mxu0 }
 0x1a1   :  { %10044 = vst [vmem:[#allocation68_spill] sm:$0xff] %v3914_v21  ;;  %v3916_v40 = vpop.f32.mrb[31].mxu0  ;;  %v605_v6 = vadd.f32 %v3914_v21, %v3725_v34 }
 0x1a2   :  { %10045 = vst [vmem:[#allocation69_spill] sm:$0xff] %v3916_v40  ;;  %v729_v20 = vadd.f32 %v728_v3, %v666_v55  ;;  %v604_v18 = vadd.f32 %v3725_v34, %v3916_v40 }
 0x1a3   :  { %v669_v57 = vmax.f32 %v605_v6, 0.0 }
 0x1a4   :  { %v668_v29 = vmax.f32 %v604_v18, 0.0  ;;  %v730_v31 = vadd.f32 %v729_v20, %v667_v35  ;;  %v3922_v32 = vpop.f32.mrb[32].mxu0 }
 0x1a5   :  { %10046 = vst [vmem:[#allocation70_spill] sm:$0xff] %v3922_v32  ;;  %v607_v24 = vadd.f32 %v3922_v32, %v3725_v34  ;;  %v3926_v4 = vpop.f32.mrb[33].mxu0 }
 0x1a6   :  { %10047 = vst [vmem:[#allocation71_spill] sm:$0xff] %v3926_v4  ;;  %v731_v11 = vadd.f32 %v730_v31, %v668_v29  ;;  %v606_v26 = vadd.f32 %v3725_v34, %v3926_v4 }
 0x1a7   :  { %v671_v55 = vmax.f32 %v607_v24, 0.0 }
 0x1a8   :  { %v3930_v3 = vadd.f32 %v731_v11, %v669_v57  ;;  %v670_v21 = vmax.f32 %v606_v26, 0.0  ;;  %v3932_v54 = vpop.f32.mrb[34].mxu0 }
 0x1a9   :  { %10048 = vst [vmem:[#allocation72_spill] sm:$0xff] %v3932_v54  ;;  %v3934_v18 = vpop.f32.mrb[35].mxu0  ;;  %v609_v20 = vadd.f32 %v3932_v54, %v3725_v34 }
 0x1aa   :  { %10049 = vst [vmem:[#allocation73_spill] sm:$0xff] %v3934_v18  ;;  %v739_v35 = vadd.f32 %v671_v55, %v670_v21  ;;  %v608_v32 = vadd.f32 %v3725_v34, %v3934_v18 }
 0x1ab   :  { %v673_v24 = vmax.f32 %v609_v20, 0.0 }
 0x1ac   :  { %v672_v6 = vmax.f32 %v608_v32, 0.0  ;;  %v3940_v29 = vpop.f32.mrb[36].mxu0 }
 0x1ad   :  { %10050 = vst [vmem:[#allocation74_spill] sm:$0xff] %v3940_v29  ;;  %v3942_v31 = vpop.f32.mrb[37].mxu0  ;;  %v611_v57 = vadd.f32 %v3940_v29, %v3725_v34 }
 0x1ae   :  { %10051 = vst [vmem:[#allocation75_spill] sm:$0xff] %v3942_v31  ;;  %v740_v11 = vadd.f32 %v739_v35, %v672_v6  ;;  %v610_v26 = vadd.f32 %v3725_v34, %v3942_v31  ;;  %v618_v31 = vadd.f32 %v3725_v34, %v3752_v52  ;;  %v4144_v52 = vld [vmem:[#allocation11 + $0xa8] sm:$0xff] }
 0x1af   :  { %v675_v18 = vmax.f32 %v611_v57, 0.0 }
 0x1b0   :  { %v674_v21 = vmax.f32 %v610_v26, 0.0  ;;  %v741_v55 = vadd.f32 %v740_v11, %v673_v24  ;;  %v3948_v4 = vpop.f32.mrb[38].mxu0  ;;  %v616_v24 = vadd.f32 %v3725_v34, %v3738_v42 }
 0x1b1   :  { %10052 = vst [vmem:[#allocation76_spill] sm:$0xff] %v3948_v4  ;;  %v3950_v54 = vpop.f32.mrb[39].mxu0  ;;  %v613_v40 = vadd.f32 %v3948_v4, %v3725_v34 }
 0x1b2   :  { %10053 = vst [vmem:[#allocation77_spill] sm:$0xff] %v3950_v54  ;;  %v742_v32 = vadd.f32 %v741_v55, %v674_v21  ;;  %v612_v35 = vadd.f32 %v3725_v34, %v3950_v54  ;;  %v680_v54 = vmax.f32 %v616_v24, 0.0 }
 0x1b3   :  { %v677_v11 = vmax.f32 %v613_v40, 0.0 }
 0x1b4   :  { %v676_v20 = vmax.f32 %v612_v35, 0.0  ;;  %v743_v6 = vadd.f32 %v742_v32, %v675_v18  ;;  %v3956_v29 = vpop.f32.mrb[40].mxu0  ;;  %v617_v18 = vadd.f32 %v3732_v39, %v3725_v34 }
 0x1b5   :  { %10054 = vst [vmem:[#allocation78_spill] sm:$0xff] %v3956_v29  ;;  %v3958_v14 = vpop.f32.mrb[41].mxu0  ;;  %v615_v57 = vadd.f32 %v3956_v29, %v3725_v34  ;;  %v682_v29 = vmax.f32 %v618_v31, 0.0 }
 0x1b6   :  { %10055 = vst [vmem:[#allocation79_spill] sm:$0xff] %v3958_v14  ;;  %v744_v26 = vadd.f32 %v743_v6, %v676_v20  ;;  %v614_v21 = vadd.f32 %v3725_v34, %v3958_v14  ;;  %v681_v40 = vmax.f32 %v617_v18, 0.0  ;;  %v619_v6 = vadd.f32 %v3746_v49, %v3725_v34  ;;  %v4142_v49 = vld [vmem:[#allocation11 + $0x90] sm:$0xff] }
 0x1b7   :  { %v679_v32 = vmax.f32 %v615_v57, 0.0 }
 0x1b8   :  { %v678_v55 = vmax.f32 %v614_v21, 0.0  ;;  %v745_v4 = vadd.f32 %v744_v26, %v677_v11  ;;  %v620_v21 = vadd.f32 %v3725_v34, %v3770_v0  ;;  %v621_v26 = vadd.f32 %v3762_v60, %v3725_v34 }
 0x1b9   :  { %v683_v57 = vmax.f32 %v619_v6, 0.0 }
 0x1ba   :  { %v746_v35 = vadd.f32 %v745_v4, %v678_v55  ;;  %v684_v24 = vmax.f32 %v620_v21, 0.0  ;;  %v622_v55 = vadd.f32 %v3725_v34, %v3784_v13  ;;  %v685_v18 = vmax.f32 %v621_v26, 0.0  ;;  %v4131_v13 = vld [vmem:[#allocation11 + $0x80] sm:$0xff] }
 0x1bc   :  { %v747_v42 = vadd.f32 %v746_v35, %v679_v32  ;;  %v686_v31 = vmax.f32 %v622_v55, 0.0  ;;  %v624_v35 = vadd.f32 %v3725_v34, %v3802_v28  ;;  %v4127_v28 = vld [vmem:[#allocation11 + $0x70] sm:$0xff] }
 0x1be   :  { %v748_v20 = vadd.f32 %v747_v42, %v680_v54  ;;  %v623_v54 = vadd.f32 %v3778_v9, %v3725_v34  ;;  %v688_v21 = vmax.f32 %v624_v35, 0.0  ;;  %v4129_v9 = vld [vmem:[#allocation11 + $0x88] sm:$0xff] }
 0x1c0   :  { %v749_v11 = vadd.f32 %v748_v20, %v681_v40  ;;  %v625_v20 = vadd.f32 %v3796_v23, %v3725_v34  ;;  %v687_v6 = vmax.f32 %v623_v54, 0.0 }
 0x1c2   :  { %v750_v4 = vadd.f32 %v749_v11, %v682_v29  ;;  %v626_v11 = vadd.f32 %v3725_v34, %v3816_v46  ;;  %v689_v26 = vmax.f32 %v625_v20, 0.0 }
 0x1c4   :  { %v751_v32 = vadd.f32 %v750_v4, %v683_v57  ;;  %v690_v55 = vmax.f32 %v626_v11, 0.0 }
 0x1c6   :  { %v752_v42 = vadd.f32 %v751_v32, %v684_v24  ;;  %v627_v24 = vadd.f32 %v3812_v44, %v3725_v34  ;;  %v628_v32 = vadd.f32 %v3725_v34, %v3828_v2  ;;  %v4114_v2 = vld [vmem:[#allocation11 + $0x68] sm:$0xff]  ;;  %v4116_v44 = vld [vmem:[#allocation11 + $0x60] sm:$0xff] }
 0x1c8   :  { %v753_v40 = vadd.f32 %v752_v42, %v685_v18  ;;  %v629_v42 = vadd.f32 %v3824_v62, %v3725_v34  ;;  %v691_v54 = vmax.f32 %v627_v24, 0.0  ;;  %v692_v35 = vmax.f32 %v628_v32, 0.0  ;;  %v4112_v62 = vld [vmem:[#allocation11 + $0x50] sm:$0xff] }
 0x1ca   :  { %v754_v29 = vadd.f32 %v753_v40, %v686_v31  ;;  %v630_v40 = vadd.f32 %v3725_v34, %v3840_v17  ;;  %v693_v20 = vmax.f32 %v629_v42, 0.0 }
 0x1cc   :  { %v755_v57 = vadd.f32 %v754_v29, %v687_v6  ;;  %v694_v11 = vmax.f32 %v630_v40, 0.0 }
 0x1ce   :  { %v756_v4 = vadd.f32 %v755_v57, %v688_v21  ;;  %v631_v21 = vadd.f32 %v3836_v15, %v3725_v34  ;;  %v632_v57 = vadd.f32 %v3725_v34, %v3852_v47 }
 0x1d0   :  { %v757_v18 = vadd.f32 %v756_v4, %v689_v26  ;;  %v633_v4 = vadd.f32 %v3848_v36, %v3725_v34  ;;  %v695_v24 = vmax.f32 %v631_v21, 0.0  ;;  %v696_v32 = vmax.f32 %v632_v57, 0.0 }
 0x1d1   :  { %v637_v57 = vadd.f32 %v3872_v53, %v3725_v34 }
 0x1d2   :  { %v758_v31 = vadd.f32 %v757_v18, %v690_v55  ;;  %v634_v18 = vadd.f32 %v3725_v34, %v3864_v7  ;;  %v697_v42 = vmax.f32 %v633_v4, 0.0 }
 0x1d4   :  { %v759_v6 = vadd.f32 %v758_v31, %v691_v54  ;;  %v635_v31 = vadd.f32 %v3860_v5, %v3725_v34 }
 0x1d6   :  { %v760_v29 = vadd.f32 %v759_v6, %v692_v35  ;;  %v733_v35 = vrot.slane %v3930_v3, 4  ;;  %v698_v6 = vmax.f32 %v634_v18, 0.0  ;;  %v699_v36 = vmax.f32 %v635_v31, 0.0 }
 0x1d8   :  { %v761_v26 = vadd.f32 %v760_v29, %v693_v20  ;;  %v636_v20 = vadd.f32 %v3725_v34, %v3876_v56  ;;  %v734_v21 = vadd.f32 %v733_v35, %v3930_v3 }
 0x1da   :  { %v762_v55 = vadd.f32 %v761_v26, %v694_v11  ;;  %v700_v26 = vmax.f32 %v636_v20, 0.0 }
 0x1dc   :  { %v763_v54 = vadd.f32 %v762_v55, %v695_v24  ;;  %v735_v24 = vrot.slane %v734_v21, 2  ;;  %v701_v55 = vmax.f32 %v637_v57, 0.0 }
 0x1de   :  { %v764_v40 = vadd.f32 %v763_v54, %v696_v32  ;;  %v736_v47 = vadd.f32 %v735_v24, %v734_v21 }
 0x1e0   :  { %v765_v29 = vadd.f32 %v764_v40, %v697_v42  ;;  %v737_v54 = vrot.slane %v736_v47, 1 }
 0x1e2   :  { %v766_v11 = vadd.f32 %v765_v29, %v698_v6  ;;  %v738_v31 = vadd.f32 %v737_v54, %v736_v47 }
 0x1e4   :  { %v767_v4 = vadd.f32 %v766_v11, %v699_v36  ;;  %v777_v3 = vmul.f32 0.00390625, %v738_v31  ;;  %v10056_v36 = vmov 0.0  }
 0x1e6   :  { %v768_v5 = vadd.f32 %v767_v4, %v700_v26 }
 0x1e8   :  { %v769_v7 = vadd.f32 %v768_v5, %v701_v55  ;;  %v10057_v5 = vmov 0.0|0.0  }
 0x1ea   :  { %v770_v32 = vrot.slane %v769_v7, 4 }
 0x1ec   :  { %v771_v18 = vadd.f32 %v770_v32, %v769_v7 }
 0x1ee   :  { %v772_v15 = vrot.slane %v771_v18, 2 }
 0x1f0   :  { %v773_v56 = vadd.f32 %v772_v15, %v771_v18 }
 0x1f2   :  { %v774_v42 = vrot.slane %v773_v56, 1 }
 0x1f4   :  { %v775_v40 = vadd.f32 %v774_v42, %v773_v56 }
 0x1f6   :  { %v778_v35 = vmul.f32 0.00390625, %v775_v40 }
 0x1f8   :  { %v805_v34 = vsel %vm804_vm1, %v778_v35, %v777_v3 }
 0x1f9   :  { %3257 = vmatmul.mubr.f32.vlgmr.msra.gmra.mrb[22].mxu1 %v805_v34 }
 0x1fa   :  { %3352 = vmatpush3.bf16.msra.mxu1 %v3714_v27  ;;  %3291 = vmatprep.mubr.msk.f32.mxu1 %vm3577_vm0, %v10056_v36  ;;  %v2971_v27 = vld [vmem:[#allocation10] ss:$0 sm:$0xff] }
 0x1fb   :  { %3353 = vmatprep.subr.bf16.mxu1 %v10057_v5 }
 0x1fe   :  { %3355 = vmatpush3.bf16.msra.mxu1 %v3718_v30 }
 0x1ff   :  { %3356 = vmatprep.subr.bf16.mxu1 %v10057_v5 }
 0x202   :  { %3358 = vmatpush3.bf16.msra.mxu1 %v3722_v33 }
 0x203   :  { %3359 = vmatprep.subr.bf16.mxu1 %v10057_v5 }
 0x206   :  { %3361 = vmatpush3.bf16.msra.mxu1 %v3728_v37 }
 0x207   :  { %3362 = vmatprep.subr.bf16.mxu1 %v10057_v5 }
 0x20a   :  { %3364 = vmatpush3.bf16.msra.mxu1 %v3748_v50  ;;  %v877_v50 = vlaneseq }
 0x20b   :  { %3365 = vmatprep.subr.bf16.mxu1 %v10057_v5 }
 0x20c   :  { %v878_v47 = vand.u32 127, %v877_v50  ;;  %v909_v24 = vshrl.u32 %v877_v50, 7 }
 0x20e   :  { %3367 = vmatpush3.bf16.msra.mxu1 %v3764_v61  ;;  %v4028_v18 = vsub.s32 0, %v909_v24  ;;  %v4030_v54 = vsub.s32 1, %v909_v24  ;;  %v4066_v24 = vld [vmem:[#allocation11 + $0x8] sm:$0xff] }
 0x20f   :  { %3368 = vmatprep.subr.bf16.mxu1 %v10057_v5 }
 0x212   :  { %3370 = vmatpush3.bf16.msra.mxu1 %v3780_v10 }
 0x213   :  { %3371 = vmatprep.subr.bf16.mxu1 %v10057_v5 }
 0x216   :  { %3373 = vmatpush3.bf16.msra.mxu1 %v3792_v19 }
 0x2cc   :  { %v873_v30 = vpop.f32.mrb[22].mxu1 }
 0x2cd   :  { %v874_v33 = vadd.f32 %v2971_v27, %v873_v30  ;;  %v3258_v37 = vpop.f32.mrb[23].mxu1 }
 0x2cf   :  { %v880_v15 = vsel %vm879_vm2, %v874_v33, -inf }
 0x2d0   :  { %881 = vmax.xlane.f32.xlu0 %v880_v15 }
 0x35d   :  { %v882_v7 = vpop.xlane.xlu0 %881 }
 0x35e   :  { %vm883_vm3 = vcmp.eq.f32.partialorder %v874_v33, %v882_v7 }
 0x35f   :  { %v884_v61 = vsel %vm883_vm3, %v878_v47, 128 }
 0x360   :  { %v885_v56 = vsel %vm879_vm2, %v884_v61, 2147483647 }
 0x361   :  { %v887_v6 = vshra.s32 %v885_v56, 16  ;;  %v886_v10 = vand.u32 65535, %v885_v56 }
 0x363   :  { %v889_v20 = vcvt.s32.f32 %v887_v6  ;;  %v888_v21 = vcvt.s32.f32 %v886_v10 }
 0x365   :  { %890 = vmin.xlane.f32.xlu0 %v889_v20 }
 0x3f2   :  { %v891_v29 = vpop.xlane.xlu0 %890 }
 0x3f3   :  { %vm892_vm4 = vcmp.eq.f32.partialorder %v889_v20, %v891_v29  ;;  %v897_v11 = vcvt.f32.s32 %v891_v29 }
 0x3f4   :  { %v893_v19 = vsel %vm892_vm4, %v888_v21, inf }
 0x3f5   :  { %894 = vmin.xlane.f32.xlu1 %v893_v19  ;;  %v898_v26 = vshll.u32 %v897_v11, 16 }
 0x482   :  { %v895_v57 = vpop.xlane.xlu1 %894 }
 0x483   :  { %v896_v4 = vcvt.f32.s32 %v895_v57 }
 0x485   :  { %v899_v55 = vadd.s32 %v898_v26, %v896_v4 }
 0x487   :  { %vm900_vm5 = vcmp.gt.s32.totalorder %v899_v55, 0 }
 0x488   :  { %v901_v32 = vsel %vm900_vm5, %v899_v55, 0  ;;  %v4068_v55 = vld [vmem:[#allocation11] sm:$0xff] }
 0x489   :  { %vm902_vm6 = vcmp.lt.s32.totalorder %v901_v32, 9 }
 0x48a   :  { %v903_v42 = vsel %vm902_vm6, %v901_v32, 9 }
 0x48b   :  { %vm904_vm7 = vcmp.eq.s32.totalorder %v903_v42, 0  ;;  %vm1080_vm8 = vcmp.eq.s32.totalorder %v903_v42, 1  ;;  %vm1257_vm9 = vcmp.eq.s32.totalorder %v903_v42, 2  ;;  %vm1434_vm10 = vcmp.eq.s32.totalorder %v903_v42, 3 }
 0x48c   :  { %v2972_v31 = vsel %vm904_vm7, 1.0, %v10056_v36  ;;  %v2973_v40 = vsel %vm1080_vm8, 1.0, %v10056_v36  ;;  %v2974_v3 = vsel %vm1257_vm9, 1.0, %v10056_v36  ;;  %v2975_v35 = vsel %vm1434_vm10, 1.0, %v10056_v36 }
 0x48d   :  { %v911_v34 = vrot.slane %v2972_v31, %v4028_v18  ;;  %v915_v5 = vrot.slane %v2972_v31, %v4030_v54  ;;  %v1087_v27 = vrot.slane %v2973_v40, %v4028_v18  ;;  %v1091_v30 = vrot.slane %v2973_v40, %v4030_v54  ;;  %v4072_v40 = vld [vmem:[#allocation11 + $0x18] sm:$0xff] }
 0x48e   :  { %v1264_v33 = vrot.slane %v2974_v3, %v4028_v18  ;;  %v1268_v37 = vrot.slane %v2974_v3, %v4030_v54  ;;  %v1441_v15 = vrot.slane %v2975_v35, %v4028_v18  ;;  %v1445_v50 = vrot.slane %v2975_v35, %v4030_v54 }
 0x48f   :  { %v4044_v47 = vmul.f32 0.3, %v911_v34  ;;  %v4046_v7 = vmul.f32 0.3, %v915_v5  ;;  %v4048_v61 = vmul.f32 0.3, %v1087_v27 }
 0x490   :  { %v4050_v56 = vmul.f32 0.3, %v1091_v30  ;;  %v4052_v6 = vmul.f32 0.3, %v1264_v33  ;;  %v4054_v20 = vmul.f32 0.3, %v1268_v37 }
 0x491   :  { %v4056_v10 = vmul.f32 0.3, %v1441_v15  ;;  %v4058_v29 = vmul.f32 0.3, %v1445_v50  ;;  %vm1611_vm11 = vcmp.eq.s32.totalorder %v903_v42, 4  ;;  %vm1788_vm12 = vcmp.eq.s32.totalorder %v903_v42, 5 }
 0x492   :  { %v2976_v21 = vsel %vm1611_vm11, 1.0, %v10056_v36  ;;  %v2977_v19 = vsel %vm1788_vm12, 1.0, %v10056_v36  ;;  %vm1965_vm13 = vcmp.eq.s32.totalorder %v903_v42, 6  ;;  %vm2142_vm14 = vcmp.eq.s32.totalorder %v903_v42, 7  ;;  %v4081_v27 = vld [vmem:[#allocation11 + $0x10] sm:$0xff]  ;;  %v4083_v30 = vld [vmem:[#allocation11 + $0x28] sm:$0xff] }
 0x493   :  { %v1618_v11 = vrot.slane %v2976_v21, %v4028_v18  ;;  %v1622_v57 = vrot.slane %v2976_v21, %v4030_v54  ;;  %v1795_v26 = vrot.slane %v2977_v19, %v4028_v18  ;;  %v1799_v4 = vrot.slane %v2977_v19, %v4030_v54  ;;  %v4085_v33 = vld [vmem:[#allocation11 + $0x20] sm:$0xff]  ;;  %v4092_v19 = vld [vmem:[#allocation11 + $0x38] sm:$0xff] }
 0x494   :  { %v2978_v32 = vsel %vm1965_vm13, 1.0, %v10056_v36  ;;  %v2979_v31 = vsel %vm2142_vm14, 1.0, %v10056_v36  ;;  %vm2319_vm15 = vcmp.eq.s32.totalorder %v903_v42, 8  ;;  %vm2496_vm0 = vcmp.eq.s32.totalorder %v903_v42, 9  ;;  %v4125_v42 = vld [vmem:[#allocation11 + $0x78] sm:$0xff] }
 0x495   :  { %v4074_v3 = vmul.f32 0.3, %v1618_v11  ;;  %v4076_v35 = vmul.f32 0.3, %v1622_v57  ;;  %v4078_v34 = vmul.f32 0.3, %v1795_v26  ;;  %v1972_v5 = vrot.slane %v2978_v32, %v4028_v18 }
 0x496   :  { %v4087_v37 = vmul.f32 0.3, %v1799_v4  ;;  %v1976_v15 = vrot.slane %v2978_v32, %v4030_v54  ;;  %v2149_v50 = vrot.slane %v2979_v31, %v4028_v18  ;;  %v2153_v21 = vrot.slane %v2979_v31, %v4030_v54  ;;  %v4094_v11 = vld [vmem:[#allocation11 + $0x30] sm:$0xff]  ;;  %v4096_v57 = vld [vmem:[#allocation11 + $0x48] sm:$0xff]  ;;  %v4098_v26 = vld [vmem:[#allocation11 + $0x40] sm:$0xff] }
 0x497   :  { %v4100_v53 = vmul.f32 0.3, %v1972_v5  ;;  %v2980_v4 = vsel %vm2319_vm15, 1.0, %v10056_v36  ;;  %v2981_v32 = vsel %vm2496_vm0, 1.0, %v10056_v36  ;;  %v4108_v17 = vmul.f32 %v4068_v55, %v4044_v47  ;;  %v4110_v31 = vld [vmem:[#allocation11 + $0x58] sm:$0xff] }
 0x498   :  { %v4118_v5 = vmul.f32 0.3, %v1976_v15  ;;  %v4120_v46 = vmul.f32 0.3, %v2149_v50  ;;  %v4122_v23 = vmul.f32 0.3, %v2153_v21  ;;  %v2326_v36 = vrot.slane %v2980_v4, %v4028_v18 }
 0x499   :  { %v2330_v60 = vrot.slane %v2980_v4, %v4030_v54  ;;  %v2503_v0 = vrot.slane %v2981_v32, %v4028_v18  ;;  %v2507_v15 = vrot.slane %v2981_v32, %v4030_v54  ;;  %v4138_v50 = vmul.f32 %v4066_v24, %v4044_v47  ;;  %v4140_v21 = vld [vmem:[#allocation11 + $0x98] sm:$0xff] }
 0x49a   :  { %v4146_v39 = vmul.f32 0.3, %v2326_v36  ;;  %v4150_v14 = vmul.f32 %v4081_v27, %v4044_v47  ;;  %v4154_v18 = vmul.f32 %v4072_v40, %v4044_v47  ;;  %v4158_v54 = vmul.f32 %v4085_v33, %v4044_v47 }
 0x49b   :  { %v4160_v4 = vmul.f32 0.3, %v2330_v60  ;;  %v4162_v32 = vmul.f32 0.3, %v2503_v0  ;;  %v4164_v16 = vmul.f32 0.3, %v2507_v15  ;;  %v4168_v36 = vmul.f32 %v4083_v30, %v4044_v47 }
 0x49c   :  { %10058 = vst [vmem:[#allocation80_spill] sm:$0xff] %v4154_v18  ;;  %10059 = vst [vmem:[#allocation81_spill] sm:$0xff] %v4158_v54  ;;  %v4178_v45 = vmul.f32 %v4094_v11, %v4044_v47  ;;  %v4182_v60 = vmul.f32 %v4092_v19, %v4044_v47  ;;  %v4186_v0 = vmul.f32 %v4098_v26, %v4044_v47  ;;  %v4236_v54 = vld [vmem:[#allocation11 + $0xf8] sm:$0xff] }
 0x49d   :  { %10060 = vst [vmem:[#allocation82_spill] sm:$0xff] %v4162_v32  ;;  %10061 = vst [vmem:[#allocation83_spill] sm:$0xff] %v4164_v16  ;;  %v4190_v15 = vmul.f32 %v4096_v57, %v4044_v47  ;;  %v4242_v48 = vmul.f32 %v4142_v49, %v4044_v47  ;;  %v4262_v18 = vmul.f32 %v4172_v1, %v4044_v47 }
 0x49e   :  { %10062 = vst [vmem:[#allocation84_spill] sm:$0xff] %v4168_v36  ;;  %10063 = vst [vmem:[#allocation85_spill] sm:$0xff] %v4178_v45  ;;  %v4200_v45 = vmul.f32 %v4112_v62, %v4044_v47  ;;  %v4218_v36 = vld [vmem:[#allocation11 + $0xe0] sm:$0xff] }
 0x49f   :  { %10064 = vst [vmem:[#allocation86_spill] sm:$0xff] %v4182_v60  ;;  %10065 = vst [vmem:[#allocation87_spill] sm:$0xff] %v4186_v0  ;;  %v4204_v60 = vmul.f32 %v4110_v31, %v4044_v47  ;;  %v4208_v0 = vmul.f32 %v4116_v44, %v4044_v47 }
 0x4a0   :  { %10066 = vst [vmem:[#allocation88_spill] sm:$0xff] %v4190_v15  ;;  %10067 = vst [vmem:[#allocation89_spill] sm:$0xff] %v4200_v45  ;;  %v4212_v15 = vmul.f32 %v4114_v2, %v4044_v47  ;;  %v4222_v45 = vmul.f32 %v4127_v28, %v4044_v47 }
 0x4a1   :  { %10068 = vst [vmem:[#allocation90_spill] sm:$0xff] %v4204_v60  ;;  %10069 = vst [vmem:[#allocation91_spill] sm:$0xff] %v4208_v0  ;;  %v4226_v60 = vmul.f32 %v4125_v42, %v4044_v47  ;;  %v4230_v0 = vmul.f32 %v4131_v13, %v4044_v47 }
 0x4a2   :  { %10070 = vst [vmem:[#allocation92_spill] sm:$0xff] %v4212_v15  ;;  %10071 = vst [vmem:[#allocation93_spill] sm:$0xff] %v4222_v45  ;;  %v4234_v15 = vmul.f32 %v4129_v9, %v4044_v47  ;;  %v4246_v45 = vmul.f32 %v4140_v21, %v4044_v47 }
 0x4a3   :  { %10072 = vst [vmem:[#allocation94_spill] sm:$0xff] %v4226_v60  ;;  %10073 = vst [vmem:[#allocation95_spill] sm:$0xff] %v4230_v0  ;;  %v4250_v60 = vmul.f32 %v4170_v58, %v4044_v47  ;;  %v4254_v0 = vmul.f32 %v4144_v52, %v4044_v47 }
 0x4a4   :  { %10074 = vst [vmem:[#allocation96_spill] sm:$0xff] %v4234_v15  ;;  %10075 = vst [vmem:[#allocation97_spill] sm:$0xff] %v4242_v48  ;;  %v4258_v15 = vmul.f32 %v4174_v43, %v4044_v47  ;;  %v4266_v48 = vmul.f32 %v4194_v25, %v4044_v47 }
 0x4a5   :  { %10076 = vst [vmem:[#allocation98_spill] sm:$0xff] %v4246_v45  ;;  %10077 = vst [vmem:[#allocation99_spill] sm:$0xff] %v4250_v60  ;;  %v4270_v45 = vmul.f32 %v4192_v22, %v4044_v47  ;;  %v4274_v60 = vmul.f32 %v4214_v12, %v4044_v47 }
 0x4a6   :  { %10078 = vst [vmem:[#allocation100_spill] sm:$0xff] %v4254_v0  ;;  %10079 = vst [vmem:[#allocation101_spill] sm:$0xff] %v4258_v15  ;;  %v4278_v0 = vmul.f32 %v4196_v8, %v4044_v47  ;;  %v4282_v15 = vmul.f32 %v4218_v36, %v4044_v47 }
 0x4a7   :  { %10080 = vst [vmem:[#allocation102_spill] sm:$0xff] %v4262_v18  ;;  %10081 = vst [vmem:[#allocation103_spill] sm:$0xff] %v4266_v48  ;;  %v4286_v18 = vmul.f32 %v4216_v59, %v4044_v47  ;;  %v4290_v48 = vmul.f32 %v4238_v63, %v4044_v47 }
 0x4a8   :  { %10082 = vst [vmem:[#allocation104_spill] sm:$0xff] %v4270_v45  ;;  %10083 = vst [vmem:[#allocation105_spill] sm:$0xff] %v4274_v60  ;;  %v4294_v45 = vmul.f32 %v4236_v54, %v4044_v47  ;;  %v4298_v60 = vmul.f32 %v4068_v55, %v4046_v7  ;;  %v4314_v47 = vmul.f32 %v4085_v33, %v4046_v7 }
 0x4a9   :  { %10084 = vst [vmem:[#allocation106_spill] sm:$0xff] %v4278_v0  ;;  %10085 = vst [vmem:[#allocation107_spill] sm:$0xff] %v4282_v15  ;;  %v4302_v0 = vmul.f32 %v4066_v24, %v4046_v7  ;;  %v4306_v15 = vmul.f32 %v4081_v27, %v4046_v7  ;;  %v4318_v55 = vmul.f32 %v4083_v30, %v4046_v7  ;;  %v4338_v30 = vld [vmem:[#allocation11 + $0x100] sm:$0xff] }
 0x4aa   :  { %10086 = vst [vmem:[#allocation108_spill] sm:$0xff] %v4286_v18  ;;  %10087 = vst [vmem:[#allocation109_spill] sm:$0xff] %v4298_v60  ;;  %v4310_v18 = vmul.f32 %v4072_v40, %v4046_v7  ;;  %v4322_v24 = vmul.f32 %v4094_v11, %v4046_v7  ;;  %v4326_v27 = vmul.f32 %v4092_v19, %v4046_v7 }
 0x4ab   :  { %10088 = vst [vmem:[#allocation110_spill] sm:$0xff] %v4302_v0  ;;  %10089 = vst [vmem:[#allocation111_spill] sm:$0xff] %v4306_v15  ;;  %v4330_v40 = vmul.f32 %v4098_v26, %v4046_v7  ;;  %v4334_v33 = vmul.f32 %v4096_v57, %v4046_v7  ;;  %v4342_v11 = vmul.f32 %v4112_v62, %v4046_v7  ;;  %v4362_v62 = vld [vmem:[#allocation11 + $0x120] sm:$0xff]  ;;  %v4558_v15 = vld [vmem:[#allocation11 + $0x1f0] sm:$0xff] }
 0x4ac   :  { %10090 = vst [vmem:[#allocation112_spill] sm:$0xff] %v4310_v18  ;;  %10091 = vst [vmem:[#allocation113_spill] sm:$0xff] %v4314_v47  ;;  %v4336_v47 = vld [vmem:[#allocation11 + $0x108] sm:$0xff]  ;;  %v4346_v19 = vmul.f32 %v4110_v31, %v4046_v7  ;;  %v4350_v26 = vmul.f32 %v4116_v44, %v4046_v7  ;;  %v4354_v57 = vmul.f32 %v4114_v2, %v4046_v7  ;;  %v4556_v18 = vld [vmem:[#allocation11 + $0x1f8] sm:$0xff] }
 0x4ad   :  { %10092 = vst [vmem:[#allocation114_spill] sm:$0xff] %v4318_v55  ;;  %10093 = vst [vmem:[#allocation115_spill] sm:$0xff] %v4322_v24  ;;  %v4366_v31 = vmul.f32 %v4127_v28, %v4046_v7  ;;  %v4370_v44 = vmul.f32 %v4125_v42, %v4046_v7  ;;  %v4374_v2 = vmul.f32 %v4131_v13, %v4046_v7  ;;  %v4536_v24 = vld [vmem:[#allocation11 + $0x1e8] sm:$0xff]  ;;  %v4538_v55 = vld [vmem:[#allocation11 + $0x1e0] sm:$0xff] }
 0x4ae   :  { %10094 = vst [vmem:[#allocation116_spill] sm:$0xff] %v4326_v27  ;;  %10095 = vst [vmem:[#allocation117_spill] sm:$0xff] %v4330_v40  ;;  %v4358_v40 = vld [vmem:[#allocation11 + $0x110] sm:$0xff]  ;;  %v4360_v27 = vld [vmem:[#allocation11 + $0x128] sm:$0xff]  ;;  %v4388_v28 = vmul.f32 %v4142_v49, %v4046_v7  ;;  %v4392_v42 = vmul.f32 %v4140_v21, %v4046_v7  ;;  %v4396_v13 = vmul.f32 %v4170_v58, %v4046_v7 }
 0x4af   :  { %10096 = vst [vmem:[#allocation118_spill] sm:$0xff] %v4334_v33  ;;  %10097 = vst [vmem:[#allocation119_spill] sm:$0xff] %v4342_v11  ;;  %v4356_v33 = vld [vmem:[#allocation11 + $0x118] sm:$0xff]  ;;  %v4384_v11 = vld [vmem:[#allocation11 + $0x148] sm:$0xff]  ;;  %v4410_v49 = vmul.f32 %v4174_v43, %v4046_v7  ;;  %v4414_v21 = vmul.f32 %v4172_v1, %v4046_v7  ;;  %v4418_v58 = vmul.f32 %v4194_v25, %v4046_v7 }
 0x4b0   :  { %10098 = vst [vmem:[#allocation120_spill] sm:$0xff] %v4346_v19  ;;  %10099 = vst [vmem:[#allocation121_spill] sm:$0xff] %v4350_v26  ;;  %v4380_v26 = vld [vmem:[#allocation11 + $0x138] sm:$0xff]  ;;  %v4382_v19 = vld [vmem:[#allocation11 + $0x130] sm:$0xff]  ;;  %v4432_v43 = vmul.f32 %v4214_v12, %v4046_v7  ;;  %v4436_v1 = vmul.f32 %v4196_v8, %v4046_v7  ;;  %v4440_v25 = vmul.f32 %v4218_v36, %v4046_v7 }
 0x4b1   :  { %10100 = vst [vmem:[#allocation122_spill] sm:$0xff] %v4354_v57  ;;  %10101 = vst [vmem:[#allocation123_spill] sm:$0xff] %v4366_v31  ;;  %v4378_v57 = vmul.f32 %v4129_v9, %v4046_v7  ;;  %v4400_v9 = vmul.f32 %v4144_v52, %v4046_v7  ;;  %v4422_v52 = vmul.f32 %v4192_v22, %v4046_v7  ;;  %v4534_v31 = vld [vmem:[#allocation11 + $0x1d0] sm:$0xff] }
 0x4b2   :  { %10102 = vst [vmem:[#allocation124_spill] sm:$0xff] %v4370_v44  ;;  %10103 = vst [vmem:[#allocation125_spill] sm:$0xff] %v4374_v2  ;;  %v4404_v2 = vld [vmem:[#allocation11 + $0x158] sm:$0xff]  ;;  %v4406_v44 = vld [vmem:[#allocation11 + $0x150] sm:$0xff]  ;;  %v4444_v22 = vmul.f32 %v4216_v59, %v4046_v7  ;;  %v4454_v12 = vmul.f32 %v4238_v63, %v4046_v7  ;;  %v4458_v8 = vmul.f32 %v4236_v54, %v4046_v7 }
 0x4b3   :  { %10104 = vst [vmem:[#allocation126_spill] sm:$0xff] %v4378_v57  ;;  %10105 = vst [vmem:[#allocation127_spill] sm:$0xff] %v4388_v28  ;;  %v4402_v57 = vld [vmem:[#allocation11 + $0x140] sm:$0xff]  ;;  %v4462_v36 = vmul.f32 %v4338_v30, %v4048_v61  ;;  %v4466_v59 = vmul.f32 %v4336_v47, %v4048_v61  ;;  %v4476_v63 = vmul.f32 %v4358_v40, %v4048_v61  ;;  %v4516_v28 = vld [vmem:[#allocation11 + $0x1d8] sm:$0xff] }
 0x4b4   :  { %10106 = vst [vmem:[#allocation128_spill] sm:$0xff] %v4392_v42  ;;  %10107 = vst [vmem:[#allocation129_spill] sm:$0xff] %v4396_v13  ;;  %v4426_v13 = vld [vmem:[#allocation11 + $0x160] sm:$0xff]  ;;  %v4428_v42 = vld [vmem:[#allocation11 + $0x178] sm:$0xff]  ;;  %v4480_v7 = vmul.f32 %v4356_v33, %v4048_v61  ;;  %v4484_v54 = vmul.f32 %v4362_v62, %v4048_v61 }
 0x4b5   :  { %10108 = vst [vmem:[#allocation130_spill] sm:$0xff] %v4400_v9  ;;  %10109 = vst [vmem:[#allocation131_spill] sm:$0xff] %v4410_v49  ;;  %v4424_v9 = vld [vmem:[#allocation11 + $0x168] sm:$0xff]  ;;  %v4514_v49 = vld [vmem:[#allocation11 + $0x1c0] sm:$0xff] }
 0x4b6   :  { %10110 = vst [vmem:[#allocation132_spill] sm:$0xff] %v4414_v21  ;;  %10111 = vst [vmem:[#allocation133_spill] sm:$0xff] %v4418_v58  ;;  %v4448_v58 = vld [vmem:[#allocation11 + $0x188] sm:$0xff]  ;;  %v4450_v21 = vld [vmem:[#allocation11 + $0x180] sm:$0xff] }
 0x4b7   :  { %10112 = vst [vmem:[#allocation134_spill] sm:$0xff] %v4422_v52  ;;  %10113 = vst [vmem:[#allocation135_spill] sm:$0xff] %v4432_v43  ;;  %v4446_v52 = vld [vmem:[#allocation11 + $0x170] sm:$0xff]  ;;  %v4512_v43 = vld [vmem:[#allocation11 + $0x1c8] sm:$0xff] }
 0x4b8   :  { %10114 = vst [vmem:[#allocation136_spill] sm:$0xff] %v4436_v1  ;;  %10115 = vst [vmem:[#allocation137_spill] sm:$0xff] %v4440_v25  ;;  %v4470_v25 = vld [vmem:[#allocation11 + $0x190] sm:$0xff]  ;;  %v4472_v1 = vld [vmem:[#allocation11 + $0x1a8] sm:$0xff] }
 0x4b9   :  { %10116 = vst [vmem:[#allocation138_spill] sm:$0xff] %v4444_v22  ;;  %10117 = vst [vmem:[#allocation139_spill] sm:$0xff] %v4454_v12  ;;  %v4468_v22 = vld [vmem:[#allocation11 + $0x198] sm:$0xff]  ;;  %v4494_v12 = vld [vmem:[#allocation11 + $0x1b0] sm:$0xff]  ;;  %v4562_v0 = vmul.f32 %v4470_v25, %v4048_v61 }
 0x4ba   :  { %10118 = vst [vmem:[#allocation140_spill] sm:$0xff] %v4458_v8  ;;  %10119 = vst [vmem:[#allocation141_spill] sm:$0xff] %v4462_v36  ;;  %v4490_v36 = vld [vmem:[#allocation11 + $0x1a0] sm:$0xff]  ;;  %v4492_v8 = vld [vmem:[#allocation11 + $0x1b8] sm:$0xff] }
 0x4bb   :  { %10120 = vst [vmem:[#allocation142_spill] sm:$0xff] %v4466_v59  ;;  %10121 = vst [vmem:[#allocation143_spill] sm:$0xff] %v4476_v63  ;;  %v4488_v59 = vmul.f32 %v4360_v27, %v4048_v61  ;;  %v4498_v63 = vmul.f32 %v4382_v19, %v4048_v61  ;;  %v4582_v60 = vmul.f32 %v4492_v8, %v4048_v61 }
 0x4bc   :  { %10122 = vst [vmem:[#allocation144_spill] sm:$0xff] %v4480_v7  ;;  %10123 = vst [vmem:[#allocation145_spill] sm:$0xff] %v4484_v54  ;;  %v4502_v7 = vmul.f32 %v4380_v26, %v4048_v61  ;;  %v4506_v54 = vmul.f32 %v4402_v57, %v4048_v61 }
 0x4bd   :  { %10124 = vst [vmem:[#allocation146_spill] sm:$0xff] %v4488_v59  ;;  %10125 = vst [vmem:[#allocation147_spill] sm:$0xff] %v4498_v63  ;;  %v4510_v59 = vmul.f32 %v4384_v11, %v4048_v61  ;;  %v4520_v63 = vmul.f32 %v4406_v44, %v4048_v61 }
 0x4be   :  { %10126 = vst [vmem:[#allocation148_spill] sm:$0xff] %v4502_v7  ;;  %10127 = vst [vmem:[#allocation149_spill] sm:$0xff] %v4506_v54  ;;  %v4524_v7 = vmul.f32 %v4404_v2, %v4048_v61  ;;  %v4528_v54 = vmul.f32 %v4426_v13, %v4048_v61 }
 0x4bf   :  { %10128 = vst [vmem:[#allocation150_spill] sm:$0xff] %v4510_v59  ;;  %10129 = vst [vmem:[#allocation151_spill] sm:$0xff] %v4520_v63  ;;  %v4532_v59 = vmul.f32 %v4424_v9, %v4048_v61  ;;  %v4542_v63 = vmul.f32 %v4446_v52, %v4048_v61 }
 0x4c0   :  { %10130 = vst [vmem:[#allocation152_spill] sm:$0xff] %v4524_v7  ;;  %10131 = vst [vmem:[#allocation153_spill] sm:$0xff] %v4528_v54  ;;  %v4546_v7 = vmul.f32 %v4428_v42, %v4048_v61  ;;  %v4550_v54 = vmul.f32 %v4450_v21, %v4048_v61 }
 0x4c1   :  { %10132 = vst [vmem:[#allocation154_spill] sm:$0xff] %v4532_v59  ;;  %10133 = vst [vmem:[#allocation155_spill] sm:$0xff] %v4542_v63  ;;  %v4554_v59 = vmul.f32 %v4448_v58, %v4048_v61  ;;  %v4566_v63 = vmul.f32 %v4468_v22, %v4048_v61 }
 0x4c2   :  { %10134 = vst [vmem:[#allocation156_spill] sm:$0xff] %v4546_v7  ;;  %10135 = vst [vmem:[#allocation157_spill] sm:$0xff] %v4550_v54  ;;  %v4570_v7 = vmul.f32 %v4490_v36, %v4048_v61  ;;  %v4574_v54 = vmul.f32 %v4472_v1, %v4048_v61 }
 0x4c3   :  { %10136 = vst [vmem:[#allocation158_spill] sm:$0xff] %v4554_v59  ;;  %10137 = vst [vmem:[#allocation159_spill] sm:$0xff] %v4562_v0  ;;  %v4578_v59 = vmul.f32 %v4494_v12, %v4048_v61  ;;  %v4586_v0 = vmul.f32 %v4514_v49, %v4048_v61 }
 0x4c4   :  { %10138 = vst [vmem:[#allocation160_spill] sm:$0xff] %v4566_v63  ;;  %10139 = vst [vmem:[#allocation161_spill] sm:$0xff] %v4570_v7  ;;  %v4590_v63 = vmul.f32 %v4512_v43, %v4048_v61  ;;  %v4594_v7 = vmul.f32 %v4534_v31, %v4048_v61 }
 0x4c5   :  { %10140 = vst [vmem:[#allocation162_spill] sm:$0xff] %v4574_v54  ;;  %10141 = vst [vmem:[#allocation163_spill] sm:$0xff] %v4578_v59  ;;  %v4598_v54 = vmul.f32 %v4516_v28, %v4048_v61  ;;  %v4602_v59 = vmul.f32 %v4538_v55, %v4048_v61 }
 0x4c6   :  { %10142 = vst [vmem:[#allocation164_spill] sm:$0xff] %v4582_v60  ;;  %10143 = vst [vmem:[#allocation165_spill] sm:$0xff] %v4586_v0  ;;  %v4606_v60 = vmul.f32 %v4536_v24, %v4048_v61  ;;  %v4610_v0 = vmul.f32 %v4558_v15, %v4048_v61 }
 0x4c7   :  { %10144 = vst [vmem:[#allocation166_spill] sm:$0xff] %v4590_v63  ;;  %10145 = vst [vmem:[#allocation167_spill] sm:$0xff] %v4594_v7  ;;  %v4614_v63 = vmul.f32 %v4556_v18, %v4048_v61  ;;  %v4618_v7 = vmul.f32 %v4338_v30, %v4050_v56  ;;  %v4634_v61 = vmul.f32 %v4362_v62, %v4050_v56 }
 0x4c8   :  { %10146 = vst [vmem:[#allocation168_spill] sm:$0xff] %v4598_v54  ;;  %10147 = vst [vmem:[#allocation169_spill] sm:$0xff] %v4602_v59  ;;  %v4622_v54 = vmul.f32 %v4336_v47, %v4050_v56  ;;  %v4626_v59 = vmul.f32 %v4358_v40, %v4050_v56  ;;  %v4638_v30 = vmul.f32 %v4360_v27, %v4050_v56  ;;  %v4658_v27 = vld [vmem:[#allocation11 + $0x200] sm:$0xff] }
 0x4c9   :  { %10148 = vst [vmem:[#allocation170_spill] sm:$0xff] %v4606_v60  ;;  %10149 = vst [vmem:[#allocation171_spill] sm:$0xff] %v4618_v7  ;;  %v4630_v60 = vmul.f32 %v4356_v33, %v4050_v56  ;;  %v4642_v47 = vmul.f32 %v4382_v19, %v4050_v56  ;;  %v4646_v40 = vmul.f32 %v4380_v26, %v4050_v56 }
 0x4ca   :  { %10150 = vst [vmem:[#allocation172_spill] sm:$0xff] %v4622_v54  ;;  %10151 = vst [vmem:[#allocation173_spill] sm:$0xff] %v4626_v59  ;;  %v4650_v33 = vmul.f32 %v4402_v57, %v4050_v56  ;;  %v4654_v62 = vmul.f32 %v4384_v11, %v4050_v56  ;;  %v4662_v19 = vmul.f32 %v4406_v44, %v4050_v56  ;;  %v4682_v44 = vld [vmem:[#allocation11 + $0x220] sm:$0xff]  ;;  %v4878_v59 = vld [vmem:[#allocation11 + $0x2f0] sm:$0xff] }
 0x4cb   :  { %10152 = vst [vmem:[#allocation174_spill] sm:$0xff] %v4630_v60  ;;  %10153 = vst [vmem:[#allocation175_spill] sm:$0xff] %v4634_v61  ;;  %v4656_v61 = vld [vmem:[#allocation11 + $0x208] sm:$0xff]  ;;  %v4666_v26 = vmul.f32 %v4404_v2, %v4050_v56  ;;  %v4670_v57 = vmul.f32 %v4426_v13, %v4050_v56  ;;  %v4674_v11 = vmul.f32 %v4424_v9, %v4050_v56  ;;  %v4876_v60 = vld [vmem:[#allocation11 + $0x2f8] sm:$0xff] }
 0x4cc   :  { %10154 = vst [vmem:[#allocation176_spill] sm:$0xff] %v4638_v30  ;;  %10155 = vst [vmem:[#allocation177_spill] sm:$0xff] %v4642_v47  ;;  %v4686_v2 = vmul.f32 %v4446_v52, %v4050_v56  ;;  %v4690_v13 = vmul.f32 %v4428_v42, %v4050_v56  ;;  %v4694_v9 = vmul.f32 %v4450_v21, %v4050_v56  ;;  %v4856_v47 = vld [vmem:[#allocation11 + $0x2e8] sm:$0xff]  ;;  %v4858_v30 = vld [vmem:[#allocation11 + $0x2e0] sm:$0xff] }
 0x4cd   :  { %10156 = vst [vmem:[#allocation178_spill] sm:$0xff] %v4646_v40  ;;  %10157 = vst [vmem:[#allocation179_spill] sm:$0xff] %v4650_v33  ;;  %v4678_v33 = vld [vmem:[#allocation11 + $0x210] sm:$0xff]  ;;  %v4680_v40 = vld [vmem:[#allocation11 + $0x228] sm:$0xff]  ;;  %v4708_v52 = vmul.f32 %v4470_v25, %v4050_v56  ;;  %v4712_v42 = vmul.f32 %v4468_v22, %v4050_v56  ;;  %v4716_v21 = vmul.f32 %v4490_v36, %v4050_v56 }
 0x4ce   :  { %10158 = vst [vmem:[#allocation180_spill] sm:$0xff] %v4654_v62  ;;  %10159 = vst [vmem:[#allocation181_spill] sm:$0xff] %v4662_v19  ;;  %v4676_v62 = vld [vmem:[#allocation11 + $0x218] sm:$0xff]  ;;  %v4704_v19 = vld [vmem:[#allocation11 + $0x248] sm:$0xff]  ;;  %v4730_v25 = vmul.f32 %v4494_v12, %v4050_v56  ;;  %v4734_v22 = vmul.f32 %v4492_v8, %v4050_v56  ;;  %v4738_v36 = vmul.f32 %v4514_v49, %v4050_v56 }
 0x4cf   :  { %10160 = vst [vmem:[#allocation182_spill] sm:$0xff] %v4666_v26  ;;  %10161 = vst [vmem:[#allocation183_spill] sm:$0xff] %v4670_v57  ;;  %v4700_v57 = vld [vmem:[#allocation11 + $0x238] sm:$0xff]  ;;  %v4702_v26 = vld [vmem:[#allocation11 + $0x230] sm:$0xff]  ;;  %v4752_v12 = vmul.f32 %v4534_v31, %v4050_v56  ;;  %v4756_v8 = vmul.f32 %v4516_v28, %v4050_v56  ;;  %v4760_v49 = vmul.f32 %v4538_v55, %v4050_v56 }
 0x4d0   :  { %10162 = vst [vmem:[#allocation184_spill] sm:$0xff] %v4674_v11  ;;  %10163 = vst [vmem:[#allocation185_spill] sm:$0xff] %v4686_v2  ;;  %v4698_v11 = vmul.f32 %v4448_v58, %v4050_v56  ;;  %v4720_v58 = vmul.f32 %v4472_v1, %v4050_v56  ;;  %v4742_v1 = vmul.f32 %v4512_v43, %v4050_v56  ;;  %v4854_v2 = vld [vmem:[#allocation11 + $0x2d0] sm:$0xff] }
 0x4d1   :  { %10164 = vst [vmem:[#allocation186_spill] sm:$0xff] %v4690_v13  ;;  %10165 = vst [vmem:[#allocation187_spill] sm:$0xff] %v4694_v9  ;;  %v4724_v9 = vld [vmem:[#allocation11 + $0x258] sm:$0xff]  ;;  %v4726_v13 = vld [vmem:[#allocation11 + $0x250] sm:$0xff]  ;;  %v4764_v43 = vmul.f32 %v4536_v24, %v4050_v56  ;;  %v4774_v31 = vmul.f32 %v4558_v15, %v4050_v56  ;;  %v4778_v28 = vmul.f32 %v4556_v18, %v4050_v56 }
 0x4d2   :  { %10166 = vst [vmem:[#allocation188_spill] sm:$0xff] %v4698_v11  ;;  %10167 = vst [vmem:[#allocation189_spill] sm:$0xff] %v4708_v52  ;;  %v4722_v11 = vld [vmem:[#allocation11 + $0x240] sm:$0xff]  ;;  %v4782_v55 = vmul.f32 %v4658_v27, %v4052_v6  ;;  %v4786_v24 = vmul.f32 %v4656_v61, %v4052_v6  ;;  %v4796_v15 = vmul.f32 %v4678_v33, %v4052_v6  ;;  %v4836_v52 = vld [vmem:[#allocation11 + $0x2d8] sm:$0xff] }
 0x4d3   :  { %10168 = vst [vmem:[#allocation190_spill] sm:$0xff] %v4712_v42  ;;  %10169 = vst [vmem:[#allocation191_spill] sm:$0xff] %v4716_v21  ;;  %v4746_v21 = vld [vmem:[#allocation11 + $0x260] sm:$0xff]  ;;  %v4748_v42 = vld [vmem:[#allocation11 + $0x278] sm:$0xff]  ;;  %v4800_v56 = vmul.f32 %v4676_v62, %v4052_v6  ;;  %v4804_v18 = vmul.f32 %v4682_v44, %v4052_v6 }
 0x4d4   :  { %10170 = vst [vmem:[#allocation192_spill] sm:$0xff] %v4720_v58  ;;  %10171 = vst [vmem:[#allocation193_spill] sm:$0xff] %v4730_v25  ;;  %v4744_v58 = vld [vmem:[#allocation11 + $0x268] sm:$0xff]  ;;  %v4834_v25 = vld [vmem:[#allocation11 + $0x2c0] sm:$0xff] }
 0x4d5   :  { %10172 = vst [vmem:[#allocation194_spill] sm:$0xff] %v4734_v22  ;;  %10173 = vst [vmem:[#allocation195_spill] sm:$0xff] %v4738_v36  ;;  %v4768_v36 = vld [vmem:[#allocation11 + $0x288] sm:$0xff]  ;;  %v4770_v22 = vld [vmem:[#allocation11 + $0x280] sm:$0xff] }
 0x4d6   :  { %10174 = vst [vmem:[#allocation196_spill] sm:$0xff] %v4742_v1  ;;  %10175 = vst [vmem:[#allocation197_spill] sm:$0xff] %v4752_v12  ;;  %v4766_v1 = vld [vmem:[#allocation11 + $0x270] sm:$0xff]  ;;  %v4832_v12 = vld [vmem:[#allocation11 + $0x2c8] sm:$0xff] }
 0x4d7   :  { %10176 = vst [vmem:[#allocation198_spill] sm:$0xff] %v4756_v8  ;;  %10177 = vst [vmem:[#allocation199_spill] sm:$0xff] %v4760_v49  ;;  %v4790_v49 = vld [vmem:[#allocation11 + $0x290] sm:$0xff]  ;;  %v4792_v8 = vld [vmem:[#allocation11 + $0x2a8] sm:$0xff] }
 0x4d8   :  { %10178 = vst [vmem:[#allocation200_spill] sm:$0xff] %v4764_v43  ;;  %10179 = vst [vmem:[#allocation201_spill] sm:$0xff] %v4774_v31  ;;  %v4788_v43 = vld [vmem:[#allocation11 + $0x298] sm:$0xff]  ;;  %v4814_v31 = vld [vmem:[#allocation11 + $0x2b0] sm:$0xff]  ;;  %v4882_v54 = vmul.f32 %v4790_v49, %v4052_v6 }
 0x4d9   :  { %10180 = vst [vmem:[#allocation202_spill] sm:$0xff] %v4778_v28  ;;  %10181 = vst [vmem:[#allocation203_spill] sm:$0xff] %v4782_v55  ;;  %v4810_v55 = vld [vmem:[#allocation11 + $0x2a0] sm:$0xff]  ;;  %v4812_v28 = vld [vmem:[#allocation11 + $0x2b8] sm:$0xff] }
 0x4da   :  { %10182 = vst [vmem:[#allocation204_spill] sm:$0xff] %v4786_v24  ;;  %10183 = vst [vmem:[#allocation205_spill] sm:$0xff] %v4796_v15  ;;  %v4808_v24 = vmul.f32 %v4680_v40, %v4052_v6  ;;  %v4818_v15 = vmul.f32 %v4702_v26, %v4052_v6  ;;  %v4902_v7 = vmul.f32 %v4812_v28, %v4052_v6 }
 0x4db   :  { %10184 = vst [vmem:[#allocation206_spill] sm:$0xff] %v4800_v56  ;;  %10185 = vst [vmem:[#allocation207_spill] sm:$0xff] %v4804_v18  ;;  %v4822_v56 = vmul.f32 %v4700_v57, %v4052_v6  ;;  %v4826_v18 = vmul.f32 %v4722_v11, %v4052_v6 }
 0x4dc   :  { %10186 = vst [vmem:[#allocation208_spill] sm:$0xff] %v4808_v24  ;;  %10187 = vst [vmem:[#allocation209_spill] sm:$0xff] %v4818_v15  ;;  %v4830_v24 = vmul.f32 %v4704_v19, %v4052_v6  ;;  %v4840_v15 = vmul.f32 %v4726_v13, %v4052_v6 }
 0x4dd   :  { %10188 = vst [vmem:[#allocation210_spill] sm:$0xff] %v4822_v56  ;;  %10189 = vst [vmem:[#allocation211_spill] sm:$0xff] %v4826_v18  ;;  %v4844_v56 = vmul.f32 %v4724_v9, %v4052_v6  ;;  %v4848_v18 = vmul.f32 %v4746_v21, %v4052_v6 }
 0x4de   :  { %10190 = vst [vmem:[#allocation212_spill] sm:$0xff] %v4830_v24  ;;  %10191 = vst [vmem:[#allocation213_spill] sm:$0xff] %v4840_v15  ;;  %v4852_v24 = vmul.f32 %v4744_v58, %v4052_v6  ;;  %v4862_v15 = vmul.f32 %v4766_v1, %v4052_v6 }
 0x4df   :  { %10192 = vst [vmem:[#allocation214_spill] sm:$0xff] %v4844_v56  ;;  %10193 = vst [vmem:[#allocation215_spill] sm:$0xff] %v4848_v18  ;;  %v4866_v56 = vmul.f32 %v4748_v42, %v4052_v6  ;;  %v4870_v18 = vmul.f32 %v4770_v22, %v4052_v6 }
 0x4e0   :  { %10194 = vst [vmem:[#allocation216_spill] sm:$0xff] %v4852_v24  ;;  %10195 = vst [vmem:[#allocation217_spill] sm:$0xff] %v4862_v15  ;;  %v4874_v24 = vmul.f32 %v4768_v36, %v4052_v6  ;;  %v4886_v15 = vmul.f32 %v4788_v43, %v4052_v6 }
 0x4e1   :  { %10196 = vst [vmem:[#allocation218_spill] sm:$0xff] %v4866_v56  ;;  %10197 = vst [vmem:[#allocation219_spill] sm:$0xff] %v4870_v18  ;;  %v4890_v56 = vmul.f32 %v4810_v55, %v4052_v6  ;;  %v4894_v18 = vmul.f32 %v4792_v8, %v4052_v6 }
 0x4e2   :  { %10198 = vst [vmem:[#allocation220_spill] sm:$0xff] %v4874_v24  ;;  %10199 = vst [vmem:[#allocation221_spill] sm:$0xff] %v4882_v54  ;;  %v4898_v24 = vmul.f32 %v4814_v31, %v4052_v6  ;;  %v4906_v54 = vmul.f32 %v4834_v25, %v4052_v6 }
 0x4e3   :  { %10200 = vst [vmem:[#allocation222_spill] sm:$0xff] %v4886_v15  ;;  %10201 = vst [vmem:[#allocation223_spill] sm:$0xff] %v4890_v56  ;;  %v4910_v15 = vmul.f32 %v4832_v12, %v4052_v6  ;;  %v4914_v56 = vmul.f32 %v4854_v2, %v4052_v6 }
 0x4e4   :  { %10202 = vst [vmem:[#allocation224_spill] sm:$0xff] %v4894_v18  ;;  %10203 = vst [vmem:[#allocation225_spill] sm:$0xff] %v4898_v24  ;;  %v4918_v18 = vmul.f32 %v4836_v52, %v4052_v6  ;;  %v4922_v24 = vmul.f32 %v4858_v30, %v4052_v6 }
 0x4e5   :  { %10204 = vst [vmem:[#allocation226_spill] sm:$0xff] %v4902_v7  ;;  %10205 = vst [vmem:[#allocation227_spill] sm:$0xff] %v4906_v54  ;;  %v4926_v7 = vmul.f32 %v4856_v47, %v4052_v6  ;;  %v4930_v54 = vmul.f32 %v4878_v59, %v4052_v6 }
 0x4e6   :  { %10206 = vst [vmem:[#allocation228_spill] sm:$0xff] %v4910_v15  ;;  %10207 = vst [vmem:[#allocation229_spill] sm:$0xff] %v4914_v56  ;;  %v4934_v15 = vmul.f32 %v4876_v60, %v4052_v6  ;;  %v4938_v56 = vmul.f32 %v4658_v27, %v4054_v20  ;;  %v4954_v6 = vmul.f32 %v4682_v44, %v4054_v20 }
 0x4e7   :  { %10208 = vst [vmem:[#allocation230_spill] sm:$0xff] %v4918_v18  ;;  %10209 = vst [vmem:[#allocation231_spill] sm:$0xff] %v4922_v24  ;;  %v4942_v18 = vmul.f32 %v4656_v61, %v4054_v20  ;;  %v4946_v24 = vmul.f32 %v4678_v33, %v4054_v20  ;;  %v4958_v27 = vmul.f32 %v4680_v40, %v4054_v20  ;;  %v4978_v40 = vld [vmem:[#allocation11 + $0x300] sm:$0xff] }
 0x4e8   :  { %10210 = vst [vmem:[#allocation232_spill] sm:$0xff] %v4926_v7  ;;  %10211 = vst [vmem:[#allocation233_spill] sm:$0xff] %v4930_v54  ;;  %v4950_v7 = vmul.f32 %v4676_v62, %v4054_v20  ;;  %v4962_v61 = vmul.f32 %v4702_v26, %v4054_v20  ;;  %v4966_v33 = vmul.f32 %v4700_v57, %v4054_v20  ;;  %v10789_v54 = vld [vmem:[#allocation127_spill] sm:$0xff] }
 0x4e9   :  { %10212 = vst [vmem:[#allocation234_spill] sm:$0xff] %v4934_v15  ;;  %10213 = vst [vmem:[#allocation235_spill] sm:$0xff] %v4938_v56  ;;  %v4970_v62 = vmul.f32 %v4722_v11, %v4054_v20  ;;  %v4974_v44 = vmul.f32 %v4704_v19, %v4054_v20  ;;  %v4982_v26 = vmul.f32 %v4726_v13, %v4054_v20  ;;  %v5002_v13 = vld [vmem:[#allocation11 + $0x320] sm:$0xff]  ;;  %v10786_v15 = vld [vmem:[#allocation29_spill] sm:$0xff] }
 0x4ea   :  { %10214 = vst [vmem:[#allocation236_spill] sm:$0xff] %v4942_v18  ;;  %10215 = vst [vmem:[#allocation237_spill] sm:$0xff] %v4946_v24  ;;  %v4986_v57 = vmul.f32 %v4724_v9, %v4054_v20  ;;  %v4990_v11 = vmul.f32 %v4746_v21, %v4054_v20  ;;  %v4994_v19 = vmul.f32 %v4744_v58, %v4054_v20  ;;  %v5198_v24 = vld [vmem:[#allocation11 + $0x3f0] sm:$0xff] }
 0x4eb   :  { %10216 = vst [vmem:[#allocation238_spill] sm:$0xff] %v4950_v7  ;;  %10217 = vst [vmem:[#allocation239_spill] sm:$0xff] %v4954_v6  ;;  %v4976_v6 = vld [vmem:[#allocation11 + $0x308] sm:$0xff]  ;;  %v5006_v9 = vmul.f32 %v4766_v1, %v4054_v20  ;;  %v5010_v21 = vmul.f32 %v4748_v42, %v4054_v20  ;;  %v5014_v58 = vmul.f32 %v4770_v22, %v4054_v20  ;;  %v5196_v7 = vld [vmem:[#allocation11 + $0x3f8] sm:$0xff] }
 0x4ec   :  { %10218 = vst [vmem:[#allocation240_spill] sm:$0xff] %v4958_v27  ;;  %10219 = vst [vmem:[#allocation241_spill] sm:$0xff] %v4962_v61  ;;  %v5028_v1 = vmul.f32 %v4790_v49, %v4054_v20  ;;  %v5032_v42 = vmul.f32 %v4788_v43, %v4054_v20  ;;  %v5036_v22 = vmul.f32 %v4810_v55, %v4054_v20  ;;  %v5176_v61 = vld [vmem:[#allocation11 + $0x3e8] sm:$0xff]  ;;  %v5178_v27 = vld [vmem:[#allocation11 + $0x3e0] sm:$0xff] }
 0x4ed   :  { %10220 = vst [vmem:[#allocation242_spill] sm:$0xff] %v4966_v33  ;;  %10221 = vst [vmem:[#allocation243_spill] sm:$0xff] %v4970_v62  ;;  %v4998_v62 = vld [vmem:[#allocation11 + $0x310] sm:$0xff]  ;;  %v5000_v33 = vld [vmem:[#allocation11 + $0x328] sm:$0xff]  ;;  %v5050_v49 = vmul.f32 %v4814_v31, %v4054_v20  ;;  %v5054_v43 = vmul.f32 %v4812_v28, %v4054_v20  ;;  %v5058_v55 = vmul.f32 %v4834_v25, %v4054_v20 }
 0x4ee   :  { %10222 = vst [vmem:[#allocation244_spill] sm:$0xff] %v4974_v44  ;;  %10223 = vst [vmem:[#allocation245_spill] sm:$0xff] %v4982_v26  ;;  %v4996_v44 = vld [vmem:[#allocation11 + $0x318] sm:$0xff]  ;;  %v5024_v26 = vld [vmem:[#allocation11 + $0x348] sm:$0xff]  ;;  %v5072_v31 = vmul.f32 %v4854_v2, %v4054_v20  ;;  %v5076_v28 = vmul.f32 %v4836_v52, %v4054_v20  ;;  %v5080_v25 = vmul.f32 %v4858_v30, %v4054_v20 }
 0x4ef   :  { %10224 = vst [vmem:[#allocation246_spill] sm:$0xff] %v4986_v57  ;;  %10225 = vst [vmem:[#allocation247_spill] sm:$0xff] %v4990_v11  ;;  %v5020_v11 = vld [vmem:[#allocation11 + $0x338] sm:$0xff]  ;;  %v5022_v57 = vld [vmem:[#allocation11 + $0x330] sm:$0xff]  ;;  %v5094_v2 = vmul.f32 %v4878_v59, %v4054_v20  ;;  %v5098_v52 = vmul.f32 %v4876_v60, %v4054_v20  ;;  %v5102_v30 = vmul.f32 %v4978_v40, %v4056_v10 }
 0x4f0   :  { %10226 = vst [vmem:[#allocation248_spill] sm:$0xff] %v4994_v19  ;;  %10227 = vst [vmem:[#allocation249_spill] sm:$0xff] %v5006_v9  ;;  %v5018_v19 = vmul.f32 %v4768_v36, %v4054_v20  ;;  %v5040_v36 = vmul.f32 %v4792_v8, %v4054_v20  ;;  %v5062_v8 = vmul.f32 %v4832_v12, %v4054_v20  ;;  %v5174_v9 = vld [vmem:[#allocation11 + $0x3d0] sm:$0xff] }
 0x4f1   :  { %10228 = vst [vmem:[#allocation250_spill] sm:$0xff] %v5010_v21  ;;  %10229 = vst [vmem:[#allocation251_spill] sm:$0xff] %v5014_v58  ;;  %v5044_v58 = vld [vmem:[#allocation11 + $0x358] sm:$0xff]  ;;  %v5046_v21 = vld [vmem:[#allocation11 + $0x350] sm:$0xff]  ;;  %v5084_v12 = vmul.f32 %v4856_v47, %v4054_v20  ;;  %v5106_v47 = vmul.f32 %v4976_v6, %v4056_v10  ;;  %v5116_v59 = vmul.f32 %v4998_v62, %v4056_v10 }
 0x4f2   :  { %10230 = vst [vmem:[#allocation252_spill] sm:$0xff] %v5018_v19  ;;  %10231 = vst [vmem:[#allocation253_spill] sm:$0xff] %v5028_v1  ;;  %v5042_v19 = vld [vmem:[#allocation11 + $0x340] sm:$0xff]  ;;  %v5120_v20 = vmul.f32 %v4996_v44, %v4056_v10  ;;  %v5124_v60 = vmul.f32 %v5002_v13, %v4056_v10  ;;  %v5156_v1 = vld [vmem:[#allocation11 + $0x3d8] sm:$0xff] }
 0x4f3   :  { %10232 = vst [vmem:[#allocation254_spill] sm:$0xff] %v5032_v42  ;;  %10233 = vst [vmem:[#allocation255_spill] sm:$0xff] %v5036_v22  ;;  %v5066_v22 = vld [vmem:[#allocation11 + $0x360] sm:$0xff]  ;;  %v5068_v42 = vld [vmem:[#allocation11 + $0x378] sm:$0xff] }
 0x4f4   :  { %10234 = vst [vmem:[#allocation256_spill] sm:$0xff] %v5040_v36  ;;  %10235 = vst [vmem:[#allocation257_spill] sm:$0xff] %v5050_v49  ;;  %v5064_v36 = vld [vmem:[#allocation11 + $0x368] sm:$0xff]  ;;  %v5154_v49 = vld [vmem:[#allocation11 + $0x3c0] sm:$0xff] }
 0x4f5   :  { %10236 = vst [vmem:[#allocation258_spill] sm:$0xff] %v5054_v43  ;;  %10237 = vst [vmem:[#allocation259_spill] sm:$0xff] %v5058_v55  ;;  %v5088_v55 = vld [vmem:[#allocation11 + $0x388] sm:$0xff]  ;;  %v5090_v43 = vld [vmem:[#allocation11 + $0x380] sm:$0xff] }
 0x4f6   :  { %10238 = vst [vmem:[#allocation260_spill] sm:$0xff] %v5062_v8  ;;  %10239 = vst [vmem:[#allocation261_spill] sm:$0xff] %v5072_v31  ;;  %v5086_v8 = vld [vmem:[#allocation11 + $0x370] sm:$0xff]  ;;  %v5152_v31 = vld [vmem:[#allocation11 + $0x3c8] sm:$0xff] }
 0x4f7   :  { %10240 = vst [vmem:[#allocation262_spill] sm:$0xff] %v5076_v28  ;;  %10241 = vst [vmem:[#allocation263_spill] sm:$0xff] %v5080_v25  ;;  %v5110_v25 = vld [vmem:[#allocation11 + $0x390] sm:$0xff]  ;;  %v5112_v28 = vld [vmem:[#allocation11 + $0x3a8] sm:$0xff] }
 0x4f8   :  { %10242 = vst [vmem:[#allocation264_spill] sm:$0xff] %v5084_v12  ;;  %10243 = vst [vmem:[#allocation265_spill] sm:$0xff] %v5094_v2  ;;  %v5108_v12 = vld [vmem:[#allocation11 + $0x398] sm:$0xff]  ;;  %v5134_v2 = vld [vmem:[#allocation11 + $0x3b0] sm:$0xff]  ;;  %v5202_v18 = vmul.f32 %v5110_v25, %v4056_v10 }
 0x4f9   :  { %10244 = vst [vmem:[#allocation266_spill] sm:$0xff] %v5098_v52  ;;  %10245 = vst [vmem:[#allocation267_spill] sm:$0xff] %v5102_v30  ;;  %v5130_v30 = vld [vmem:[#allocation11 + $0x3a0] sm:$0xff]  ;;  %v5132_v52 = vld [vmem:[#allocation11 + $0x3b8] sm:$0xff] }
 0x4fa   :  { %10246 = vst [vmem:[#allocation268_spill] sm:$0xff] %v5106_v47  ;;  %10247 = vst [vmem:[#allocation269_spill] sm:$0xff] %v5116_v59  ;;  %v5128_v47 = vmul.f32 %v5000_v33, %v4056_v10  ;;  %v5138_v59 = vmul.f32 %v5022_v57, %v4056_v10  ;;  %v5222_v56 = vmul.f32 %v5132_v52, %v4056_v10 }
 0x4fb   :  { %10248 = vst [vmem:[#allocation270_spill] sm:$0xff] %v5120_v20  ;;  %10249 = vst [vmem:[#allocation271_spill] sm:$0xff] %v5124_v60  ;;  %v5142_v20 = vmul.f32 %v5020_v11, %v4056_v10  ;;  %v5146_v60 = vmul.f32 %v5042_v19, %v4056_v10 }
 0x4fc   :  { %10250 = vst [vmem:[#allocation272_spill] sm:$0xff] %v5128_v47  ;;  %10251 = vst [vmem:[#allocation273_spill] sm:$0xff] %v5138_v59  ;;  %v5150_v47 = vmul.f32 %v5024_v26, %v4056_v10  ;;  %v5160_v59 = vmul.f32 %v5046_v21, %v4056_v10 }
 0x4fd   :  { %10252 = vst [vmem:[#allocation274_spill] sm:$0xff] %v5142_v20  ;;  %10253 = vst [vmem:[#allocation275_spill] sm:$0xff] %v5146_v60  ;;  %v5164_v20 = vmul.f32 %v5044_v58, %v4056_v10  ;;  %v5168_v60 = vmul.f32 %v5066_v22, %v4056_v10 }
 0x4fe   :  { %10254 = vst [vmem:[#allocation276_spill] sm:$0xff] %v5150_v47  ;;  %10255 = vst [vmem:[#allocation277_spill] sm:$0xff] %v5160_v59  ;;  %v5172_v47 = vmul.f32 %v5064_v36, %v4056_v10  ;;  %v5182_v59 = vmul.f32 %v5086_v8, %v4056_v10 }
 0x4ff   :  { %10256 = vst [vmem:[#allocation278_spill] sm:$0xff] %v5164_v20  ;;  %10257 = vst [vmem:[#allocation279_spill] sm:$0xff] %v5168_v60  ;;  %v5186_v20 = vmul.f32 %v5068_v42, %v4056_v10  ;;  %v5190_v60 = vmul.f32 %v5090_v43, %v4056_v10 }
 0x500   :  { %10258 = vst [vmem:[#allocation280_spill] sm:$0xff] %v5172_v47  ;;  %10259 = vst [vmem:[#allocation281_spill] sm:$0xff] %v5182_v59  ;;  %v5194_v47 = vmul.f32 %v5088_v55, %v4056_v10  ;;  %v5206_v59 = vmul.f32 %v5108_v12, %v4056_v10 }
 0x501   :  { %10260 = vst [vmem:[#allocation282_spill] sm:$0xff] %v5186_v20  ;;  %10261 = vst [vmem:[#allocation283_spill] sm:$0xff] %v5190_v60  ;;  %v5210_v20 = vmul.f32 %v5130_v30, %v4056_v10  ;;  %v5214_v60 = vmul.f32 %v5112_v28, %v4056_v10 }
 0x502   :  { %10262 = vst [vmem:[#allocation284_spill] sm:$0xff] %v5194_v47  ;;  %10263 = vst [vmem:[#allocation285_spill] sm:$0xff] %v5202_v18  ;;  %v5218_v47 = vmul.f32 %v5134_v2, %v4056_v10  ;;  %v5226_v18 = vmul.f32 %v5154_v49, %v4056_v10 }
 0x503   :  { %10264 = vst [vmem:[#allocation286_spill] sm:$0xff] %v5206_v59  ;;  %10265 = vst [vmem:[#allocation287_spill] sm:$0xff] %v5210_v20  ;;  %v5230_v59 = vmul.f32 %v5152_v31, %v4056_v10  ;;  %v5234_v20 = vmul.f32 %v5174_v9, %v4056_v10 }
 0x504   :  { %10266 = vst [vmem:[#allocation288_spill] sm:$0xff] %v5214_v60  ;;  %10267 = vst [vmem:[#allocation289_spill] sm:$0xff] %v5218_v47  ;;  %v5238_v60 = vmul.f32 %v5156_v1, %v4056_v10  ;;  %v5242_v47 = vmul.f32 %v5178_v27, %v4056_v10 }
 0x505   :  { %10268 = vst [vmem:[#allocation290_spill] sm:$0xff] %v5222_v56  ;;  %10269 = vst [vmem:[#allocation291_spill] sm:$0xff] %v5226_v18  ;;  %v5246_v56 = vmul.f32 %v5176_v61, %v4056_v10  ;;  %v5250_v18 = vmul.f32 %v5198_v24, %v4056_v10 }
 0x506   :  { %10270 = vst [vmem:[#allocation292_spill] sm:$0xff] %v5230_v59  ;;  %10271 = vst [vmem:[#allocation293_spill] sm:$0xff] %v5234_v20  ;;  %v5254_v59 = vmul.f32 %v5196_v7, %v4056_v10  ;;  %v5258_v20 = vmul.f32 %v4978_v40, %v4058_v29  ;;  %v5274_v10 = vmul.f32 %v5002_v13, %v4058_v29 }
 0x507   :  { %10272 = vst [vmem:[#allocation294_spill] sm:$0xff] %v5238_v60  ;;  %10273 = vst [vmem:[#allocation295_spill] sm:$0xff] %v5242_v47  ;;  %v5262_v60 = vmul.f32 %v4976_v6, %v4058_v29  ;;  %v5266_v47 = vmul.f32 %v4998_v62, %v4058_v29  ;;  %v5278_v40 = vmul.f32 %v5000_v33, %v4058_v29  ;;  %v5298_v33 = vld [vmem:[#allocation11 + $0x400] sm:$0xff] }
 0x508   :  { %10274 = vst [vmem:[#allocation296_spill] sm:$0xff] %v5246_v56  ;;  %10275 = vst [vmem:[#allocation297_spill] sm:$0xff] %v5250_v18  ;;  %v5270_v56 = vmul.f32 %v4996_v44, %v4058_v29  ;;  %v5282_v6 = vmul.f32 %v5022_v57, %v4058_v29  ;;  %v5286_v62 = vmul.f32 %v5020_v11, %v4058_v29  ;;  %v10783_v18 = vld [vmem:[#allocation125_spill] sm:$0xff] }
 0x509   :  { %10276 = vst [vmem:[#allocation298_spill] sm:$0xff] %v5254_v59  ;;  %10277 = vst [vmem:[#allocation299_spill] sm:$0xff] %v5258_v20  ;;  %v5290_v44 = vmul.f32 %v5042_v19, %v4058_v29  ;;  %v5294_v13 = vmul.f32 %v5024_v26, %v4058_v29  ;;  %v5302_v57 = vmul.f32 %v5046_v21, %v4058_v29  ;;  %v5322_v21 = vld [vmem:[#allocation11 + $0x420] sm:$0xff]  ;;  %v10780_v59 = vld [vmem:[#allocation25_spill] sm:$0xff] }
 0x50a   :  { %10278 = vst [vmem:[#allocation300_spill] sm:$0xff] %v5262_v60  ;;  %10279 = vst [vmem:[#allocation301_spill] sm:$0xff] %v5266_v47  ;;  %v5306_v11 = vmul.f32 %v5044_v58, %v4058_v29  ;;  %v5310_v19 = vmul.f32 %v5066_v22, %v4058_v29  ;;  %v5314_v26 = vmul.f32 %v5064_v36, %v4058_v29  ;;  %v5518_v47 = vld [vmem:[#allocation11 + $0x4f0] sm:$0xff] }
 0x50b   :  { %10280 = vst [vmem:[#allocation302_spill] sm:$0xff] %v5270_v56  ;;  %10281 = vst [vmem:[#allocation303_spill] sm:$0xff] %v5274_v10  ;;  %v5296_v10 = vld [vmem:[#allocation11 + $0x408] sm:$0xff]  ;;  %v5326_v58 = vmul.f32 %v5086_v8, %v4058_v29  ;;  %v5330_v22 = vmul.f32 %v5068_v42, %v4058_v29  ;;  %v5334_v36 = vmul.f32 %v5090_v43, %v4058_v29  ;;  %v5516_v56 = vld [vmem:[#allocation11 + $0x4f8] sm:$0xff] }
 0x50c   :  { %10282 = vst [vmem:[#allocation304_spill] sm:$0xff] %v5278_v40  ;;  %10283 = vst [vmem:[#allocation305_spill] sm:$0xff] %v5282_v6  ;;  %v5348_v8 = vmul.f32 %v5110_v25, %v4058_v29  ;;  %v5352_v42 = vmul.f32 %v5108_v12, %v4058_v29  ;;  %v5356_v43 = vmul.f32 %v5130_v30, %v4058_v29  ;;  %v5496_v6 = vld [vmem:[#allocation11 + $0x4e8] sm:$0xff]  ;;  %v5498_v40 = vld [vmem:[#allocation11 + $0x4e0] sm:$0xff] }
 0x50d   :  { %10284 = vst [vmem:[#allocation306_spill] sm:$0xff] %v5286_v62  ;;  %10285 = vst [vmem:[#allocation307_spill] sm:$0xff] %v5290_v44  ;;  %v5318_v44 = vld [vmem:[#allocation11 + $0x410] sm:$0xff]  ;;  %v5320_v62 = vld [vmem:[#allocation11 + $0x428] sm:$0xff]  ;;  %v5370_v25 = vmul.f32 %v5134_v2, %v4058_v29  ;;  %v5374_v12 = vmul.f32 %v5132_v52, %v4058_v29  ;;  %v5378_v30 = vmul.f32 %v5154_v49, %v4058_v29 }
 0x50e   :  { %10286 = vst [vmem:[#allocation308_spill] sm:$0xff] %v5294_v13  ;;  %10287 = vst [vmem:[#allocation309_spill] sm:$0xff] %v5302_v57  ;;  %v5316_v13 = vld [vmem:[#allocation11 + $0x418] sm:$0xff]  ;;  %v5344_v57 = vld [vmem:[#allocation11 + $0x448] sm:$0xff]  ;;  %v5392_v2 = vmul.f32 %v5174_v9, %v4058_v29  ;;  %v5396_v52 = vmul.f32 %v5156_v1, %v4058_v29  ;;  %v5400_v49 = vmul.f32 %v5178_v27, %v4058_v29 }
 0x50f   :  { %10288 = vst [vmem:[#allocation310_spill] sm:$0xff] %v5306_v11  ;;  %10289 = vst [vmem:[#allocation311_spill] sm:$0xff] %v5310_v19  ;;  %v5340_v19 = vld [vmem:[#allocation11 + $0x438] sm:$0xff]  ;;  %v5342_v11 = vld [vmem:[#allocation11 + $0x430] sm:$0xff]  ;;  %v5414_v9 = vmul.f32 %v5198_v24, %v4058_v29  ;;  %v5418_v1 = vmul.f32 %v5196_v7, %v4058_v29  ;;  %v5422_v27 = vmul.f32 %v5298_v33, %v4074_v3 }
 0x510   :  { %10290 = vst [vmem:[#allocation312_spill] sm:$0xff] %v5314_v26  ;;  %10291 = vst [vmem:[#allocation313_spill] sm:$0xff] %v5326_v58  ;;  %v5338_v26 = vmul.f32 %v5088_v55, %v4058_v29  ;;  %v5360_v55 = vmul.f32 %v5112_v28, %v4058_v29  ;;  %v5382_v28 = vmul.f32 %v5152_v31, %v4058_v29  ;;  %v5494_v58 = vld [vmem:[#allocation11 + $0x4d0] sm:$0xff] }
 0x511   :  { %10292 = vst [vmem:[#allocation314_spill] sm:$0xff] %v5330_v22  ;;  %10293 = vst [vmem:[#allocation315_spill] sm:$0xff] %v5334_v36  ;;  %v5364_v36 = vld [vmem:[#allocation11 + $0x458] sm:$0xff]  ;;  %v5366_v22 = vld [vmem:[#allocation11 + $0x450] sm:$0xff]  ;;  %v5404_v31 = vmul.f32 %v5176_v61, %v4058_v29  ;;  %v5426_v61 = vmul.f32 %v5296_v10, %v4074_v3  ;;  %v5436_v24 = vmul.f32 %v5318_v44, %v4074_v3 }
 0x512   :  { %10294 = vst [vmem:[#allocation316_spill] sm:$0xff] %v5338_v26  ;;  %10295 = vst [vmem:[#allocation317_spill] sm:$0xff] %v5348_v8  ;;  %v5362_v26 = vld [vmem:[#allocation11 + $0x440] sm:$0xff]  ;;  %v5440_v29 = vmul.f32 %v5316_v13, %v4074_v3  ;;  %v5444_v7 = vmul.f32 %v5322_v21, %v4074_v3  ;;  %v5476_v8 = vld [vmem:[#allocation11 + $0x4d8] sm:$0xff] }
 0x513   :  { %10296 = vst [vmem:[#allocation318_spill] sm:$0xff] %v5352_v42  ;;  %10297 = vst [vmem:[#allocation319_spill] sm:$0xff] %v5356_v43  ;;  %v5386_v43 = vld [vmem:[#allocation11 + $0x460] sm:$0xff]  ;;  %v5388_v42 = vld [vmem:[#allocation11 + $0x478] sm:$0xff] }
 0x514   :  { %10298 = vst [vmem:[#allocation320_spill] sm:$0xff] %v5360_v55  ;;  %10299 = vst [vmem:[#allocation321_spill] sm:$0xff] %v5370_v25  ;;  %v5384_v55 = vld [vmem:[#allocation11 + $0x468] sm:$0xff]  ;;  %v5474_v25 = vld [vmem:[#allocation11 + $0x4c0] sm:$0xff] }
 0x515   :  { %10300 = vst [vmem:[#allocation322_spill] sm:$0xff] %v5374_v12  ;;  %10301 = vst [vmem:[#allocation323_spill] sm:$0xff] %v5378_v30  ;;  %v5408_v30 = vld [vmem:[#allocation11 + $0x488] sm:$0xff]  ;;  %v5410_v12 = vld [vmem:[#allocation11 + $0x480] sm:$0xff] }
 0x516   :  { %10302 = vst [vmem:[#allocation324_spill] sm:$0xff] %v5382_v28  ;;  %10303 = vst [vmem:[#allocation325_spill] sm:$0xff] %v5392_v2  ;;  %v5406_v28 = vld [vmem:[#allocation11 + $0x470] sm:$0xff]  ;;  %v5472_v2 = vld [vmem:[#allocation11 + $0x4c8] sm:$0xff] }
 0x517   :  { %10304 = vst [vmem:[#allocation326_spill] sm:$0xff] %v5396_v52  ;;  %10305 = vst [vmem:[#allocation327_spill] sm:$0xff] %v5400_v49  ;;  %v5430_v49 = vld [vmem:[#allocation11 + $0x490] sm:$0xff]  ;;  %v5432_v52 = vld [vmem:[#allocation11 + $0x4a8] sm:$0xff] }
 0x518   :  { %10306 = vst [vmem:[#allocation328_spill] sm:$0xff] %v5404_v31  ;;  %10307 = vst [vmem:[#allocation329_spill] sm:$0xff] %v5414_v9  ;;  %v5428_v31 = vld [vmem:[#allocation11 + $0x498] sm:$0xff]  ;;  %v5454_v9 = vld [vmem:[#allocation11 + $0x4b0] sm:$0xff]  ;;  %v5522_v60 = vmul.f32 %v5430_v49, %v4074_v3 }
 0x519   :  { %10308 = vst [vmem:[#allocation330_spill] sm:$0xff] %v5418_v1  ;;  %10309 = vst [vmem:[#allocation331_spill] sm:$0xff] %v5422_v27  ;;  %v5450_v27 = vld [vmem:[#allocation11 + $0x4a0] sm:$0xff]  ;;  %v5452_v1 = vld [vmem:[#allocation11 + $0x4b8] sm:$0xff] }
 0x51a   :  { %10310 = vst [vmem:[#allocation332_spill] sm:$0xff] %v5426_v61  ;;  %10311 = vst [vmem:[#allocation333_spill] sm:$0xff] %v5436_v24  ;;  %v5448_v61 = vmul.f32 %v5320_v62, %v4074_v3  ;;  %v5458_v24 = vmul.f32 %v5342_v11, %v4074_v3  ;;  %v5542_v20 = vmul.f32 %v5452_v1, %v4074_v3 }
 0x51b   :  { %10312 = vst [vmem:[#allocation334_spill] sm:$0xff] %v5440_v29  ;;  %10313 = vst [vmem:[#allocation335_spill] sm:$0xff] %v5444_v7  ;;  %v5462_v29 = vmul.f32 %v5340_v19, %v4074_v3  ;;  %v5466_v7 = vmul.f32 %v5362_v26, %v4074_v3 }
 0x51c   :  { %10314 = vst [vmem:[#allocation336_spill] sm:$0xff] %v5448_v61  ;;  %10315 = vst [vmem:[#allocation337_spill] sm:$0xff] %v5458_v24  ;;  %v5470_v61 = vmul.f32 %v5344_v57, %v4074_v3  ;;  %v5480_v24 = vmul.f32 %v5366_v22, %v4074_v3 }
 0x51d   :  { %10316 = vst [vmem:[#allocation338_spill] sm:$0xff] %v5462_v29  ;;  %10317 = vst [vmem:[#allocation339_spill] sm:$0xff] %v5466_v7  ;;  %v5484_v29 = vmul.f32 %v5364_v36, %v4074_v3  ;;  %v5488_v7 = vmul.f32 %v5386_v43, %v4074_v3 }
 0x51e   :  { %10318 = vst [vmem:[#allocation340_spill] sm:$0xff] %v5470_v61  ;;  %10319 = vst [vmem:[#allocation341_spill] sm:$0xff] %v5480_v24  ;;  %v5492_v61 = vmul.f32 %v5384_v55, %v4074_v3  ;;  %v5502_v24 = vmul.f32 %v5406_v28, %v4074_v3 }
 0x51f   :  { %10320 = vst [vmem:[#allocation342_spill] sm:$0xff] %v5484_v29  ;;  %10321 = vst [vmem:[#allocation343_spill] sm:$0xff] %v5488_v7  ;;  %v5506_v29 = vmul.f32 %v5388_v42, %v4074_v3  ;;  %v5510_v7 = vmul.f32 %v5410_v12, %v4074_v3 }
 0x520   :  { %10322 = vst [vmem:[#allocation344_spill] sm:$0xff] %v5492_v61  ;;  %10323 = vst [vmem:[#allocation345_spill] sm:$0xff] %v5502_v24  ;;  %v5514_v61 = vmul.f32 %v5408_v30, %v4074_v3  ;;  %v5526_v24 = vmul.f32 %v5428_v31, %v4074_v3 }
 0x521   :  { %10324 = vst [vmem:[#allocation346_spill] sm:$0xff] %v5506_v29  ;;  %10325 = vst [vmem:[#allocation347_spill] sm:$0xff] %v5510_v7  ;;  %v5530_v29 = vmul.f32 %v5450_v27, %v4074_v3  ;;  %v5534_v7 = vmul.f32 %v5432_v52, %v4074_v3 }
 0x522   :  { %10326 = vst [vmem:[#allocation348_spill] sm:$0xff] %v5514_v61  ;;  %10327 = vst [vmem:[#allocation349_spill] sm:$0xff] %v5522_v60  ;;  %v5538_v61 = vmul.f32 %v5454_v9, %v4074_v3  ;;  %v5546_v60 = vmul.f32 %v5474_v25, %v4074_v3 }
 0x523   :  { %10328 = vst [vmem:[#allocation350_spill] sm:$0xff] %v5526_v24  ;;  %10329 = vst [vmem:[#allocation351_spill] sm:$0xff] %v5530_v29  ;;  %v5550_v24 = vmul.f32 %v5472_v2, %v4074_v3  ;;  %v5554_v29 = vmul.f32 %v5494_v58, %v4074_v3 }
 0x524   :  { %10330 = vst [vmem:[#allocation352_spill] sm:$0xff] %v5534_v7  ;;  %10331 = vst [vmem:[#allocation353_spill] sm:$0xff] %v5538_v61  ;;  %v5558_v7 = vmul.f32 %v5476_v8, %v4074_v3  ;;  %v5562_v61 = vmul.f32 %v5498_v40, %v4074_v3 }
 0x525   :  { %10332 = vst [vmem:[#allocation354_spill] sm:$0xff] %v5542_v20  ;;  %10333 = vst [vmem:[#allocation355_spill] sm:$0xff] %v5546_v60  ;;  %v5566_v20 = vmul.f32 %v5496_v6, %v4074_v3  ;;  %v5570_v60 = vmul.f32 %v5518_v47, %v4074_v3 }
 0x526   :  { %10334 = vst [vmem:[#allocation356_spill] sm:$0xff] %v5550_v24  ;;  %10335 = vst [vmem:[#allocation357_spill] sm:$0xff] %v5554_v29  ;;  %v5574_v24 = vmul.f32 %v5516_v56, %v4074_v3  ;;  %v5578_v29 = vmul.f32 %v5298_v33, %v4076_v35  ;;  %v5594_v3 = vmul.f32 %v5322_v21, %v4076_v35 }
 0x527   :  { %10336 = vst [vmem:[#allocation358_spill] sm:$0xff] %v5558_v7  ;;  %10337 = vst [vmem:[#allocation359_spill] sm:$0xff] %v5562_v61  ;;  %v5582_v7 = vmul.f32 %v5296_v10, %v4076_v35  ;;  %v5586_v61 = vmul.f32 %v5318_v44, %v4076_v35  ;;  %v5598_v33 = vmul.f32 %v5320_v62, %v4076_v35  ;;  %v5618_v62 = vld [vmem:[#allocation11 + $0x500] sm:$0xff] }
 0x528   :  { %10338 = vst [vmem:[#allocation360_spill] sm:$0xff] %v5566_v20  ;;  %10339 = vst [vmem:[#allocation361_spill] sm:$0xff] %v5570_v60  ;;  %v5590_v20 = vmul.f32 %v5316_v13, %v4076_v35  ;;  %v5602_v10 = vmul.f32 %v5342_v11, %v4076_v35  ;;  %v5606_v44 = vmul.f32 %v5340_v19, %v4076_v35  ;;  %v10777_v60 = vld [vmem:[#allocation123_spill] sm:$0xff] }
 0x529   :  { %10340 = vst [vmem:[#allocation362_spill] sm:$0xff] %v5574_v24  ;;  %10341 = vst [vmem:[#allocation363_spill] sm:$0xff] %v5578_v29  ;;  %v5610_v13 = vmul.f32 %v5362_v26, %v4076_v35  ;;  %v5614_v21 = vmul.f32 %v5344_v57, %v4076_v35  ;;  %v5622_v11 = vmul.f32 %v5366_v22, %v4076_v35  ;;  %v5642_v22 = vld [vmem:[#allocation11 + $0x520] sm:$0xff] }
 0x52a   :  { %10342 = vst [vmem:[#allocation364_spill] sm:$0xff] %v5582_v7  ;;  %10343 = vst [vmem:[#allocation365_spill] sm:$0xff] %v5586_v61  ;;  %v5626_v19 = vmul.f32 %v5364_v36, %v4076_v35  ;;  %v5630_v26 = vmul.f32 %v5386_v43, %v4076_v35  ;;  %v5634_v57 = vmul.f32 %v5384_v55, %v4076_v35  ;;  %v5838_v61 = vld [vmem:[#allocation11 + $0x5f0] sm:$0xff]  ;;  %v10774_v24 = vld [vmem:[#allocation22_spill] sm:$0xff] }
 0x52b   :  { %10344 = vst [vmem:[#allocation366_spill] sm:$0xff] %v5590_v20  ;;  %10345 = vst [vmem:[#allocation367_spill] sm:$0xff] %v5594_v3  ;;  %v5616_v3 = vld [vmem:[#allocation11 + $0x508] sm:$0xff]  ;;  %v5646_v36 = vmul.f32 %v5406_v28, %v4076_v35  ;;  %v5650_v43 = vmul.f32 %v5388_v42, %v4076_v35  ;;  %v5654_v55 = vmul.f32 %v5410_v12, %v4076_v35  ;;  %v5836_v20 = vld [vmem:[#allocation11 + $0x5f8] sm:$0xff] }
 0x52c   :  { %10346 = vst [vmem:[#allocation368_spill] sm:$0xff] %v5598_v33  ;;  %10347 = vst [vmem:[#allocation369_spill] sm:$0xff] %v5602_v10  ;;  %v5668_v28 = vmul.f32 %v5430_v49, %v4076_v35  ;;  %v5672_v42 = vmul.f32 %v5428_v31, %v4076_v35  ;;  %v5676_v12 = vmul.f32 %v5450_v27, %v4076_v35  ;;  %v5816_v10 = vld [vmem:[#allocation11 + $0x5e8] sm:$0xff]  ;;  %v5818_v33 = vld [vmem:[#allocation11 + $0x5e0] sm:$0xff] }
 0x52d   :  { %10348 = vst [vmem:[#allocation370_spill] sm:$0xff] %v5606_v44  ;;  %10349 = vst [vmem:[#allocation371_spill] sm:$0xff] %v5610_v13  ;;  %v5638_v13 = vld [vmem:[#allocation11 + $0x510] sm:$0xff]  ;;  %v5640_v44 = vld [vmem:[#allocation11 + $0x528] sm:$0xff]  ;;  %v5690_v49 = vmul.f32 %v5454_v9, %v4076_v35  ;;  %v5694_v31 = vmul.f32 %v5452_v1, %v4076_v35  ;;  %v5698_v27 = vmul.f32 %v5474_v25, %v4076_v35 }
 0x52e   :  { %10350 = vst [vmem:[#allocation372_spill] sm:$0xff] %v5614_v21  ;;  %10351 = vst [vmem:[#allocation373_spill] sm:$0xff] %v5622_v11  ;;  %v5636_v21 = vld [vmem:[#allocation11 + $0x518] sm:$0xff]  ;;  %v5664_v11 = vld [vmem:[#allocation11 + $0x548] sm:$0xff]  ;;  %v5712_v9 = vmul.f32 %v5494_v58, %v4076_v35  ;;  %v5716_v1 = vmul.f32 %v5476_v8, %v4076_v35  ;;  %v5720_v25 = vmul.f32 %v5498_v40, %v4076_v35 }
 0x52f   :  { %10352 = vst [vmem:[#allocation374_spill] sm:$0xff] %v5626_v19  ;;  %10353 = vst [vmem:[#allocation375_spill] sm:$0xff] %v5630_v26  ;;  %v5660_v26 = vld [vmem:[#allocation11 + $0x538] sm:$0xff]  ;;  %v5662_v19 = vld [vmem:[#allocation11 + $0x530] sm:$0xff]  ;;  %v5734_v58 = vmul.f32 %v5518_v47, %v4076_v35  ;;  %v5738_v8 = vmul.f32 %v5516_v56, %v4076_v35  ;;  %v5742_v40 = vmul.f32 %v5618_v62, %v4078_v34 }
 0x530   :  { %10354 = vst [vmem:[#allocation376_spill] sm:$0xff] %v5634_v57  ;;  %10355 = vst [vmem:[#allocation377_spill] sm:$0xff] %v5646_v36  ;;  %v5658_v57 = vmul.f32 %v5408_v30, %v4076_v35  ;;  %v5680_v30 = vmul.f32 %v5432_v52, %v4076_v35  ;;  %v5702_v52 = vmul.f32 %v5472_v2, %v4076_v35  ;;  %v5814_v36 = vld [vmem:[#allocation11 + $0x5d0] sm:$0xff] }
 0x531   :  { %10356 = vst [vmem:[#allocation378_spill] sm:$0xff] %v5650_v43  ;;  %10357 = vst [vmem:[#allocation379_spill] sm:$0xff] %v5654_v55  ;;  %v5684_v55 = vld [vmem:[#allocation11 + $0x558] sm:$0xff]  ;;  %v5686_v43 = vld [vmem:[#allocation11 + $0x550] sm:$0xff]  ;;  %v5724_v2 = vmul.f32 %v5496_v6, %v4076_v35  ;;  %v5746_v6 = vmul.f32 %v5616_v3, %v4078_v34  ;;  %v5756_v47 = vmul.f32 %v5638_v13, %v4078_v34 }
 0x532   :  { %10358 = vst [vmem:[#allocation380_spill] sm:$0xff] %v5658_v57  ;;  %10359 = vst [vmem:[#allocation381_spill] sm:$0xff] %v5668_v28  ;;  %v5682_v57 = vld [vmem:[#allocation11 + $0x540] sm:$0xff]  ;;  %v5760_v35 = vmul.f32 %v5636_v21, %v4078_v34  ;;  %v5764_v56 = vmul.f32 %v5642_v22, %v4078_v34  ;;  %v5796_v28 = vld [vmem:[#allocation11 + $0x5d8] sm:$0xff] }
 0x533   :  { %10360 = vst [vmem:[#allocation382_spill] sm:$0xff] %v5672_v42  ;;  %10361 = vst [vmem:[#allocation383_spill] sm:$0xff] %v5676_v12  ;;  %v5706_v12 = vld [vmem:[#allocation11 + $0x560] sm:$0xff]  ;;  %v5708_v42 = vld [vmem:[#allocation11 + $0x578] sm:$0xff] }
 0x534   :  { %10362 = vst [vmem:[#allocation384_spill] sm:$0xff] %v5680_v30  ;;  %10363 = vst [vmem:[#allocation385_spill] sm:$0xff] %v5690_v49  ;;  %v5704_v30 = vld [vmem:[#allocation11 + $0x568] sm:$0xff]  ;;  %v5794_v49 = vld [vmem:[#allocation11 + $0x5c0] sm:$0xff] }
 0x535   :  { %10364 = vst [vmem:[#allocation386_spill] sm:$0xff] %v5694_v31  ;;  %10365 = vst [vmem:[#allocation387_spill] sm:$0xff] %v5698_v27  ;;  %v5728_v27 = vld [vmem:[#allocation11 + $0x588] sm:$0xff]  ;;  %v5730_v31 = vld [vmem:[#allocation11 + $0x580] sm:$0xff] }
 0x536   :  { %10366 = vst [vmem:[#allocation388_spill] sm:$0xff] %v5702_v52  ;;  %10367 = vst [vmem:[#allocation389_spill] sm:$0xff] %v5712_v9  ;;  %v5726_v52 = vld [vmem:[#allocation11 + $0x570] sm:$0xff]  ;;  %v5792_v9 = vld [vmem:[#allocation11 + $0x5c8] sm:$0xff] }
 0x537   :  { %10368 = vst [vmem:[#allocation390_spill] sm:$0xff] %v5716_v1  ;;  %10369 = vst [vmem:[#allocation391_spill] sm:$0xff] %v5720_v25  ;;  %v5750_v25 = vld [vmem:[#allocation11 + $0x590] sm:$0xff]  ;;  %v5752_v1 = vld [vmem:[#allocation11 + $0x5a8] sm:$0xff] }
 0x538   :  { %10370 = vst [vmem:[#allocation392_spill] sm:$0xff] %v5724_v2  ;;  %10371 = vst [vmem:[#allocation393_spill] sm:$0xff] %v5734_v58  ;;  %v5748_v2 = vld [vmem:[#allocation11 + $0x598] sm:$0xff]  ;;  %v5774_v58 = vld [vmem:[#allocation11 + $0x5b0] sm:$0xff]  ;;  %v5842_v7 = vmul.f32 %v5750_v25, %v4078_v34 }
 0x539   :  { %10372 = vst [vmem:[#allocation394_spill] sm:$0xff] %v5738_v8  ;;  %10373 = vst [vmem:[#allocation395_spill] sm:$0xff] %v5742_v40  ;;  %v5770_v40 = vld [vmem:[#allocation11 + $0x5a0] sm:$0xff]  ;;  %v5772_v8 = vld [vmem:[#allocation11 + $0x5b8] sm:$0xff] }
 0x53a   :  { %10374 = vst [vmem:[#allocation396_spill] sm:$0xff] %v5746_v6  ;;  %10375 = vst [vmem:[#allocation397_spill] sm:$0xff] %v5756_v47  ;;  %v5768_v6 = vmul.f32 %v5640_v44, %v4078_v34  ;;  %v5778_v47 = vmul.f32 %v5662_v19, %v4078_v34  ;;  %v5862_v29 = vmul.f32 %v5772_v8, %v4078_v34 }
 0x53b   :  { %10376 = vst [vmem:[#allocation398_spill] sm:$0xff] %v5760_v35  ;;  %10377 = vst [vmem:[#allocation399_spill] sm:$0xff] %v5764_v56  ;;  %v5782_v35 = vmul.f32 %v5660_v26, %v4078_v34  ;;  %v5786_v56 = vmul.f32 %v5682_v57, %v4078_v34 }
 0x53c   :  { %10378 = vst [vmem:[#allocation400_spill] sm:$0xff] %v5768_v6  ;;  %10379 = vst [vmem:[#allocation401_spill] sm:$0xff] %v5778_v47  ;;  %v5790_v6 = vmul.f32 %v5664_v11, %v4078_v34  ;;  %v5800_v47 = vmul.f32 %v5686_v43, %v4078_v34 }
 0x53d   :  { %10380 = vst [vmem:[#allocation402_spill] sm:$0xff] %v5782_v35  ;;  %10381 = vst [vmem:[#allocation403_spill] sm:$0xff] %v5786_v56  ;;  %v5804_v35 = vmul.f32 %v5684_v55, %v4078_v34  ;;  %v5808_v56 = vmul.f32 %v5706_v12, %v4078_v34 }
 0x53e   :  { %10382 = vst [vmem:[#allocation404_spill] sm:$0xff] %v5790_v6  ;;  %10383 = vst [vmem:[#allocation405_spill] sm:$0xff] %v5800_v47  ;;  %v5812_v6 = vmul.f32 %v5704_v30, %v4078_v34  ;;  %v5822_v47 = vmul.f32 %v5726_v52, %v4078_v34 }
 0x53f   :  { %10384 = vst [vmem:[#allocation406_spill] sm:$0xff] %v5804_v35  ;;  %10385 = vst [vmem:[#allocation407_spill] sm:$0xff] %v5808_v56  ;;  %v5826_v35 = vmul.f32 %v5708_v42, %v4078_v34  ;;  %v5830_v56 = vmul.f32 %v5730_v31, %v4078_v34 }
 0x540   :  { %10386 = vst [vmem:[#allocation408_spill] sm:$0xff] %v5812_v6  ;;  %10387 = vst [vmem:[#allocation409_spill] sm:$0xff] %v5822_v47  ;;  %v5834_v6 = vmul.f32 %v5728_v27, %v4078_v34  ;;  %v5846_v47 = vmul.f32 %v5748_v2, %v4078_v34 }
 0x541   :  { %10388 = vst [vmem:[#allocation410_spill] sm:$0xff] %v5826_v35  ;;  %10389 = vst [vmem:[#allocation411_spill] sm:$0xff] %v5830_v56  ;;  %v5850_v35 = vmul.f32 %v5770_v40, %v4078_v34  ;;  %v5854_v56 = vmul.f32 %v5752_v1, %v4078_v34 }
 0x542   :  { %10390 = vst [vmem:[#allocation412_spill] sm:$0xff] %v5834_v6  ;;  %10391 = vst [vmem:[#allocation413_spill] sm:$0xff] %v5842_v7  ;;  %v5858_v6 = vmul.f32 %v5774_v58, %v4078_v34  ;;  %v5866_v7 = vmul.f32 %v5794_v49, %v4078_v34 }
 0x543   :  { %10392 = vst [vmem:[#allocation414_spill] sm:$0xff] %v5846_v47  ;;  %10393 = vst [vmem:[#allocation415_spill] sm:$0xff] %v5850_v35  ;;  %v5870_v47 = vmul.f32 %v5792_v9, %v4078_v34  ;;  %v5874_v35 = vmul.f32 %v5814_v36, %v4078_v34 }
 0x544   :  { %10394 = vst [vmem:[#allocation416_spill] sm:$0xff] %v5854_v56  ;;  %10395 = vst [vmem:[#allocation417_spill] sm:$0xff] %v5858_v6  ;;  %v5878_v56 = vmul.f32 %v5796_v28, %v4078_v34  ;;  %v5882_v6 = vmul.f32 %v5818_v33, %v4078_v34 }
 0x545   :  { %10396 = vst [vmem:[#allocation418_spill] sm:$0xff] %v5862_v29  ;;  %10397 = vst [vmem:[#allocation419_spill] sm:$0xff] %v5866_v7  ;;  %v5886_v29 = vmul.f32 %v5816_v10, %v4078_v34  ;;  %v5890_v7 = vmul.f32 %v5838_v61, %v4078_v34 }
 0x546   :  { %10398 = vst [vmem:[#allocation420_spill] sm:$0xff] %v5870_v47  ;;  %10399 = vst [vmem:[#allocation421_spill] sm:$0xff] %v5874_v35  ;;  %v5894_v47 = vmul.f32 %v5836_v20, %v4078_v34  ;;  %v5898_v35 = vmul.f32 %v5618_v62, %v4087_v37  ;;  %v5914_v34 = vmul.f32 %v5642_v22, %v4087_v37 }
 0x547   :  { %10400 = vst [vmem:[#allocation422_spill] sm:$0xff] %v5878_v56  ;;  %10401 = vst [vmem:[#allocation423_spill] sm:$0xff] %v5882_v6  ;;  %v5902_v56 = vmul.f32 %v5616_v3, %v4087_v37  ;;  %v5906_v6 = vmul.f32 %v5638_v13, %v4087_v37  ;;  %v5918_v62 = vmul.f32 %v5640_v44, %v4087_v37  ;;  %v5938_v44 = vld [vmem:[#allocation11 + $0x600] sm:$0xff] }
 0x548   :  { %10402 = vst [vmem:[#allocation424_spill] sm:$0xff] %v5886_v29  ;;  %10403 = vst [vmem:[#allocation425_spill] sm:$0xff] %v5890_v7  ;;  %v5910_v29 = vmul.f32 %v5636_v21, %v4087_v37  ;;  %v5922_v3 = vmul.f32 %v5662_v19, %v4087_v37  ;;  %v5926_v13 = vmul.f32 %v5660_v26, %v4087_v37  ;;  %v10772_v7 = vld [vmem:[#allocation121_spill] sm:$0xff] }
 0x549   :  { %10404 = vst [vmem:[#allocation426_spill] sm:$0xff] %v5894_v47  ;;  %10405 = vst [vmem:[#allocation427_spill] sm:$0xff] %v5898_v35  ;;  %v5930_v21 = vmul.f32 %v5682_v57, %v4087_v37  ;;  %v5934_v22 = vmul.f32 %v5664_v11, %v4087_v37  ;;  %v5942_v19 = vmul.f32 %v5686_v43, %v4087_v37  ;;  %v5962_v43 = vld [vmem:[#allocation11 + $0x620] sm:$0xff] }
 0x54a   :  { %10406 = vst [vmem:[#allocation428_spill] sm:$0xff] %v5902_v56  ;;  %10407 = vst [vmem:[#allocation429_spill] sm:$0xff] %v5906_v6  ;;  %v5946_v26 = vmul.f32 %v5684_v55, %v4087_v37  ;;  %v5950_v57 = vmul.f32 %v5706_v12, %v4087_v37  ;;  %v5954_v11 = vmul.f32 %v5704_v30, %v4087_v37  ;;  %v6158_v6 = vld [vmem:[#allocation11 + $0x6f0] sm:$0xff]  ;;  %v10770_v47 = vld [vmem:[#allocation19_spill] sm:$0xff] }
 0x54b   :  { %10408 = vst [vmem:[#allocation430_spill] sm:$0xff] %v5910_v29  ;;  %10409 = vst [vmem:[#allocation431_spill] sm:$0xff] %v5914_v34  ;;  %v5936_v34 = vld [vmem:[#allocation11 + $0x608] sm:$0xff]  ;;  %v5966_v55 = vmul.f32 %v5726_v52, %v4087_v37  ;;  %v5970_v12 = vmul.f32 %v5708_v42, %v4087_v37  ;;  %v5974_v30 = vmul.f32 %v5730_v31, %v4087_v37  ;;  %v6156_v29 = vld [vmem:[#allocation11 + $0x6f8] sm:$0xff] }
 0x54c   :  { %10410 = vst [vmem:[#allocation432_spill] sm:$0xff] %v5918_v62  ;;  %10411 = vst [vmem:[#allocation433_spill] sm:$0xff] %v5922_v3  ;;  %v5988_v52 = vmul.f32 %v5750_v25, %v4087_v37  ;;  %v5992_v42 = vmul.f32 %v5748_v2, %v4087_v37  ;;  %v5996_v31 = vmul.f32 %v5770_v40, %v4087_v37  ;;  %v6136_v3 = vld [vmem:[#allocation11 + $0x6e8] sm:$0xff]  ;;  %v6138_v62 = vld [vmem:[#allocation11 + $0x6e0] sm:$0xff] }
 0x54d   :  { %10412 = vst [vmem:[#allocation434_spill] sm:$0xff] %v5926_v13  ;;  %10413 = vst [vmem:[#allocation435_spill] sm:$0xff] %v5930_v21  ;;  %v5958_v21 = vld [vmem:[#allocation11 + $0x610] sm:$0xff]  ;;  %v5960_v13 = vld [vmem:[#allocation11 + $0x628] sm:$0xff]  ;;  %v6010_v25 = vmul.f32 %v5774_v58, %v4087_v37  ;;  %v6014_v2 = vmul.f32 %v5772_v8, %v4087_v37  ;;  %v6018_v40 = vmul.f32 %v5794_v49, %v4087_v37 }
 0x54e   :  { %10414 = vst [vmem:[#allocation436_spill] sm:$0xff] %v5934_v22  ;;  %10415 = vst [vmem:[#allocation437_spill] sm:$0xff] %v5942_v19  ;;  %v5956_v22 = vld [vmem:[#allocation11 + $0x618] sm:$0xff]  ;;  %v5984_v19 = vld [vmem:[#allocation11 + $0x648] sm:$0xff]  ;;  %v6032_v58 = vmul.f32 %v5814_v36, %v4087_v37  ;;  %v6036_v8 = vmul.f32 %v5796_v28, %v4087_v37  ;;  %v6040_v49 = vmul.f32 %v5818_v33, %v4087_v37 }
 0x54f   :  { %10416 = vst [vmem:[#allocation438_spill] sm:$0xff] %v5946_v26  ;;  %10417 = vst [vmem:[#allocation439_spill] sm:$0xff] %v5950_v57  ;;  %v5980_v57 = vld [vmem:[#allocation11 + $0x638] sm:$0xff]  ;;  %v5982_v26 = vld [vmem:[#allocation11 + $0x630] sm:$0xff]  ;;  %v6054_v36 = vmul.f32 %v5838_v61, %v4087_v37  ;;  %v6058_v28 = vmul.f32 %v5836_v20, %v4087_v37  ;;  %v6062_v33 = vmul.f32 %v5938_v44, %v4100_v53 }
 0x550   :  { %10418 = vst [vmem:[#allocation440_spill] sm:$0xff] %v5954_v11  ;;  %10419 = vst [vmem:[#allocation441_spill] sm:$0xff] %v5966_v55  ;;  %v5978_v11 = vmul.f32 %v5728_v27, %v4087_v37  ;;  %v6000_v27 = vmul.f32 %v5752_v1, %v4087_v37  ;;  %v6022_v1 = vmul.f32 %v5792_v9, %v4087_v37  ;;  %v6134_v55 = vld [vmem:[#allocation11 + $0x6d0] sm:$0xff] }
 0x551   :  { %10420 = vst [vmem:[#allocation442_spill] sm:$0xff] %v5970_v12  ;;  %10421 = vst [vmem:[#allocation443_spill] sm:$0xff] %v5974_v30  ;;  %v6004_v30 = vld [vmem:[#allocation11 + $0x658] sm:$0xff]  ;;  %v6006_v12 = vld [vmem:[#allocation11 + $0x650] sm:$0xff]  ;;  %v6044_v9 = vmul.f32 %v5816_v10, %v4087_v37  ;;  %v6066_v10 = vmul.f32 %v5936_v34, %v4100_v53  ;;  %v6076_v61 = vmul.f32 %v5958_v21, %v4100_v53 }
 0x552   :  { %10422 = vst [vmem:[#allocation444_spill] sm:$0xff] %v5978_v11  ;;  %10423 = vst [vmem:[#allocation445_spill] sm:$0xff] %v5988_v52  ;;  %v6002_v11 = vld [vmem:[#allocation11 + $0x640] sm:$0xff]  ;;  %v6080_v37 = vmul.f32 %v5956_v22, %v4100_v53  ;;  %v6084_v20 = vmul.f32 %v5962_v43, %v4100_v53  ;;  %v6116_v52 = vld [vmem:[#allocation11 + $0x6d8] sm:$0xff] }
 0x553   :  { %10424 = vst [vmem:[#allocation446_spill] sm:$0xff] %v5992_v42  ;;  %10425 = vst [vmem:[#allocation447_spill] sm:$0xff] %v5996_v31  ;;  %v6026_v31 = vld [vmem:[#allocation11 + $0x660] sm:$0xff]  ;;  %v6028_v42 = vld [vmem:[#allocation11 + $0x678] sm:$0xff] }
 0x554   :  { %10426 = vst [vmem:[#allocation448_spill] sm:$0xff] %v6000_v27  ;;  %10427 = vst [vmem:[#allocation449_spill] sm:$0xff] %v6010_v25  ;;  %v6024_v27 = vld [vmem:[#allocation11 + $0x668] sm:$0xff]  ;;  %v6114_v25 = vld [vmem:[#allocation11 + $0x6c0] sm:$0xff] }
 0x555   :  { %10428 = vst [vmem:[#allocation450_spill] sm:$0xff] %v6014_v2  ;;  %10429 = vst [vmem:[#allocation451_spill] sm:$0xff] %v6018_v40  ;;  %v6048_v40 = vld [vmem:[#allocation11 + $0x688] sm:$0xff]  ;;  %v6050_v2 = vld [vmem:[#allocation11 + $0x680] sm:$0xff] }
 0x556   :  { %10430 = vst [vmem:[#allocation452_spill] sm:$0xff] %v6022_v1  ;;  %10431 = vst [vmem:[#allocation453_spill] sm:$0xff] %v6032_v58  ;;  %v6046_v1 = vld [vmem:[#allocation11 + $0x670] sm:$0xff]  ;;  %v6112_v58 = vld [vmem:[#allocation11 + $0x6c8] sm:$0xff] }
 0x557   :  { %10432 = vst [vmem:[#allocation454_spill] sm:$0xff] %v6036_v8  ;;  %10433 = vst [vmem:[#allocation455_spill] sm:$0xff] %v6040_v49  ;;  %v6070_v49 = vld [vmem:[#allocation11 + $0x690] sm:$0xff]  ;;  %v6072_v8 = vld [vmem:[#allocation11 + $0x6a8] sm:$0xff] }
 0x558   :  { %10434 = vst [vmem:[#allocation456_spill] sm:$0xff] %v6044_v9  ;;  %10435 = vst [vmem:[#allocation457_spill] sm:$0xff] %v6054_v36  ;;  %v6068_v9 = vld [vmem:[#allocation11 + $0x698] sm:$0xff]  ;;  %v6094_v36 = vld [vmem:[#allocation11 + $0x6b0] sm:$0xff]  ;;  %v6162_v56 = vmul.f32 %v6070_v49, %v4100_v53 }
 0x559   :  { %10436 = vst [vmem:[#allocation458_spill] sm:$0xff] %v6058_v28  ;;  %10437 = vst [vmem:[#allocation459_spill] sm:$0xff] %v6062_v33  ;;  %v6090_v33 = vld [vmem:[#allocation11 + $0x6a0] sm:$0xff]  ;;  %v6092_v28 = vld [vmem:[#allocation11 + $0x6b8] sm:$0xff] }
 0x55a   :  { %10438 = vst [vmem:[#allocation460_spill] sm:$0xff] %v6066_v10  ;;  %10439 = vst [vmem:[#allocation461_spill] sm:$0xff] %v6076_v61  ;;  %v6088_v10 = vmul.f32 %v5960_v13, %v4100_v53  ;;  %v6098_v61 = vmul.f32 %v5982_v26, %v4100_v53  ;;  %v6182_v35 = vmul.f32 %v6092_v28, %v4100_v53 }
 0x55b   :  { %10440 = vst [vmem:[#allocation462_spill] sm:$0xff] %v6080_v37  ;;  %10441 = vst [vmem:[#allocation463_spill] sm:$0xff] %v6084_v20  ;;  %v6102_v37 = vmul.f32 %v5980_v57, %v4100_v53  ;;  %v6106_v20 = vmul.f32 %v6002_v11, %v4100_v53 }
 0x55c   :  { %10442 = vst [vmem:[#allocation464_spill] sm:$0xff] %v6088_v10  ;;  %10443 = vst [vmem:[#allocation465_spill] sm:$0xff] %v6098_v61  ;;  %v6110_v10 = vmul.f32 %v5984_v19, %v4100_v53  ;;  %v6120_v61 = vmul.f32 %v6006_v12, %v4100_v53 }
 0x55d   :  { %10444 = vst [vmem:[#allocation466_spill] sm:$0xff] %v6102_v37  ;;  %10445 = vst [vmem:[#allocation467_spill] sm:$0xff] %v6106_v20  ;;  %v6124_v37 = vmul.f32 %v6004_v30, %v4100_v53  ;;  %v6128_v20 = vmul.f32 %v6026_v31, %v4100_v53 }
 0x55e   :  { %10446 = vst [vmem:[#allocation468_spill] sm:$0xff] %v6110_v10  ;;  %10447 = vst [vmem:[#allocation469_spill] sm:$0xff] %v6120_v61  ;;  %v6132_v10 = vmul.f32 %v6024_v27, %v4100_v53  ;;  %v6142_v61 = vmul.f32 %v6046_v1, %v4100_v53 }
 0x55f   :  { %10448 = vst [vmem:[#allocation470_spill] sm:$0xff] %v6124_v37  ;;  %10449 = vst [vmem:[#allocation471_spill] sm:$0xff] %v6128_v20  ;;  %v6146_v37 = vmul.f32 %v6028_v42, %v4100_v53  ;;  %v6150_v20 = vmul.f32 %v6050_v2, %v4100_v53 }
 0x560   :  { %10450 = vst [vmem:[#allocation472_spill] sm:$0xff] %v6132_v10  ;;  %10451 = vst [vmem:[#allocation473_spill] sm:$0xff] %v6142_v61  ;;  %v6154_v10 = vmul.f32 %v6048_v40, %v4100_v53  ;;  %v6166_v61 = vmul.f32 %v6068_v9, %v4100_v53 }
 0x561   :  { %10452 = vst [vmem:[#allocation474_spill] sm:$0xff] %v6146_v37  ;;  %10453 = vst [vmem:[#allocation475_spill] sm:$0xff] %v6150_v20  ;;  %v6170_v37 = vmul.f32 %v6090_v33, %v4100_v53  ;;  %v6174_v20 = vmul.f32 %v6072_v8, %v4100_v53 }
 0x562   :  { %10454 = vst [vmem:[#allocation476_spill] sm:$0xff] %v6154_v10  ;;  %10455 = vst [vmem:[#allocation477_spill] sm:$0xff] %v6162_v56  ;;  %v6178_v10 = vmul.f32 %v6094_v36, %v4100_v53  ;;  %v6186_v56 = vmul.f32 %v6114_v25, %v4100_v53 }
 0x563   :  { %10456 = vst [vmem:[#allocation478_spill] sm:$0xff] %v6166_v61  ;;  %10457 = vst [vmem:[#allocation479_spill] sm:$0xff] %v6170_v37  ;;  %v6190_v61 = vmul.f32 %v6112_v58, %v4100_v53  ;;  %v6194_v37 = vmul.f32 %v6134_v55, %v4100_v53 }
 0x564   :  { %10458 = vst [vmem:[#allocation480_spill] sm:$0xff] %v6174_v20  ;;  %10459 = vst [vmem:[#allocation481_spill] sm:$0xff] %v6178_v10  ;;  %v6198_v20 = vmul.f32 %v6116_v52, %v4100_v53  ;;  %v6202_v10 = vmul.f32 %v6138_v62, %v4100_v53 }
 0x565   :  { %10460 = vst [vmem:[#allocation482_spill] sm:$0xff] %v6182_v35  ;;  %10461 = vst [vmem:[#allocation483_spill] sm:$0xff] %v6186_v56  ;;  %v6206_v35 = vmul.f32 %v6136_v3, %v4100_v53  ;;  %v6210_v56 = vmul.f32 %v6158_v6, %v4100_v53 }
 0x566   :  { %10462 = vst [vmem:[#allocation484_spill] sm:$0xff] %v6190_v61  ;;  %10463 = vst [vmem:[#allocation485_spill] sm:$0xff] %v6194_v37  ;;  %v6214_v61 = vmul.f32 %v6156_v29, %v4100_v53  ;;  %v6218_v37 = vmul.f32 %v5938_v44, %v4118_v5  ;;  %v6234_v53 = vmul.f32 %v5962_v43, %v4118_v5 }
 0x567   :  { %10464 = vst [vmem:[#allocation486_spill] sm:$0xff] %v6198_v20  ;;  %10465 = vst [vmem:[#allocation487_spill] sm:$0xff] %v6202_v10  ;;  %v6222_v20 = vmul.f32 %v5936_v34, %v4118_v5  ;;  %v6226_v10 = vmul.f32 %v5958_v21, %v4118_v5  ;;  %v6238_v44 = vmul.f32 %v5960_v13, %v4118_v5  ;;  %v6258_v13 = vld [vmem:[#allocation11 + $0x700] sm:$0xff] }
 0x568   :  { %10466 = vst [vmem:[#allocation488_spill] sm:$0xff] %v6206_v35  ;;  %10467 = vst [vmem:[#allocation489_spill] sm:$0xff] %v6210_v56  ;;  %v6230_v35 = vmul.f32 %v5956_v22, %v4118_v5  ;;  %v6242_v34 = vmul.f32 %v5982_v26, %v4118_v5  ;;  %v6246_v21 = vmul.f32 %v5980_v57, %v4118_v5  ;;  %v10768_v56 = vld [vmem:[#allocation119_spill] sm:$0xff] }
 0x569   :  { %10468 = vst [vmem:[#allocation490_spill] sm:$0xff] %v6214_v61  ;;  %10469 = vst [vmem:[#allocation491_spill] sm:$0xff] %v6218_v37  ;;  %v6250_v22 = vmul.f32 %v6002_v11, %v4118_v5  ;;  %v6254_v43 = vmul.f32 %v5984_v19, %v4118_v5  ;;  %v6262_v26 = vmul.f32 %v6006_v12, %v4118_v5  ;;  %v6282_v12 = vld [vmem:[#allocation11 + $0x720] sm:$0xff] }
 0x56a   :  { %10470 = vst [vmem:[#allocation492_spill] sm:$0xff] %v6222_v20  ;;  %10471 = vst [vmem:[#allocation493_spill] sm:$0xff] %v6226_v10  ;;  %v6266_v57 = vmul.f32 %v6004_v30, %v4118_v5  ;;  %v6270_v11 = vmul.f32 %v6026_v31, %v4118_v5  ;;  %v6274_v19 = vmul.f32 %v6024_v27, %v4118_v5  ;;  %v6478_v10 = vld [vmem:[#allocation11 + $0x7f0] sm:$0xff]  ;;  %v10766_v61 = vld [vmem:[#allocation78_spill] sm:$0xff] }
 0x56b   :  { %10472 = vst [vmem:[#allocation494_spill] sm:$0xff] %v6230_v35  ;;  %10473 = vst [vmem:[#allocation495_spill] sm:$0xff] %v6234_v53  ;;  %v6256_v53 = vld [vmem:[#allocation11 + $0x708] sm:$0xff]  ;;  %v6286_v30 = vmul.f32 %v6046_v1, %v4118_v5  ;;  %v6290_v31 = vmul.f32 %v6028_v42, %v4118_v5  ;;  %v6294_v27 = vmul.f32 %v6050_v2, %v4118_v5  ;;  %v6476_v35 = vld [vmem:[#allocation11 + $0x7f8] sm:$0xff] }
 0x56c   :  { %10474 = vst [vmem:[#allocation496_spill] sm:$0xff] %v6238_v44  ;;  %10475 = vst [vmem:[#allocation497_spill] sm:$0xff] %v6242_v34  ;;  %v6308_v1 = vmul.f32 %v6070_v49, %v4118_v5  ;;  %v6312_v42 = vmul.f32 %v6068_v9, %v4118_v5  ;;  %v6316_v2 = vmul.f32 %v6090_v33, %v4118_v5  ;;  %v6456_v34 = vld [vmem:[#allocation11 + $0x7e8] sm:$0xff]  ;;  %v6458_v44 = vld [vmem:[#allocation11 + $0x7e0] sm:$0xff] }
 0x56d   :  { %10476 = vst [vmem:[#allocation498_spill] sm:$0xff] %v6246_v21  ;;  %10477 = vst [vmem:[#allocation499_spill] sm:$0xff] %v6250_v22  ;;  %v6278_v22 = vld [vmem:[#allocation11 + $0x710] sm:$0xff]  ;;  %v6280_v21 = vld [vmem:[#allocation11 + $0x728] sm:$0xff]  ;;  %v6330_v49 = vmul.f32 %v6094_v36, %v4118_v5  ;;  %v6334_v9 = vmul.f32 %v6092_v28, %v4118_v5  ;;  %v6338_v33 = vmul.f32 %v6114_v25, %v4118_v5 }
 0x56e   :  { %10478 = vst [vmem:[#allocation500_spill] sm:$0xff] %v6254_v43  ;;  %10479 = vst [vmem:[#allocation501_spill] sm:$0xff] %v6262_v26  ;;  %v6276_v43 = vld [vmem:[#allocation11 + $0x718] sm:$0xff]  ;;  %v6304_v26 = vld [vmem:[#allocation11 + $0x748] sm:$0xff]  ;;  %v6352_v36 = vmul.f32 %v6134_v55, %v4118_v5  ;;  %v6356_v28 = vmul.f32 %v6116_v52, %v4118_v5  ;;  %v6360_v25 = vmul.f32 %v6138_v62, %v4118_v5 }
 0x56f   :  { %10480 = vst [vmem:[#allocation502_spill] sm:$0xff] %v6266_v57  ;;  %10481 = vst [vmem:[#allocation503_spill] sm:$0xff] %v6270_v11  ;;  %v6300_v11 = vld [vmem:[#allocation11 + $0x738] sm:$0xff]  ;;  %v6302_v57 = vld [vmem:[#allocation11 + $0x730] sm:$0xff]  ;;  %v6374_v55 = vmul.f32 %v6158_v6, %v4118_v5  ;;  %v6378_v52 = vmul.f32 %v6156_v29, %v4118_v5  ;;  %v6382_v62 = vmul.f32 %v6258_v13, %v4120_v46 }
 0x570   :  { %10482 = vst [vmem:[#allocation504_spill] sm:$0xff] %v6274_v19  ;;  %10483 = vst [vmem:[#allocation505_spill] sm:$0xff] %v6286_v30  ;;  %v6298_v19 = vmul.f32 %v6048_v40, %v4118_v5  ;;  %v6320_v40 = vmul.f32 %v6072_v8, %v4118_v5  ;;  %v6342_v8 = vmul.f32 %v6112_v58, %v4118_v5  ;;  %v6454_v30 = vld [vmem:[#allocation11 + $0x7d0] sm:$0xff] }
 0x571   :  { %10484 = vst [vmem:[#allocation506_spill] sm:$0xff] %v6290_v31  ;;  %10485 = vst [vmem:[#allocation507_spill] sm:$0xff] %v6294_v27  ;;  %v6324_v27 = vld [vmem:[#allocation11 + $0x758] sm:$0xff]  ;;  %v6326_v31 = vld [vmem:[#allocation11 + $0x750] sm:$0xff]  ;;  %v6364_v58 = vmul.f32 %v6136_v3, %v4118_v5  ;;  %v6386_v3 = vmul.f32 %v6256_v53, %v4120_v46  ;;  %v6396_v6 = vmul.f32 %v6278_v22, %v4120_v46 }
 0x572   :  { %10486 = vst [vmem:[#allocation508_spill] sm:$0xff] %v6298_v19  ;;  %10487 = vst [vmem:[#allocation509_spill] sm:$0xff] %v6308_v1  ;;  %v6322_v19 = vld [vmem:[#allocation11 + $0x740] sm:$0xff]  ;;  %v6400_v5 = vmul.f32 %v6276_v43, %v4120_v46  ;;  %v6404_v29 = vmul.f32 %v6282_v12, %v4120_v46  ;;  %v6436_v1 = vld [vmem:[#allocation11 + $0x7d8] sm:$0xff] }
 0x573   :  { %10488 = vst [vmem:[#allocation510_spill] sm:$0xff] %v6312_v42  ;;  %10489 = vst [vmem:[#allocation511_spill] sm:$0xff] %v6316_v2  ;;  %v6346_v2 = vld [vmem:[#allocation11 + $0x760] sm:$0xff]  ;;  %v6348_v42 = vld [vmem:[#allocation11 + $0x778] sm:$0xff] }
 0x574   :  { %10490 = vst [vmem:[#allocation512_spill] sm:$0xff] %v6320_v40  ;;  %10491 = vst [vmem:[#allocation513_spill] sm:$0xff] %v6330_v49  ;;  %v6344_v40 = vld [vmem:[#allocation11 + $0x768] sm:$0xff]  ;;  %v6434_v49 = vld [vmem:[#allocation11 + $0x7c0] sm:$0xff] }
 0x575   :  { %10492 = vst [vmem:[#allocation514_spill] sm:$0xff] %v6334_v9  ;;  %10493 = vst [vmem:[#allocation515_spill] sm:$0xff] %v6338_v33  ;;  %v6368_v33 = vld [vmem:[#allocation11 + $0x788] sm:$0xff]  ;;  %v6370_v9 = vld [vmem:[#allocation11 + $0x780] sm:$0xff] }
 0x576   :  { %10494 = vst [vmem:[#allocation516_spill] sm:$0xff] %v6342_v8  ;;  %10495 = vst [vmem:[#allocation517_spill] sm:$0xff] %v6352_v36  ;;  %v6366_v8 = vld [vmem:[#allocation11 + $0x770] sm:$0xff]  ;;  %v6432_v36 = vld [vmem:[#allocation11 + $0x7c8] sm:$0xff] }
 0x577   :  { %10496 = vst [vmem:[#allocation518_spill] sm:$0xff] %v6356_v28  ;;  %10497 = vst [vmem:[#allocation519_spill] sm:$0xff] %v6360_v25  ;;  %v6390_v25 = vld [vmem:[#allocation11 + $0x790] sm:$0xff]  ;;  %v6392_v28 = vld [vmem:[#allocation11 + $0x7a8] sm:$0xff] }
 0x578   :  { %10498 = vst [vmem:[#allocation520_spill] sm:$0xff] %v6364_v58  ;;  %10499 = vst [vmem:[#allocation521_spill] sm:$0xff] %v6374_v55  ;;  %v6388_v58 = vld [vmem:[#allocation11 + $0x798] sm:$0xff]  ;;  %v6414_v55 = vld [vmem:[#allocation11 + $0x7b0] sm:$0xff]  ;;  %v6482_v20 = vmul.f32 %v6390_v25, %v4120_v46 }
 0x579   :  { %10500 = vst [vmem:[#allocation522_spill] sm:$0xff] %v6378_v52  ;;  %10501 = vst [vmem:[#allocation523_spill] sm:$0xff] %v6382_v62  ;;  %v6410_v62 = vld [vmem:[#allocation11 + $0x7a0] sm:$0xff]  ;;  %v6412_v52 = vld [vmem:[#allocation11 + $0x7b8] sm:$0xff] }
 0x57a   :  { %10502 = vst [vmem:[#allocation524_spill] sm:$0xff] %v6386_v3  ;;  %10503 = vst [vmem:[#allocation525_spill] sm:$0xff] %v6396_v6  ;;  %v6408_v3 = vmul.f32 %v6280_v21, %v4120_v46  ;;  %v6418_v6 = vmul.f32 %v6302_v57, %v4120_v46  ;;  %v6502_v37 = vmul.f32 %v6412_v52, %v4120_v46 }
 0x57b   :  { %10504 = vst [vmem:[#allocation526_spill] sm:$0xff] %v6400_v5  ;;  %10505 = vst [vmem:[#allocation527_spill] sm:$0xff] %v6404_v29  ;;  %v6422_v5 = vmul.f32 %v6300_v11, %v4120_v46  ;;  %v6426_v29 = vmul.f32 %v6322_v19, %v4120_v46 }
 0x57c   :  { %10506 = vst [vmem:[#allocation528_spill] sm:$0xff] %v6408_v3  ;;  %10507 = vst [vmem:[#allocation529_spill] sm:$0xff] %v6418_v6  ;;  %v6430_v3 = vmul.f32 %v6304_v26, %v4120_v46  ;;  %v6440_v6 = vmul.f32 %v6326_v31, %v4120_v46 }
 0x57d   :  { %10508 = vst [vmem:[#allocation530_spill] sm:$0xff] %v6422_v5  ;;  %10509 = vst [vmem:[#allocation531_spill] sm:$0xff] %v6426_v29  ;;  %v6444_v5 = vmul.f32 %v6324_v27, %v4120_v46  ;;  %v6448_v29 = vmul.f32 %v6346_v2, %v4120_v46 }
 0x57e   :  { %10510 = vst [vmem:[#allocation532_spill] sm:$0xff] %v6430_v3  ;;  %10511 = vst [vmem:[#allocation533_spill] sm:$0xff] %v6440_v6  ;;  %v6452_v3 = vmul.f32 %v6344_v40, %v4120_v46  ;;  %v6462_v6 = vmul.f32 %v6366_v8, %v4120_v46 }
 0x57f   :  { %10512 = vst [vmem:[#allocation534_spill] sm:$0xff] %v6444_v5  ;;  %10513 = vst [vmem:[#allocation535_spill] sm:$0xff] %v6448_v29  ;;  %v6466_v5 = vmul.f32 %v6348_v42, %v4120_v46  ;;  %v6470_v29 = vmul.f32 %v6370_v9, %v4120_v46 }
 0x580   :  { %10514 = vst [vmem:[#allocation536_spill] sm:$0xff] %v6452_v3  ;;  %10515 = vst [vmem:[#allocation537_spill] sm:$0xff] %v6462_v6  ;;  %v6474_v3 = vmul.f32 %v6368_v33, %v4120_v46  ;;  %v6486_v6 = vmul.f32 %v6388_v58, %v4120_v46 }
 0x581   :  { %10516 = vst [vmem:[#allocation538_spill] sm:$0xff] %v6466_v5  ;;  %10517 = vst [vmem:[#allocation539_spill] sm:$0xff] %v6470_v29  ;;  %v6490_v5 = vmul.f32 %v6410_v62, %v4120_v46  ;;  %v6494_v29 = vmul.f32 %v6392_v28, %v4120_v46 }
 0x582   :  { %10518 = vst [vmem:[#allocation540_spill] sm:$0xff] %v6474_v3  ;;  %10519 = vst [vmem:[#allocation541_spill] sm:$0xff] %v6482_v20  ;;  %v6498_v3 = vmul.f32 %v6414_v55, %v4120_v46  ;;  %v6506_v20 = vmul.f32 %v6434_v49, %v4120_v46 }
 0x583   :  { %10520 = vst [vmem:[#allocation542_spill] sm:$0xff] %v6486_v6  ;;  %10521 = vst [vmem:[#allocation543_spill] sm:$0xff] %v6490_v5  ;;  %v6510_v6 = vmul.f32 %v6432_v36, %v4120_v46  ;;  %v6514_v5 = vmul.f32 %v6454_v30, %v4120_v46 }
 0x584   :  { %10522 = vst [vmem:[#allocation544_spill] sm:$0xff] %v6494_v29  ;;  %10523 = vst [vmem:[#allocation545_spill] sm:$0xff] %v6498_v3  ;;  %v6518_v29 = vmul.f32 %v6436_v1, %v4120_v46  ;;  %v6522_v3 = vmul.f32 %v6458_v44, %v4120_v46 }
 0x585   :  { %10524 = vst [vmem:[#allocation546_spill] sm:$0xff] %v6502_v37  ;;  %10525 = vst [vmem:[#allocation547_spill] sm:$0xff] %v6506_v20  ;;  %v6526_v37 = vmul.f32 %v6456_v34, %v4120_v46  ;;  %v6530_v20 = vmul.f32 %v6478_v10, %v4120_v46 }
 0x586   :  { %10526 = vst [vmem:[#allocation548_spill] sm:$0xff] %v6510_v6  ;;  %10527 = vst [vmem:[#allocation549_spill] sm:$0xff] %v6514_v5  ;;  %v6534_v6 = vmul.f32 %v6476_v35, %v4120_v46  ;;  %v6538_v5 = vmul.f32 %v6258_v13, %v4122_v23  ;;  %v6554_v46 = vmul.f32 %v6282_v12, %v4122_v23 }
 0x587   :  { %10528 = vst [vmem:[#allocation550_spill] sm:$0xff] %v6518_v29  ;;  %10529 = vst [vmem:[#allocation551_spill] sm:$0xff] %v6522_v3  ;;  %v6542_v29 = vmul.f32 %v6256_v53, %v4122_v23  ;;  %v6546_v3 = vmul.f32 %v6278_v22, %v4122_v23  ;;  %v6558_v13 = vmul.f32 %v6280_v21, %v4122_v23  ;;  %v6578_v21 = vld [vmem:[#allocation11 + $0x800] sm:$0xff] }
 0x588   :  { %10530 = vst [vmem:[#allocation552_spill] sm:$0xff] %v6526_v37  ;;  %10531 = vst [vmem:[#allocation553_spill] sm:$0xff] %v6530_v20  ;;  %v6550_v37 = vmul.f32 %v6276_v43, %v4122_v23  ;;  %v6562_v53 = vmul.f32 %v6302_v57, %v4122_v23  ;;  %v6566_v22 = vmul.f32 %v6300_v11, %v4122_v23  ;;  %v10764_v20 = vld [vmem:[#allocation117_spill] sm:$0xff] }
 0x589   :  { %10532 = vst [vmem:[#allocation554_spill] sm:$0xff] %v6534_v6  ;;  %10533 = vst [vmem:[#allocation555_spill] sm:$0xff] %v6538_v5  ;;  %v6570_v43 = vmul.f32 %v6322_v19, %v4122_v23  ;;  %v6574_v12 = vmul.f32 %v6304_v26, %v4122_v23  ;;  %v6582_v57 = vmul.f32 %v6326_v31, %v4122_v23  ;;  %v6602_v31 = vld [vmem:[#allocation11 + $0x820] sm:$0xff]  ;;  %v10762_v6 = vld [vmem:[#allocation76_spill] sm:$0xff] }
 0x58a   :  { %10534 = vst [vmem:[#allocation556_spill] sm:$0xff] %v6542_v29  ;;  %10535 = vst [vmem:[#allocation557_spill] sm:$0xff] %v6546_v3  ;;  %v6586_v11 = vmul.f32 %v6324_v27, %v4122_v23  ;;  %v6590_v19 = vmul.f32 %v6346_v2, %v4122_v23  ;;  %v6594_v26 = vmul.f32 %v6344_v40, %v4122_v23  ;;  %v6798_v3 = vld [vmem:[#allocation11 + $0x8f0] sm:$0xff] }
 0x58b   :  { %10536 = vst [vmem:[#allocation558_spill] sm:$0xff] %v6550_v37  ;;  %10537 = vst [vmem:[#allocation559_spill] sm:$0xff] %v6554_v46  ;;  %v6576_v46 = vld [vmem:[#allocation11 + $0x808] sm:$0xff]  ;;  %v6606_v27 = vmul.f32 %v6366_v8, %v4122_v23  ;;  %v6610_v2 = vmul.f32 %v6348_v42, %v4122_v23  ;;  %v6614_v40 = vmul.f32 %v6370_v9, %v4122_v23  ;;  %v6796_v37 = vld [vmem:[#allocation11 + $0x8f8] sm:$0xff] }
 0x58c   :  { %10538 = vst [vmem:[#allocation560_spill] sm:$0xff] %v6558_v13  ;;  %10539 = vst [vmem:[#allocation561_spill] sm:$0xff] %v6562_v53  ;;  %v6628_v8 = vmul.f32 %v6390_v25, %v4122_v23  ;;  %v6632_v42 = vmul.f32 %v6388_v58, %v4122_v23  ;;  %v6636_v9 = vmul.f32 %v6410_v62, %v4122_v23  ;;  %v6776_v53 = vld [vmem:[#allocation11 + $0x8e8] sm:$0xff]  ;;  %v6778_v13 = vld [vmem:[#allocation11 + $0x8e0] sm:$0xff] }
 0x58d   :  { %10540 = vst [vmem:[#allocation562_spill] sm:$0xff] %v6566_v22  ;;  %10541 = vst [vmem:[#allocation563_spill] sm:$0xff] %v6570_v43  ;;  %v6598_v43 = vld [vmem:[#allocation11 + $0x810] sm:$0xff]  ;;  %v6600_v22 = vld [vmem:[#allocation11 + $0x828] sm:$0xff]  ;;  %v6650_v25 = vmul.f32 %v6414_v55, %v4122_v23  ;;  %v6654_v58 = vmul.f32 %v6412_v52, %v4122_v23  ;;  %v6658_v62 = vmul.f32 %v6434_v49, %v4122_v23 }
 0x58e   :  { %10542 = vst [vmem:[#allocation564_spill] sm:$0xff] %v6574_v12  ;;  %10543 = vst [vmem:[#allocation565_spill] sm:$0xff] %v6582_v57  ;;  %v6596_v12 = vld [vmem:[#allocation11 + $0x818] sm:$0xff]  ;;  %v6624_v57 = vld [vmem:[#allocation11 + $0x848] sm:$0xff]  ;;  %v6672_v55 = vmul.f32 %v6454_v30, %v4122_v23  ;;  %v6676_v52 = vmul.f32 %v6436_v1, %v4122_v23  ;;  %v6680_v49 = vmul.f32 %v6458_v44, %v4122_v23 }
 0x58f   :  { %10544 = vst [vmem:[#allocation566_spill] sm:$0xff] %v6586_v11  ;;  %10545 = vst [vmem:[#allocation567_spill] sm:$0xff] %v6590_v19  ;;  %v6620_v19 = vld [vmem:[#allocation11 + $0x838] sm:$0xff]  ;;  %v6622_v11 = vld [vmem:[#allocation11 + $0x830] sm:$0xff]  ;;  %v6694_v30 = vmul.f32 %v6478_v10, %v4122_v23  ;;  %v6698_v1 = vmul.f32 %v6476_v35, %v4122_v23  ;;  %v6702_v44 = vmul.f32 %v6578_v21, %v4146_v39 }
 0x590   :  { %10546 = vst [vmem:[#allocation568_spill] sm:$0xff] %v6594_v26  ;;  %10547 = vst [vmem:[#allocation569_spill] sm:$0xff] %v6606_v27  ;;  %v6618_v26 = vmul.f32 %v6368_v33, %v4122_v23  ;;  %v6640_v33 = vmul.f32 %v6392_v28, %v4122_v23  ;;  %v6662_v28 = vmul.f32 %v6432_v36, %v4122_v23  ;;  %v6774_v27 = vld [vmem:[#allocation11 + $0x8d0] sm:$0xff] }
 0x591   :  { %10548 = vst [vmem:[#allocation570_spill] sm:$0xff] %v6610_v2  ;;  %10549 = vst [vmem:[#allocation571_spill] sm:$0xff] %v6614_v40  ;;  %v6644_v40 = vld [vmem:[#allocation11 + $0x858] sm:$0xff]  ;;  %v6646_v2 = vld [vmem:[#allocation11 + $0x850] sm:$0xff]  ;;  %v6684_v36 = vmul.f32 %v6456_v34, %v4122_v23  ;;  %v6706_v34 = vmul.f32 %v6576_v46, %v4146_v39  ;;  %v6716_v10 = vmul.f32 %v6598_v43, %v4146_v39 }
 0x592   :  { %10550 = vst [vmem:[#allocation572_spill] sm:$0xff] %v6618_v26  ;;  %10551 = vst [vmem:[#allocation573_spill] sm:$0xff] %v6628_v8  ;;  %v6642_v26 = vld [vmem:[#allocation11 + $0x840] sm:$0xff]  ;;  %v6720_v23 = vmul.f32 %v6596_v12, %v4146_v39  ;;  %v6724_v35 = vmul.f32 %v6602_v31, %v4146_v39  ;;  %v6756_v8 = vld [vmem:[#allocation11 + $0x8d8] sm:$0xff] }
 0x593   :  { %10552 = vst [vmem:[#allocation574_spill] sm:$0xff] %v6632_v42  ;;  %10553 = vst [vmem:[#allocation575_spill] sm:$0xff] %v6636_v9  ;;  %v6666_v9 = vld [vmem:[#allocation11 + $0x860] sm:$0xff]  ;;  %v6668_v42 = vld [vmem:[#allocation11 + $0x878] sm:$0xff] }
 0x594   :  { %10554 = vst [vmem:[#allocation576_spill] sm:$0xff] %v6640_v33  ;;  %10555 = vst [vmem:[#allocation577_spill] sm:$0xff] %v6650_v25  ;;  %v6664_v33 = vld [vmem:[#allocation11 + $0x868] sm:$0xff]  ;;  %v6754_v25 = vld [vmem:[#allocation11 + $0x8c0] sm:$0xff] }
 0x595   :  { %10556 = vst [vmem:[#allocation578_spill] sm:$0xff] %v6654_v58  ;;  %10557 = vst [vmem:[#allocation579_spill] sm:$0xff] %v6658_v62  ;;  %v6688_v62 = vld [vmem:[#allocation11 + $0x888] sm:$0xff]  ;;  %v6690_v58 = vld [vmem:[#allocation11 + $0x880] sm:$0xff] }
 0x596   :  { %10558 = vst [vmem:[#allocation580_spill] sm:$0xff] %v6662_v28  ;;  %10559 = vst [vmem:[#allocation581_spill] sm:$0xff] %v6672_v55  ;;  %v6686_v28 = vld [vmem:[#allocation11 + $0x870] sm:$0xff]  ;;  %v6752_v55 = vld [vmem:[#allocation11 + $0x8c8] sm:$0xff] }
 0x597   :  { %10560 = vst [vmem:[#allocation582_spill] sm:$0xff] %v6676_v52  ;;  %10561 = vst [vmem:[#allocation583_spill] sm:$0xff] %v6680_v49  ;;  %v6710_v49 = vld [vmem:[#allocation11 + $0x890] sm:$0xff]  ;;  %v6712_v52 = vld [vmem:[#allocation11 + $0x8a8] sm:$0xff] }
 0x598   :  { %10562 = vst [vmem:[#allocation584_spill] sm:$0xff] %v6684_v36  ;;  %10563 = vst [vmem:[#allocation585_spill] sm:$0xff] %v6694_v30  ;;  %v6708_v36 = vld [vmem:[#allocation11 + $0x898] sm:$0xff]  ;;  %v6734_v30 = vld [vmem:[#allocation11 + $0x8b0] sm:$0xff]  ;;  %v6802_v29 = vmul.f32 %v6710_v49, %v4146_v39 }
 0x599   :  { %10564 = vst [vmem:[#allocation586_spill] sm:$0xff] %v6698_v1  ;;  %10565 = vst [vmem:[#allocation587_spill] sm:$0xff] %v6702_v44  ;;  %v6730_v44 = vld [vmem:[#allocation11 + $0x8a0] sm:$0xff]  ;;  %v6732_v1 = vld [vmem:[#allocation11 + $0x8b8] sm:$0xff] }
 0x59a   :  { %10566 = vst [vmem:[#allocation588_spill] sm:$0xff] %v6706_v34  ;;  %10567 = vst [vmem:[#allocation589_spill] sm:$0xff] %v6716_v10  ;;  %v6728_v34 = vmul.f32 %v6600_v22, %v4146_v39  ;;  %v6738_v10 = vmul.f32 %v6622_v11, %v4146_v39  ;;  %v6822_v5 = vmul.f32 %v6732_v1, %v4146_v39 }
 0x59b   :  { %10568 = vst [vmem:[#allocation590_spill] sm:$0xff] %v6720_v23  ;;  %10569 = vst [vmem:[#allocation591_spill] sm:$0xff] %v6724_v35  ;;  %v6742_v23 = vmul.f32 %v6620_v19, %v4146_v39  ;;  %v6746_v35 = vmul.f32 %v6642_v26, %v4146_v39 }
 0x59c   :  { %10570 = vst [vmem:[#allocation592_spill] sm:$0xff] %v6728_v34  ;;  %10571 = vst [vmem:[#allocation593_spill] sm:$0xff] %v6738_v10  ;;  %v6750_v34 = vmul.f32 %v6624_v57, %v4146_v39  ;;  %v6760_v10 = vmul.f32 %v6646_v2, %v4146_v39 }
 0x59d   :  { %10572 = vst [vmem:[#allocation594_spill] sm:$0xff] %v6742_v23  ;;  %10573 = vst [vmem:[#allocation595_spill] sm:$0xff] %v6746_v35  ;;  %v6764_v23 = vmul.f32 %v6644_v40, %v4146_v39  ;;  %v6768_v35 = vmul.f32 %v6666_v9, %v4146_v39 }
 0x59e   :  { %10574 = vst [vmem:[#allocation596_spill] sm:$0xff] %v6750_v34  ;;  %10575 = vst [vmem:[#allocation597_spill] sm:$0xff] %v6760_v10  ;;  %v6772_v34 = vmul.f32 %v6664_v33, %v4146_v39  ;;  %v6782_v10 = vmul.f32 %v6686_v28, %v4146_v39 }
 0x59f   :  { %10576 = vst [vmem:[#allocation598_spill] sm:$0xff] %v6764_v23  ;;  %10577 = vst [vmem:[#allocation599_spill] sm:$0xff] %v6768_v35  ;;  %v6786_v23 = vmul.f32 %v6668_v42, %v4146_v39  ;;  %v6790_v35 = vmul.f32 %v6690_v58, %v4146_v39 }
 0x5a0   :  { %10578 = vst [vmem:[#allocation600_spill] sm:$0xff] %v6772_v34  ;;  %10579 = vst [vmem:[#allocation601_spill] sm:$0xff] %v6782_v10  ;;  %v6794_v34 = vmul.f32 %v6688_v62, %v4146_v39  ;;  %v6806_v10 = vmul.f32 %v6708_v36, %v4146_v39 }
 0x5a1   :  { %10580 = vst [vmem:[#allocation602_spill] sm:$0xff] %v6786_v23  ;;  %10581 = vst [vmem:[#allocation603_spill] sm:$0xff] %v6790_v35  ;;  %v6810_v23 = vmul.f32 %v6730_v44, %v4146_v39  ;;  %v6814_v35 = vmul.f32 %v6712_v52, %v4146_v39 }
 0x5a2   :  { %10582 = vst [vmem:[#allocation604_spill] sm:$0xff] %v6794_v34  ;;  %10583 = vst [vmem:[#allocation605_spill] sm:$0xff] %v6802_v29  ;;  %v6818_v34 = vmul.f32 %v6734_v30, %v4146_v39  ;;  %v6826_v29 = vmul.f32 %v6754_v25, %v4146_v39 }
 0x5a3   :  { %10584 = vst [vmem:[#allocation606_spill] sm:$0xff] %v6806_v10  ;;  %10585 = vst [vmem:[#allocation607_spill] sm:$0xff] %v6810_v23  ;;  %v6830_v10 = vmul.f32 %v6752_v55, %v4146_v39  ;;  %v6834_v23 = vmul.f32 %v6774_v27, %v4146_v39 }
 0x5a4   :  { %10586 = vst [vmem:[#allocation608_spill] sm:$0xff] %v6814_v35  ;;  %10587 = vst [vmem:[#allocation609_spill] sm:$0xff] %v6818_v34  ;;  %v6838_v35 = vmul.f32 %v6756_v8, %v4146_v39  ;;  %v6842_v34 = vmul.f32 %v6778_v13, %v4146_v39 }
 0x5a5   :  { %10588 = vst [vmem:[#allocation610_spill] sm:$0xff] %v6822_v5  ;;  %10589 = vst [vmem:[#allocation611_spill] sm:$0xff] %v6826_v29  ;;  %v6846_v5 = vmul.f32 %v6776_v53, %v4146_v39  ;;  %v6850_v29 = vmul.f32 %v6798_v3, %v4146_v39 }
 0x5a6   :  { %10590 = vst [vmem:[#allocation612_spill] sm:$0xff] %v6830_v10  ;;  %10591 = vst [vmem:[#allocation613_spill] sm:$0xff] %v6834_v23  ;;  %v6854_v10 = vmul.f32 %v6796_v37, %v4146_v39  ;;  %v6858_v23 = vmul.f32 %v6578_v21, %v4160_v4  ;;  %v6874_v39 = vmul.f32 %v6602_v31, %v4160_v4 }
 0x5a7   :  { %10592 = vst [vmem:[#allocation614_spill] sm:$0xff] %v6838_v35  ;;  %10593 = vst [vmem:[#allocation615_spill] sm:$0xff] %v6842_v34  ;;  %v6862_v35 = vmul.f32 %v6576_v46, %v4160_v4  ;;  %v6866_v34 = vmul.f32 %v6598_v43, %v4160_v4  ;;  %v6878_v21 = vmul.f32 %v6600_v22, %v4160_v4  ;;  %v6898_v22 = vld [vmem:[#allocation11 + $0x900] sm:$0xff] }
 0x5a8   :  { %10594 = vst [vmem:[#allocation616_spill] sm:$0xff] %v6846_v5  ;;  %10595 = vst [vmem:[#allocation617_spill] sm:$0xff] %v6850_v29  ;;  %v6870_v5 = vmul.f32 %v6596_v12, %v4160_v4  ;;  %v6882_v46 = vmul.f32 %v6622_v11, %v4160_v4  ;;  %v6886_v43 = vmul.f32 %v6620_v19, %v4160_v4  ;;  %v10760_v29 = vld [vmem:[#allocation115_spill] sm:$0xff] }
 0x5a9   :  { %10596 = vst [vmem:[#allocation618_spill] sm:$0xff] %v6854_v10  ;;  %10597 = vst [vmem:[#allocation619_spill] sm:$0xff] %v6858_v23  ;;  %v6890_v12 = vmul.f32 %v6642_v26, %v4160_v4  ;;  %v6894_v31 = vmul.f32 %v6624_v57, %v4160_v4  ;;  %v6902_v11 = vmul.f32 %v6646_v2, %v4160_v4  ;;  %v6922_v2 = vld [vmem:[#allocation11 + $0x920] sm:$0xff] }
 0x5aa   :  { %10598 = vst [vmem:[#allocation620_spill] sm:$0xff] %v6862_v35  ;;  %10599 = vst [vmem:[#allocation621_spill] sm:$0xff] %v6866_v34  ;;  %v6906_v19 = vmul.f32 %v6644_v40, %v4160_v4  ;;  %v6910_v26 = vmul.f32 %v6666_v9, %v4160_v4  ;;  %v6914_v57 = vmul.f32 %v6664_v33, %v4160_v4  ;;  %v10758_v10 = vld [vmem:[#allocation74_spill] sm:$0xff] }
 0x5ab   :  { %10600 = vst [vmem:[#allocation622_spill] sm:$0xff] %v6870_v5  ;;  %10601 = vst [vmem:[#allocation623_spill] sm:$0xff] %v6874_v39  ;;  %v6896_v39 = vld [vmem:[#allocation11 + $0x908] sm:$0xff]  ;;  %v6926_v40 = vmul.f32 %v6686_v28, %v4160_v4  ;;  %v6930_v9 = vmul.f32 %v6668_v42, %v4160_v4  ;;  %v6934_v33 = vmul.f32 %v6690_v58, %v4160_v4 }
 0x5ac   :  { %10602 = vst [vmem:[#allocation624_spill] sm:$0xff] %v6878_v21  ;;  %10603 = vst [vmem:[#allocation625_spill] sm:$0xff] %v6882_v46  ;;  %v6948_v28 = vmul.f32 %v6710_v49, %v4160_v4  ;;  %v6952_v42 = vmul.f32 %v6708_v36, %v4160_v4  ;;  %v6956_v58 = vmul.f32 %v6730_v44, %v4160_v4  ;;  %v2542_v46 = vld [vmem:[#allocation11 + $0x9e8] sm:$0xff]  ;;  %v2541_v21 = vld [vmem:[#allocation11 + $0x9e0] sm:$0xff] }
 0x5ad   :  { %10604 = vst [vmem:[#allocation626_spill] sm:$0xff] %v6886_v43  ;;  %10605 = vst [vmem:[#allocation627_spill] sm:$0xff] %v6890_v12  ;;  %v6918_v12 = vld [vmem:[#allocation11 + $0x910] sm:$0xff]  ;;  %v6920_v43 = vld [vmem:[#allocation11 + $0x928] sm:$0xff]  ;;  %v6970_v49 = vmul.f32 %v6734_v30, %v4160_v4  ;;  %v6974_v36 = vmul.f32 %v6732_v1, %v4160_v4  ;;  %v6978_v44 = vmul.f32 %v6754_v25, %v4160_v4 }
 0x5ae   :  { %10606 = vst [vmem:[#allocation628_spill] sm:$0xff] %v6894_v31  ;;  %10607 = vst [vmem:[#allocation629_spill] sm:$0xff] %v6902_v11  ;;  %v6916_v31 = vld [vmem:[#allocation11 + $0x918] sm:$0xff]  ;;  %v6944_v11 = vld [vmem:[#allocation11 + $0x948] sm:$0xff]  ;;  %v6992_v30 = vmul.f32 %v6774_v27, %v4160_v4  ;;  %v6996_v1 = vmul.f32 %v6756_v8, %v4160_v4  ;;  %v7000_v25 = vmul.f32 %v6778_v13, %v4160_v4 }
 0x5af   :  { %10608 = vst [vmem:[#allocation630_spill] sm:$0xff] %v6906_v19  ;;  %10609 = vst [vmem:[#allocation631_spill] sm:$0xff] %v6910_v26  ;;  %v6940_v26 = vld [vmem:[#allocation11 + $0x938] sm:$0xff]  ;;  %v6942_v19 = vld [vmem:[#allocation11 + $0x930] sm:$0xff]  ;;  %v7014_v27 = vmul.f32 %v6798_v3, %v4160_v4  ;;  %v7018_v8 = vmul.f32 %v6796_v37, %v4160_v4  ;;  %v7022_v13 = vmul.f32 %v6898_v22, %v4162_v32 }
 0x5b0   :  { %10610 = vst [vmem:[#allocation632_spill] sm:$0xff] %v6914_v57  ;;  %10611 = vst [vmem:[#allocation633_spill] sm:$0xff] %v6926_v40  ;;  %v6938_v57 = vmul.f32 %v6688_v62, %v4160_v4  ;;  %v6960_v62 = vmul.f32 %v6712_v52, %v4160_v4  ;;  %v6982_v52 = vmul.f32 %v6752_v55, %v4160_v4 }
 0x5b1   :  { %10612 = vst [vmem:[#allocation634_spill] sm:$0xff] %v6930_v9  ;;  %10613 = vst [vmem:[#allocation635_spill] sm:$0xff] %v6934_v33  ;;  %v6964_v33 = vld [vmem:[#allocation11 + $0x958] sm:$0xff]  ;;  %v6966_v9 = vld [vmem:[#allocation11 + $0x950] sm:$0xff]  ;;  %v7004_v55 = vmul.f32 %v6776_v53, %v4160_v4  ;;  %v7026_v53 = vmul.f32 %v6896_v39, %v4162_v32  ;;  %v7034_v3 = vmul.f32 %v6916_v31, %v4162_v32 }
 0x5b2   :  { %10614 = vst [vmem:[#allocation636_spill] sm:$0xff] %v6938_v57  ;;  %10615 = vst [vmem:[#allocation637_spill] sm:$0xff] %v6948_v28  ;;  %v6962_v57 = vld [vmem:[#allocation11 + $0x940] sm:$0xff]  ;;  %v7038_v4 = vmul.f32 %v6922_v2, %v4162_v32  ;;  %v7042_v37 = vmul.f32 %v6920_v43, %v4162_v32  ;;  %v2540_v28 = vld [vmem:[#allocation11 + $0x9d8] sm:$0xff]  ;;  %v7062_v40 = vmul.f32 %v6966_v9, %v4162_v32 }
 0x5b3   :  { %10616 = vst [vmem:[#allocation638_spill] sm:$0xff] %v6952_v42  ;;  %10617 = vst [vmem:[#allocation639_spill] sm:$0xff] %v6956_v58  ;;  %v6986_v58 = vld [vmem:[#allocation11 + $0x960] sm:$0xff]  ;;  %v6988_v42 = vld [vmem:[#allocation11 + $0x978] sm:$0xff] }
 0x5b4   :  { %10618 = vst [vmem:[#allocation640_spill] sm:$0xff] %v6960_v62  ;;  %10619 = vst [vmem:[#allocation641_spill] sm:$0xff] %v6970_v49  ;;  %v6984_v62 = vld [vmem:[#allocation11 + $0x968] sm:$0xff]  ;;  %v2537_v49 = vld [vmem:[#allocation11 + $0x9c0] sm:$0xff] }
 0x5b5   :  { %10620 = vst [vmem:[#allocation642_spill] sm:$0xff] %v6974_v36  ;;  %10621 = vst [vmem:[#allocation643_spill] sm:$0xff] %v6978_v44  ;;  %v7008_v44 = vld [vmem:[#allocation11 + $0x988] sm:$0xff]  ;;  %v7010_v36 = vld [vmem:[#allocation11 + $0x980] sm:$0xff] }
 0x5b6   :  { %10622 = vst [vmem:[#allocation644_spill] sm:$0xff] %v6982_v52  ;;  %10623 = vst [vmem:[#allocation645_spill] sm:$0xff] %v6992_v30  ;;  %v7006_v52 = vld [vmem:[#allocation11 + $0x970] sm:$0xff]  ;;  %v7030_v30 = vmul.f32 %v6918_v12, %v4162_v32 }
 0x5b7   :  { %10624 = vst [vmem:[#allocation646_spill] sm:$0xff] %v6996_v1  ;;  %10625 = vst [vmem:[#allocation647_spill] sm:$0xff] %v7000_v25  ;;  %v2531_v25 = vld [vmem:[#allocation11 + $0x990] sm:$0xff]  ;;  %v2534_v1 = vld [vmem:[#allocation11 + $0x9a8] sm:$0xff]  ;;  %v7078_v5 = vmul.f32 %v7006_v52, %v4162_v32 }
 0x5b8   :  { %10626 = vst [vmem:[#allocation648_spill] sm:$0xff] %v7004_v55  ;;  %10627 = vst [vmem:[#allocation649_spill] sm:$0xff] %v7014_v27  ;;  %v2532_v55 = vld [vmem:[#allocation11 + $0x998] sm:$0xff]  ;;  %v7046_v27 = vmul.f32 %v6942_v19, %v4162_v32  ;;  %v7093_v34 = vmul.f32 %v2531_v25, %v4162_v32 }
 0x5b9   :  { %10628 = vst [vmem:[#allocation650_spill] sm:$0xff] %v7018_v8  ;;  %10629 = vst [vmem:[#allocation651_spill] sm:$0xff] %v7022_v13  ;;  %v2536_v13 = vld [vmem:[#allocation11 + $0x9b8] sm:$0xff]  ;;  %v2535_v8 = vld [vmem:[#allocation11 + $0x9b0] sm:$0xff]  ;;  %v7096_v35 = vmul.f32 %v2532_v55, %v4162_v32 }
 0x5ba   :  { %10630 = vst [vmem:[#allocation652_spill] sm:$0xff] %v7026_v53  ;;  %10631 = vst [vmem:[#allocation653_spill] sm:$0xff] %v7030_v30  ;;  %v2533_v53 = vld [vmem:[#allocation11 + $0x9a0] sm:$0xff]  ;;  %v7050_v30 = vmul.f32 %v6940_v26, %v4162_v32  ;;  %v7105_v23 = vmul.f32 %v2535_v8, %v4162_v32 }
 0x5bb   :  { %10632 = vst [vmem:[#allocation654_spill] sm:$0xff] %v7034_v3  ;;  %10633 = vst [vmem:[#allocation655_spill] sm:$0xff] %v7038_v4  ;;  %v7054_v3 = vmul.f32 %v6962_v57, %v4162_v32  ;;  %v7058_v4 = vmul.f32 %v6944_v11, %v4162_v32 }
 0x5bc   :  { %10634 = vst [vmem:[#allocation656_spill] sm:$0xff] %v7042_v37  ;;  %10635 = vst [vmem:[#allocation657_spill] sm:$0xff] %v7046_v27  ;;  %v2538_v37 = vld [vmem:[#allocation11 + $0x9c8] sm:$0xff]  ;;  %v7066_v27 = vmul.f32 %v6964_v33, %v4162_v32 }
 0x5bd   :  { %10636 = vst [vmem:[#allocation658_spill] sm:$0xff] %v7050_v30  ;;  %10637 = vst [vmem:[#allocation659_spill] sm:$0xff] %v7054_v3  ;;  %v7070_v30 = vmul.f32 %v6986_v58, %v4162_v32  ;;  %v7074_v3 = vmul.f32 %v6984_v62, %v4162_v32 }
 0x5be   :  { %10638 = vst [vmem:[#allocation660_spill] sm:$0xff] %v7058_v4  ;;  %10639 = vst [vmem:[#allocation661_spill] sm:$0xff] %v7062_v40  ;;  %v2539_v4 = vld [vmem:[#allocation11 + $0x9d0] sm:$0xff]  ;;  %v7082_v40 = vmul.f32 %v6988_v42, %v4162_v32 }
 0x5bf   :  { %10640 = vst [vmem:[#allocation662_spill] sm:$0xff] %v7066_v27  ;;  %10641 = vst [vmem:[#allocation663_spill] sm:$0xff] %v7070_v30  ;;  %v7086_v27 = vmul.f32 %v7010_v36, %v4162_v32  ;;  %v7090_v30 = vmul.f32 %v7008_v44, %v4162_v32 }
 0x5c0   :  { %10642 = vst [vmem:[#allocation664_spill] sm:$0xff] %v7074_v3  ;;  %10643 = vst [vmem:[#allocation665_spill] sm:$0xff] %v7078_v5  ;;  %v2543_v3 = vld [vmem:[#allocation11 + $0x9f0] sm:$0xff]  ;;  %v7099_v5 = vmul.f32 %v2533_v53, %v4162_v32 }
 0x5c1   :  { %10644 = vst [vmem:[#allocation666_spill] sm:$0xff] %v7082_v40  ;;  %10645 = vst [vmem:[#allocation667_spill] sm:$0xff] %v7086_v27  ;;  %v7102_v40 = vmul.f32 %v2534_v1, %v4162_v32  ;;  %v7108_v27 = vmul.f32 %v2536_v13, %v4162_v32 }
 0x5c2   :  { %10646 = vst [vmem:[#allocation668_spill] sm:$0xff] %v7090_v30  ;;  %10647 = vst [vmem:[#allocation669_spill] sm:$0xff] %v7093_v34  ;;  %v7111_v30 = vmul.f32 %v2537_v49, %v4162_v32  ;;  %v7114_v34 = vmul.f32 %v2538_v37, %v4162_v32 }
 0x5c3   :  { %10648 = vst [vmem:[#allocation670_spill] sm:$0xff] %v7096_v35  ;;  %10649 = vst [vmem:[#allocation671_spill] sm:$0xff] %v7099_v5  ;;  %v7117_v35 = vmul.f32 %v2539_v4, %v4162_v32  ;;  %v7120_v5 = vmul.f32 %v2540_v28, %v4162_v32 }
 0x5c4   :  { %10650 = vst [vmem:[#allocation672_spill] sm:$0xff] %v7102_v40  ;;  %10651 = vst [vmem:[#allocation673_spill] sm:$0xff] %v7105_v23  ;;  %v7123_v40 = vmul.f32 %v2541_v21, %v4162_v32  ;;  %v7126_v23 = vmul.f32 %v2542_v46, %v4162_v32 }
 0x5c5   :  { %10652 = vst [vmem:[#allocation674_spill] sm:$0xff] %v7108_v27  ;;  %10653 = vst [vmem:[#allocation675_spill] sm:$0xff] %v7111_v30  ;;  %v7129_v27 = vmul.f32 %v2543_v3, %v4162_v32  ;;  %v7133_v30 = vmul.f32 %v6898_v22, %v4164_v16  ;;  %v7149_v32 = vmul.f32 %v6922_v2, %v4164_v16 }
 0x5c6   :  { %10654 = vst [vmem:[#allocation676_spill] sm:$0xff] %v7114_v34  ;;  %10655 = vst [vmem:[#allocation677_spill] sm:$0xff] %v7117_v35  ;;  %v7137_v34 = vmul.f32 %v6896_v39, %v4164_v16  ;;  %v7153_v22 = vmul.f32 %v6920_v43, %v4164_v16  ;;  %v7157_v39 = vmul.f32 %v6942_v19, %v4164_v16  ;;  %v10756_v35 = vld [vmem:[#allocation113_spill] sm:$0xff] }
 0x5c7   :  { %10656 = vst [vmem:[#allocation678_spill] sm:$0xff] %v7120_v5  ;;  %10657 = vst [vmem:[#allocation679_spill] sm:$0xff] %v7123_v40  ;;  %v7141_v5 = vmul.f32 %v6918_v12, %v4164_v16  ;;  %v7145_v40 = vmul.f32 %v6916_v31, %v4164_v16  ;;  %v7161_v12 = vmul.f32 %v6940_v26, %v4164_v16 }
 0x5c8   :  { %10658 = vst [vmem:[#allocation680_spill] sm:$0xff] %v7126_v23  ;;  %10659 = vst [vmem:[#allocation681_spill] sm:$0xff] %v7129_v27  ;;  %v7165_v31 = vmul.f32 %v6962_v57, %v4164_v16  ;;  %v7169_v2 = vmul.f32 %v6944_v11, %v4164_v16  ;;  %v7173_v43 = vmul.f32 %v6966_v9, %v4164_v16  ;;  %v10752_v27 = vld [vmem:[#allocation111_spill] sm:$0xff]  ;;  %v10754_v23 = vld [vmem:[#allocation72_spill] sm:$0xff] }
 0x5c9   :  { %10660 = vst [vmem:[#allocation682_spill] sm:$0xff] %v7133_v30  ;;  %10661 = vst [vmem:[#allocation683_spill] sm:$0xff] %v7137_v34  ;;  %v7177_v19 = vmul.f32 %v6964_v33, %v4164_v16  ;;  %v7181_v26 = vmul.f32 %v6986_v58, %v4164_v16  ;;  %v7185_v57 = vmul.f32 %v6984_v62, %v4164_v16  ;;  %v10748_v34 = vld [vmem:[#allocation109_spill] sm:$0xff]  ;;  %v10750_v30 = vld [vmem:[#allocation70_spill] sm:$0xff] }
 0x5ca   :  { %10662 = vst [vmem:[#allocation684_spill] sm:$0xff] %v7141_v5  ;;  %10663 = vst [vmem:[#allocation685_spill] sm:$0xff] %v7145_v40  ;;  %v7189_v11 = vmul.f32 %v7006_v52, %v4164_v16  ;;  %v7193_v9 = vmul.f32 %v6988_v42, %v4164_v16  ;;  %v7197_v33 = vmul.f32 %v7010_v36, %v4164_v16  ;;  %v10742_v40 = vld [vmem:[#allocation107_spill] sm:$0xff]  ;;  %v10744_v5 = vld [vmem:[#allocation66_spill] sm:$0xff] }
 0x5cb   :  { %10664 = vst [vmem:[#allocation686_spill] sm:$0xff] %v7149_v32  ;;  %10665 = vst [vmem:[#allocation687_spill] sm:$0xff] %v7153_v22  ;;  %v7201_v58 = vmul.f32 %v7008_v44, %v4164_v16  ;;  %v7207_v62 = vmul.f32 %v2532_v55, %v4164_v16  ;;  %v7210_v52 = vmul.f32 %v2533_v53, %v4164_v16  ;;  %v10738_v22 = vld [vmem:[#allocation105_spill] sm:$0xff]  ;;  %v10740_v32 = vld [vmem:[#allocation64_spill] sm:$0xff] }
 0x5cc   :  { %10666 = vst [vmem:[#allocation688_spill] sm:$0xff] %v7157_v39  ;;  %10667 = vst [vmem:[#allocation689_spill] sm:$0xff] %v7161_v12  ;;  %v7213_v42 = vmul.f32 %v2534_v1, %v4164_v16  ;;  %v7219_v36 = vmul.f32 %v2536_v13, %v4164_v16  ;;  %v7222_v44 = vmul.f32 %v2537_v49, %v4164_v16  ;;  %v10734_v12 = vld [vmem:[#allocation103_spill] sm:$0xff]  ;;  %v10736_v39 = vld [vmem:[#allocation62_spill] sm:$0xff] }
 0x5cd   :  { %10668 = vst [vmem:[#allocation690_spill] sm:$0xff] %v7165_v31  ;;  %10669 = vst [vmem:[#allocation691_spill] sm:$0xff] %v7169_v2  ;;  %v7228_v55 = vmul.f32 %v2539_v4, %v4164_v16  ;;  %v7231_v53 = vmul.f32 %v2540_v28, %v4164_v16  ;;  %v7234_v1 = vmul.f32 %v2541_v21, %v4164_v16  ;;  %v10691_v21 = vld [vmem:[#allocation80_spill] sm:$0xff]  ;;  %v10730_v2 = vld [vmem:[#allocation101_spill] sm:$0xff] }
 0x5ce   :  { %10670 = vst [vmem:[#allocation692_spill] sm:$0xff] %v7173_v43  ;;  %10671 = vst [vmem:[#allocation693_spill] sm:$0xff] %v7177_v19  ;;  %v7240_v13 = vmul.f32 %v2543_v3, %v4164_v16  ;;  %v7244_v49 = vadd.f32 %v4108_v17, %v3736_v41  ;;  %v7248_v4 = vadd.f32 %v3730_v38, %v4138_v50  ;;  %v10697_v17 = vld [vmem:[#allocation30_spill] sm:$0xff]  ;;  %v10726_v19 = vld [vmem:[#allocation99_spill] sm:$0xff] }
 0x5cf   :  { %10672 = vst [vmem:[#allocation694_spill] sm:$0xff] %v7181_v26  ;;  %10673 = vst [vmem:[#allocation695_spill] sm:$0xff] %v7185_v57  ;;  %v7204_v26 = vmul.f32 %v2531_v25, %v4164_v16  ;;  %v7225_v25 = vmul.f32 %v2538_v37, %v4164_v16  ;;  %v7252_v28 = vadd.f32 %v4150_v14, %v3750_v51  ;;  %v10692_v37 = vld [vmem:[#allocation21_spill] sm:$0xff]  ;;  %v10699_v50 = vld [vmem:[#allocation86_spill] sm:$0xff] }
 0x5d0   :  { %10674 = vst [vmem:[#allocation696_spill] sm:$0xff] %v7189_v11  ;;  %10675 = vst [vmem:[#allocation697_spill] sm:$0xff] %v7193_v9  ;;  %v7216_v9 = vmul.f32 %v2535_v8, %v4164_v16  ;;  %v7237_v8 = vmul.f32 %v2542_v46, %v4164_v16  ;;  %v10693_v46 = vld [vmem:[#allocation26_spill] sm:$0xff]  ;;  %v10695_v16 = vld [vmem:[#allocation84_spill] sm:$0xff] }
 0x5d1   :  { %10676 = vst [vmem:[#allocation698_spill] sm:$0xff] %v7197_v33  ;;  %10677 = vst [vmem:[#allocation699_spill] sm:$0xff] %v7201_v58  ;;  %v10701_v14 = vld [vmem:[#allocation34_spill] sm:$0xff]  ;;  %v10718_v58 = vld [vmem:[#allocation95_spill] sm:$0xff] }
 0x5d2   :  { %10678 = vst [vmem:[#allocation700_spill] sm:$0xff] %v7204_v26  ;;  %10679 = vst [vmem:[#allocation701_spill] sm:$0xff] %v7207_v62  ;;  %v10714_v62 = vld [vmem:[#allocation93_spill] sm:$0xff]  ;;  %v10716_v26 = vld [vmem:[#allocation44_spill] sm:$0xff] }
 0x5d3   :  { %10680 = vst [vmem:[#allocation702_spill] sm:$0xff] %v7210_v52  ;;  %10681 = vst [vmem:[#allocation703_spill] sm:$0xff] %v7213_v42  ;;  %v10710_v42 = vld [vmem:[#allocation91_spill] sm:$0xff]  ;;  %v10712_v52 = vld [vmem:[#allocation40_spill] sm:$0xff] }
 0x5d4   :  { %10682 = vst [vmem:[#allocation704_spill] sm:$0xff] %v7216_v9  ;;  %10683 = vst [vmem:[#allocation705_spill] sm:$0xff] %v7219_v36  ;;  %v10706_v36 = vld [vmem:[#allocation89_spill] sm:$0xff]  ;;  %v10708_v9 = vld [vmem:[#allocation36_spill] sm:$0xff] }
 0x5d5   :  { %10684 = vst [vmem:[#allocation706_spill] sm:$0xff] %v7222_v44  ;;  %10685 = vst [vmem:[#allocation707_spill] sm:$0xff] %v7225_v25  ;;  %v10702_v25 = vld [vmem:[#allocation87_spill] sm:$0xff]  ;;  %v10704_v44 = vld [vmem:[#allocation32_spill] sm:$0xff] }
 0x5d6   :  { %10686 = vst [vmem:[#allocation708_spill] sm:$0xff] %v7228_v55  ;;  %10687 = vst [vmem:[#allocation709_spill] sm:$0xff] %v7231_v53  ;;  %v10698_v53 = vld [vmem:[#allocation85_spill] sm:$0xff]  ;;  %v10700_v55 = vld [vmem:[#allocation28_spill] sm:$0xff] }
 0x5d7   :  { %10688 = vst [vmem:[#allocation710_spill] sm:$0xff] %v7234_v1  ;;  %10689 = vst [vmem:[#allocation711_spill] sm:$0xff] %v7237_v8  ;;  %v7256_v1 = vadd.f32 %v10692_v37, %v10691_v21  ;;  %v10694_v8 = vld [vmem:[#allocation81_spill] sm:$0xff]  ;;  %v7268_v38 = vadd.f32 %v10698_v53, %v10697_v17  ;;  %v7272_v51 = vadd.f32 %v10700_v55, %v10699_v50  ;;  %v10703_v37 = vld [vmem:[#allocation88_spill] sm:$0xff] }
 0x5d8   :  { %10690 = vst [vmem:[#allocation712_spill] sm:$0xff] %v7240_v13  ;;  %v7260_v3 = vadd.f32 %v10694_v8, %v10693_v46  ;;  %v10696_v13 = vld [vmem:[#allocation24_spill] sm:$0xff]  ;;  %v7276_v21 = vadd.f32 %v10702_v25, %v10701_v14  ;;  %v7280_v8 = vadd.f32 %v10704_v44, %v10703_v37  ;;  %v10705_v46 = vld [vmem:[#allocation38_spill] sm:$0xff]  ;;  %v10722_v11 = vld [vmem:[#allocation97_spill] sm:$0xff] }
 0x5d9   :  { %v7264_v41 = vadd.f32 %v10696_v13, %v10695_v16  ;;  %v7284_v16 = vadd.f32 %v10706_v36, %v10705_v46  ;;  %v10707_v13 = vld [vmem:[#allocation90_spill] sm:$0xff]  ;;  %v10711_v50 = vld [vmem:[#allocation92_spill] sm:$0xff] }
 0x5da   :  { %v7288_v53 = vadd.f32 %v10708_v9, %v10707_v13  ;;  %v10709_v17 = vld [vmem:[#allocation42_spill] sm:$0xff]  ;;  %v7296_v25 = vadd.f32 %v10712_v52, %v10711_v50  ;;  %v10719_v13 = vld [vmem:[#allocation96_spill] sm:$0xff] }
 0x5db   :  { %v7292_v55 = vadd.f32 %v10710_v42, %v10709_v17  ;;  %v10713_v14 = vld [vmem:[#allocation46_spill] sm:$0xff]  ;;  %v10720_v33 = vld [vmem:[#allocation48_spill] sm:$0xff] }
 0x5dc   :  { %v7300_v44 = vadd.f32 %v10714_v62, %v10713_v14  ;;  %v10715_v37 = vld [vmem:[#allocation94_spill] sm:$0xff]  ;;  %v7312_v42 = vadd.f32 %v10720_v33, %v10719_v13  ;;  %v10724_v57 = vld [vmem:[#allocation52_spill] sm:$0xff] }
 0x5dd   :  { %v7304_v36 = vadd.f32 %v10716_v26, %v10715_v37  ;;  %v10717_v46 = vld [vmem:[#allocation50_spill] sm:$0xff]  ;;  %v10727_v37 = vld [vmem:[#allocation100_spill] sm:$0xff] }
 0x5de   :  { %v7308_v9 = vadd.f32 %v10718_v58, %v10717_v46  ;;  %v10721_v17 = vld [vmem:[#allocation54_spill] sm:$0xff]  ;;  %v10728_v43 = vld [vmem:[#allocation56_spill] sm:$0xff]  ;;  %v10729_v46 = vld [vmem:[#allocation61_spill] sm:$0xff] }
 0x5df   :  { %v7316_v52 = vadd.f32 %v10722_v11, %v10721_v17  ;;  %v10723_v50 = vld [vmem:[#allocation98_spill] sm:$0xff]  ;;  %v7328_v58 = vadd.f32 %v10728_v43, %v10727_v37  ;;  %v7332_v33 = vadd.f32 %v10730_v2, %v10729_v46  ;;  %v10732_v31 = vld [vmem:[#allocation60_spill] sm:$0xff]  ;;  %v10733_v17 = vld [vmem:[#allocation63_spill] sm:$0xff] }
 0x5e0   :  { %v7320_v62 = vadd.f32 %v10724_v57, %v10723_v50  ;;  %v10725_v14 = vld [vmem:[#allocation58_spill] sm:$0xff]  ;;  %v7340_v57 = vadd.f32 %v10734_v12, %v10733_v17  ;;  %v10735_v50 = vld [vmem:[#allocation104_spill] sm:$0xff]  ;;  %v10741_v46 = vld [vmem:[#allocation67_spill] sm:$0xff] }
 0x5e1   :  { %v7324_v26 = vadd.f32 %v10726_v19, %v10725_v14  ;;  %v10731_v13 = vld [vmem:[#allocation102_spill] sm:$0xff]  ;;  %v7344_v19 = vadd.f32 %v10736_v39, %v10735_v50  ;;  %v10737_v14 = vld [vmem:[#allocation65_spill] sm:$0xff]  ;;  %v10746_v50 = vld [vmem:[#allocation68_spill] sm:$0xff] }
 0x5e2   :  { %v7336_v11 = vadd.f32 %v10732_v31, %v10731_v13  ;;  %v7348_v43 = vadd.f32 %v10738_v22, %v10737_v14  ;;  %v10739_v37 = vld [vmem:[#allocation106_spill] sm:$0xff]  ;;  %v7356_v31 = vadd.f32 %v10742_v40, %v10741_v46  ;;  %v10743_v13 = vld [vmem:[#allocation108_spill] sm:$0xff]  ;;  %v10745_v17 = vld [vmem:[#allocation69_spill] sm:$0xff]  ;;  %v7368_v22 = vadd.f32 %v10746_v50, %v4294_v45 }
 0x5e3   :  { %v7352_v2 = vadd.f32 %v10740_v32, %v10739_v37  ;;  %v7360_v12 = vadd.f32 %v10744_v5, %v10743_v13  ;;  %v7364_v39 = vadd.f32 %v4290_v48, %v10745_v17  ;;  %v10747_v14 = vld [vmem:[#allocation71_spill] sm:$0xff]  ;;  %v10749_v37 = vld [vmem:[#allocation110_spill] sm:$0xff]  ;;  %v10751_v46 = vld [vmem:[#allocation73_spill] sm:$0xff] }
 0x5e4   :  { %v7372_v32 = vadd.f32 %v10748_v34, %v10747_v14  ;;  %v7376_v40 = vadd.f32 %v10750_v30, %v10749_v37  ;;  %v7380_v5 = vadd.f32 %v10752_v27, %v10751_v46  ;;  %v10753_v13 = vld [vmem:[#allocation112_spill] sm:$0xff]  ;;  %v10755_v17 = vld [vmem:[#allocation75_spill] sm:$0xff]  ;;  %v10757_v50 = vld [vmem:[#allocation114_spill] sm:$0xff] }
 0x5e5   :  { %v7384_v48 = vadd.f32 %v10754_v23, %v10753_v13  ;;  %v7388_v45 = vadd.f32 %v10756_v35, %v10755_v17  ;;  %v7392_v34 = vadd.f32 %v10758_v10, %v10757_v50  ;;  %v10759_v14 = vld [vmem:[#allocation77_spill] sm:$0xff]  ;;  %v10761_v37 = vld [vmem:[#allocation116_spill] sm:$0xff]  ;;  %v10763_v46 = vld [vmem:[#allocation79_spill] sm:$0xff] }
 0x5e6   :  { %v7396_v30 = vadd.f32 %v10760_v29, %v10759_v14  ;;  %v7400_v27 = vadd.f32 %v10762_v6, %v10761_v37  ;;  %v7404_v23 = vadd.f32 %v10764_v20, %v10763_v46  ;;  %v10765_v13 = vld [vmem:[#allocation118_spill] sm:$0xff]  ;;  %v10767_v17 = vld [vmem:[#allocation20_spill] sm:$0xff]  ;;  %v10771_v14 = vld [vmem:[#allocation23_spill] sm:$0xff] }
 0x5e7   :  { %v7408_v35 = vadd.f32 %v10766_v61, %v10765_v13  ;;  %v7412_v10 = vadd.f32 %v10768_v56, %v10767_v17  ;;  %v10769_v50 = vld [vmem:[#allocation120_spill] sm:$0xff]  ;;  %v7420_v6 = vadd.f32 %v10772_v7, %v10771_v14  ;;  %v10773_v37 = vld [vmem:[#allocation122_spill] sm:$0xff]  ;;  %v10776_v46 = vld [vmem:[#allocation27_spill] sm:$0xff] }
 0x5e8   :  { %v7416_v29 = vadd.f32 %v10770_v47, %v10769_v50  ;;  %v7424_v20 = vadd.f32 %v10774_v24, %v10773_v37  ;;  %v7428_v61 = vadd.f32 %v10777_v60, %v10776_v46  ;;  %v10779_v13 = vld [vmem:[#allocation124_spill] sm:$0xff]  ;;  %v10782_v17 = vld [vmem:[#allocation31_spill] sm:$0xff]  ;;  %v10785_v50 = vld [vmem:[#allocation126_spill] sm:$0xff] }
 0x5e9   :  { %v7432_v56 = vadd.f32 %v10780_v59, %v10779_v13  ;;  %v7436_v47 = vadd.f32 %v10783_v18, %v10782_v17  ;;  %v7440_v7 = vadd.f32 %v10786_v15, %v10785_v50  ;;  %v10788_v14 = vld [vmem:[#allocation35_spill] sm:$0xff]  ;;  %v10791_v37 = vld [vmem:[#allocation128_spill] sm:$0xff]  ;;  %v10797_v13 = vld [vmem:[#allocation130_spill] sm:$0xff] }
 0x5ea   :  { %10775 = vst [vmem:[#allocation80_spill] sm:$0xff] %v7424_v20  ;;  %10778 = vst [vmem:[#allocation21_spill] sm:$0xff] %v7428_v61  ;;  %v7444_v24 = vadd.f32 %v10789_v54, %v10788_v14  ;;  %v10792_v20 = vld [vmem:[#allocation33_spill] sm:$0xff]  ;;  %v10794_v46 = vld [vmem:[#allocation39_spill] sm:$0xff] }
 0x5eb   :  { %10781 = vst [vmem:[#allocation26_spill] sm:$0xff] %v7432_v56  ;;  %10784 = vst [vmem:[#allocation81_spill] sm:$0xff] %v7436_v47  ;;  %v7448_v60 = vadd.f32 %v10792_v20, %v10791_v37  ;;  %v10795_v61 = vld [vmem:[#allocation129_spill] sm:$0xff]  ;;  %v10800_v17 = vld [vmem:[#allocation43_spill] sm:$0xff] }
 0x5ec   :  { %10787 = vst [vmem:[#allocation84_spill] sm:$0xff] %v7440_v7  ;;  %10790 = vst [vmem:[#allocation24_spill] sm:$0xff] %v7444_v24  ;;  %v7452_v59 = vadd.f32 %v10795_v61, %v10794_v46  ;;  %v10798_v56 = vld [vmem:[#allocation37_spill] sm:$0xff]  ;;  %v10801_v47 = vld [vmem:[#allocation131_spill] sm:$0xff] }
 0x5ed   :  { %10793 = vst [vmem:[#allocation30_spill] sm:$0xff] %v7448_v60  ;;  %v7456_v18 = vadd.f32 %v10798_v56, %v10797_v13  ;;  %v7460_v15 = vadd.f32 %v10801_v47, %v10800_v17  ;;  %v10803_v50 = vld [vmem:[#allocation132_spill] sm:$0xff]  ;;  %v10804_v7 = vld [vmem:[#allocation41_spill] sm:$0xff]  ;;  %v10806_v14 = vld [vmem:[#allocation47_spill] sm:$0xff] }
 0x5ee   :  { %10796 = vst [vmem:[#allocation85_spill] sm:$0xff] %v7452_v59  ;;  %v7464_v54 = vadd.f32 %v10804_v7, %v10803_v50  ;;  %v10807_v24 = vld [vmem:[#allocation133_spill] sm:$0xff]  ;;  %v10809_v37 = vld [vmem:[#allocation134_spill] sm:$0xff]  ;;  %v10812_v46 = vld [vmem:[#allocation51_spill] sm:$0xff] }
 0x5ef   :  { %10799 = vst [vmem:[#allocation86_spill] sm:$0xff] %v7456_v18  ;;  %10802 = vst [vmem:[#allocation28_spill] sm:$0xff] %v7460_v15  ;;  %v7468_v20 = vadd.f32 %v10807_v24, %v10806_v14  ;;  %v10810_v60 = vld [vmem:[#allocation45_spill] sm:$0xff]  ;;  %v10813_v59 = vld [vmem:[#allocation135_spill] sm:$0xff] }
 0x5f0   :  { %10805 = vst [vmem:[#allocation34_spill] sm:$0xff] %v7464_v54  ;;  %v7472_v61 = vadd.f32 %v10810_v60, %v10809_v37  ;;  %v7476_v56 = vadd.f32 %v10813_v59, %v10812_v46  ;;  %v10814_v13 = vld [vmem:[#allocation136_spill] sm:$0xff]  ;;  %v10815_v18 = vld [vmem:[#allocation49_spill] sm:$0xff]  ;;  %v10816_v17 = vld [vmem:[#allocation55_spill] sm:$0xff] }
 0x5f1   :  { %10808 = vst [vmem:[#allocation87_spill] sm:$0xff] %v7468_v20  ;;  %v7480_v47 = vadd.f32 %v10815_v18, %v10814_v13  ;;  %v10817_v15 = vld [vmem:[#allocation137_spill] sm:$0xff]  ;;  %v10818_v50 = vld [vmem:[#allocation138_spill] sm:$0xff]  ;;  %v10820_v14 = vld [vmem:[#allocation59_spill] sm:$0xff] }
 0x5f2   :  { %10811 = vst [vmem:[#allocation88_spill] sm:$0xff] %v7472_v61  ;;  %v7484_v7 = vadd.f32 %v10817_v15, %v10816_v17  ;;  %v10819_v54 = vld [vmem:[#allocation53_spill] sm:$0xff]  ;;  %v10821_v20 = vld [vmem:[#allocation139_spill] sm:$0xff]  ;;  %v10822_v37 = vld [vmem:[#allocation140_spill] sm:$0xff] }
 0x5f3   :  { %v7488_v24 = vadd.f32 %v10819_v54, %v10818_v50  ;;  %v7492_v60 = vadd.f32 %v10821_v20, %v10820_v14  ;;  %v10823_v61 = vld [vmem:[#allocation57_spill] sm:$0xff]  ;;  %v10825_v13 = vld [vmem:[#allocation142_spill] sm:$0xff]  ;;  %v10826_v17 = vld [vmem:[#allocation143_spill] sm:$0xff] }
 0x5f4   :  { %v7496_v59 = vadd.f32 %v10823_v61, %v10822_v37  ;;  %v10824_v46 = vld [vmem:[#allocation141_spill] sm:$0xff]  ;;  %v7504_v15 = vadd.f32 %v10825_v13, %v7248_v4  ;;  %v7508_v54 = vadd.f32 %v10826_v17, %v7252_v28  ;;  %v10827_v50 = vld [vmem:[#allocation144_spill] sm:$0xff]  ;;  %v10829_v37 = vld [vmem:[#allocation146_spill] sm:$0xff] }
 0x5f5   :  { %v7500_v18 = vadd.f32 %v10824_v46, %v7244_v49  ;;  %v7512_v20 = vadd.f32 %v10827_v50, %v7256_v1  ;;  %v10828_v14 = vld [vmem:[#allocation145_spill] sm:$0xff]  ;;  %v7520_v49 = vadd.f32 %v10829_v37, %v7264_v41  ;;  %v10830_v46 = vld [vmem:[#allocation147_spill] sm:$0xff]  ;;  %v10831_v13 = vld [vmem:[#allocation148_spill] sm:$0xff] }
 0x5f6   :  { %v7516_v61 = vadd.f32 %v10828_v14, %v7260_v3  ;;  %v7524_v4 = vadd.f32 %v10830_v46, %v7268_v38  ;;  %v7528_v28 = vadd.f32 %v10831_v13, %v7272_v51  ;;  %v10832_v17 = vld [vmem:[#allocation149_spill] sm:$0xff]  ;;  %v10833_v50 = vld [vmem:[#allocation150_spill] sm:$0xff]  ;;  %v10834_v14 = vld [vmem:[#allocation151_spill] sm:$0xff] }
 0x5f7   :  { %v7532_v1 = vadd.f32 %v10832_v17, %v7276_v21  ;;  %v7536_v3 = vadd.f32 %v10833_v50, %v7280_v8  ;;  %v7540_v41 = vadd.f32 %v10834_v14, %v7284_v16  ;;  %v10835_v37 = vld [vmem:[#allocation152_spill] sm:$0xff]  ;;  %v10836_v46 = vld [vmem:[#allocation153_spill] sm:$0xff]  ;;  %v10837_v13 = vld [vmem:[#allocation154_spill] sm:$0xff] }
 0x5f8   :  { %v7544_v38 = vadd.f32 %v10835_v37, %v7288_v53  ;;  %v7548_v51 = vadd.f32 %v10836_v46, %v7292_v55  ;;  %v7552_v21 = vadd.f32 %v10837_v13, %v7296_v25  ;;  %v10838_v17 = vld [vmem:[#allocation155_spill] sm:$0xff]  ;;  %v10839_v50 = vld [vmem:[#allocation156_spill] sm:$0xff]  ;;  %v10840_v14 = vld [vmem:[#allocation157_spill] sm:$0xff] }
 0x5f9   :  { %v7556_v8 = vadd.f32 %v10838_v17, %v7300_v44  ;;  %v7560_v16 = vadd.f32 %v10839_v50, %v7304_v36  ;;  %v7564_v53 = vadd.f32 %v10840_v14, %v7308_v9  ;;  %v10841_v37 = vld [vmem:[#allocation158_spill] sm:$0xff]  ;;  %v10842_v46 = vld [vmem:[#allocation159_spill] sm:$0xff]  ;;  %v10843_v13 = vld [vmem:[#allocation160_spill] sm:$0xff] }
 0x5fa   :  { %v7568_v55 = vadd.f32 %v10841_v37, %v7312_v42  ;;  %v7572_v25 = vadd.f32 %v10842_v46, %v7316_v52  ;;  %v7576_v44 = vadd.f32 %v10843_v13, %v7320_v62  ;;  %v10844_v17 = vld [vmem:[#allocation161_spill] sm:$0xff]  ;;  %v10845_v50 = vld [vmem:[#allocation162_spill] sm:$0xff]  ;;  %v10846_v14 = vld [vmem:[#allocation163_spill] sm:$0xff] }
 0x5fb   :  { %v7580_v36 = vadd.f32 %v10844_v17, %v7324_v26  ;;  %v7584_v9 = vadd.f32 %v10845_v50, %v7328_v58  ;;  %v7588_v42 = vadd.f32 %v10846_v14, %v7332_v33  ;;  %v10847_v37 = vld [vmem:[#allocation164_spill] sm:$0xff]  ;;  %v10848_v46 = vld [vmem:[#allocation165_spill] sm:$0xff]  ;;  %v10849_v13 = vld [vmem:[#allocation166_spill] sm:$0xff] }
 0x5fc   :  { %v7592_v52 = vadd.f32 %v10847_v37, %v7336_v11  ;;  %v7596_v62 = vadd.f32 %v10848_v46, %v7340_v57  ;;  %v7600_v26 = vadd.f32 %v10849_v13, %v7344_v19  ;;  %v10850_v17 = vld [vmem:[#allocation167_spill] sm:$0xff]  ;;  %v10851_v50 = vld [vmem:[#allocation168_spill] sm:$0xff]  ;;  %v10852_v14 = vld [vmem:[#allocation169_spill] sm:$0xff]  ;;  %v7620_v19 = vadd.f32 %v4610_v0, %v7364_v39 }
 0x5fd   :  { %v7604_v58 = vadd.f32 %v10850_v17, %v7348_v43  ;;  %v7608_v33 = vadd.f32 %v10851_v50, %v7352_v2  ;;  %v7612_v11 = vadd.f32 %v10852_v14, %v7356_v31  ;;  %v10853_v37 = vld [vmem:[#allocation170_spill] sm:$0xff]  ;;  %v7624_v43 = vadd.f32 %v4614_v63, %v7368_v22  ;;  %v10854_v46 = vld [vmem:[#allocation171_spill] sm:$0xff]  ;;  %v10855_v13 = vld [vmem:[#allocation172_spill] sm:$0xff] }
 0x5fe   :  { %v7616_v57 = vadd.f32 %v10853_v37, %v7360_v12  ;;  %v7628_v2 = vadd.f32 %v10854_v46, %v7372_v32  ;;  %v7632_v31 = vadd.f32 %v10855_v13, %v7376_v40  ;;  %v10856_v17 = vld [vmem:[#allocation173_spill] sm:$0xff]  ;;  %v10857_v50 = vld [vmem:[#allocation174_spill] sm:$0xff]  ;;  %v10858_v39 = vld [vmem:[#allocation175_spill] sm:$0xff] }
 0x5ff   :  { %v7636_v12 = vadd.f32 %v10856_v17, %v7380_v5  ;;  %v7640_v0 = vadd.f32 %v10857_v50, %v7384_v48  ;;  %v7644_v63 = vadd.f32 %v10858_v39, %v7388_v45  ;;  %v10859_v22 = vld [vmem:[#allocation176_spill] sm:$0xff]  ;;  %v10860_v14 = vld [vmem:[#allocation177_spill] sm:$0xff]  ;;  %v10861_v37 = vld [vmem:[#allocation178_spill] sm:$0xff] }
 0x600   :  { %v7648_v32 = vadd.f32 %v10859_v22, %v7392_v34  ;;  %v7652_v40 = vadd.f32 %v10860_v14, %v7396_v30  ;;  %v7656_v5 = vadd.f32 %v10861_v37, %v7400_v27  ;;  %v10862_v46 = vld [vmem:[#allocation179_spill] sm:$0xff]  ;;  %v10863_v13 = vld [vmem:[#allocation180_spill] sm:$0xff]  ;;  %v10865_v17 = vld [vmem:[#allocation181_spill] sm:$0xff] }
 0x601   :  { %v7660_v48 = vadd.f32 %v10862_v46, %v7404_v23  ;;  %v7664_v45 = vadd.f32 %v10863_v13, %v7408_v35  ;;  %v7668_v34 = vadd.f32 %v10865_v17, %v7412_v10  ;;  %v10867_v50 = vld [vmem:[#allocation182_spill] sm:$0xff]  ;;  %v10869_v39 = vld [vmem:[#allocation183_spill] sm:$0xff]  ;;  %v10871_v22 = vld [vmem:[#allocation80_spill] sm:$0xff] }
 0x602   :  { %v7672_v30 = vadd.f32 %v10867_v50, %v7416_v29  ;;  %v7676_v27 = vadd.f32 %v10869_v39, %v7420_v6  ;;  %v10872_v14 = vld [vmem:[#allocation184_spill] sm:$0xff]  ;;  %v10874_v37 = vld [vmem:[#allocation21_spill] sm:$0xff]  ;;  %v10877_v13 = vld [vmem:[#allocation26_spill] sm:$0xff] }
 0x603   :  { %10864 = vst [vmem:[#allocation32_spill] sm:$0xff] %v7664_v45  ;;  %10866 = vst [vmem:[#allocation38_spill] sm:$0xff] %v7668_v34  ;;  %v7680_v23 = vadd.f32 %v10872_v14, %v10871_v22  ;;  %v10875_v46 = vld [vmem:[#allocation185_spill] sm:$0xff]  ;;  %v10878_v45 = vld [vmem:[#allocation186_spill] sm:$0xff] }
 0x604   :  { %10868 = vst [vmem:[#allocation89_spill] sm:$0xff] %v7672_v30  ;;  %10870 = vst [vmem:[#allocation90_spill] sm:$0xff] %v7676_v27  ;;  %v7684_v35 = vadd.f32 %v10875_v46, %v10874_v37  ;;  %v7688_v10 = vadd.f32 %v10878_v45, %v10877_v13  ;;  %v10880_v17 = vld [vmem:[#allocation81_spill] sm:$0xff]  ;;  %v10881_v34 = vld [vmem:[#allocation187_spill] sm:$0xff] }
 0x605   :  { %10873 = vst [vmem:[#allocation36_spill] sm:$0xff] %v7680_v23  ;;  %v7692_v29 = vadd.f32 %v10881_v34, %v10880_v17  ;;  %v10883_v50 = vld [vmem:[#allocation84_spill] sm:$0xff]  ;;  %v10887_v27 = vld [vmem:[#allocation189_spill] sm:$0xff]  ;;  %v10889_v14 = vld [vmem:[#allocation30_spill] sm:$0xff] }
 0x606   :  { %10876 = vst [vmem:[#allocation42_spill] sm:$0xff] %v7684_v35  ;;  %10879 = vst [vmem:[#allocation91_spill] sm:$0xff] %v7688_v10  ;;  %v10884_v30 = vld [vmem:[#allocation188_spill] sm:$0xff]  ;;  %v10890_v23 = vld [vmem:[#allocation190_spill] sm:$0xff] }
 0x607   :  { %10882 = vst [vmem:[#allocation92_spill] sm:$0xff] %v7692_v29  ;;  %v7696_v6 = vadd.f32 %v10884_v30, %v10883_v50  ;;  %v10886_v39 = vld [vmem:[#allocation24_spill] sm:$0xff]  ;;  %v7704_v37 = vadd.f32 %v10890_v23, %v10889_v14  ;;  %v10892_v46 = vld [vmem:[#allocation85_spill] sm:$0xff]  ;;  %v10893_v35 = vld [vmem:[#allocation191_spill] sm:$0xff] }
 0x608   :  { %v7700_v22 = vadd.f32 %v10887_v27, %v10886_v39  ;;  %v7708_v45 = vadd.f32 %v10893_v35, %v10892_v46  ;;  %v10894_v13 = vld [vmem:[#allocation86_spill] sm:$0xff]  ;;  %v10895_v10 = vld [vmem:[#allocation192_spill] sm:$0xff]  ;;  %v10897_v29 = vld [vmem:[#allocation193_spill] sm:$0xff] }
 0x609   :  { %10885 = vst [vmem:[#allocation40_spill] sm:$0xff] %v7696_v6  ;;  %10891 = vst [vmem:[#allocation93_spill] sm:$0xff] %v7704_v37  ;;  %v7712_v34 = vadd.f32 %v10895_v10, %v10894_v13  ;;  %v10896_v17 = vld [vmem:[#allocation28_spill] sm:$0xff]  ;;  %v10898_v50 = vld [vmem:[#allocation34_spill] sm:$0xff] }
 0x60a   :  { %10888 = vst [vmem:[#allocation46_spill] sm:$0xff] %v7700_v22  ;;  %v7716_v30 = vadd.f32 %v10897_v29, %v10896_v17  ;;  %v10899_v6 = vld [vmem:[#allocation194_spill] sm:$0xff]  ;;  %v10900_v39 = vld [vmem:[#allocation87_spill] sm:$0xff]  ;;  %v10902_v14 = vld [vmem:[#allocation88_spill] sm:$0xff] }
 0x60b   :  { %v7720_v27 = vadd.f32 %v10899_v6, %v10898_v50  ;;  %v10901_v22 = vld [vmem:[#allocation195_spill] sm:$0xff]  ;;  %v10903_v37 = vld [vmem:[#allocation196_spill] sm:$0xff]  ;;  %v10904_v46 = vld [vmem:[#allocation197_spill] sm:$0xff] }
 0x60c   :  { %v7724_v23 = vadd.f32 %v10901_v22, %v10900_v39  ;;  %v7728_v35 = vadd.f32 %v10903_v37, %v10902_v14  ;;  %v7732_v10 = vadd.f32 %v10904_v46, %v7476_v56  ;;  %v10905_v13 = vld [vmem:[#allocation198_spill] sm:$0xff]  ;;  %v10906_v17 = vld [vmem:[#allocation199_spill] sm:$0xff]  ;;  %v10907_v50 = vld [vmem:[#allocation200_spill] sm:$0xff] }
 0x60d   :  { %v7736_v29 = vadd.f32 %v10905_v13, %v7480_v47  ;;  %v7740_v6 = vadd.f32 %v10906_v17, %v7484_v7  ;;  %v7744_v22 = vadd.f32 %v10907_v50, %v7488_v24  ;;  %v10908_v39 = vld [vmem:[#allocation201_spill] sm:$0xff]  ;;  %v10909_v14 = vld [vmem:[#allocation202_spill] sm:$0xff]  ;;  %v10910_v46 = vld [vmem:[#allocation203_spill] sm:$0xff] }
 0x60e   :  { %v7748_v37 = vadd.f32 %v10908_v39, %v7492_v60  ;;  %v7752_v56 = vadd.f32 %v10909_v14, %v7496_v59  ;;  %v7756_v47 = vadd.f32 %v10910_v46, %v7500_v18  ;;  %v10911_v13 = vld [vmem:[#allocation204_spill] sm:$0xff]  ;;  %v10912_v17 = vld [vmem:[#allocation205_spill] sm:$0xff]  ;;  %v10913_v50 = vld [vmem:[#allocation206_spill] sm:$0xff] }
 0x60f   :  { %v7760_v7 = vadd.f32 %v10911_v13, %v7504_v15  ;;  %v7764_v24 = vadd.f32 %v10912_v17, %v7508_v54  ;;  %v7768_v60 = vadd.f32 %v10913_v50, %v7512_v20  ;;  %v10914_v39 = vld [vmem:[#allocation207_spill] sm:$0xff]  ;;  %v10915_v14 = vld [vmem:[#allocation208_spill] sm:$0xff]  ;;  %v10916_v46 = vld [vmem:[#allocation209_spill] sm:$0xff] }
 0x610   :  { %v7772_v59 = vadd.f32 %v10914_v39, %v7516_v61  ;;  %v7776_v18 = vadd.f32 %v10915_v14, %v7520_v49  ;;  %v7780_v15 = vadd.f32 %v10916_v46, %v7524_v4  ;;  %v10917_v13 = vld [vmem:[#allocation210_spill] sm:$0xff]  ;;  %v10918_v17 = vld [vmem:[#allocation211_spill] sm:$0xff]  ;;  %v10919_v50 = vld [vmem:[#allocation212_spill] sm:$0xff] }
 0x611   :  { %v7784_v54 = vadd.f32 %v10917_v13, %v7528_v28  ;;  %v7788_v20 = vadd.f32 %v10918_v17, %v7532_v1  ;;  %v7792_v61 = vadd.f32 %v10919_v50, %v7536_v3  ;;  %v10920_v39 = vld [vmem:[#allocation213_spill] sm:$0xff]  ;;  %v10921_v14 = vld [vmem:[#allocation214_spill] sm:$0xff]  ;;  %v10922_v46 = vld [vmem:[#allocation215_spill] sm:$0xff] }
 0x612   :  { %v7796_v49 = vadd.f32 %v10920_v39, %v7540_v41  ;;  %v7800_v4 = vadd.f32 %v10921_v14, %v7544_v38  ;;  %v7804_v28 = vadd.f32 %v10922_v46, %v7548_v51  ;;  %v10923_v13 = vld [vmem:[#allocation216_spill] sm:$0xff]  ;;  %v10924_v17 = vld [vmem:[#allocation217_spill] sm:$0xff]  ;;  %v10925_v50 = vld [vmem:[#allocation218_spill] sm:$0xff] }
 0x613   :  { %v7808_v1 = vadd.f32 %v10923_v13, %v7552_v21  ;;  %v7812_v3 = vadd.f32 %v10924_v17, %v7556_v8  ;;  %v7816_v41 = vadd.f32 %v10925_v50, %v7560_v16  ;;  %v10926_v39 = vld [vmem:[#allocation219_spill] sm:$0xff]  ;;  %v10927_v14 = vld [vmem:[#allocation220_spill] sm:$0xff]  ;;  %v10928_v46 = vld [vmem:[#allocation221_spill] sm:$0xff] }
 0x614   :  { %v7820_v38 = vadd.f32 %v10926_v39, %v7564_v53  ;;  %v7824_v51 = vadd.f32 %v10927_v14, %v7568_v55  ;;  %v7828_v21 = vadd.f32 %v10928_v46, %v7572_v25  ;;  %v10929_v13 = vld [vmem:[#allocation222_spill] sm:$0xff]  ;;  %v10930_v17 = vld [vmem:[#allocation223_spill] sm:$0xff]  ;;  %v10931_v50 = vld [vmem:[#allocation224_spill] sm:$0xff] }
 0x615   :  { %v7832_v8 = vadd.f32 %v10929_v13, %v7576_v44  ;;  %v7836_v16 = vadd.f32 %v10930_v17, %v7580_v36  ;;  %v7840_v53 = vadd.f32 %v10931_v50, %v7584_v9  ;;  %v10932_v39 = vld [vmem:[#allocation225_spill] sm:$0xff]  ;;  %v10933_v14 = vld [vmem:[#allocation226_spill] sm:$0xff]  ;;  %v10934_v46 = vld [vmem:[#allocation227_spill] sm:$0xff] }
 0x616   :  { %v7844_v55 = vadd.f32 %v10932_v39, %v7588_v42  ;;  %v7848_v25 = vadd.f32 %v10933_v14, %v7592_v52  ;;  %v7852_v44 = vadd.f32 %v10934_v46, %v7596_v62  ;;  %v10935_v13 = vld [vmem:[#allocation228_spill] sm:$0xff]  ;;  %v10936_v17 = vld [vmem:[#allocation229_spill] sm:$0xff]  ;;  %v10937_v50 = vld [vmem:[#allocation230_spill] sm:$0xff] }
 0x617   :  { %v7856_v36 = vadd.f32 %v10935_v13, %v7600_v26  ;;  %v7860_v9 = vadd.f32 %v10936_v17, %v7604_v58  ;;  %v7864_v42 = vadd.f32 %v10937_v50, %v7608_v33  ;;  %v10938_v39 = vld [vmem:[#allocation231_spill] sm:$0xff]  ;;  %v10939_v14 = vld [vmem:[#allocation232_spill] sm:$0xff]  ;;  %v10940_v46 = vld [vmem:[#allocation233_spill] sm:$0xff] }
 0x618   :  { %v7868_v52 = vadd.f32 %v10938_v39, %v7612_v11  ;;  %v7872_v62 = vadd.f32 %v10939_v14, %v7616_v57  ;;  %v7876_v26 = vadd.f32 %v10940_v46, %v7620_v19  ;;  %v10941_v13 = vld [vmem:[#allocation234_spill] sm:$0xff]  ;;  %v10942_v17 = vld [vmem:[#allocation235_spill] sm:$0xff]  ;;  %v10943_v50 = vld [vmem:[#allocation236_spill] sm:$0xff] }
 0x619   :  { %v7880_v58 = vadd.f32 %v10941_v13, %v7624_v43  ;;  %v7884_v33 = vadd.f32 %v10942_v17, %v7628_v2  ;;  %v7888_v11 = vadd.f32 %v10943_v50, %v7632_v31  ;;  %v10944_v39 = vld [vmem:[#allocation237_spill] sm:$0xff]  ;;  %v10945_v14 = vld [vmem:[#allocation238_spill] sm:$0xff]  ;;  %v10947_v46 = vld [vmem:[#allocation239_spill] sm:$0xff] }
 0x61a   :  { %v7892_v57 = vadd.f32 %v10944_v39, %v7636_v12  ;;  %v7896_v19 = vadd.f32 %v10945_v14, %v7640_v0  ;;  %v7900_v43 = vadd.f32 %v10947_v46, %v7644_v63  ;;  %v10949_v13 = vld [vmem:[#allocation240_spill] sm:$0xff]  ;;  %v10951_v17 = vld [vmem:[#allocation241_spill] sm:$0xff]  ;;  %v10953_v50 = vld [vmem:[#allocation242_spill] sm:$0xff] }
 0x61b   :  { %v7904_v2 = vadd.f32 %v10949_v13, %v7648_v32  ;;  %v7908_v31 = vadd.f32 %v10951_v17, %v7652_v40  ;;  %v7912_v12 = vadd.f32 %v10953_v50, %v7656_v5  ;;  %v10955_v39 = vld [vmem:[#allocation243_spill] sm:$0xff]  ;;  %v10957_v14 = vld [vmem:[#allocation32_spill] sm:$0xff]  ;;  %v10960_v46 = vld [vmem:[#allocation38_spill] sm:$0xff] }
 0x61c   :  { %10946 = vst [vmem:[#allocation94_spill] sm:$0xff] %v7896_v19  ;;  %10948 = vst [vmem:[#allocation44_spill] sm:$0xff] %v7900_v43  ;;  %v7916_v0 = vadd.f32 %v10955_v39, %v7660_v48  ;;  %v10958_v19 = vld [vmem:[#allocation244_spill] sm:$0xff]  ;;  %v10961_v43 = vld [vmem:[#allocation245_spill] sm:$0xff] }
 0x61d   :  { %10950 = vst [vmem:[#allocation50_spill] sm:$0xff] %v7904_v2  ;;  %10952 = vst [vmem:[#allocation95_spill] sm:$0xff] %v7908_v31  ;;  %v7920_v63 = vadd.f32 %v10958_v19, %v10957_v14  ;;  %v7924_v32 = vadd.f32 %v10961_v43, %v10960_v46  ;;  %v10963_v13 = vld [vmem:[#allocation89_spill] sm:$0xff]  ;;  %v10964_v2 = vld [vmem:[#allocation246_spill] sm:$0xff] }
 0x61e   :  { %10954 = vst [vmem:[#allocation96_spill] sm:$0xff] %v7912_v12  ;;  %10956 = vst [vmem:[#allocation48_spill] sm:$0xff] %v7916_v0  ;;  %v7928_v40 = vadd.f32 %v10964_v2, %v10963_v13  ;;  %v10966_v17 = vld [vmem:[#allocation90_spill] sm:$0xff]  ;;  %v10967_v31 = vld [vmem:[#allocation247_spill] sm:$0xff] }
 0x61f   :  { %10959 = vst [vmem:[#allocation54_spill] sm:$0xff] %v7920_v63  ;;  %10962 = vst [vmem:[#allocation97_spill] sm:$0xff] %v7924_v32  ;;  %v7932_v5 = vadd.f32 %v10967_v31, %v10966_v17  ;;  %v10969_v50 = vld [vmem:[#allocation36_spill] sm:$0xff]  ;;  %v10972_v39 = vld [vmem:[#allocation42_spill] sm:$0xff] }
 0x620   :  { %10965 = vst [vmem:[#allocation98_spill] sm:$0xff] %v7928_v40  ;;  %v10970_v12 = vld [vmem:[#allocation248_spill] sm:$0xff]  ;;  %v10973_v0 = vld [vmem:[#allocation249_spill] sm:$0xff]  ;;  %v10974_v14 = vld [vmem:[#allocation91_spill] sm:$0xff] }
 0x621   :  { %10968 = vst [vmem:[#allocation52_spill] sm:$0xff] %v7932_v5  ;;  %v7936_v48 = vadd.f32 %v10970_v12, %v10969_v50  ;;  %v7940_v19 = vadd.f32 %v10973_v0, %v10972_v39  ;;  %v10975_v63 = vld [vmem:[#allocation250_spill] sm:$0xff]  ;;  %v10976_v46 = vld [vmem:[#allocation92_spill] sm:$0xff]  ;;  %v10977_v32 = vld [vmem:[#allocation251_spill] sm:$0xff] }
 0x622   :  { %v7944_v43 = vadd.f32 %v10975_v63, %v10974_v14  ;;  %v7948_v2 = vadd.f32 %v10977_v32, %v10976_v46  ;;  %v10978_v13 = vld [vmem:[#allocation40_spill] sm:$0xff]  ;;  %v10980_v17 = vld [vmem:[#allocation46_spill] sm:$0xff]  ;;  %v10981_v5 = vld [vmem:[#allocation253_spill] sm:$0xff] }
 0x623   :  { %10971 = vst [vmem:[#allocation58_spill] sm:$0xff] %v7936_v48  ;;  %v10979_v40 = vld [vmem:[#allocation252_spill] sm:$0xff]  ;;  %v7956_v12 = vadd.f32 %v10981_v5, %v10980_v17  ;;  %v10982_v50 = vld [vmem:[#allocation93_spill] sm:$0xff]  ;;  %v10983_v48 = vld [vmem:[#allocation254_spill] sm:$0xff] }
 0x624   :  { %v7952_v31 = vadd.f32 %v10979_v40, %v10978_v13  ;;  %v7960_v0 = vadd.f32 %v10983_v48, %v10982_v50  ;;  %v10984_v39 = vld [vmem:[#allocation255_spill] sm:$0xff]  ;;  %v10985_v14 = vld [vmem:[#allocation256_spill] sm:$0xff]  ;;  %v10986_v46 = vld [vmem:[#allocation257_spill] sm:$0xff] }
 0x625   :  { %v7964_v63 = vadd.f32 %v10984_v39, %v7708_v45  ;;  %v7968_v32 = vadd.f32 %v10985_v14, %v7712_v34  ;;  %v7972_v40 = vadd.f32 %v10986_v46, %v7716_v30  ;;  %v10987_v13 = vld [vmem:[#allocation258_spill] sm:$0xff]  ;;  %v10988_v17 = vld [vmem:[#allocation259_spill] sm:$0xff]  ;;  %v10989_v50 = vld [vmem:[#allocation260_spill] sm:$0xff] }
 0x626   :  { %v7976_v5 = vadd.f32 %v10987_v13, %v7720_v27  ;;  %v7980_v48 = vadd.f32 %v10988_v17, %v7724_v23  ;;  %v7984_v45 = vadd.f32 %v10989_v50, %v7728_v35  ;;  %v10990_v39 = vld [vmem:[#allocation261_spill] sm:$0xff]  ;;  %v10991_v14 = vld [vmem:[#allocation262_spill] sm:$0xff]  ;;  %v10992_v46 = vld [vmem:[#allocation263_spill] sm:$0xff] }
 0x627   :  { %v7988_v34 = vadd.f32 %v10990_v39, %v7732_v10  ;;  %v7992_v30 = vadd.f32 %v10991_v14, %v7736_v29  ;;  %v7996_v27 = vadd.f32 %v10992_v46, %v7740_v6  ;;  %v10993_v13 = vld [vmem:[#allocation264_spill] sm:$0xff]  ;;  %v10994_v17 = vld [vmem:[#allocation265_spill] sm:$0xff]  ;;  %v10995_v50 = vld [vmem:[#allocation266_spill] sm:$0xff] }
 0x628   :  { %v8000_v23 = vadd.f32 %v10993_v13, %v7744_v22  ;;  %v8004_v35 = vadd.f32 %v10994_v17, %v7748_v37  ;;  %v8008_v10 = vadd.f32 %v10995_v50, %v7752_v56  ;;  %v10996_v39 = vld [vmem:[#allocation267_spill] sm:$0xff]  ;;  %v10997_v14 = vld [vmem:[#allocation268_spill] sm:$0xff]  ;;  %v10998_v46 = vld [vmem:[#allocation269_spill] sm:$0xff] }
 0x629   :  { %v8012_v29 = vadd.f32 %v10996_v39, %v7756_v47  ;;  %v8016_v6 = vadd.f32 %v10997_v14, %v7760_v7  ;;  %v8020_v22 = vadd.f32 %v10998_v46, %v7764_v24  ;;  %v10999_v13 = vld [vmem:[#allocation270_spill] sm:$0xff]  ;;  %v11000_v17 = vld [vmem:[#allocation271_spill] sm:$0xff]  ;;  %v11001_v50 = vld [vmem:[#allocation272_spill] sm:$0xff] }
 0x62a   :  { %v8024_v37 = vadd.f32 %v10999_v13, %v7768_v60  ;;  %v8028_v56 = vadd.f32 %v11000_v17, %v7772_v59  ;;  %v8032_v47 = vadd.f32 %v11001_v50, %v7776_v18  ;;  %v11002_v39 = vld [vmem:[#allocation273_spill] sm:$0xff]  ;;  %v11003_v14 = vld [vmem:[#allocation274_spill] sm:$0xff]  ;;  %v11004_v46 = vld [vmem:[#allocation275_spill] sm:$0xff] }
 0x62b   :  { %v8036_v7 = vadd.f32 %v11002_v39, %v7780_v15  ;;  %v8040_v24 = vadd.f32 %v11003_v14, %v7784_v54  ;;  %v8044_v60 = vadd.f32 %v11004_v46, %v7788_v20  ;;  %v11005_v13 = vld [vmem:[#allocation276_spill] sm:$0xff]  ;;  %v11006_v17 = vld [vmem:[#allocation277_spill] sm:$0xff]  ;;  %v11007_v50 = vld [vmem:[#allocation278_spill] sm:$0xff] }
 0x62c   :  { %v8048_v59 = vadd.f32 %v11005_v13, %v7792_v61  ;;  %v8052_v18 = vadd.f32 %v11006_v17, %v7796_v49  ;;  %v8056_v15 = vadd.f32 %v11007_v50, %v7800_v4  ;;  %v11008_v39 = vld [vmem:[#allocation279_spill] sm:$0xff]  ;;  %v11009_v14 = vld [vmem:[#allocation280_spill] sm:$0xff]  ;;  %v11010_v46 = vld [vmem:[#allocation281_spill] sm:$0xff] }
 0x62d   :  { %v8060_v54 = vadd.f32 %v11008_v39, %v7804_v28  ;;  %v8064_v20 = vadd.f32 %v11009_v14, %v7808_v1  ;;  %v8068_v61 = vadd.f32 %v11010_v46, %v7812_v3  ;;  %v11011_v13 = vld [vmem:[#allocation282_spill] sm:$0xff]  ;;  %v11012_v17 = vld [vmem:[#allocation283_spill] sm:$0xff]  ;;  %v11013_v50 = vld [vmem:[#allocation284_spill] sm:$0xff] }
 0x62e   :  { %v8072_v49 = vadd.f32 %v11011_v13, %v7816_v41  ;;  %v8076_v4 = vadd.f32 %v11012_v17, %v7820_v38  ;;  %v8080_v28 = vadd.f32 %v11013_v50, %v7824_v51  ;;  %v11014_v39 = vld [vmem:[#allocation285_spill] sm:$0xff]  ;;  %v11015_v14 = vld [vmem:[#allocation286_spill] sm:$0xff]  ;;  %v11016_v46 = vld [vmem:[#allocation287_spill] sm:$0xff] }
 0x62f   :  { %v8084_v1 = vadd.f32 %v11014_v39, %v7828_v21  ;;  %v8088_v3 = vadd.f32 %v11015_v14, %v7832_v8  ;;  %v8092_v41 = vadd.f32 %v11016_v46, %v7836_v16  ;;  %v11017_v13 = vld [vmem:[#allocation288_spill] sm:$0xff]  ;;  %v11018_v17 = vld [vmem:[#allocation289_spill] sm:$0xff]  ;;  %v11019_v50 = vld [vmem:[#allocation290_spill] sm:$0xff] }
 0x630   :  { %v8096_v38 = vadd.f32 %v11017_v13, %v7840_v53  ;;  %v8100_v51 = vadd.f32 %v11018_v17, %v7844_v55  ;;  %v8104_v21 = vadd.f32 %v11019_v50, %v7848_v25  ;;  %v11020_v39 = vld [vmem:[#allocation291_spill] sm:$0xff]  ;;  %v11021_v14 = vld [vmem:[#allocation292_spill] sm:$0xff]  ;;  %v11022_v46 = vld [vmem:[#allocation293_spill] sm:$0xff] }
 0x631   :  { %v8108_v8 = vadd.f32 %v11020_v39, %v7852_v44  ;;  %v8112_v16 = vadd.f32 %v11021_v14, %v7856_v36  ;;  %v8116_v53 = vadd.f32 %v11022_v46, %v7860_v9  ;;  %v11023_v13 = vld [vmem:[#allocation294_spill] sm:$0xff]  ;;  %v11024_v17 = vld [vmem:[#allocation295_spill] sm:$0xff]  ;;  %v11025_v50 = vld [vmem:[#allocation296_spill] sm:$0xff] }
 0x632   :  { %v8120_v55 = vadd.f32 %v11023_v13, %v7864_v42  ;;  %v8124_v25 = vadd.f32 %v11024_v17, %v7868_v52  ;;  %v8128_v44 = vadd.f32 %v11025_v50, %v7872_v62  ;;  %v11027_v39 = vld [vmem:[#allocation297_spill] sm:$0xff]  ;;  %v11029_v14 = vld [vmem:[#allocation298_spill] sm:$0xff]  ;;  %v11031_v46 = vld [vmem:[#allocation299_spill] sm:$0xff] }
 0x633   :  { %v8132_v36 = vadd.f32 %v11027_v39, %v7876_v26  ;;  %v8136_v9 = vadd.f32 %v11029_v14, %v7880_v58  ;;  %v8140_v42 = vadd.f32 %v11031_v46, %v7884_v33  ;;  %v11033_v13 = vld [vmem:[#allocation300_spill] sm:$0xff]  ;;  %v11035_v17 = vld [vmem:[#allocation301_spill] sm:$0xff]  ;;  %v11037_v50 = vld [vmem:[#allocation94_spill] sm:$0xff] }
 0x634   :  { %11026 = vst [vmem:[#allocation99_spill] sm:$0xff] %v8128_v44  ;;  %v8144_v52 = vadd.f32 %v11033_v13, %v7888_v11  ;;  %v8148_v62 = vadd.f32 %v11035_v17, %v7892_v57  ;;  %v11038_v44 = vld [vmem:[#allocation302_spill] sm:$0xff]  ;;  %v11040_v39 = vld [vmem:[#allocation44_spill] sm:$0xff]  ;;  %v11046_v46 = vld [vmem:[#allocation95_spill] sm:$0xff] }
 0x635   :  { %11028 = vst [vmem:[#allocation100_spill] sm:$0xff] %v8132_v36  ;;  %11030 = vst [vmem:[#allocation56_spill] sm:$0xff] %v8136_v9  ;;  %v8152_v26 = vadd.f32 %v11038_v44, %v11037_v50  ;;  %v11041_v36 = vld [vmem:[#allocation303_spill] sm:$0xff]  ;;  %v11043_v14 = vld [vmem:[#allocation50_spill] sm:$0xff] }
 0x636   :  { %11032 = vst [vmem:[#allocation61_spill] sm:$0xff] %v8140_v42  ;;  %11034 = vst [vmem:[#allocation101_spill] sm:$0xff] %v8144_v52  ;;  %v8156_v58 = vadd.f32 %v11041_v36, %v11040_v39  ;;  %v11044_v9 = vld [vmem:[#allocation304_spill] sm:$0xff]  ;;  %v11047_v42 = vld [vmem:[#allocation305_spill] sm:$0xff] }
 0x637   :  { %11036 = vst [vmem:[#allocation102_spill] sm:$0xff] %v8148_v62  ;;  %11039 = vst [vmem:[#allocation60_spill] sm:$0xff] %v8152_v26  ;;  %v8160_v33 = vadd.f32 %v11044_v9, %v11043_v14  ;;  %v8164_v11 = vadd.f32 %v11047_v42, %v11046_v46  ;;  %v11049_v13 = vld [vmem:[#allocation96_spill] sm:$0xff]  ;;  %v11050_v52 = vld [vmem:[#allocation306_spill] sm:$0xff] }
 0x638   :  { %11042 = vst [vmem:[#allocation63_spill] sm:$0xff] %v8156_v58  ;;  %v8168_v57 = vadd.f32 %v11050_v52, %v11049_v13  ;;  %v11052_v17 = vld [vmem:[#allocation48_spill] sm:$0xff]  ;;  %v11053_v62 = vld [vmem:[#allocation307_spill] sm:$0xff]  ;;  %v11054_v50 = vld [vmem:[#allocation54_spill] sm:$0xff] }
 0x639   :  { %11045 = vst [vmem:[#allocation103_spill] sm:$0xff] %v8160_v33  ;;  %11048 = vst [vmem:[#allocation104_spill] sm:$0xff] %v8164_v11  ;;  %v8172_v44 = vadd.f32 %v11053_v62, %v11052_v17  ;;  %v11055_v26 = vld [vmem:[#allocation308_spill] sm:$0xff]  ;;  %v11056_v39 = vld [vmem:[#allocation97_spill] sm:$0xff] }
 0x63a   :  { %11051 = vst [vmem:[#allocation62_spill] sm:$0xff] %v8168_v57  ;;  %v8176_v36 = vadd.f32 %v11055_v26, %v11054_v50  ;;  %v11057_v58 = vld [vmem:[#allocation309_spill] sm:$0xff]  ;;  %v11058_v14 = vld [vmem:[#allocation98_spill] sm:$0xff]  ;;  %v11060_v46 = vld [vmem:[#allocation52_spill] sm:$0xff] }
 0x63b   :  { %v8180_v9 = vadd.f32 %v11057_v58, %v11056_v39  ;;  %v11059_v33 = vld [vmem:[#allocation310_spill] sm:$0xff]  ;;  %v11061_v11 = vld [vmem:[#allocation311_spill] sm:$0xff]  ;;  %v11063_v57 = vld [vmem:[#allocation312_spill] sm:$0xff] }
 0x63c   :  { %v8184_v42 = vadd.f32 %v11059_v33, %v11058_v14  ;;  %v8188_v52 = vadd.f32 %v11061_v11, %v11060_v46  ;;  %v11062_v13 = vld [vmem:[#allocation58_spill] sm:$0xff]  ;;  %v11064_v17 = vld [vmem:[#allocation313_spill] sm:$0xff]  ;;  %v11066_v39 = vld [vmem:[#allocation315_spill] sm:$0xff] }
 0x63d   :  { %v8192_v62 = vadd.f32 %v11063_v57, %v11062_v13  ;;  %v8196_v26 = vadd.f32 %v11064_v17, %v7940_v19  ;;  %v11065_v50 = vld [vmem:[#allocation314_spill] sm:$0xff]  ;;  %v8204_v33 = vadd.f32 %v11066_v39, %v7948_v2  ;;  %v11067_v14 = vld [vmem:[#allocation316_spill] sm:$0xff]  ;;  %v11068_v46 = vld [vmem:[#allocation317_spill] sm:$0xff] }
 0x63e   :  { %v8200_v58 = vadd.f32 %v11065_v50, %v7944_v43  ;;  %v8208_v11 = vadd.f32 %v11067_v14, %v7952_v31  ;;  %v8212_v57 = vadd.f32 %v11068_v46, %v7956_v12  ;;  %v11069_v13 = vld [vmem:[#allocation318_spill] sm:$0xff]  ;;  %v11070_v17 = vld [vmem:[#allocation319_spill] sm:$0xff]  ;;  %v11071_v50 = vld [vmem:[#allocation320_spill] sm:$0xff] }
 0x63f   :  { %v8216_v19 = vadd.f32 %v11069_v13, %v7960_v0  ;;  %v8220_v43 = vadd.f32 %v11070_v17, %v7964_v63  ;;  %v8224_v2 = vadd.f32 %v11071_v50, %v7968_v32  ;;  %v11072_v39 = vld [vmem:[#allocation321_spill] sm:$0xff]  ;;  %v11073_v14 = vld [vmem:[#allocation322_spill] sm:$0xff]  ;;  %v11074_v46 = vld [vmem:[#allocation323_spill] sm:$0xff] }
 0x640   :  { %v8228_v31 = vadd.f32 %v11072_v39, %v7972_v40  ;;  %v8232_v12 = vadd.f32 %v11073_v14, %v7976_v5  ;;  %v8236_v0 = vadd.f32 %v11074_v46, %v7980_v48  ;;  %v11075_v13 = vld [vmem:[#allocation324_spill] sm:$0xff]  ;;  %v11076_v17 = vld [vmem:[#allocation325_spill] sm:$0xff]  ;;  %v11077_v50 = vld [vmem:[#allocation326_spill] sm:$0xff] }
 0x641   :  { %v8240_v63 = vadd.f32 %v11075_v13, %v7984_v45  ;;  %v8244_v32 = vadd.f32 %v11076_v17, %v7988_v34  ;;  %v8248_v40 = vadd.f32 %v11077_v50, %v7992_v30  ;;  %v11078_v39 = vld [vmem:[#allocation327_spill] sm:$0xff]  ;;  %v11079_v14 = vld [vmem:[#allocation328_spill] sm:$0xff]  ;;  %v11080_v46 = vld [vmem:[#allocation329_spill] sm:$0xff] }
 0x642   :  { %v8252_v5 = vadd.f32 %v11078_v39, %v7996_v27  ;;  %v8256_v48 = vadd.f32 %v11079_v14, %v8000_v23  ;;  %v8260_v45 = vadd.f32 %v11080_v46, %v8004_v35  ;;  %v11081_v13 = vld [vmem:[#allocation330_spill] sm:$0xff]  ;;  %v11082_v17 = vld [vmem:[#allocation331_spill] sm:$0xff]  ;;  %v11083_v50 = vld [vmem:[#allocation332_spill] sm:$0xff] }
 0x643   :  { %v8264_v34 = vadd.f32 %v11081_v13, %v8008_v10  ;;  %v8268_v30 = vadd.f32 %v11082_v17, %v8012_v29  ;;  %v8272_v27 = vadd.f32 %v11083_v50, %v8016_v6  ;;  %v11084_v39 = vld [vmem:[#allocation333_spill] sm:$0xff]  ;;  %v11085_v14 = vld [vmem:[#allocation334_spill] sm:$0xff]  ;;  %v11086_v46 = vld [vmem:[#allocation335_spill] sm:$0xff] }
 0x644   :  { %v8276_v23 = vadd.f32 %v11084_v39, %v8020_v22  ;;  %v8280_v35 = vadd.f32 %v11085_v14, %v8024_v37  ;;  %v8284_v10 = vadd.f32 %v11086_v46, %v8028_v56  ;;  %v11087_v13 = vld [vmem:[#allocation336_spill] sm:$0xff]  ;;  %v11088_v17 = vld [vmem:[#allocation337_spill] sm:$0xff]  ;;  %v11089_v50 = vld [vmem:[#allocation338_spill] sm:$0xff] }
 0x645   :  { %v8288_v29 = vadd.f32 %v11087_v13, %v8032_v47  ;;  %v8292_v6 = vadd.f32 %v11088_v17, %v8036_v7  ;;  %v8296_v22 = vadd.f32 %v11089_v50, %v8040_v24  ;;  %v11090_v39 = vld [vmem:[#allocation339_spill] sm:$0xff]  ;;  %v11091_v14 = vld [vmem:[#allocation340_spill] sm:$0xff]  ;;  %v11092_v46 = vld [vmem:[#allocation341_spill] sm:$0xff] }
 0x646   :  { %v8300_v37 = vadd.f32 %v11090_v39, %v8044_v60  ;;  %v8304_v56 = vadd.f32 %v11091_v14, %v8048_v59  ;;  %v8308_v47 = vadd.f32 %v11092_v46, %v8052_v18  ;;  %v11093_v13 = vld [vmem:[#allocation342_spill] sm:$0xff]  ;;  %v11094_v17 = vld [vmem:[#allocation343_spill] sm:$0xff]  ;;  %v11095_v50 = vld [vmem:[#allocation344_spill] sm:$0xff] }
 0x647   :  { %v8312_v7 = vadd.f32 %v11093_v13, %v8056_v15  ;;  %v8316_v24 = vadd.f32 %v11094_v17, %v8060_v54  ;;  %v8320_v60 = vadd.f32 %v11095_v50, %v8064_v20  ;;  %v11096_v39 = vld [vmem:[#allocation345_spill] sm:$0xff]  ;;  %v11097_v14 = vld [vmem:[#allocation346_spill] sm:$0xff]  ;;  %v11098_v46 = vld [vmem:[#allocation347_spill] sm:$0xff] }
 0x648   :  { %v8324_v59 = vadd.f32 %v11096_v39, %v8068_v61  ;;  %v8328_v18 = vadd.f32 %v11097_v14, %v8072_v49  ;;  %v8332_v15 = vadd.f32 %v11098_v46, %v8076_v4  ;;  %v11099_v13 = vld [vmem:[#allocation348_spill] sm:$0xff]  ;;  %v11100_v17 = vld [vmem:[#allocation349_spill] sm:$0xff]  ;;  %v11101_v50 = vld [vmem:[#allocation350_spill] sm:$0xff] }
 0x649   :  { %v8336_v54 = vadd.f32 %v11099_v13, %v8080_v28  ;;  %v8340_v20 = vadd.f32 %v11100_v17, %v8084_v1  ;;  %v8344_v61 = vadd.f32 %v11101_v50, %v8088_v3  ;;  %v11102_v39 = vld [vmem:[#allocation351_spill] sm:$0xff]  ;;  %v11103_v14 = vld [vmem:[#allocation352_spill] sm:$0xff]  ;;  %v11104_v46 = vld [vmem:[#allocation353_spill] sm:$0xff] }
 0x64a   :  { %v8348_v49 = vadd.f32 %v11102_v39, %v8092_v41  ;;  %v8352_v4 = vadd.f32 %v11103_v14, %v8096_v38  ;;  %v8356_v28 = vadd.f32 %v11104_v46, %v8100_v51  ;;  %v11105_v13 = vld [vmem:[#allocation354_spill] sm:$0xff]  ;;  %v11107_v17 = vld [vmem:[#allocation355_spill] sm:$0xff]  ;;  %v11109_v50 = vld [vmem:[#allocation356_spill] sm:$0xff] }
 0x64b   :  { %v8360_v1 = vadd.f32 %v11105_v13, %v8104_v21  ;;  %v8364_v3 = vadd.f32 %v11107_v17, %v8108_v8  ;;  %v8368_v41 = vadd.f32 %v11109_v50, %v8112_v16  ;;  %v11111_v39 = vld [vmem:[#allocation357_spill] sm:$0xff]  ;;  %v11113_v14 = vld [vmem:[#allocation358_spill] sm:$0xff]  ;;  %v11115_v46 = vld [vmem:[#allocation359_spill] sm:$0xff] }
 0x64c   :  { %v8372_v38 = vadd.f32 %v11111_v39, %v8116_v53  ;;  %v8376_v51 = vadd.f32 %v11113_v14, %v8120_v55  ;;  %v8380_v21 = vadd.f32 %v11115_v46, %v8124_v25  ;;  %v11117_v13 = vld [vmem:[#allocation99_spill] sm:$0xff]  ;;  %v11120_v17 = vld [vmem:[#allocation100_spill] sm:$0xff]  ;;  %v11126_v39 = vld [vmem:[#allocation61_spill] sm:$0xff] }
 0x64d   :  { %11106 = vst [vmem:[#allocation65_spill] sm:$0xff] %v8360_v1  ;;  %11108 = vst [vmem:[#allocation105_spill] sm:$0xff] %v8364_v3  ;;  %v11118_v1 = vld [vmem:[#allocation360_spill] sm:$0xff]  ;;  %v11121_v3 = vld [vmem:[#allocation361_spill] sm:$0xff] }
 0x64e   :  { %11110 = vst [vmem:[#allocation106_spill] sm:$0xff] %v8368_v41  ;;  %11112 = vst [vmem:[#allocation64_spill] sm:$0xff] %v8372_v38  ;;  %v8384_v8 = vadd.f32 %v11118_v1, %v11117_v13  ;;  %v8388_v16 = vadd.f32 %v11121_v3, %v11120_v17  ;;  %v11123_v50 = vld [vmem:[#allocation56_spill] sm:$0xff]  ;;  %v11124_v41 = vld [vmem:[#allocation362_spill] sm:$0xff] }
 0x64f   :  { %11114 = vst [vmem:[#allocation67_spill] sm:$0xff] %v8376_v51  ;;  %11116 = vst [vmem:[#allocation107_spill] sm:$0xff] %v8380_v21  ;;  %v8392_v53 = vadd.f32 %v11124_v41, %v11123_v50  ;;  %v11127_v38 = vld [vmem:[#allocation363_spill] sm:$0xff]  ;;  %v11129_v14 = vld [vmem:[#allocation101_spill] sm:$0xff] }
 0x650   :  { %11119 = vst [vmem:[#allocation108_spill] sm:$0xff] %v8384_v8  ;;  %11122 = vst [vmem:[#allocation66_spill] sm:$0xff] %v8388_v16  ;;  %v8396_v55 = vadd.f32 %v11127_v38, %v11126_v39  ;;  %v11130_v51 = vld [vmem:[#allocation364_spill] sm:$0xff]  ;;  %v11132_v46 = vld [vmem:[#allocation102_spill] sm:$0xff] }
 0x651   :  { %11125 = vst [vmem:[#allocation69_spill] sm:$0xff] %v8392_v53  ;;  %v8400_v25 = vadd.f32 %v11130_v51, %v11129_v14  ;;  %v11133_v21 = vld [vmem:[#allocation365_spill] sm:$0xff]  ;;  %v11134_v13 = vld [vmem:[#allocation60_spill] sm:$0xff]  ;;  %v11135_v8 = vld [vmem:[#allocation366_spill] sm:$0xff] }
 0x652   :  { %11128 = vst [vmem:[#allocation68_spill] sm:$0xff] %v8396_v55  ;;  %v8404_v1 = vadd.f32 %v11133_v21, %v11132_v46  ;;  %v8408_v3 = vadd.f32 %v11135_v8, %v11134_v13  ;;  %v11136_v17 = vld [vmem:[#allocation63_spill] sm:$0xff]  ;;  %v11139_v53 = vld [vmem:[#allocation368_spill] sm:$0xff]  ;;  %v11141_v55 = vld [vmem:[#allocation369_spill] sm:$0xff] }
 0x653   :  { %11131 = vst [vmem:[#allocation71_spill] sm:$0xff] %v8400_v25  ;;  %v11137_v16 = vld [vmem:[#allocation367_spill] sm:$0xff]  ;;  %v11140_v39 = vld [vmem:[#allocation104_spill] sm:$0xff]  ;;  %v11142_v14 = vld [vmem:[#allocation62_spill] sm:$0xff] }
 0x654   :  { %v8412_v41 = vadd.f32 %v11137_v16, %v11136_v17  ;;  %v11138_v50 = vld [vmem:[#allocation103_spill] sm:$0xff]  ;;  %v8420_v51 = vadd.f32 %v11141_v55, %v11140_v39  ;;  %v11143_v25 = vld [vmem:[#allocation370_spill] sm:$0xff]  ;;  %v11145_v13 = vld [vmem:[#allocation372_spill] sm:$0xff] }
 0x655   :  { %v8416_v38 = vadd.f32 %v11139_v53, %v11138_v50  ;;  %v8424_v21 = vadd.f32 %v11143_v25, %v11142_v14  ;;  %v11144_v46 = vld [vmem:[#allocation371_spill] sm:$0xff]  ;;  %v8432_v16 = vadd.f32 %v11145_v13, %v8176_v36  ;;  %v11146_v17 = vld [vmem:[#allocation373_spill] sm:$0xff]  ;;  %v11147_v50 = vld [vmem:[#allocation374_spill] sm:$0xff] }
 0x656   :  { %v8428_v8 = vadd.f32 %v11144_v46, %v8172_v44  ;;  %v8436_v53 = vadd.f32 %v11146_v17, %v8180_v9  ;;  %v8440_v55 = vadd.f32 %v11147_v50, %v8184_v42  ;;  %v11148_v39 = vld [vmem:[#allocation375_spill] sm:$0xff]  ;;  %v11149_v14 = vld [vmem:[#allocation376_spill] sm:$0xff]  ;;  %v11150_v46 = vld [vmem:[#allocation377_spill] sm:$0xff] }
 0x657   :  { %v8444_v25 = vadd.f32 %v11148_v39, %v8188_v52  ;;  %v8448_v44 = vadd.f32 %v11149_v14, %v8192_v62  ;;  %v8452_v36 = vadd.f32 %v11150_v46, %v8196_v26  ;;  %v11151_v13 = vld [vmem:[#allocation378_spill] sm:$0xff]  ;;  %v11152_v17 = vld [vmem:[#allocation379_spill] sm:$0xff]  ;;  %v11153_v50 = vld [vmem:[#allocation380_spill] sm:$0xff] }
 0x658   :  { %v8456_v9 = vadd.f32 %v11151_v13, %v8200_v58  ;;  %v8460_v42 = vadd.f32 %v11152_v17, %v8204_v33  ;;  %v8464_v52 = vadd.f32 %v11153_v50, %v8208_v11  ;;  %v11154_v39 = vld [vmem:[#allocation381_spill] sm:$0xff]  ;;  %v11155_v14 = vld [vmem:[#allocation382_spill] sm:$0xff]  ;;  %v11156_v46 = vld [vmem:[#allocation383_spill] sm:$0xff] }
 0x659   :  { %v8468_v62 = vadd.f32 %v11154_v39, %v8212_v57  ;;  %v8472_v26 = vadd.f32 %v11155_v14, %v8216_v19  ;;  %v8476_v58 = vadd.f32 %v11156_v46, %v8220_v43  ;;  %v11157_v13 = vld [vmem:[#allocation384_spill] sm:$0xff]  ;;  %v11158_v17 = vld [vmem:[#allocation385_spill] sm:$0xff]  ;;  %v11159_v50 = vld [vmem:[#allocation386_spill] sm:$0xff] }
 0x65a   :  { %v8480_v33 = vadd.f32 %v11157_v13, %v8224_v2  ;;  %v8484_v11 = vadd.f32 %v11158_v17, %v8228_v31  ;;  %v8488_v57 = vadd.f32 %v11159_v50, %v8232_v12  ;;  %v11160_v39 = vld [vmem:[#allocation387_spill] sm:$0xff]  ;;  %v11161_v14 = vld [vmem:[#allocation388_spill] sm:$0xff]  ;;  %v11162_v46 = vld [vmem:[#allocation389_spill] sm:$0xff] }
 0x65b   :  { %v8492_v19 = vadd.f32 %v11160_v39, %v8236_v0  ;;  %v8496_v43 = vadd.f32 %v11161_v14, %v8240_v63  ;;  %v8500_v2 = vadd.f32 %v11162_v46, %v8244_v32  ;;  %v11163_v13 = vld [vmem:[#allocation390_spill] sm:$0xff]  ;;  %v11164_v17 = vld [vmem:[#allocation391_spill] sm:$0xff]  ;;  %v11165_v50 = vld [vmem:[#allocation392_spill] sm:$0xff] }
 0x65c   :  { %v8504_v31 = vadd.f32 %v11163_v13, %v8248_v40  ;;  %v8508_v12 = vadd.f32 %v11164_v17, %v8252_v5  ;;  %v8512_v0 = vadd.f32 %v11165_v50, %v8256_v48  ;;  %v11166_v39 = vld [vmem:[#allocation393_spill] sm:$0xff]  ;;  %v11167_v14 = vld [vmem:[#allocation394_spill] sm:$0xff]  ;;  %v11168_v46 = vld [vmem:[#allocation395_spill] sm:$0xff] }
 0x65d   :  { %v8516_v63 = vadd.f32 %v11166_v39, %v8260_v45  ;;  %v8520_v32 = vadd.f32 %v11167_v14, %v8264_v34  ;;  %v8524_v40 = vadd.f32 %v11168_v46, %v8268_v30  ;;  %v11169_v13 = vld [vmem:[#allocation396_spill] sm:$0xff]  ;;  %v11170_v17 = vld [vmem:[#allocation397_spill] sm:$0xff]  ;;  %v11171_v50 = vld [vmem:[#allocation398_spill] sm:$0xff] }
 0x65e   :  { %v8528_v5 = vadd.f32 %v11169_v13, %v8272_v27  ;;  %v8532_v48 = vadd.f32 %v11170_v17, %v8276_v23  ;;  %v8536_v45 = vadd.f32 %v11171_v50, %v8280_v35  ;;  %v11172_v39 = vld [vmem:[#allocation399_spill] sm:$0xff]  ;;  %v11173_v14 = vld [vmem:[#allocation400_spill] sm:$0xff]  ;;  %v11174_v46 = vld [vmem:[#allocation401_spill] sm:$0xff] }
 0x65f   :  { %v8540_v34 = vadd.f32 %v11172_v39, %v8284_v10  ;;  %v8544_v30 = vadd.f32 %v11173_v14, %v8288_v29  ;;  %v8548_v27 = vadd.f32 %v11174_v46, %v8292_v6  ;;  %v11175_v13 = vld [vmem:[#allocation402_spill] sm:$0xff]  ;;  %v11176_v17 = vld [vmem:[#allocation403_spill] sm:$0xff]  ;;  %v11177_v50 = vld [vmem:[#allocation404_spill] sm:$0xff] }
 0x660   :  { %v8552_v23 = vadd.f32 %v11175_v13, %v8296_v22  ;;  %v8556_v35 = vadd.f32 %v11176_v17, %v8300_v37  ;;  %v8560_v10 = vadd.f32 %v11177_v50, %v8304_v56  ;;  %v11178_v39 = vld [vmem:[#allocation405_spill] sm:$0xff]  ;;  %v11179_v14 = vld [vmem:[#allocation406_spill] sm:$0xff]  ;;  %v11180_v46 = vld [vmem:[#allocation407_spill] sm:$0xff] }
 0x661   :  { %v8564_v29 = vadd.f32 %v11178_v39, %v8308_v47  ;;  %v8568_v6 = vadd.f32 %v11179_v14, %v8312_v7  ;;  %v8572_v22 = vadd.f32 %v11180_v46, %v8316_v24  ;;  %v11181_v13 = vld [vmem:[#allocation408_spill] sm:$0xff]  ;;  %v11182_v17 = vld [vmem:[#allocation409_spill] sm:$0xff]  ;;  %v11183_v50 = vld [vmem:[#allocation410_spill] sm:$0xff] }
 0x662   :  { %v8576_v37 = vadd.f32 %v11181_v13, %v8320_v60  ;;  %v8580_v56 = vadd.f32 %v11182_v17, %v8324_v59  ;;  %v8584_v47 = vadd.f32 %v11183_v50, %v8328_v18  ;;  %v11184_v39 = vld [vmem:[#allocation411_spill] sm:$0xff]  ;;  %v11185_v14 = vld [vmem:[#allocation412_spill] sm:$0xff]  ;;  %v11187_v46 = vld [vmem:[#allocation413_spill] sm:$0xff] }
 0x663   :  { %v8588_v7 = vadd.f32 %v11184_v39, %v8332_v15  ;;  %v8592_v24 = vadd.f32 %v11185_v14, %v8336_v54  ;;  %v8596_v60 = vadd.f32 %v11187_v46, %v8340_v20  ;;  %v11189_v13 = vld [vmem:[#allocation414_spill] sm:$0xff]  ;;  %v11191_v17 = vld [vmem:[#allocation415_spill] sm:$0xff]  ;;  %v11193_v50 = vld [vmem:[#allocation416_spill] sm:$0xff] }
 0x664   :  { %v8600_v59 = vadd.f32 %v11189_v13, %v8344_v61  ;;  %v8604_v18 = vadd.f32 %v11191_v17, %v8348_v49  ;;  %v8608_v15 = vadd.f32 %v11193_v50, %v8352_v4  ;;  %v11195_v39 = vld [vmem:[#allocation417_spill] sm:$0xff]  ;;  %v11203_v13 = vld [vmem:[#allocation106_spill] sm:$0xff]  ;;  %v11206_v17 = vld [vmem:[#allocation64_spill] sm:$0xff] }
 0x665   :  { %11186 = vst [vmem:[#allocation109_spill] sm:$0xff] %v8592_v24  ;;  %11188 = vst [vmem:[#allocation110_spill] sm:$0xff] %v8596_v60  ;;  %v8612_v54 = vadd.f32 %v11195_v39, %v8356_v28  ;;  %v11197_v14 = vld [vmem:[#allocation65_spill] sm:$0xff]  ;;  %v11198_v24 = vld [vmem:[#allocation418_spill] sm:$0xff] }
 0x666   :  { %11190 = vst [vmem:[#allocation70_spill] sm:$0xff] %v8600_v59  ;;  %11192 = vst [vmem:[#allocation73_spill] sm:$0xff] %v8604_v18  ;;  %v8616_v20 = vadd.f32 %v11198_v24, %v11197_v14  ;;  %v11200_v46 = vld [vmem:[#allocation105_spill] sm:$0xff]  ;;  %v11201_v60 = vld [vmem:[#allocation419_spill] sm:$0xff] }
 0x667   :  { %11194 = vst [vmem:[#allocation111_spill] sm:$0xff] %v8608_v15  ;;  %11196 = vst [vmem:[#allocation112_spill] sm:$0xff] %v8612_v54  ;;  %v8620_v61 = vadd.f32 %v11201_v60, %v11200_v46  ;;  %v11204_v59 = vld [vmem:[#allocation420_spill] sm:$0xff]  ;;  %v11207_v18 = vld [vmem:[#allocation421_spill] sm:$0xff] }
 0x668   :  { %11199 = vst [vmem:[#allocation72_spill] sm:$0xff] %v8616_v20  ;;  %v8624_v49 = vadd.f32 %v11204_v59, %v11203_v13  ;;  %v8628_v4 = vadd.f32 %v11207_v18, %v11206_v17  ;;  %v11209_v50 = vld [vmem:[#allocation67_spill] sm:$0xff]  ;;  %v11210_v15 = vld [vmem:[#allocation422_spill] sm:$0xff]  ;;  %v11214_v14 = vld [vmem:[#allocation108_spill] sm:$0xff] }
 0x669   :  { %11202 = vst [vmem:[#allocation75_spill] sm:$0xff] %v8620_v61  ;;  %v8632_v28 = vadd.f32 %v11210_v15, %v11209_v50  ;;  %v11212_v39 = vld [vmem:[#allocation107_spill] sm:$0xff]  ;;  %v11215_v20 = vld [vmem:[#allocation424_spill] sm:$0xff]  ;;  %v11216_v46 = vld [vmem:[#allocation66_spill] sm:$0xff] }
 0x66a   :  { %11205 = vst [vmem:[#allocation113_spill] sm:$0xff] %v8624_v49  ;;  %11208 = vst [vmem:[#allocation114_spill] sm:$0xff] %v8628_v4  ;;  %v11213_v54 = vld [vmem:[#allocation423_spill] sm:$0xff]  ;;  %v8640_v60 = vadd.f32 %v11215_v20, %v11214_v14  ;;  %v11217_v61 = vld [vmem:[#allocation425_spill] sm:$0xff] }
 0x66b   :  { %11211 = vst [vmem:[#allocation74_spill] sm:$0xff] %v8632_v28  ;;  %v8636_v24 = vadd.f32 %v11213_v54, %v11212_v39  ;;  %v8644_v59 = vadd.f32 %v11217_v61, %v11216_v46  ;;  %v11218_v13 = vld [vmem:[#allocation69_spill] sm:$0xff]  ;;  %v11219_v49 = vld [vmem:[#allocation426_spill] sm:$0xff]  ;;  %v11220_v17 = vld [vmem:[#allocation68_spill] sm:$0xff] }
 0x66c   :  { %v8648_v18 = vadd.f32 %v11219_v49, %v11218_v13  ;;  %v11221_v4 = vld [vmem:[#allocation427_spill] sm:$0xff]  ;;  %v11223_v28 = vld [vmem:[#allocation428_spill] sm:$0xff]  ;;  %v11224_v39 = vld [vmem:[#allocation429_spill] sm:$0xff] }
 0x66d   :  { %v8652_v15 = vadd.f32 %v11221_v4, %v11220_v17  ;;  %v11222_v50 = vld [vmem:[#allocation71_spill] sm:$0xff]  ;;  %v8660_v20 = vadd.f32 %v11224_v39, %v8404_v1  ;;  %v11225_v14 = vld [vmem:[#allocation430_spill] sm:$0xff]  ;;  %v11227_v13 = vld [vmem:[#allocation432_spill] sm:$0xff] }
 0x66e   :  { %v8656_v54 = vadd.f32 %v11223_v28, %v11222_v50  ;;  %v8664_v61 = vadd.f32 %v11225_v14, %v8408_v3  ;;  %v11226_v46 = vld [vmem:[#allocation431_spill] sm:$0xff]  ;;  %v8672_v4 = vadd.f32 %v11227_v13, %v8416_v38  ;;  %v11228_v17 = vld [vmem:[#allocation433_spill] sm:$0xff]  ;;  %v11229_v50 = vld [vmem:[#allocation434_spill] sm:$0xff] }
 0x66f   :  { %v8668_v49 = vadd.f32 %v11226_v46, %v8412_v41  ;;  %v8676_v28 = vadd.f32 %v11228_v17, %v8420_v51  ;;  %v8680_v1 = vadd.f32 %v11229_v50, %v8424_v21  ;;  %v11230_v39 = vld [vmem:[#allocation435_spill] sm:$0xff]  ;;  %v11231_v14 = vld [vmem:[#allocation436_spill] sm:$0xff]  ;;  %v11232_v46 = vld [vmem:[#allocation437_spill] sm:$0xff] }
 0x670   :  { %v8684_v3 = vadd.f32 %v11230_v39, %v8428_v8  ;;  %v8688_v41 = vadd.f32 %v11231_v14, %v8432_v16  ;;  %v8692_v38 = vadd.f32 %v11232_v46, %v8436_v53  ;;  %v11233_v13 = vld [vmem:[#allocation438_spill] sm:$0xff]  ;;  %v11234_v17 = vld [vmem:[#allocation439_spill] sm:$0xff]  ;;  %v11235_v50 = vld [vmem:[#allocation440_spill] sm:$0xff] }
 0x671   :  { %v8696_v51 = vadd.f32 %v11233_v13, %v8440_v55  ;;  %v8700_v21 = vadd.f32 %v11234_v17, %v8444_v25  ;;  %v8704_v8 = vadd.f32 %v11235_v50, %v8448_v44  ;;  %v11236_v39 = vld [vmem:[#allocation441_spill] sm:$0xff]  ;;  %v11237_v14 = vld [vmem:[#allocation442_spill] sm:$0xff]  ;;  %v11238_v46 = vld [vmem:[#allocation443_spill] sm:$0xff] }
 0x672   :  { %v8708_v16 = vadd.f32 %v11236_v39, %v8452_v36  ;;  %v8712_v53 = vadd.f32 %v11237_v14, %v8456_v9  ;;  %v8716_v55 = vadd.f32 %v11238_v46, %v8460_v42  ;;  %v11239_v13 = vld [vmem:[#allocation444_spill] sm:$0xff]  ;;  %v11240_v17 = vld [vmem:[#allocation445_spill] sm:$0xff]  ;;  %v11241_v50 = vld [vmem:[#allocation446_spill] sm:$0xff] }
 0x673   :  { %v8720_v25 = vadd.f32 %v11239_v13, %v8464_v52  ;;  %v8724_v44 = vadd.f32 %v11240_v17, %v8468_v62  ;;  %v8728_v36 = vadd.f32 %v11241_v50, %v8472_v26  ;;  %v11242_v39 = vld [vmem:[#allocation447_spill] sm:$0xff]  ;;  %v11243_v14 = vld [vmem:[#allocation448_spill] sm:$0xff]  ;;  %v11244_v46 = vld [vmem:[#allocation449_spill] sm:$0xff] }
 0x674   :  { %v8732_v9 = vadd.f32 %v11242_v39, %v8476_v58  ;;  %v8736_v42 = vadd.f32 %v11243_v14, %v8480_v33  ;;  %v8740_v52 = vadd.f32 %v11244_v46, %v8484_v11  ;;  %v11245_v13 = vld [vmem:[#allocation450_spill] sm:$0xff]  ;;  %v11246_v17 = vld [vmem:[#allocation451_spill] sm:$0xff]  ;;  %v11247_v50 = vld [vmem:[#allocation452_spill] sm:$0xff] }
 0x675   :  { %v8744_v62 = vadd.f32 %v11245_v13, %v8488_v57  ;;  %v8748_v26 = vadd.f32 %v11246_v17, %v8492_v19  ;;  %v8752_v58 = vadd.f32 %v11247_v50, %v8496_v43  ;;  %v11248_v39 = vld [vmem:[#allocation453_spill] sm:$0xff]  ;;  %v11249_v14 = vld [vmem:[#allocation454_spill] sm:$0xff]  ;;  %v11250_v46 = vld [vmem:[#allocation455_spill] sm:$0xff] }
 0x676   :  { %v8756_v33 = vadd.f32 %v11248_v39, %v8500_v2  ;;  %v8760_v11 = vadd.f32 %v11249_v14, %v8504_v31  ;;  %v8764_v57 = vadd.f32 %v11250_v46, %v8508_v12  ;;  %v11251_v13 = vld [vmem:[#allocation456_spill] sm:$0xff]  ;;  %v11252_v17 = vld [vmem:[#allocation457_spill] sm:$0xff]  ;;  %v11253_v50 = vld [vmem:[#allocation458_spill] sm:$0xff] }
 0x677   :  { %v8768_v19 = vadd.f32 %v11251_v13, %v8512_v0  ;;  %v8772_v43 = vadd.f32 %v11252_v17, %v8516_v63  ;;  %v8776_v2 = vadd.f32 %v11253_v50, %v8520_v32  ;;  %v11254_v39 = vld [vmem:[#allocation459_spill] sm:$0xff]  ;;  %v11255_v14 = vld [vmem:[#allocation460_spill] sm:$0xff]  ;;  %v11256_v46 = vld [vmem:[#allocation461_spill] sm:$0xff] }
 0x678   :  { %v8780_v31 = vadd.f32 %v11254_v39, %v8524_v40  ;;  %v8784_v12 = vadd.f32 %v11255_v14, %v8528_v5  ;;  %v8788_v0 = vadd.f32 %v11256_v46, %v8532_v48  ;;  %v11257_v13 = vld [vmem:[#allocation462_spill] sm:$0xff]  ;;  %v11258_v17 = vld [vmem:[#allocation463_spill] sm:$0xff]  ;;  %v11259_v50 = vld [vmem:[#allocation464_spill] sm:$0xff] }
 0x679   :  { %v8792_v63 = vadd.f32 %v11257_v13, %v8536_v45  ;;  %v8796_v32 = vadd.f32 %v11258_v17, %v8540_v34  ;;  %v8800_v40 = vadd.f32 %v11259_v50, %v8544_v30  ;;  %v11260_v39 = vld [vmem:[#allocation465_spill] sm:$0xff]  ;;  %v11261_v14 = vld [vmem:[#allocation466_spill] sm:$0xff]  ;;  %v11262_v46 = vld [vmem:[#allocation467_spill] sm:$0xff] }
 0x67a   :  { %v8804_v5 = vadd.f32 %v11260_v39, %v8548_v27  ;;  %v8808_v48 = vadd.f32 %v11261_v14, %v8552_v23  ;;  %v8812_v45 = vadd.f32 %v11262_v46, %v8556_v35  ;;  %v11263_v13 = vld [vmem:[#allocation468_spill] sm:$0xff]  ;;  %v11264_v17 = vld [vmem:[#allocation469_spill] sm:$0xff]  ;;  %v11265_v50 = vld [vmem:[#allocation470_spill] sm:$0xff] }
 0x67b   :  { %v8816_v34 = vadd.f32 %v11263_v13, %v8560_v10  ;;  %v8820_v30 = vadd.f32 %v11264_v17, %v8564_v29  ;;  %v8824_v27 = vadd.f32 %v11265_v50, %v8568_v6  ;;  %v11267_v39 = vld [vmem:[#allocation471_spill] sm:$0xff]  ;;  %v11269_v14 = vld [vmem:[#allocation472_spill] sm:$0xff]  ;;  %v11271_v46 = vld [vmem:[#allocation473_spill] sm:$0xff] }
 0x67c   :  { %v8828_v23 = vadd.f32 %v11267_v39, %v8572_v22  ;;  %v8832_v35 = vadd.f32 %v11269_v14, %v8576_v37  ;;  %v8836_v10 = vadd.f32 %v11271_v46, %v8580_v56  ;;  %v11273_v13 = vld [vmem:[#allocation474_spill] sm:$0xff]  ;;  %v11275_v17 = vld [vmem:[#allocation475_spill] sm:$0xff]  ;;  %v11277_v50 = vld [vmem:[#allocation109_spill] sm:$0xff] }
 0x67d   :  { %11266 = vst [vmem:[#allocation77_spill] sm:$0xff] %v8824_v27  ;;  %v8840_v29 = vadd.f32 %v11273_v13, %v8584_v47  ;;  %v8844_v6 = vadd.f32 %v11275_v17, %v8588_v7  ;;  %v11278_v27 = vld [vmem:[#allocation476_spill] sm:$0xff]  ;;  %v11280_v39 = vld [vmem:[#allocation110_spill] sm:$0xff]  ;;  %v11286_v46 = vld [vmem:[#allocation73_spill] sm:$0xff] }
 0x67e   :  { %11268 = vst [vmem:[#allocation115_spill] sm:$0xff] %v8828_v23  ;;  %11270 = vst [vmem:[#allocation116_spill] sm:$0xff] %v8832_v35  ;;  %v8848_v22 = vadd.f32 %v11278_v27, %v11277_v50  ;;  %v11281_v23 = vld [vmem:[#allocation477_spill] sm:$0xff]  ;;  %v11283_v14 = vld [vmem:[#allocation70_spill] sm:$0xff] }
 0x67f   :  { %11272 = vst [vmem:[#allocation76_spill] sm:$0xff] %v8836_v10  ;;  %11274 = vst [vmem:[#allocation79_spill] sm:$0xff] %v8840_v29  ;;  %v8852_v37 = vadd.f32 %v11281_v23, %v11280_v39  ;;  %v11284_v35 = vld [vmem:[#allocation478_spill] sm:$0xff]  ;;  %v11287_v10 = vld [vmem:[#allocation479_spill] sm:$0xff] }
 0x680   :  { %11276 = vst [vmem:[#allocation117_spill] sm:$0xff] %v8844_v6  ;;  %11279 = vst [vmem:[#allocation118_spill] sm:$0xff] %v8848_v22  ;;  %v8856_v56 = vadd.f32 %v11284_v35, %v11283_v14  ;;  %v8860_v47 = vadd.f32 %v11287_v10, %v11286_v46  ;;  %v11289_v13 = vld [vmem:[#allocation111_spill] sm:$0xff]  ;;  %v11290_v29 = vld [vmem:[#allocation480_spill] sm:$0xff] }
 0x681   :  { %11282 = vst [vmem:[#allocation78_spill] sm:$0xff] %v8852_v37  ;;  %v8864_v7 = vadd.f32 %v11290_v29, %v11289_v13  ;;  %v11292_v17 = vld [vmem:[#allocation112_spill] sm:$0xff]  ;;  %v11293_v6 = vld [vmem:[#allocation481_spill] sm:$0xff]  ;;  %v11295_v22 = vld [vmem:[#allocation482_spill] sm:$0xff] }
 0x682   :  { %11285 = vst [vmem:[#allocation20_spill] sm:$0xff] %v8856_v56  ;;  %11288 = vst [vmem:[#allocation119_spill] sm:$0xff] %v8860_v47  ;;  %v8868_v27 = vadd.f32 %v11293_v6, %v11292_v17  ;;  %v11294_v50 = vld [vmem:[#allocation72_spill] sm:$0xff]  ;;  %v11296_v39 = vld [vmem:[#allocation75_spill] sm:$0xff] }
 0x683   :  { %11291 = vst [vmem:[#allocation120_spill] sm:$0xff] %v8864_v7  ;;  %v8872_v23 = vadd.f32 %v11295_v22, %v11294_v50  ;;  %v11297_v37 = vld [vmem:[#allocation483_spill] sm:$0xff]  ;;  %v11298_v14 = vld [vmem:[#allocation113_spill] sm:$0xff]  ;;  %v11299_v56 = vld [vmem:[#allocation484_spill] sm:$0xff] }
 0x684   :  { %v8876_v35 = vadd.f32 %v11297_v37, %v11296_v39  ;;  %v8880_v10 = vadd.f32 %v11299_v56, %v11298_v14  ;;  %v11300_v46 = vld [vmem:[#allocation114_spill] sm:$0xff]  ;;  %v11301_v47 = vld [vmem:[#allocation485_spill] sm:$0xff]  ;;  %v11304_v17 = vld [vmem:[#allocation487_spill] sm:$0xff] }
 0x685   :  { %v8884_v29 = vadd.f32 %v11301_v47, %v11300_v46  ;;  %v11302_v13 = vld [vmem:[#allocation74_spill] sm:$0xff]  ;;  %v8892_v22 = vadd.f32 %v11304_v17, %v8636_v24  ;;  %v11305_v50 = vld [vmem:[#allocation488_spill] sm:$0xff]  ;;  %v11306_v39 = vld [vmem:[#allocation489_spill] sm:$0xff] }
 0x686   :  { %v11303_v7 = vld [vmem:[#allocation486_spill] sm:$0xff]  ;;  %v8896_v37 = vadd.f32 %v11305_v50, %v8640_v60  ;;  %v8900_v56 = vadd.f32 %v11306_v39, %v8644_v59  ;;  %v11308_v46 = vld [vmem:[#allocation491_spill] sm:$0xff]  ;;  %v11310_v17 = vld [vmem:[#allocation493_spill] sm:$0xff] }
 0x687   :  { %v8888_v6 = vadd.f32 %v11303_v7, %v11302_v13  ;;  %v11307_v14 = vld [vmem:[#allocation490_spill] sm:$0xff]  ;;  %v8908_v7 = vadd.f32 %v11308_v46, %v8652_v15  ;;  %v11309_v13 = vld [vmem:[#allocation492_spill] sm:$0xff]  ;;  %v8916_v60 = vadd.f32 %v11310_v17, %v8660_v20  ;;  %v11312_v39 = vld [vmem:[#allocation495_spill] sm:$0xff] }
 0x688   :  { %v8904_v47 = vadd.f32 %v11307_v14, %v8648_v18  ;;  %v8912_v24 = vadd.f32 %v11309_v13, %v8656_v54  ;;  %v11311_v50 = vld [vmem:[#allocation494_spill] sm:$0xff]  ;;  %v8924_v18 = vadd.f32 %v11312_v39, %v8668_v49  ;;  %v11313_v14 = vld [vmem:[#allocation496_spill] sm:$0xff]  ;;  %v11314_v46 = vld [vmem:[#allocation497_spill] sm:$0xff] }
 0x689   :  { %v8920_v59 = vadd.f32 %v11311_v50, %v8664_v61  ;;  %v8928_v15 = vadd.f32 %v11313_v14, %v8672_v4  ;;  %v8932_v54 = vadd.f32 %v11314_v46, %v8676_v28  ;;  %v11315_v13 = vld [vmem:[#allocation498_spill] sm:$0xff]  ;;  %v11316_v17 = vld [vmem:[#allocation499_spill] sm:$0xff]  ;;  %v11317_v50 = vld [vmem:[#allocation500_spill] sm:$0xff] }
 0x68a   :  { %v8936_v20 = vadd.f32 %v11315_v13, %v8680_v1  ;;  %v8940_v61 = vadd.f32 %v11316_v17, %v8684_v3  ;;  %v8944_v49 = vadd.f32 %v11317_v50, %v8688_v41  ;;  %v11318_v39 = vld [vmem:[#allocation501_spill] sm:$0xff]  ;;  %v11319_v14 = vld [vmem:[#allocation502_spill] sm:$0xff]  ;;  %v11320_v46 = vld [vmem:[#allocation503_spill] sm:$0xff] }
 0x68b   :  { %v8948_v4 = vadd.f32 %v11318_v39, %v8692_v38  ;;  %v8952_v28 = vadd.f32 %v11319_v14, %v8696_v51  ;;  %v8956_v1 = vadd.f32 %v11320_v46, %v8700_v21  ;;  %v11321_v13 = vld [vmem:[#allocation504_spill] sm:$0xff]  ;;  %v11322_v17 = vld [vmem:[#allocation505_spill] sm:$0xff]  ;;  %v11323_v50 = vld [vmem:[#allocation506_spill] sm:$0xff] }
 0x68c   :  { %v8960_v3 = vadd.f32 %v11321_v13, %v8704_v8  ;;  %v8964_v41 = vadd.f32 %v11322_v17, %v8708_v16  ;;  %v8968_v38 = vadd.f32 %v11323_v50, %v8712_v53  ;;  %v11324_v39 = vld [vmem:[#allocation507_spill] sm:$0xff]  ;;  %v11325_v14 = vld [vmem:[#allocation508_spill] sm:$0xff]  ;;  %v11326_v46 = vld [vmem:[#allocation509_spill] sm:$0xff] }
 0x68d   :  { %v8972_v51 = vadd.f32 %v11324_v39, %v8716_v55  ;;  %v8976_v21 = vadd.f32 %v11325_v14, %v8720_v25  ;;  %v8980_v8 = vadd.f32 %v11326_v46, %v8724_v44  ;;  %v11327_v13 = vld [vmem:[#allocation510_spill] sm:$0xff]  ;;  %v11328_v17 = vld [vmem:[#allocation511_spill] sm:$0xff]  ;;  %v11329_v50 = vld [vmem:[#allocation512_spill] sm:$0xff] }
 0x68e   :  { %v8984_v16 = vadd.f32 %v11327_v13, %v8728_v36  ;;  %v8988_v53 = vadd.f32 %v11328_v17, %v8732_v9  ;;  %v8992_v55 = vadd.f32 %v11329_v50, %v8736_v42  ;;  %v11330_v39 = vld [vmem:[#allocation513_spill] sm:$0xff]  ;;  %v11331_v14 = vld [vmem:[#allocation514_spill] sm:$0xff]  ;;  %v11332_v46 = vld [vmem:[#allocation515_spill] sm:$0xff] }
 0x68f   :  { %v8996_v25 = vadd.f32 %v11330_v39, %v8740_v52  ;;  %v9000_v44 = vadd.f32 %v11331_v14, %v8744_v62  ;;  %v9004_v36 = vadd.f32 %v11332_v46, %v8748_v26  ;;  %v11333_v13 = vld [vmem:[#allocation516_spill] sm:$0xff]  ;;  %v11334_v17 = vld [vmem:[#allocation517_spill] sm:$0xff]  ;;  %v11335_v50 = vld [vmem:[#allocation518_spill] sm:$0xff] }
 0x690   :  { %v9008_v9 = vadd.f32 %v11333_v13, %v8752_v58  ;;  %v9012_v42 = vadd.f32 %v11334_v17, %v8756_v33  ;;  %v9016_v52 = vadd.f32 %v11335_v50, %v8760_v11  ;;  %v11336_v39 = vld [vmem:[#allocation519_spill] sm:$0xff]  ;;  %v11337_v14 = vld [vmem:[#allocation520_spill] sm:$0xff]  ;;  %v11338_v46 = vld [vmem:[#allocation521_spill] sm:$0xff] }
 0x691   :  { %v9020_v62 = vadd.f32 %v11336_v39, %v8764_v57  ;;  %v9024_v26 = vadd.f32 %v11337_v14, %v8768_v19  ;;  %v9028_v58 = vadd.f32 %v11338_v46, %v8772_v43  ;;  %v11339_v13 = vld [vmem:[#allocation522_spill] sm:$0xff]  ;;  %v11340_v17 = vld [vmem:[#allocation523_spill] sm:$0xff]  ;;  %v11341_v50 = vld [vmem:[#allocation524_spill] sm:$0xff] }
 0x692   :  { %v9032_v33 = vadd.f32 %v11339_v13, %v8776_v2  ;;  %v9036_v11 = vadd.f32 %v11340_v17, %v8780_v31  ;;  %v9040_v57 = vadd.f32 %v11341_v50, %v8784_v12  ;;  %v11342_v39 = vld [vmem:[#allocation525_spill] sm:$0xff]  ;;  %v11343_v14 = vld [vmem:[#allocation526_spill] sm:$0xff]  ;;  %v11344_v46 = vld [vmem:[#allocation527_spill] sm:$0xff] }
 0x693   :  { %v9044_v19 = vadd.f32 %v11342_v39, %v8788_v0  ;;  %v9048_v43 = vadd.f32 %v11343_v14, %v8792_v63  ;;  %v9052_v2 = vadd.f32 %v11344_v46, %v8796_v32  ;;  %v11345_v13 = vld [vmem:[#allocation528_spill] sm:$0xff]  ;;  %v11347_v17 = vld [vmem:[#allocation529_spill] sm:$0xff]  ;;  %v11349_v50 = vld [vmem:[#allocation530_spill] sm:$0xff] }
 0x694   :  { %v9056_v31 = vadd.f32 %v11345_v13, %v8800_v40  ;;  %v9060_v12 = vadd.f32 %v11347_v17, %v8804_v5  ;;  %v9064_v0 = vadd.f32 %v11349_v50, %v8808_v48  ;;  %v11351_v39 = vld [vmem:[#allocation531_spill] sm:$0xff]  ;;  %v11353_v14 = vld [vmem:[#allocation532_spill] sm:$0xff]  ;;  %v11355_v46 = vld [vmem:[#allocation533_spill] sm:$0xff] }
 0x695   :  { %v9068_v63 = vadd.f32 %v11351_v39, %v8812_v45  ;;  %v9072_v32 = vadd.f32 %v11353_v14, %v8816_v34  ;;  %v9076_v40 = vadd.f32 %v11355_v46, %v8820_v30  ;;  %v11357_v13 = vld [vmem:[#allocation77_spill] sm:$0xff]  ;;  %v11360_v17 = vld [vmem:[#allocation115_spill] sm:$0xff]  ;;  %v11363_v50 = vld [vmem:[#allocation116_spill] sm:$0xff] }
 0x696   :  { %11346 = vst [vmem:[#allocation19_spill] sm:$0xff] %v9056_v31  ;;  %11348 = vst [vmem:[#allocation23_spill] sm:$0xff] %v9060_v12  ;;  %v11358_v31 = vld [vmem:[#allocation534_spill] sm:$0xff]  ;;  %v11361_v12 = vld [vmem:[#allocation535_spill] sm:$0xff] }
 0x697   :  { %11350 = vst [vmem:[#allocation121_spill] sm:$0xff] %v9064_v0  ;;  %11352 = vst [vmem:[#allocation122_spill] sm:$0xff] %v9068_v63  ;;  %v9080_v5 = vadd.f32 %v11358_v31, %v11357_v13  ;;  %v9084_v48 = vadd.f32 %v11361_v12, %v11360_v17  ;;  %v11364_v0 = vld [vmem:[#allocation536_spill] sm:$0xff]  ;;  %v11367_v63 = vld [vmem:[#allocation537_spill] sm:$0xff] }
 0x698   :  { %11354 = vst [vmem:[#allocation22_spill] sm:$0xff] %v9072_v32  ;;  %11356 = vst [vmem:[#allocation27_spill] sm:$0xff] %v9076_v40  ;;  %v9088_v45 = vadd.f32 %v11364_v0, %v11363_v50  ;;  %v11366_v39 = vld [vmem:[#allocation76_spill] sm:$0xff]  ;;  %v11369_v14 = vld [vmem:[#allocation79_spill] sm:$0xff] }
 0x699   :  { %11359 = vst [vmem:[#allocation123_spill] sm:$0xff] %v9080_v5  ;;  %11362 = vst [vmem:[#allocation124_spill] sm:$0xff] %v9084_v48  ;;  %v9092_v34 = vadd.f32 %v11367_v63, %v11366_v39  ;;  %v11370_v32 = vld [vmem:[#allocation538_spill] sm:$0xff]  ;;  %v11372_v46 = vld [vmem:[#allocation117_spill] sm:$0xff] }
 0x69a   :  { %11365 = vst [vmem:[#allocation25_spill] sm:$0xff] %v9088_v45  ;;  %v9096_v30 = vadd.f32 %v11370_v32, %v11369_v14  ;;  %v11373_v40 = vld [vmem:[#allocation539_spill] sm:$0xff]  ;;  %v11374_v13 = vld [vmem:[#allocation118_spill] sm:$0xff]  ;;  %v11375_v5 = vld [vmem:[#allocation540_spill] sm:$0xff] }
 0x69b   :  { %11368 = vst [vmem:[#allocation31_spill] sm:$0xff] %v9092_v34  ;;  %v9100_v31 = vadd.f32 %v11373_v40, %v11372_v46  ;;  %v9104_v12 = vadd.f32 %v11375_v5, %v11374_v13  ;;  %v11376_v17 = vld [vmem:[#allocation78_spill] sm:$0xff]  ;;  %v11377_v48 = vld [vmem:[#allocation541_spill] sm:$0xff]  ;;  %v11378_v50 = vld [vmem:[#allocation20_spill] sm:$0xff] }
 0x69c   :  { %11371 = vst [vmem:[#allocation125_spill] sm:$0xff] %v9096_v30  ;;  %v9108_v0 = vadd.f32 %v11377_v48, %v11376_v17  ;;  %v11379_v45 = vld [vmem:[#allocation542_spill] sm:$0xff]  ;;  %v11380_v39 = vld [vmem:[#allocation119_spill] sm:$0xff]  ;;  %v11382_v14 = vld [vmem:[#allocation120_spill] sm:$0xff] }
 0x69d   :  { %v9112_v63 = vadd.f32 %v11379_v45, %v11378_v50  ;;  %v11381_v34 = vld [vmem:[#allocation543_spill] sm:$0xff]  ;;  %v11383_v30 = vld [vmem:[#allocation544_spill] sm:$0xff]  ;;  %v11384_v46 = vld [vmem:[#allocation545_spill] sm:$0xff] }
 0x69e   :  { %v9116_v32 = vadd.f32 %v11381_v34, %v11380_v39  ;;  %v9120_v40 = vadd.f32 %v11383_v30, %v11382_v14  ;;  %v9124_v5 = vadd.f32 %v11384_v46, %v8868_v27  ;;  %v11385_v13 = vld [vmem:[#allocation546_spill] sm:$0xff]  ;;  %v11386_v17 = vld [vmem:[#allocation547_spill] sm:$0xff]  ;;  %v11387_v50 = vld [vmem:[#allocation548_spill] sm:$0xff] }
 0x69f   :  { %v9128_v48 = vadd.f32 %v11385_v13, %v8872_v23  ;;  %v9132_v45 = vadd.f32 %v11386_v17, %v8876_v35  ;;  %v9136_v34 = vadd.f32 %v11387_v50, %v8880_v10  ;;  %v11388_v39 = vld [vmem:[#allocation549_spill] sm:$0xff]  ;;  %v11389_v14 = vld [vmem:[#allocation550_spill] sm:$0xff]  ;;  %v11390_v46 = vld [vmem:[#allocation551_spill] sm:$0xff] }
 0x6a0   :  { %v9140_v30 = vadd.f32 %v11388_v39, %v8884_v29  ;;  %v9144_v27 = vadd.f32 %v11389_v14, %v8888_v6  ;;  %v9148_v23 = vadd.f32 %v11390_v46, %v8892_v22  ;;  %v11391_v13 = vld [vmem:[#allocation552_spill] sm:$0xff]  ;;  %v11392_v17 = vld [vmem:[#allocation553_spill] sm:$0xff]  ;;  %v11393_v50 = vld [vmem:[#allocation554_spill] sm:$0xff] }
 0x6a1   :  { %v9152_v35 = vadd.f32 %v11391_v13, %v8896_v37  ;;  %v9156_v10 = vadd.f32 %v11392_v17, %v8900_v56  ;;  %v9160_v29 = vadd.f32 %v11393_v50, %v8904_v47  ;;  %v11394_v39 = vld [vmem:[#allocation555_spill] sm:$0xff]  ;;  %v11395_v14 = vld [vmem:[#allocation556_spill] sm:$0xff]  ;;  %v11396_v46 = vld [vmem:[#allocation557_spill] sm:$0xff] }
 0x6a2   :  { %v9164_v6 = vadd.f32 %v11394_v39, %v8908_v7  ;;  %v9168_v22 = vadd.f32 %v11395_v14, %v8912_v24  ;;  %v9172_v37 = vadd.f32 %v11396_v46, %v8916_v60  ;;  %v11397_v13 = vld [vmem:[#allocation558_spill] sm:$0xff]  ;;  %v11398_v17 = vld [vmem:[#allocation559_spill] sm:$0xff]  ;;  %v11399_v50 = vld [vmem:[#allocation560_spill] sm:$0xff] }
 0x6a3   :  { %v9176_v56 = vadd.f32 %v11397_v13, %v8920_v59  ;;  %v9180_v47 = vadd.f32 %v11398_v17, %v8924_v18  ;;  %v9184_v7 = vadd.f32 %v11399_v50, %v8928_v15  ;;  %v11400_v39 = vld [vmem:[#allocation561_spill] sm:$0xff]  ;;  %v11401_v14 = vld [vmem:[#allocation562_spill] sm:$0xff]  ;;  %v11402_v46 = vld [vmem:[#allocation563_spill] sm:$0xff] }
 0x6a4   :  { %v9188_v24 = vadd.f32 %v11400_v39, %v8932_v54  ;;  %v9192_v60 = vadd.f32 %v11401_v14, %v8936_v20  ;;  %v9196_v59 = vadd.f32 %v11402_v46, %v8940_v61  ;;  %v11403_v13 = vld [vmem:[#allocation564_spill] sm:$0xff]  ;;  %v11404_v17 = vld [vmem:[#allocation565_spill] sm:$0xff]  ;;  %v11405_v50 = vld [vmem:[#allocation566_spill] sm:$0xff] }
 0x6a5   :  { %v9200_v18 = vadd.f32 %v11403_v13, %v8944_v49  ;;  %v9204_v15 = vadd.f32 %v11404_v17, %v8948_v4  ;;  %v9208_v54 = vadd.f32 %v11405_v50, %v8952_v28  ;;  %v11406_v39 = vld [vmem:[#allocation567_spill] sm:$0xff]  ;;  %v11407_v14 = vld [vmem:[#allocation568_spill] sm:$0xff]  ;;  %v11408_v46 = vld [vmem:[#allocation569_spill] sm:$0xff] }
 0x6a6   :  { %v9212_v20 = vadd.f32 %v11406_v39, %v8956_v1  ;;  %v9216_v61 = vadd.f32 %v11407_v14, %v8960_v3  ;;  %v9220_v49 = vadd.f32 %v11408_v46, %v8964_v41  ;;  %v11409_v13 = vld [vmem:[#allocation570_spill] sm:$0xff]  ;;  %v11410_v17 = vld [vmem:[#allocation571_spill] sm:$0xff]  ;;  %v11411_v50 = vld [vmem:[#allocation572_spill] sm:$0xff] }
 0x6a7   :  { %v9224_v4 = vadd.f32 %v11409_v13, %v8968_v38  ;;  %v9228_v28 = vadd.f32 %v11410_v17, %v8972_v51  ;;  %v9232_v1 = vadd.f32 %v11411_v50, %v8976_v21  ;;  %v11412_v39 = vld [vmem:[#allocation573_spill] sm:$0xff]  ;;  %v11413_v14 = vld [vmem:[#allocation574_spill] sm:$0xff]  ;;  %v11414_v46 = vld [vmem:[#allocation575_spill] sm:$0xff] }
 0x6a8   :  { %v9236_v3 = vadd.f32 %v11412_v39, %v8980_v8  ;;  %v9240_v41 = vadd.f32 %v11413_v14, %v8984_v16  ;;  %v9244_v38 = vadd.f32 %v11414_v46, %v8988_v53  ;;  %v11415_v13 = vld [vmem:[#allocation576_spill] sm:$0xff]  ;;  %v11416_v17 = vld [vmem:[#allocation577_spill] sm:$0xff]  ;;  %v11417_v50 = vld [vmem:[#allocation578_spill] sm:$0xff] }
 0x6a9   :  { %v9248_v51 = vadd.f32 %v11415_v13, %v8992_v55  ;;  %v9252_v21 = vadd.f32 %v11416_v17, %v8996_v25  ;;  %v9256_v8 = vadd.f32 %v11417_v50, %v9000_v44  ;;  %v11418_v39 = vld [vmem:[#allocation579_spill] sm:$0xff]  ;;  %v11419_v14 = vld [vmem:[#allocation580_spill] sm:$0xff]  ;;  %v11420_v46 = vld [vmem:[#allocation581_spill] sm:$0xff] }
 0x6aa   :  { %v9260_v16 = vadd.f32 %v11418_v39, %v9004_v36  ;;  %v9264_v53 = vadd.f32 %v11419_v14, %v9008_v9  ;;  %v9268_v55 = vadd.f32 %v11420_v46, %v9012_v42  ;;  %v11421_v13 = vld [vmem:[#allocation582_spill] sm:$0xff]  ;;  %v11422_v17 = vld [vmem:[#allocation583_spill] sm:$0xff]  ;;  %v11423_v50 = vld [vmem:[#allocation584_spill] sm:$0xff] }
 0x6ab   :  { %v9272_v25 = vadd.f32 %v11421_v13, %v9016_v52  ;;  %v9276_v44 = vadd.f32 %v11422_v17, %v9020_v62  ;;  %v9280_v36 = vadd.f32 %v11423_v50, %v9024_v26  ;;  %v11424_v39 = vld [vmem:[#allocation585_spill] sm:$0xff]  ;;  %v11425_v14 = vld [vmem:[#allocation586_spill] sm:$0xff]  ;;  %v11427_v46 = vld [vmem:[#allocation587_spill] sm:$0xff] }
 0x6ac   :  { %v9284_v9 = vadd.f32 %v11424_v39, %v9028_v58  ;;  %v9288_v42 = vadd.f32 %v11425_v14, %v9032_v33  ;;  %v9292_v52 = vadd.f32 %v11427_v46, %v9036_v11  ;;  %v11429_v13 = vld [vmem:[#allocation588_spill] sm:$0xff]  ;;  %v11431_v17 = vld [vmem:[#allocation589_spill] sm:$0xff]  ;;  %v11433_v50 = vld [vmem:[#allocation590_spill] sm:$0xff] }
 0x6ad   :  { %v9296_v62 = vadd.f32 %v11429_v13, %v9040_v57  ;;  %v9300_v26 = vadd.f32 %v11431_v17, %v9044_v19  ;;  %v9304_v58 = vadd.f32 %v11433_v50, %v9048_v43  ;;  %v11435_v39 = vld [vmem:[#allocation591_spill] sm:$0xff]  ;;  %v11443_v13 = vld [vmem:[#allocation121_spill] sm:$0xff]  ;;  %v11446_v17 = vld [vmem:[#allocation122_spill] sm:$0xff] }
 0x6ae   :  { %11426 = vst [vmem:[#allocation126_spill] sm:$0xff] %v9288_v42  ;;  %11428 = vst [vmem:[#allocation29_spill] sm:$0xff] %v9292_v52  ;;  %v9308_v33 = vadd.f32 %v11435_v39, %v9052_v2  ;;  %v11437_v14 = vld [vmem:[#allocation19_spill] sm:$0xff]  ;;  %v11438_v42 = vld [vmem:[#allocation592_spill] sm:$0xff] }
 0x6af   :  { %11430 = vst [vmem:[#allocation35_spill] sm:$0xff] %v9296_v62  ;;  %11432 = vst [vmem:[#allocation127_spill] sm:$0xff] %v9300_v26  ;;  %v9312_v11 = vadd.f32 %v11438_v42, %v11437_v14  ;;  %v11440_v46 = vld [vmem:[#allocation23_spill] sm:$0xff]  ;;  %v11441_v52 = vld [vmem:[#allocation593_spill] sm:$0xff] }
 0x6b0   :  { %11434 = vst [vmem:[#allocation128_spill] sm:$0xff] %v9304_v58  ;;  %11436 = vst [vmem:[#allocation33_spill] sm:$0xff] %v9308_v33  ;;  %v9316_v57 = vadd.f32 %v11441_v52, %v11440_v46  ;;  %v11444_v62 = vld [vmem:[#allocation594_spill] sm:$0xff]  ;;  %v11447_v26 = vld [vmem:[#allocation595_spill] sm:$0xff] }
 0x6b1   :  { %11439 = vst [vmem:[#allocation39_spill] sm:$0xff] %v9312_v11  ;;  %v9320_v19 = vadd.f32 %v11444_v62, %v11443_v13  ;;  %v9324_v43 = vadd.f32 %v11447_v26, %v11446_v17  ;;  %v11449_v50 = vld [vmem:[#allocation22_spill] sm:$0xff]  ;;  %v11450_v58 = vld [vmem:[#allocation596_spill] sm:$0xff]  ;;  %v11452_v39 = vld [vmem:[#allocation27_spill] sm:$0xff] }
 0x6b2   :  { %11442 = vst [vmem:[#allocation129_spill] sm:$0xff] %v9316_v57  ;;  %v9328_v2 = vadd.f32 %v11450_v58, %v11449_v50  ;;  %v11453_v33 = vld [vmem:[#allocation597_spill] sm:$0xff]  ;;  %v11454_v14 = vld [vmem:[#allocation123_spill] sm:$0xff]  ;;  %v11455_v11 = vld [vmem:[#allocation598_spill] sm:$0xff] }
 0x6b3   :  { %11445 = vst [vmem:[#allocation130_spill] sm:$0xff] %v9320_v19  ;;  %11448 = vst [vmem:[#allocation37_spill] sm:$0xff] %v9324_v43  ;;  %v9332_v42 = vadd.f32 %v11453_v33, %v11452_v39  ;;  %v9336_v52 = vadd.f32 %v11455_v11, %v11454_v14  ;;  %v11456_v46 = vld [vmem:[#allocation124_spill] sm:$0xff]  ;;  %v11457_v57 = vld [vmem:[#allocation599_spill] sm:$0xff] }
 0x6b4   :  { %11451 = vst [vmem:[#allocation43_spill] sm:$0xff] %v9328_v2  ;;  %v9340_v62 = vadd.f32 %v11457_v57, %v11456_v46  ;;  %v11458_v13 = vld [vmem:[#allocation25_spill] sm:$0xff]  ;;  %v11459_v19 = vld [vmem:[#allocation600_spill] sm:$0xff]  ;;  %v11460_v17 = vld [vmem:[#allocation31_spill] sm:$0xff] }
 0x6b5   :  { %v9344_v26 = vadd.f32 %v11459_v19, %v11458_v13  ;;  %v11461_v43 = vld [vmem:[#allocation601_spill] sm:$0xff]  ;;  %v11463_v2 = vld [vmem:[#allocation602_spill] sm:$0xff]  ;;  %v11464_v39 = vld [vmem:[#allocation603_spill] sm:$0xff] }
 0x6b6   :  { %v9348_v58 = vadd.f32 %v11461_v43, %v11460_v17  ;;  %v11462_v50 = vld [vmem:[#allocation125_spill] sm:$0xff]  ;;  %v9356_v11 = vadd.f32 %v11464_v39, %v9100_v31  ;;  %v11465_v14 = vld [vmem:[#allocation604_spill] sm:$0xff]  ;;  %v11467_v13 = vld [vmem:[#allocation606_spill] sm:$0xff] }
 0x6b7   :  { %v9352_v33 = vadd.f32 %v11463_v2, %v11462_v50  ;;  %v9360_v57 = vadd.f32 %v11465_v14, %v9104_v12  ;;  %v11466_v46 = vld [vmem:[#allocation605_spill] sm:$0xff]  ;;  %v9368_v43 = vadd.f32 %v11467_v13, %v9112_v63  ;;  %v11468_v17 = vld [vmem:[#allocation607_spill] sm:$0xff]  ;;  %v11469_v50 = vld [vmem:[#allocation608_spill] sm:$0xff] }
 0x6b8   :  { %v9364_v19 = vadd.f32 %v11466_v46, %v9108_v0  ;;  %v9372_v2 = vadd.f32 %v11468_v17, %v9116_v32  ;;  %v9376_v31 = vadd.f32 %v11469_v50, %v9120_v40  ;;  %v11470_v39 = vld [vmem:[#allocation609_spill] sm:$0xff]  ;;  %v11471_v14 = vld [vmem:[#allocation610_spill] sm:$0xff]  ;;  %v11472_v46 = vld [vmem:[#allocation611_spill] sm:$0xff] }
 0x6b9   :  { %v9380_v12 = vadd.f32 %v11470_v39, %v9124_v5  ;;  %v9384_v0 = vadd.f32 %v11471_v14, %v9128_v48  ;;  %v9388_v63 = vadd.f32 %v11472_v46, %v9132_v45  ;;  %v11473_v13 = vld [vmem:[#allocation612_spill] sm:$0xff]  ;;  %v11474_v17 = vld [vmem:[#allocation613_spill] sm:$0xff]  ;;  %v11475_v50 = vld [vmem:[#allocation614_spill] sm:$0xff] }
 0x6ba   :  { %v9392_v32 = vadd.f32 %v11473_v13, %v9136_v34  ;;  %v9396_v40 = vadd.f32 %v11474_v17, %v9140_v30  ;;  %v9400_v5 = vadd.f32 %v11475_v50, %v9144_v27  ;;  %v11476_v39 = vld [vmem:[#allocation615_spill] sm:$0xff]  ;;  %v11477_v14 = vld [vmem:[#allocation616_spill] sm:$0xff]  ;;  %v11478_v46 = vld [vmem:[#allocation617_spill] sm:$0xff] }
 0x6bb   :  { %v9404_v48 = vadd.f32 %v11476_v39, %v9148_v23  ;;  %v9408_v45 = vadd.f32 %v11477_v14, %v9152_v35  ;;  %v9412_v34 = vadd.f32 %v11478_v46, %v9156_v10  ;;  %v11479_v13 = vld [vmem:[#allocation618_spill] sm:$0xff]  ;;  %v11481_v17 = vld [vmem:[#allocation619_spill] sm:$0xff]  ;;  %v11482_v50 = vld [vmem:[#allocation620_spill] sm:$0xff] }
 0x6bc   :  { %v9416_v30 = vadd.f32 %v11479_v13, %v9160_v29  ;;  %v9420_v27 = vadd.f32 %v11481_v17, %v9164_v6  ;;  %v9424_v23 = vadd.f32 %v11482_v50, %v9168_v22  ;;  %v11483_v39 = vld [vmem:[#allocation621_spill] sm:$0xff]  ;;  %v11484_v14 = vld [vmem:[#allocation622_spill] sm:$0xff]  ;;  %v11485_v46 = vld [vmem:[#allocation623_spill] sm:$0xff] }
 0x6bd   :  { %v9428_v35 = vadd.f32 %v11483_v39, %v9172_v37  ;;  %v9432_v10 = vadd.f32 %v11484_v14, %v9176_v56  ;;  %v9436_v29 = vadd.f32 %v11485_v46, %v9180_v47  ;;  %v11486_v13 = vld [vmem:[#allocation624_spill] sm:$0xff]  ;;  %v11487_v17 = vld [vmem:[#allocation625_spill] sm:$0xff]  ;;  %v11488_v50 = vld [vmem:[#allocation626_spill] sm:$0xff] }
 0x6be   :  { %11480 = vst [vmem:[#allocation131_spill] sm:$0xff] %v9416_v30  ;;  %v9440_v6 = vadd.f32 %v11486_v13, %v9184_v7  ;;  %v9444_v22 = vadd.f32 %v11487_v17, %v9188_v24  ;;  %v9448_v37 = vadd.f32 %v11488_v50, %v9192_v60  ;;  %v11489_v39 = vld [vmem:[#allocation627_spill] sm:$0xff]  ;;  %v11490_v14 = vld [vmem:[#allocation628_spill] sm:$0xff]  ;;  %v11491_v46 = vld [vmem:[#allocation629_spill] sm:$0xff] }
 0x6bf   :  { %v9452_v56 = vadd.f32 %v11489_v39, %v9196_v59  ;;  %v9456_v47 = vadd.f32 %v11490_v14, %v9200_v18  ;;  %v9460_v7 = vadd.f32 %v11491_v46, %v9204_v15  ;;  %v11492_v13 = vld [vmem:[#allocation630_spill] sm:$0xff]  ;;  %v11493_v17 = vld [vmem:[#allocation631_spill] sm:$0xff]  ;;  %v11494_v50 = vld [vmem:[#allocation632_spill] sm:$0xff] }
 0x6c0   :  { %v9464_v24 = vadd.f32 %v11492_v13, %v9208_v54  ;;  %v9468_v60 = vadd.f32 %v11493_v17, %v9212_v20  ;;  %v9472_v59 = vadd.f32 %v11494_v50, %v9216_v61  ;;  %v11495_v39 = vld [vmem:[#allocation633_spill] sm:$0xff]  ;;  %v11496_v14 = vld [vmem:[#allocation634_spill] sm:$0xff]  ;;  %v11497_v46 = vld [vmem:[#allocation635_spill] sm:$0xff] }
 0x6c1   :  { %v9476_v18 = vadd.f32 %v11495_v39, %v9220_v49  ;;  %v9480_v15 = vadd.f32 %v11496_v14, %v9224_v4  ;;  %v9484_v54 = vadd.f32 %v11497_v46, %v9228_v28  ;;  %v11498_v13 = vld [vmem:[#allocation636_spill] sm:$0xff]  ;;  %v11499_v17 = vld [vmem:[#allocation637_spill] sm:$0xff]  ;;  %v11500_v50 = vld [vmem:[#allocation638_spill] sm:$0xff] }
 0x6c2   :  { %v9488_v20 = vadd.f32 %v11498_v13, %v9232_v1  ;;  %v9492_v61 = vadd.f32 %v11499_v17, %v9236_v3  ;;  %v9496_v49 = vadd.f32 %v11500_v50, %v9240_v41  ;;  %v11501_v39 = vld [vmem:[#allocation639_spill] sm:$0xff]  ;;  %v11502_v14 = vld [vmem:[#allocation640_spill] sm:$0xff]  ;;  %v11503_v46 = vld [vmem:[#allocation641_spill] sm:$0xff] }
 0x6c3   :  { %v9500_v4 = vadd.f32 %v11501_v39, %v9244_v38  ;;  %v9504_v28 = vadd.f32 %v11502_v14, %v9248_v51  ;;  %v9508_v1 = vadd.f32 %v11503_v46, %v9252_v21  ;;  %v11504_v13 = vld [vmem:[#allocation642_spill] sm:$0xff]  ;;  %v11505_v17 = vld [vmem:[#allocation643_spill] sm:$0xff]  ;;  %v11506_v50 = vld [vmem:[#allocation644_spill] sm:$0xff] }
 0x6c4   :  { %v9512_v3 = vadd.f32 %v11504_v13, %v9256_v8  ;;  %v9516_v41 = vadd.f32 %v11505_v17, %v9260_v16  ;;  %v9520_v38 = vadd.f32 %v11506_v50, %v9264_v53  ;;  %v11507_v39 = vld [vmem:[#allocation645_spill] sm:$0xff]  ;;  %v11509_v14 = vld [vmem:[#allocation646_spill] sm:$0xff]  ;;  %v11511_v46 = vld [vmem:[#allocation647_spill] sm:$0xff] }
 0x6c5   :  { %v9524_v51 = vadd.f32 %v11507_v39, %v9268_v55  ;;  %v9528_v21 = vadd.f32 %v11509_v14, %v9272_v25  ;;  %v9532_v8 = vadd.f32 %v11511_v46, %v9276_v44  ;;  %v11513_v13 = vld [vmem:[#allocation648_spill] sm:$0xff]  ;;  %v11515_v17 = vld [vmem:[#allocation649_spill] sm:$0xff]  ;;  %v11517_v50 = vld [vmem:[#allocation126_spill] sm:$0xff] }
 0x6c6   :  { %v9536_v16 = vadd.f32 %v11513_v13, %v9280_v36  ;;  %v9540_v53 = vadd.f32 %v11515_v17, %v9284_v9  ;;  %v11518_v30 = vld [vmem:[#allocation650_spill] sm:$0xff]  ;;  %v11520_v39 = vld [vmem:[#allocation29_spill] sm:$0xff]  ;;  %v11523_v14 = vld [vmem:[#allocation35_spill] sm:$0xff] }
 0x6c7   :  { %11508 = vst [vmem:[#allocation132_spill] sm:$0xff] %v9524_v51  ;;  %11510 = vst [vmem:[#allocation41_spill] sm:$0xff] %v9528_v21  ;;  %v9544_v55 = vadd.f32 %v11518_v30, %v11517_v50  ;;  %v11521_v51 = vld [vmem:[#allocation651_spill] sm:$0xff]  ;;  %v11524_v21 = vld [vmem:[#allocation652_spill] sm:$0xff] }
 0x6c8   :  { %11512 = vst [vmem:[#allocation47_spill] sm:$0xff] %v9532_v8  ;;  %11514 = vst [vmem:[#allocation133_spill] sm:$0xff] %v9536_v16  ;;  %v9548_v25 = vadd.f32 %v11521_v51, %v11520_v39  ;;  %v9552_v44 = vadd.f32 %v11524_v21, %v11523_v14  ;;  %v11526_v46 = vld [vmem:[#allocation127_spill] sm:$0xff]  ;;  %v11527_v8 = vld [vmem:[#allocation653_spill] sm:$0xff] }
 0x6c9   :  { %11516 = vst [vmem:[#allocation134_spill] sm:$0xff] %v9540_v53  ;;  %11519 = vst [vmem:[#allocation45_spill] sm:$0xff] %v9544_v55  ;;  %v9556_v36 = vadd.f32 %v11527_v8, %v11526_v46  ;;  %v11529_v13 = vld [vmem:[#allocation128_spill] sm:$0xff]  ;;  %v11530_v16 = vld [vmem:[#allocation654_spill] sm:$0xff] }
 0x6ca   :  { %11522 = vst [vmem:[#allocation51_spill] sm:$0xff] %v9548_v25  ;;  %11525 = vst [vmem:[#allocation135_spill] sm:$0xff] %v9552_v44  ;;  %v9560_v9 = vadd.f32 %v11530_v16, %v11529_v13  ;;  %v11532_v17 = vld [vmem:[#allocation33_spill] sm:$0xff]  ;;  %v11533_v53 = vld [vmem:[#allocation655_spill] sm:$0xff] }
 0x6cb   :  { %11528 = vst [vmem:[#allocation136_spill] sm:$0xff] %v9556_v36  ;;  %v9564_v30 = vadd.f32 %v11533_v53, %v11532_v17  ;;  %v11534_v50 = vld [vmem:[#allocation39_spill] sm:$0xff]  ;;  %v11535_v55 = vld [vmem:[#allocation656_spill] sm:$0xff]  ;;  %v11536_v39 = vld [vmem:[#allocation129_spill] sm:$0xff] }
 0x6cc   :  { %11531 = vst [vmem:[#allocation49_spill] sm:$0xff] %v9560_v9  ;;  %v9568_v51 = vadd.f32 %v11535_v55, %v11534_v50  ;;  %v11537_v25 = vld [vmem:[#allocation657_spill] sm:$0xff]  ;;  %v11538_v14 = vld [vmem:[#allocation130_spill] sm:$0xff]  ;;  %v11541_v36 = vld [vmem:[#allocation659_spill] sm:$0xff] }
 0x6cd   :  { %v9572_v21 = vadd.f32 %v11537_v25, %v11536_v39  ;;  %v11539_v44 = vld [vmem:[#allocation658_spill] sm:$0xff]  ;;  %v11540_v46 = vld [vmem:[#allocation37_spill] sm:$0xff]  ;;  %v11542_v13 = vld [vmem:[#allocation43_spill] sm:$0xff] }
 0x6ce   :  { %v9576_v8 = vadd.f32 %v11539_v44, %v11538_v14  ;;  %v9580_v16 = vadd.f32 %v11541_v36, %v11540_v46  ;;  %v11543_v9 = vld [vmem:[#allocation660_spill] sm:$0xff]  ;;  %v11544_v17 = vld [vmem:[#allocation661_spill] sm:$0xff]  ;;  %v11545_v50 = vld [vmem:[#allocation662_spill] sm:$0xff] }
 0x6cf   :  { %v9584_v53 = vadd.f32 %v11543_v9, %v11542_v13  ;;  %v9588_v55 = vadd.f32 %v11544_v17, %v9332_v42  ;;  %v9592_v25 = vadd.f32 %v11545_v50, %v9336_v52  ;;  %v11546_v39 = vld [vmem:[#allocation663_spill] sm:$0xff]  ;;  %v11547_v14 = vld [vmem:[#allocation664_spill] sm:$0xff]  ;;  %v11548_v46 = vld [vmem:[#allocation665_spill] sm:$0xff] }
 0x6d0   :  { %v9596_v44 = vadd.f32 %v11546_v39, %v9340_v62  ;;  %v9600_v36 = vadd.f32 %v11547_v14, %v9344_v26  ;;  %v9604_v9 = vadd.f32 %v11548_v46, %v9348_v58  ;;  %v11549_v13 = vld [vmem:[#allocation666_spill] sm:$0xff]  ;;  %v11550_v17 = vld [vmem:[#allocation667_spill] sm:$0xff]  ;;  %v11551_v50 = vld [vmem:[#allocation668_spill] sm:$0xff] }
 0x6d1   :  { %v9608_v42 = vadd.f32 %v11549_v13, %v9352_v33  ;;  %v9612_v52 = vadd.f32 %v11550_v17, %v9356_v11  ;;  %v9616_v62 = vadd.f32 %v11551_v50, %v9360_v57  ;;  %v11552_v39 = vld [vmem:[#allocation669_spill] sm:$0xff]  ;;  %v11553_v14 = vld [vmem:[#allocation670_spill] sm:$0xff]  ;;  %v11554_v46 = vld [vmem:[#allocation671_spill] sm:$0xff] }
 0x6d2   :  { %v9620_v26 = vadd.f32 %v11552_v39, %v9364_v19  ;;  %v9624_v58 = vadd.f32 %v11553_v14, %v9368_v43  ;;  %v9628_v33 = vadd.f32 %v11554_v46, %v9372_v2  ;;  %v11555_v13 = vld [vmem:[#allocation672_spill] sm:$0xff]  ;;  %v11556_v17 = vld [vmem:[#allocation673_spill] sm:$0xff]  ;;  %v11557_v50 = vld [vmem:[#allocation674_spill] sm:$0xff] }
 0x6d3   :  { %v9632_v11 = vadd.f32 %v11555_v13, %v9376_v31  ;;  %v9636_v57 = vadd.f32 %v11556_v17, %v9380_v12  ;;  %v9640_v19 = vadd.f32 %v11557_v50, %v9384_v0  ;;  %v11559_v39 = vld [vmem:[#allocation675_spill] sm:$0xff]  ;;  %v11561_v14 = vld [vmem:[#allocation676_spill] sm:$0xff]  ;;  %v11563_v46 = vld [vmem:[#allocation677_spill] sm:$0xff] }
 0x6d4   :  { %v9644_v43 = vadd.f32 %v11559_v39, %v9388_v63  ;;  %v9648_v2 = vadd.f32 %v11561_v14, %v9392_v32  ;;  %v9652_v31 = vadd.f32 %v11563_v46, %v9396_v40  ;;  %v11565_v13 = vld [vmem:[#allocation678_spill] sm:$0xff]  ;;  %v11567_v17 = vld [vmem:[#allocation679_spill] sm:$0xff]  ;;  %v11569_v50 = vld [vmem:[#allocation680_spill] sm:$0xff] }
 0x6d5   :  { %11558 = vst [vmem:[#allocation55_spill] sm:$0xff] %v9640_v19  ;;  %v9656_v12 = vadd.f32 %v11565_v13, %v9400_v5  ;;  %v9660_v0 = vadd.f32 %v11567_v17, %v9404_v48  ;;  %v9664_v63 = vadd.f32 %v11569_v50, %v9408_v45  ;;  %v11571_v39 = vld [vmem:[#allocation681_spill] sm:$0xff]  ;;  %v11573_v14 = vld [vmem:[#allocation682_spill] sm:$0xff]  ;;  %v11574_v46 = vld [vmem:[#allocation683_spill] sm:$0xff] }
 0x6d6   :  { %11560 = vst [vmem:[#allocation137_spill] sm:$0xff] %v9644_v43  ;;  %11562 = vst [vmem:[#allocation138_spill] sm:$0xff] %v9648_v2  ;;  %v9668_v32 = vadd.f32 %v11571_v39, %v9412_v34  ;;  %v2641_v40 = vadd.f32 %v11573_v14, %v9420_v27  ;;  %v11575_v5 = vld [vmem:[#allocation684_spill] sm:$0xff]  ;;  %v11576_v48 = vld [vmem:[#allocation685_spill] sm:$0xff] }
 0x6d7   :  { %11564 = vst [vmem:[#allocation53_spill] sm:$0xff] %v9652_v31  ;;  %11566 = vst [vmem:[#allocation59_spill] sm:$0xff] %v9656_v12  ;;  %v2642_v31 = vadd.f32 %v11574_v46, %v9424_v23  ;;  %v2643_v13 = vadd.f32 %v11575_v5, %v9428_v35  ;;  %v2644_v17 = vadd.f32 %v11576_v48, %v9432_v10  ;;  %v11578_v50 = vld [vmem:[#allocation687_spill] sm:$0xff]  ;;  %v11579_v34 = vld [vmem:[#allocation688_spill] sm:$0xff] }
 0x6d8   :  { %11568 = vst [vmem:[#allocation139_spill] sm:$0xff] %v9660_v0  ;;  %11570 = vst [vmem:[#allocation140_spill] sm:$0xff] %v9664_v63  ;;  %v11577_v0 = vld [vmem:[#allocation686_spill] sm:$0xff]  ;;  %v2646_v63 = vadd.f32 %v11578_v50, %v9440_v6  ;;  %v2647_v39 = vadd.f32 %v11579_v34, %v9444_v22  ;;  %v11580_v27 = vld [vmem:[#allocation689_spill] sm:$0xff] }
 0x6d9   :  { %11572 = vst [vmem:[#allocation57_spill] sm:$0xff] %v9668_v32  ;;  %v2645_v45 = vadd.f32 %v11577_v0, %v9436_v29  ;;  %v2648_v14 = vadd.f32 %v11580_v27, %v9448_v37  ;;  %v11581_v23 = vld [vmem:[#allocation690_spill] sm:$0xff]  ;;  %v11582_v35 = vld [vmem:[#allocation691_spill] sm:$0xff]  ;;  %v11583_v10 = vld [vmem:[#allocation692_spill] sm:$0xff] }
 0x6da   :  { %v9688_v46 = vadd.f32 %v11581_v23, %v9452_v56  ;;  %v9692_v5 = vadd.f32 %v11582_v35, %v9456_v47  ;;  %v9696_v29 = vadd.f32 %v11583_v10, %v9460_v7  ;;  %v11584_v6 = vld [vmem:[#allocation693_spill] sm:$0xff]  ;;  %v11585_v22 = vld [vmem:[#allocation694_spill] sm:$0xff]  ;;  %v11586_v37 = vld [vmem:[#allocation695_spill] sm:$0xff] }
 0x6db   :  { %v9700_v0 = vadd.f32 %v11584_v6, %v9464_v24  ;;  %v9704_v48 = vadd.f32 %v11585_v22, %v9468_v60  ;;  %v9708_v56 = vadd.f32 %v11586_v37, %v9472_v59  ;;  %v11587_v50 = vld [vmem:[#allocation696_spill] sm:$0xff]  ;;  %v11588_v34 = vld [vmem:[#allocation697_spill] sm:$0xff]  ;;  %v11589_v27 = vld [vmem:[#allocation698_spill] sm:$0xff] }
 0x6dc   :  { %v9712_v47 = vadd.f32 %v11587_v50, %v9476_v18  ;;  %v9716_v7 = vadd.f32 %v11588_v34, %v9480_v15  ;;  %v9720_v24 = vadd.f32 %v11589_v27, %v9484_v54  ;;  %v11590_v23 = vld [vmem:[#allocation699_spill] sm:$0xff]  ;;  %v11591_v35 = vld [vmem:[#allocation700_spill] sm:$0xff]  ;;  %v11592_v10 = vld [vmem:[#allocation701_spill] sm:$0xff] }
 0x6dd   :  { %v9724_v60 = vadd.f32 %v11590_v23, %v9488_v20  ;;  %v9728_v59 = vadd.f32 %v11591_v35, %v9492_v61  ;;  %v9732_v18 = vadd.f32 %v11592_v10, %v9496_v49  ;;  %v11593_v6 = vld [vmem:[#allocation702_spill] sm:$0xff]  ;;  %v11594_v22 = vld [vmem:[#allocation703_spill] sm:$0xff]  ;;  %v11595_v37 = vld [vmem:[#allocation704_spill] sm:$0xff] }
 0x6de   :  { %v9736_v15 = vadd.f32 %v11593_v6, %v9500_v4  ;;  %v9740_v54 = vadd.f32 %v11594_v22, %v9504_v28  ;;  %v9744_v20 = vadd.f32 %v11595_v37, %v9508_v1  ;;  %v11596_v50 = vld [vmem:[#allocation705_spill] sm:$0xff]  ;;  %v11598_v34 = vld [vmem:[#allocation706_spill] sm:$0xff]  ;;  %v11600_v27 = vld [vmem:[#allocation707_spill] sm:$0xff] }
 0x6df   :  { %v9748_v61 = vadd.f32 %v11596_v50, %v9512_v3  ;;  %v9752_v49 = vadd.f32 %v11598_v34, %v9516_v41  ;;  %v9756_v4 = vadd.f32 %v11600_v27, %v9520_v38  ;;  %v11602_v23 = vld [vmem:[#allocation132_spill] sm:$0xff]  ;;  %v11605_v10 = vld [vmem:[#allocation41_spill] sm:$0xff]  ;;  %v11608_v22 = vld [vmem:[#allocation47_spill] sm:$0xff] }
 0x6e0   :  { %v11603_v35 = vld [vmem:[#allocation708_spill] sm:$0xff]  ;;  %v11606_v6 = vld [vmem:[#allocation709_spill] sm:$0xff]  ;;  %v11609_v37 = vld [vmem:[#allocation710_spill] sm:$0xff] }
 0x6e1   :  { %11597 = vst [vmem:[#allocation141_spill] sm:$0xff] %v9748_v61  ;;  %11599 = vst [vmem:[#allocation142_spill] sm:$0xff] %v9752_v49  ;;  %v9760_v28 = vadd.f32 %v11603_v35, %v11602_v23  ;;  %v9764_v1 = vadd.f32 %v11606_v6, %v11605_v10  ;;  %v9768_v3 = vadd.f32 %v11609_v37, %v11608_v22  ;;  %v11611_v50 = vld [vmem:[#allocation133_spill] sm:$0xff]  ;;  %v11612_v32 = vld [vmem:[#allocation711_spill] sm:$0xff] }
 0x6e2   :  { %11601 = vst [vmem:[#allocation143_spill] sm:$0xff] %v9756_v4  ;;  %v9772_v41 = vadd.f32 %v11612_v32, %v11611_v50  ;;  %v11614_v34 = vld [vmem:[#allocation134_spill] sm:$0xff]  ;;  %v11615_v12 = vld [vmem:[#allocation712_spill] sm:$0xff]  ;;  %v11617_v23 = vld [vmem:[#allocation51_spill] sm:$0xff] }
 0x6e3   :  { %11604 = vst [vmem:[#allocation144_spill] sm:$0xff] %v9760_v28  ;;  %11607 = vst [vmem:[#allocation145_spill] sm:$0xff] %v9764_v1  ;;  %v9776_v38 = vadd.f32 %v11615_v12, %v11614_v34  ;;  %v9778_v27 = vld [vmem:[#allocation7] ss:$0 sm:$0xff]  ;;  %v11618_v28 = vld [vmem:[#allocation135_spill] sm:$0xff] }
 0x6e4   :  { %11610 = vst [vmem:[#allocation146_spill] sm:$0xff] %v9768_v3  ;;  %11613 = vst [vmem:[#allocation147_spill] sm:$0xff] %v9772_v41  ;;  %v2673_v35 = vadd.f32 %v9778_v27, %v11617_v23  ;;  %v2674_v10 = vadd.f32 %v9778_v27, %v11618_v28  ;;  %v2705_v6 = vadd.f32 %v9778_v27, %v2641_v40  ;;  %v11619_v37 = vld [vmem:[#allocation136_spill] sm:$0xff]  ;;  %v11620_v3 = vld [vmem:[#allocation49_spill] sm:$0xff] }
 0x6e5   :  { %11616 = vst [vmem:[#allocation148_spill] sm:$0xff] %v9776_v38  ;;  %v2706_v22 = vadd.f32 %v9778_v27, %v2642_v31  ;;  %v2675_v32 = vadd.f32 %v9778_v27, %v11619_v37  ;;  %v2707_v50 = vadd.f32 %v9778_v27, %v2643_v13  ;;  %v2676_v1 = vadd.f32 %v9778_v27, %v11620_v3  ;;  %v2544_v4 = vld [vmem:[#allocation11 + $0x9f8] sm:$0xff]  ;;  %v11622_v3 = vld [vmem:[#allocation83_spill] sm:$0xff] }
 0x6e6   :  { %v2737_v41 = vmax.f32 %v2673_v35, 0.0  ;;  %v2738_v12 = vmax.f32 %v2674_v10, 0.0  ;;  %v2769_v34 = vmax.f32 %v2705_v6, 0.0  ;;  %v2708_v23 = vadd.f32 %v9778_v27, %v2644_v17  ;;  %v11621_v10 = vld [vmem:[#allocation82_spill] sm:$0xff] }
 0x6e7   :  { %v2770_v38 = vmax.f32 %v2706_v22, 0.0  ;;  %v2677_v40 = vadd.f32 %v9778_v27, %v9564_v30  ;;  %v2709_v31 = vadd.f32 %v9778_v27, %v2645_v45  ;;  %v2739_v28 = vmax.f32 %v2675_v32, 0.0  ;;  %v11624_v32 = vld [vmem:[#allocation45_spill] sm:$0xff] }
 0x6e8   :  { %v2771_v2 = vmax.f32 %v2707_v50, 0.0  ;;  %v2801_v37 = vadd.f32 %v2738_v12, %v2737_v41  ;;  %v2678_v13 = vadd.f32 %v9778_v27, %v9568_v51  ;;  %v2710_v35 = vadd.f32 %v9778_v27, %v2646_v63  ;;  %v11623_v41 = vld [vmem:[#allocation131_spill] sm:$0xff] }
 0x6e9   :  { %v2838_v49 = vadd.f32 %v2770_v38, %v2769_v34  ;;  %v2576_v6 = vmul.f32 %v2544_v4, %v11621_v10  ;;  %v2608_v22 = vmul.f32 %v2544_v4, %v11622_v3  ;;  %v2740_v17 = vmax.f32 %v2676_v1, 0.0 }
 0x6ea   :  { %v2772_v43 = vmax.f32 %v2708_v23, 0.0  ;;  %v2802_v61 = vadd.f32 %v2801_v37, %v2739_v28  ;;  %v2679_v30 = vadd.f32 %v9778_v27, %v9572_v21  ;;  %v2711_v45 = vadd.f32 %v9778_v27, %v2647_v39 }
 0x6eb   :  { %v2839_v19 = vadd.f32 %v2838_v49, %v2771_v2  ;;  %v9804_v38 = vadd.f32 %v2576_v6, %v11623_v41  ;;  %v9807_v51 = vadd.f32 %v2608_v22, %v11624_v32  ;;  %v2741_v63 = vmax.f32 %v2677_v40, 0.0 }
 0x6ec   :  { %v2773_v50 = vmax.f32 %v2709_v31, 0.0  ;;  %v2803_v12 = vadd.f32 %v2802_v61, %v2740_v17  ;;  %v2680_v4 = vadd.f32 %v9778_v27, %v9576_v8  ;;  %v2712_v2 = vadd.f32 %v9778_v27, %v2648_v14 }
 0x6ed   :  { %v2840_v34 = vadd.f32 %v2839_v19, %v2772_v43  ;;  %v2742_v49 = vmax.f32 %v2678_v13, 0.0  ;;  %v2774_v1 = vmax.f32 %v2710_v35, 0.0  ;;  %v2681_v39 = vadd.f32 %v9778_v27, %v9580_v16 }
 0x6ee   :  { %v2804_v21 = vadd.f32 %v2803_v12, %v2741_v63  ;;  %v2713_v28 = vadd.f32 %v9778_v27, %v9688_v46  ;;  %v2743_v37 = vmax.f32 %v2679_v30, 0.0  ;;  %v2775_v40 = vmax.f32 %v2711_v45, 0.0 }
 0x6ef   :  { %v2841_v23 = vadd.f32 %v2840_v34, %v2773_v50  ;;  %v2682_v19 = vadd.f32 %v9778_v27, %v9584_v53  ;;  %v2714_v8 = vadd.f32 %v9778_v27, %v9692_v5  ;;  %v2744_v43 = vmax.f32 %v2680_v4, 0.0 }
 0x6f0   :  { %v2805_v31 = vadd.f32 %v2804_v21, %v2742_v49  ;;  %v2776_v14 = vmax.f32 %v2712_v2, 0.0  ;;  %v2683_v16 = vadd.f32 %v9778_v27, %v9588_v55  ;;  %v2715_v46 = vadd.f32 %v9778_v27, %v9696_v29 }
 0x6f1   :  { %v2842_v61 = vadd.f32 %v2841_v23, %v2774_v1  ;;  %v2745_v10 = vmax.f32 %v2681_v39, 0.0  ;;  %v2777_v6 = vmax.f32 %v2713_v28, 0.0  ;;  %v2684_v53 = vadd.f32 %v9778_v27, %v9592_v25 }
 0x6f2   :  { %v2806_v13 = vadd.f32 %v2805_v31, %v2743_v37  ;;  %v2716_v5 = vadd.f32 %v9778_v27, %v9700_v0  ;;  %v2746_v17 = vmax.f32 %v2682_v19, 0.0  ;;  %v2778_v30 = vmax.f32 %v2714_v8, 0.0 }
 0x6f3   :  { %v2843_v35 = vadd.f32 %v2842_v61, %v2775_v40  ;;  %v2685_v55 = vadd.f32 %v9778_v27, %v9596_v44  ;;  %v2717_v29 = vadd.f32 %v9778_v27, %v9704_v48  ;;  %v2747_v32 = vmax.f32 %v2683_v16, 0.0 }
 0x6f4   :  { %v2807_v3 = vadd.f32 %v2806_v13, %v2744_v43  ;;  %v2779_v63 = vmax.f32 %v2715_v46, 0.0  ;;  %v2686_v25 = vadd.f32 %v9778_v27, %v9600_v36  ;;  %v2718_v0 = vadd.f32 %v9778_v27, %v9708_v56 }
 0x6f5   :  { %v2844_v22 = vadd.f32 %v2843_v35, %v2776_v14  ;;  %v2748_v34 = vmax.f32 %v2684_v53, 0.0  ;;  %v2780_v4 = vmax.f32 %v2716_v5, 0.0  ;;  %v2687_v44 = vadd.f32 %v9778_v27, %v9604_v9 }
 0x6f6   :  { %v2808_v45 = vadd.f32 %v2807_v3, %v2745_v10  ;;  %v2719_v48 = vadd.f32 %v9778_v27, %v9712_v47  ;;  %v2749_v1 = vmax.f32 %v2685_v55, 0.0  ;;  %v2781_v21 = vmax.f32 %v2717_v29, 0.0 }
 0x6f7   :  { %v2845_v41 = vadd.f32 %v2844_v22, %v2777_v6  ;;  %v2688_v36 = vadd.f32 %v9778_v27, %v9608_v42  ;;  %v2720_v56 = vadd.f32 %v9778_v27, %v9716_v7  ;;  %v2750_v28 = vmax.f32 %v2686_v25, 0.0 }
 0x6f8   :  { %v2809_v50 = vadd.f32 %v2808_v45, %v2746_v17  ;;  %v2782_v37 = vmax.f32 %v2718_v0, 0.0  ;;  %v2689_v9 = vadd.f32 %v9778_v27, %v9612_v52  ;;  %v2721_v47 = vadd.f32 %v9778_v27, %v9720_v24 }
 0x6f9   :  { %v2846_v12 = vadd.f32 %v2845_v41, %v2778_v30  ;;  %v2751_v61 = vmax.f32 %v2687_v44, 0.0  ;;  %v2783_v19 = vmax.f32 %v2719_v48, 0.0  ;;  %v2690_v42 = vadd.f32 %v9778_v27, %v9616_v62 }
 0x6fa   :  { %v2810_v2 = vadd.f32 %v2809_v50, %v2747_v32  ;;  %v2722_v7 = vadd.f32 %v9778_v27, %v9724_v60  ;;  %v2752_v14 = vmax.f32 %v2688_v36, 0.0  ;;  %v2784_v13 = vmax.f32 %v2720_v56, 0.0 }
 0x6fb   :  { %v2847_v49 = vadd.f32 %v2846_v12, %v2779_v63  ;;  %v2691_v52 = vadd.f32 %v9778_v27, %v9620_v26  ;;  %v2723_v24 = vadd.f32 %v9778_v27, %v9728_v59  ;;  %v2753_v46 = vmax.f32 %v2689_v9, 0.0 }
 0x6fc   :  { %v2811_v23 = vadd.f32 %v2810_v2, %v2748_v34  ;;  %v2785_v10 = vmax.f32 %v2721_v47, 0.0  ;;  %v2692_v62 = vadd.f32 %v9778_v27, %v9624_v58  ;;  %v2724_v60 = vadd.f32 %v9778_v27, %v9732_v18  ;;  %v11626_v2 = vld [vmem:[#allocation141_spill] sm:$0xff] }
 0x6fd   :  { %v2848_v39 = vadd.f32 %v2847_v49, %v2780_v4  ;;  %v2754_v22 = vmax.f32 %v2690_v42, 0.0  ;;  %v2786_v53 = vmax.f32 %v2722_v7, 0.0  ;;  %v2693_v26 = vadd.f32 %v9778_v27, %v9628_v33  ;;  %v11625_v4 = vld [vmem:[#allocation55_spill] sm:$0xff]  ;;  %v11632_v7 = vld [vmem:[#allocation144_spill] sm:$0xff] }
 0x6fe   :  { %v2812_v40 = vadd.f32 %v2811_v23, %v2749_v1  ;;  %v2725_v59 = vadd.f32 %v9778_v27, %v9736_v15  ;;  %v2755_v30 = vmax.f32 %v2691_v52, 0.0  ;;  %v2787_v45 = vmax.f32 %v2723_v24, 0.0  ;;  %v11628_v23 = vld [vmem:[#allocation142_spill] sm:$0xff]  ;;  %v11633_v24 = vld [vmem:[#allocation59_spill] sm:$0xff] }
 0x6ff   :  { %v2849_v31 = vadd.f32 %v2848_v39, %v2781_v21  ;;  %v2694_v58 = vadd.f32 %v9778_v27, %v9632_v11  ;;  %v2726_v18 = vadd.f32 %v9778_v27, %v9740_v54  ;;  %v2756_v29 = vmax.f32 %v2692_v62, 0.0  ;;  %v11627_v21 = vld [vmem:[#allocation137_spill] sm:$0xff] }
 0x700   :  { %v2813_v8 = vadd.f32 %v2812_v40, %v2750_v28  ;;  %v2788_v32 = vmax.f32 %v2724_v60, 0.0  ;;  %v2695_v33 = vadd.f32 %v9778_v27, %v9636_v57  ;;  %v2727_v15 = vadd.f32 %v9778_v27, %v9744_v20 }
 0x701   :  { %v2850_v43 = vadd.f32 %v2849_v31, %v2782_v37  ;;  %v2757_v12 = vmax.f32 %v2693_v26, 0.0  ;;  %v2789_v25 = vmax.f32 %v2725_v59, 0.0  ;;  %v2696_v11 = vadd.f32 %v9778_v27, %v11625_v4  ;;  %v11629_v37 = vld [vmem:[#allocation138_spill] sm:$0xff]  ;;  %v11630_v31 = vld [vmem:[#allocation143_spill] sm:$0xff] }
 0x702   :  { %v2814_v35 = vadd.f32 %v2813_v8, %v2751_v61  ;;  %v2728_v54 = vadd.f32 %v9778_v27, %v11626_v2  ;;  %v2758_v49 = vmax.f32 %v2694_v58, 0.0  ;;  %v2790_v44 = vmax.f32 %v2726_v18, 0.0  ;;  %v11638_v18 = vld [vmem:[#allocation147_spill] sm:$0xff] }
 0x703   :  { %v2851_v16 = vadd.f32 %v2850_v43, %v2783_v19  ;;  %v2697_v57 = vadd.f32 %v9778_v27, %v11627_v21  ;;  %v2729_v20 = vadd.f32 %v9778_v27, %v11628_v23  ;;  %v2759_v39 = vmax.f32 %v2695_v33, 0.0  ;;  %v11631_v43 = vld [vmem:[#allocation53_spill] sm:$0xff] }
 0x704   :  { %v2815_v6 = vadd.f32 %v2814_v35, %v2752_v14  ;;  %v2791_v36 = vmax.f32 %v2727_v15, 0.0  ;;  %v2698_v40 = vadd.f32 %v9778_v27, %v11629_v37  ;;  %v2730_v9 = vadd.f32 %v9778_v27, %v11630_v31 }
 0x705   :  { %v2852_v3 = vadd.f32 %v2851_v16, %v2784_v13  ;;  %v2760_v47 = vmax.f32 %v2696_v11, 0.0  ;;  %v2792_v61 = vmax.f32 %v2728_v54, 0.0  ;;  %v2699_v42 = vadd.f32 %v9778_v27, %v11631_v43 }
 0x706   :  { %v2816_v5 = vadd.f32 %v2815_v6, %v2753_v46  ;;  %v2731_v14 = vadd.f32 %v9778_v27, %v11632_v7  ;;  %v2761_v13 = vmax.f32 %v2697_v57, 0.0  ;;  %v2793_v35 = vmax.f32 %v2729_v20, 0.0 }
 0x707   :  { %v2853_v17 = vadd.f32 %v2852_v3, %v2785_v10  ;;  %v2700_v46 = vadd.f32 %v9778_v27, %v11633_v24  ;;  %v11634_v10 = vld [vmem:[#allocation145_spill] sm:$0xff]  ;;  %v2762_v3 = vmax.f32 %v2698_v40, 0.0  ;;  %v2794_v62 = vmax.f32 %v2730_v9, 0.0  ;;  %v3403_v24 = vld [vmem:[#allocation10] ss:$0 sm:$0xff] }
 0x708   :  { %v2817_v41 = vadd.f32 %v2816_v5, %v2754_v22  ;;  %v2732_v6 = vadd.f32 %v9778_v27, %v11634_v10  ;;  %v2763_v59 = vmax.f32 %v2699_v42, 0.0 }
 0x709   :  { %v2854_v55 = vadd.f32 %v2853_v17, %v2786_v53  ;;  %v11635_v53 = vld [vmem:[#allocation139_spill] sm:$0xff]  ;;  %v11636_v17 = vld [vmem:[#allocation146_spill] sm:$0xff] }
 0x70a   :  { %v2818_v63 = vadd.f32 %v2817_v41, %v2755_v30  ;;  %v2701_v5 = vadd.f32 %v9778_v27, %v11635_v53  ;;  %v2733_v26 = vadd.f32 %v9778_v27, %v11636_v17  ;;  %v2795_v30 = vmax.f32 %v2731_v14, 0.0 }
 0x70b   :  { %v2855_v50 = vadd.f32 %v2854_v55, %v2787_v45  ;;  %v11637_v55 = vld [vmem:[#allocation140_spill] sm:$0xff] }
 0x70c   :  { %v2819_v0 = vadd.f32 %v2818_v63, %v2756_v29  ;;  %v2702_v58 = vadd.f32 %v9778_v27, %v11637_v55  ;;  %v2734_v29 = vadd.f32 %v9778_v27, %v11638_v18  ;;  %v2796_v63 = vmax.f32 %v2732_v6, 0.0 }
 0x70d   :  { %v2856_v34 = vadd.f32 %v2855_v50, %v2788_v32  ;;  %v2764_v32 = vmax.f32 %v2700_v46, 0.0  ;;  %v2765_v15 = vmax.f32 %v2701_v5, 0.0 }
 0x70e   :  { %v2820_v48 = vadd.f32 %v2819_v0, %v2757_v12  ;;  %v2797_v12 = vmax.f32 %v2733_v26, 0.0  ;;  %v2766_v54 = vmax.f32 %v2702_v58, 0.0 }
 0x70f   :  { %v2857_v1 = vadd.f32 %v2856_v34, %v2789_v25  ;;  %v11639_v25 = vld [vmem:[#allocation57_spill] sm:$0xff]  ;;  %v11640_v34 = vld [vmem:[#allocation148_spill] sm:$0xff] }
 0x710   :  { %v2821_v56 = vadd.f32 %v2820_v48, %v2758_v49  ;;  %v2703_v0 = vadd.f32 %v9778_v27, %v11639_v25  ;;  %v2735_v4 = vadd.f32 %v9778_v27, %v11640_v34  ;;  %v2798_v49 = vmax.f32 %v2734_v29, 0.0 }
 0x711   :  { %v2858_v28 = vadd.f32 %v2857_v1, %v2790_v44  ;;  %v2704_v44 = vadd.f32 %v9778_v27, %v9804_v38  ;;  %v2736_v48 = vadd.f32 %v9778_v27, %v9807_v51 }
 0x712   :  { %v2822_v19 = vadd.f32 %v2821_v56, %v2759_v39  ;;  %v2767_v57 = vmax.f32 %v2703_v0, 0.0  ;;  %v2799_v23 = vmax.f32 %v2735_v4, 0.0 }
 0x713   :  { %v2859_v8 = vadd.f32 %v2858_v28, %v2791_v36  ;;  %v2768_v36 = vmax.f32 %v2704_v44, 0.0  ;;  %v2800_v56 = vmax.f32 %v2736_v48, 0.0 }
 0x714   :  { %v2823_v16 = vadd.f32 %v2822_v19, %v2760_v47 }
 0x715   :  { %v2860_v52 = vadd.f32 %v2859_v8, %v2792_v61 }
 0x716   :  { %v2824_v60 = vadd.f32 %v2823_v16, %v2761_v13 }
 0x717   :  { %v2861_v22 = vadd.f32 %v2860_v52, %v2793_v35 }
 0x718   :  { %v2825_v45 = vadd.f32 %v2824_v60, %v2762_v3 }
 0x719   :  { %v2862_v41 = vadd.f32 %v2861_v22, %v2794_v62 }
 0x71a   :  { %v2826_v50 = vadd.f32 %v2825_v45, %v2763_v59 }
 0x71b   :  { %v2863_v33 = vadd.f32 %v2862_v41, %v2795_v30 }
 0x71c   :  { %v2827_v11 = vadd.f32 %v2826_v50, %v2764_v32 }
 0x71d   :  { %v2864_v2 = vadd.f32 %v2863_v33, %v2796_v63 }
 0x71e   :  { %v2828_v1 = vadd.f32 %v2827_v11, %v2765_v15 }
 0x71f   :  { %v2865_v21 = vadd.f32 %v2864_v2, %v2797_v12 }
 0x720   :  { %v2829_v20 = vadd.f32 %v2828_v1, %v2766_v54 }
 0x721   :  { %v2866_v39 = vadd.f32 %v2865_v21, %v2798_v49 }
 0x722   :  { %v2830_v28 = vadd.f32 %v2829_v20, %v2767_v57 }
 0x723   :  { %v2867_v37 = vadd.f32 %v2866_v39, %v2799_v23 }
 0x724   :  { %v2831_v40 = vadd.f32 %v2830_v28, %v2768_v36 }
 0x725   :  { %v2868_v31 = vadd.f32 %v2867_v37, %v2800_v56 }
 0x726   :  { %v2832_v9 = vrot.slane %v2831_v40, 4 }
 0x727   :  { %v2869_v47 = vrot.slane %v2868_v31, 4 }
 0x728   :  { %v2833_v61 = vadd.f32 %v2832_v9, %v2831_v40 }
 0x729   :  { %v2870_v19 = vadd.f32 %v2869_v47, %v2868_v31 }
 0x72a   :  { %v2834_v38 = vrot.slane %v2833_v61, 2 }
 0x72b   :  { %v2871_v8 = vrot.slane %v2870_v19, 2 }
 0x72c   :  { %v2835_v43 = vadd.f32 %v2834_v38, %v2833_v61 }
 0x72d   :  { %v2872_v27 = vadd.f32 %v2871_v8, %v2870_v19 }
 0x72e   :  { %v2836_v51 = vrot.slane %v2835_v43, 1 }
 0x72f   :  { %v2873_v42 = vrot.slane %v2872_v27, 1 }
 0x730   :  { %v2837_v7 = vadd.f32 %v2836_v51, %v2835_v43 }
 0x731   :  { %v2874_v14 = vadd.f32 %v2873_v42, %v2872_v27 }
 0x732   :  { %v2875_v13 = vmul.f32 0.00390625, %v2837_v7 }
 0x733   :  { %v2876_v35 = vmul.f32 0.00390625, %v2874_v14 }
 0x735   :  { %v2879_v16 = vsel %vm804_vm1, %v2876_v35, %v2875_v13 }
 0x736   :  { %3292 = vmatmul.mubr.f32.vlgmr.msra.gmra.mrb[24].mxu1 %v2879_v16 }
 0x809   :  { %v2947_v52 = vpop.f32.mrb[24].mxu1 }
 0x80a   :  { %v2948_v46 = vadd.f32 %v3403_v24, %v2947_v52  ;;  %v3293_v10 = vpop.f32.mrb[25].mxu1 }
 0x80c   :  { %2951 = vst [vmem:[#allocation13] sm:$0x3] %v2948_v46 }
 0x80d   :  { %3547 = shalt.err (!%p3544_p10)
}
 0x80e   :  { %s3548_s22 = scalar_lea.hbm %s9927_s6, 32 }
 0x80f   :  { %p3549_p11 = scmp.ne.s32.totalorder %s9927_s6, %s3548_s22  ;;  %p3552_p12 = scmp.lt.u32.totalorder %s3548_s22, %s9927_s6 }
 0x811   :  { %p3554_p13 = pnand %p3552_p12, %p3549_p11 }
 0x813   :  { %3557 = shalt.err (!%p3554_p13)
}
 0x814   :  { %2961 = dma.vmem_to_hbm [thread:$0]  %s2959_s9, 32, %s9927_s6, [#allocation4]  }
 0x815   :  { %3566 = dma.done.wait [#allocation4], 32  }
 0x816   :  { %3567 = vsyncadd [#allocation4], 4294967264 }
 0x817   :  { %2965 = vsyncpa [#allocation3], 1 }
 0x818   :  { %2966 = vsyncpa [#allocation6], 1 }
 0x819   :  { %2967 = vsyncpa [#allocation9], 1 }
 0x81a   :  { %2968 = vsyncpa [#allocation12], 1 }
 0x81b   :  { %2969 = vsyncpa [#allocation4], 1 }

</bundles_post_ra>
